<compile_context>
chip_gen: v6e
topology: v6e:2x2x1
jax: 0.10.0
libtpu: 0.0.40
codegen_flags: <defaults>
</compile_context>

<pallas_src>
import jax
import jax.numpy as jnp
from jax.experimental import pallas as pl
from jax.experimental.pallas import tpu as pltpu


def _round_up(x, m):
    return (x + m - 1) // m * m


def _pick_tile(n, candidates=(256, 128, 64, 32, 16)):
    for c in candidates:
        if n % c == 0:
            return c
    return n


# ---------------------------------------------------------------------------
# Pass 1: batched MXU matmul (bf16 in, f32 accumulate) with fused per-channel
#         partial BatchNorm statistics (sum, sum of squares).
# ---------------------------------------------------------------------------
def _mm_stats_kernel(a_ref, b_ref, y_ref, s_ref):
    acc = jnp.dot(a_ref[...], b_ref[...], preferred_element_type=jnp.float32)
    y_ref[...] = acc.astype(y_ref.dtype)
    s_ref[...] = jnp.concatenate(
        [jnp.sum(acc, axis=0, keepdims=True),
         jnp.sum(acc * acc, axis=0, keepdims=True)], axis=0)


# ---------------------------------------------------------------------------
# Pass 2: BatchNorm apply (y * scale + shift) + ReLU, emits bf16.
# ---------------------------------------------------------------------------
def _bn_relu_kernel(y_ref, sc_ref, sh_ref, o_ref):
    y = y_ref[...].astype(jnp.float32)
    o_ref[...] = jnp.maximum(y * sc_ref[...] + sh_ref[...], 0.0).astype(o_ref.dtype)


def batched_matmul_bn_relu(A, B, gamma, beta, eps=1e-5):
    """y[p] = A[p] @ B[p]; BatchNorm over all P*M rows per channel C; ReLU.

    A: (P, M, K), B: (P, K, C) -> (P, M, C) bfloat16.
    BatchNorm uses training-mode (biased) batch statistics, PyTorch default for a
    freshly constructed nn.BatchNorm2d.
    """
    P, M, K = A.shape
    C = B.shape[-1]
    A = A.astype(jnp.bfloat16)
    B = B.astype(jnp.bfloat16)

    Kp = _round_up(K, 128)
    Mp = _round_up(M, 16)
    tm = _pick_tile(Mp)
    mb = Mp // tm

    if (Mp, Kp) != (M, K):
        A = jnp.pad(A, ((0, 0), (0, Mp - M), (0, Kp - K)))
    if Kp != K:
        B = jnp.pad(B, ((0, 0), (0, Kp - K), (0, 0)))

    y, part = pl.pallas_call(
        _mm_stats_kernel,
        out_shape=(jax.ShapeDtypeStruct((P, Mp, C), jnp.bfloat16),
                   jax.ShapeDtypeStruct((P, mb, 2, C), jnp.float32)),
        grid_spec=pltpu.PrefetchScalarGridSpec(
            num_scalar_prefetch=0,
            grid=(P, mb),
            in_specs=[pl.BlockSpec((None, tm, Kp), lambda p, m: (p, m, 0)),
                      pl.BlockSpec((None, Kp, C), lambda p, m: (p, 0, 0))],
            out_specs=[pl.BlockSpec((None, tm, C), lambda p, m: (p, m, 0)),
                       pl.BlockSpec((None, None, 2, C), lambda p, m: (p, m, 0, 0))],
        ),
        compiler_params=pltpu.CompilerParams(
            dimension_semantics=("parallel", "parallel")),
    )(A, B)

    # Padded rows of A are zero -> contribute 0 to both sums; divide by true count.
    stats = jnp.sum(part, axis=(0, 1))                     # (2, C)
    count = P * M
    mean = stats[0] / count
    var = jnp.maximum(stats[1] / count - mean * mean, 0.0)  # biased (train-mode) var
    scale = (gamma * jax.lax.rsqrt(var + eps)).astype(jnp.float32)
    shift = (beta - mean * scale).astype(jnp.float32)

    yn = pl.pallas_call(
        _bn_relu_kernel,
        out_shape=jax.ShapeDtypeStruct((P, Mp, C), jnp.bfloat16),
        grid_spec=pltpu.PrefetchScalarGridSpec(
            num_scalar_prefetch=0,
            grid=(P, mb),
            in_specs=[pl.BlockSpec((None, tm, C), lambda p, m: (p, m, 0)),
                      pl.BlockSpec((1, C), lambda p, m: (0, 0)),
                      pl.BlockSpec((1, C), lambda p, m: (0, 0))],
            out_specs=pl.BlockSpec((None, tm, C), lambda p, m: (p, m, 0)),
        ),
        compiler_params=pltpu.CompilerParams(
            dimension_semantics=("parallel", "parallel")),
    )(y, scale.reshape(1, C), shift.reshape(1, C))

    return yn[:, :M] if Mp != M else yn


# ---------------------------------------------------------------------------
# ConvTranspose2d(k=4, s=2, p=1) output-parity decomposition.
# Output row 2m+r:  r=0 uses input rows {m-1, m} with kernel rows {3, 1}
#                   r=1 uses input rows {m, m+1} with kernel rows {2, 0}
# ---------------------------------------------------------------------------
_KIDX = ((3, 1), (2, 0))   # _KIDX[output_parity][window_offset] -> kernel tap index


def first_layer_bn_relu(z2d, w, gamma, beta):
    """ConvTranspose2d(100,512,4,1,0) on a 1x1 input + BN + ReLU.
    z2d: (N,100); w: (100,512,4,4) -> (N,4,4,512) bf16 (NHWC)."""
    Cin, Cout, k, _ = w.shape
    N = z2d.shape[0]
    A = jnp.broadcast_to(z2d[None], (k * k, N, Cin))          # same z for all 16 taps
    B = jnp.transpose(w, (2, 3, 0, 1)).reshape(k * k, Cin, Cout)
    yn = batched_matmul_bn_relu(A, B, gamma, beta)            # (16, N, Cout)
    return jnp.transpose(yn, (1, 0, 2)).reshape(N, k, k, Cout)


def conv_t2_bn_relu(x, w, gamma, beta):
    """ConvTranspose2d(Cin,Cout,4,2,1,bias=False) + BN + ReLU on NHWC input.
    x: (N,H,W,Cin) bf16; w: (Cin,Cout,4,4) -> (N,2H,2W,Cout) bf16."""
    N, H, W, Cin = x.shape
    Cout = w.shape[1]
    M = N * H * W
    xp = jnp.pad(x, ((0, 0), (1, 1), (1, 1), (0, 0)))         # zero halo of 1
    As, Bs = [], []
    for rh in (0, 1):
        for rw in (0, 1):
            cols = [xp[:, rh + dy: rh + dy + H, rw + dx: rw + dx + W, :]
                    for dy in (0, 1) for dx in (0, 1)]
            As.append(jnp.concatenate(cols, axis=-1).reshape(M, 4 * Cin))
            Bs.append(jnp.stack([w[:, :, _KIDX[rh][dy], _KIDX[rw][dx]]
                                 for dy in (0, 1) for dx in (0, 1)],
                                axis=0).reshape(4 * Cin, Cout))
    A = jnp.stack(As, axis=0)                                 # (4, M, 4*Cin)
    B = jnp.stack(Bs, axis=0)                                 # (4, 4*Cin, Cout)
    yn = batched_matmul_bn_relu(A, B, gamma, beta)            # (4, M, Cout)
    o = yn.reshape(2, 2, N, H, W, Cout).transpose(2, 3, 0, 4, 1, 5)
    return o.reshape(N, 2 * H, 2 * W, Cout)


# ---------------------------------------------------------------------------
# Final layer: transposed (lane-dense) formulation with fused tanh.
# ---------------------------------------------------------------------------
def _final_kernel(w_ref, a_ref, o_ref):
    acc = jnp.dot(w_ref[...], a_ref[...], preferred_element_type=jnp.float32)
    o_ref[...] = jnp.tanh(acc)          # Tanh fused into the matmul epilogue


def conv_t2_tanh_final(x, w):
    """Final ConvTranspose2d(Cin,3,4,2,1) + Tanh.
    x: (N,H,W,Cin) bf16; w: (Cin,3,4,4) -> NCHW (N,3,2H,2W) f32."""
    N, H, W, Cin = x.shape
    Cout = w.shape[1]
    M = N * H * W
    K = 4 * Cin
    xp = jnp.pad(x, ((0, 0), (1, 1), (1, 1), (0, 0)))
    xcf = jnp.transpose(xp, (3, 0, 1, 2))                     # (Cin, N, H+2, W+2)
    As, Bs = [], []
    for rh in (0, 1):
        for rw in (0, 1):
            a = jnp.concatenate(
                [xcf[:, :, rh + dy: rh + dy + H, rw + dx: rw + dx + W]
                 for dy in (0, 1) for dx in (0, 1)], axis=0)  # (4*Cin, N, H, W)
            As.append(a.reshape(K, M))
            b = jnp.stack([w[:, :, _KIDX[rh][dy], _KIDX[rw][dx]]
                           for dy in (0, 1) for dx in (0, 1)], axis=0)
            Bs.append(b.reshape(K, Cout).T)                   # (Cout, 4*Cin)
    A = jnp.stack(As, axis=0).astype(jnp.bfloat16)            # (4, K, M)
    B = jnp.stack(Bs, axis=0).astype(jnp.bfloat16)            # (4, Cout, K)

    T = M
    for cand in (1024, 512, 256, 128):
        if M % cand == 0:
            T = cand
            break
    out = pl.pallas_call(
        _final_kernel,
        out_shape=jax.ShapeDtypeStruct((4, Cout, M), jnp.float32),
        grid_spec=pltpu.PrefetchScalarGridSpec(
            num_scalar_prefetch=0,
            grid=(4, M // T),
            in_specs=[pl.BlockSpec((None, Cout, K), lambda p, t: (p, 0, 0)),
                      pl.BlockSpec((None, K, T), lambda p, t: (p, 0, t))],
            out_specs=pl.BlockSpec((None, Cout, T), lambda p, t: (p, 0, t)),
        ),
        compiler_params=pltpu.CompilerParams(
            dimension_semantics=("parallel", "parallel")),
    )(B, A)
    # Parity interleave directly into NCHW (N, 3, 2H, 2W).
    o = out.reshape(2, 2, Cout, N, H, W)
    return o.transpose(3, 2, 4, 0, 5, 1).reshape(N, Cout, 2 * H, 2 * W)


# ---------------------------------------------------------------------------
# Generator forward
# ---------------------------------------------------------------------------
def make_params(key):
    ks = jax.random.split(key, 5)

    def w(k, cin, cout):
        return jax.random.normal(k, (cin, cout, 4, 4), jnp.float32) * 0.02

    return {
        "w1": w(ks[0], 100, 512), "w2": w(ks[1], 512, 256),
        "w3": w(ks[2], 256, 128), "w4": w(ks[3], 128, 64),
        "w5": w(ks[4], 64, 3),
        # BatchNorm2d affine params (PyTorch init: weight=1, bias=0)
        "g1": jnp.ones((512,), jnp.float32), "b1": jnp.zeros((512,), jnp.float32),
        "g2": jnp.ones((256,), jnp.float32), "b2": jnp.zeros((256,), jnp.float32),
        "g3": jnp.ones((128,), jnp.float32), "b3": jnp.zeros((128,), jnp.float32),
        "g4": jnp.ones((64,), jnp.float32),  "b4": jnp.zeros((64,), jnp.float32),
    }


@jax.jit
def generator_forward(z_nchw, params):
    N = z_nchw.shape[0]
    z2d = z_nchw.reshape(N, 100).astype(jnp.float32)

    x = first_layer_bn_relu(z2d, params["w1"], params["g1"], params["b1"])  # (N,4,4,512)
    x = conv_t2_bn_relu(x, params["w2"], params["g2"], params["b2"])        # (N,8,8,256)
    x = conv_t2_bn_relu(x, params["w3"], params["g3"], params["b3"])        # (N,16,16,128)
    x = conv_t2_bn_relu(x, params["w4"], params["g4"], params["b4"])        # (N,32,32,64)
    return conv_t2_tanh_final(x, params["w5"])                              # (N,3,64,64)


if __name__ == "__main__":
    key = jax.random.PRNGKey(0)
    k_z, k_w = jax.random.split(key)
    z = jax.random.normal(k_z, (2, 100, 1, 1), jnp.float32)   # latent noise, NCHW
    params = make_params(k_w)

    out = generator_forward(z, params)
    out = jax.block_until_ready(out)
    assert out.shape == (2, 3, 64, 64), out.shape
    assert bool(jnp.isfinite(out).all())
    print("KERNEL_OK")
</pallas_src>

<mosaic_0001>
module attributes {stable_mosaic.version = 11 : i64} {
  func.func @_mm_stats_kernel(%arg0: i32, %arg1: i32, %arg2: memref<1x16x128xbf16, #tpu.memory_space<vmem>>, %arg3: memref<1x128x512xbf16, #tpu.memory_space<vmem>>, %arg4: memref<1x16x512xbf16, #tpu.memory_space<vmem>>, %arg5: memref<1x1x2x512xf32, #tpu.memory_space<vmem>>) attributes {dimension_semantics = [#tpu.dimension_semantics<parallel>, #tpu.dimension_semantics<parallel>], iteration_bounds = array<i64: 16, 1>, scalar_prefetch = 0 : i64, scratch_operands = 0 : i64, tpu.core_type = #tpu.core_type<tc>, window_params = [{transform_indices = @transform_0, window_bounds = array<i64: 1, 16, 128>}, {transform_indices = @transform_1, window_bounds = array<i64: 1, 128, 512>}, {transform_indices = @transform_2, window_bounds = array<i64: 1, 16, 512>}, {transform_indices = @transform_3, window_bounds = array<i64: 1, 1, 2, 512>}]} {
    %c0 = arith.constant 0 : index
    %c0_0 = arith.constant 0 : index
    %c0_1 = arith.constant 0 : index
    %0 = vector.load %arg2[%c0, %c0_0, %c0_1] : memref<1x16x128xbf16, #tpu.memory_space<vmem>>, vector<1x16x128xbf16>
    %1 = vector.shape_cast %0 : vector<1x16x128xbf16> to vector<16x128xbf16>
    %c0_2 = arith.constant 0 : index
    %c0_3 = arith.constant 0 : index
    %c0_4 = arith.constant 0 : index
    %2 = vector.load %arg3[%c0_2, %c0_3, %c0_4] : memref<1x128x512xbf16, #tpu.memory_space<vmem>>, vector<1x128x512xbf16>
    %3 = vector.shape_cast %2 : vector<1x128x512xbf16> to vector<128x512xbf16>
    %cst = arith.constant dense<0.000000e+00> : vector<16x512xf32>
    %4 = tpu.matmul %1, %3, %cst {dimension_numbers = #tpu.dot_dimension_numbers<[1], [0], [0], [1], [0, 0, 1, 1], [], []>} : vector<16x128xbf16>, vector<128x512xbf16>, vector<16x512xf32> -> vector<16x512xf32>
    %5 = arith.truncf %4 : vector<16x512xf32> to vector<16x512xbf16>
    %c0_5 = arith.constant 0 : index
    %c0_6 = arith.constant 0 : index
    %c0_7 = arith.constant 0 : index
    %6 = vector.load %arg4[%c0_5, %c0_6, %c0_7] : memref<1x16x512xbf16, #tpu.memory_space<vmem>>, vector<1x16x512xbf16>
    %7 = vector.shape_cast %6 : vector<1x16x512xbf16> to vector<16x512xbf16>
    %8 = vector.shape_cast %5 : vector<16x512xbf16> to vector<1x16x512xbf16>
    tpu.vector_store %arg4[%c0_5, %c0_6, %c0_7], %8 {strides = array<i32>} : memref<1x16x512xbf16, #tpu.memory_space<vmem>>, vector<1x16x512xbf16>,
    %cst_8 = arith.constant dense<0.000000e+00> : vector<512xf32>
    %9 = vector.multi_reduction <add>, %4, %cst_8 [0] : vector<16x512xf32> to vector<512xf32>
    %10 = vector.shape_cast %9 : vector<512xf32> to vector<1x512xf32>
    %11 = arith.mulf %4, %4 : vector<16x512xf32>
    %cst_9 = arith.constant dense<0.000000e+00> : vector<512xf32>
    %12 = vector.multi_reduction <add>, %11, %cst_9 [0] : vector<16x512xf32> to vector<512xf32>
    %13 = vector.shape_cast %12 : vector<512xf32> to vector<1x512xf32>
    %14 = tpu.concatenate %10, %13 in 0 : vector<1x512xf32>, vector<1x512xf32> -> vector<2x512xf32>
    %c0_10 = arith.constant 0 : index
    %c0_11 = arith.constant 0 : index
    %c0_12 = arith.constant 0 : index
    %c0_13 = arith.constant 0 : index
    %15 = vector.load %arg5[%c0_10, %c0_11, %c0_12, %c0_13] : memref<1x1x2x512xf32, #tpu.memory_space<vmem>>, vector<1x1x2x512xf32>
    %16 = vector.shape_cast %15 : vector<1x1x2x512xf32> to vector<2x512xf32>
    %17 = vector.shape_cast %14 : vector<2x512xf32> to vector<1x1x2x512xf32>
    tpu.vector_store %arg5[%c0_10, %c0_11, %c0_12, %c0_13], %17 {strides = array<i32>} : memref<1x1x2x512xf32, #tpu.memory_space<vmem>>, vector<1x1x2x512xf32>,
    return
  }
  func.func @transform_0(%arg0: i32, %arg1: i32) -> (i32, i32, i32) {
    %c0_i32 = arith.constant 0 : i32
    %c0_i32_0 = arith.constant 0 : i32
    return %arg0, %arg1, %c0_i32 : i32, i32, i32
  }
  func.func @transform_1(%arg0: i32, %arg1: i32) -> (i32, i32, i32) {
    %c0_i32 = arith.constant 0 : i32
    %c0_i32_0 = arith.constant 0 : i32
    %c0_i32_1 = arith.constant 0 : i32
    return %arg0, %c0_i32, %c0_i32_0 : i32, i32, i32
  }
  func.func @transform_2(%arg0: i32, %arg1: i32) -> (i32, i32, i32) {
    %c0_i32 = arith.constant 0 : i32
    %c0_i32_0 = arith.constant 0 : i32
    return %arg0, %arg1, %c0_i32 : i32, i32, i32
  }
  func.func @transform_3(%arg0: i32, %arg1: i32) -> (i32, i32, i32, i32) {
    %c0_i32 = arith.constant 0 : i32
    %c0_i32_0 = arith.constant 0 : i32
    %c0_i32_1 = arith.constant 0 : i32
    return %arg0, %arg1, %c0_i32, %c0_i32_0 : i32, i32, i32, i32
  }
}

module attributes {stable_mosaic.version = 11 : i64} {
  func.func @_bn_relu_kernel(%arg0: i32, %arg1: i32, %arg2: memref<1x16x512xbf16, #tpu.memory_space<vmem>>, %arg3: memref<1x512xf32, #tpu.memory_space<vmem>>, %arg4: memref<1x512xf32, #tpu.memory_space<vmem>>, %arg5: memref<1x16x512xbf16, #tpu.memory_space<vmem>>) attributes {dimension_semantics = [#tpu.dimension_semantics<parallel>, #tpu.dimension_semantics<parallel>], iteration_bounds = array<i64: 16, 1>, scalar_prefetch = 0 : i64, scratch_operands = 0 : i64, tpu.core_type = #tpu.core_type<tc>, window_params = [{transform_indices = @transform_0, window_bounds = array<i64: 1, 16, 512>}, {pipeline_mode = #tpu.pipeline_mode<synchronous>, transform_indices = @transform_1, window_bounds = array<i64: 1, 512>}, {pipeline_mode = #tpu.pipeline_mode<synchronous>, transform_indices = @transform_2, window_bounds = array<i64: 1, 512>}, {transform_indices = @transform_3, window_bounds = array<i64: 1, 16, 512>}]} {
    %c0 = arith.constant 0 : index
    %c0_0 = arith.constant 0 : index
    %c0_1 = arith.constant 0 : index
    %0 = vector.load %arg2[%c0, %c0_0, %c0_1] : memref<1x16x512xbf16, #tpu.memory_space<vmem>>, vector<1x16x512xbf16>
    %1 = vector.shape_cast %0 : vector<1x16x512xbf16> to vector<16x512xbf16>
    %2 = arith.extf %1 : vector<16x512xbf16> to vector<16x512xf32>
    %c0_2 = arith.constant 0 : index
    %c0_3 = arith.constant 0 : index
    %3 = vector.load %arg3[%c0_2, %c0_3] : memref<1x512xf32, #tpu.memory_space<vmem>>, vector<1x512xf32>
    %4 = vector.broadcast %3 : vector<1x512xf32> to vector<16x512xf32>
    %5 = arith.mulf %2, %4 : vector<16x512xf32>
    %c0_4 = arith.constant 0 : index
    %c0_5 = arith.constant 0 : index
    %6 = vector.load %arg4[%c0_4, %c0_5] : memref<1x512xf32, #tpu.memory_space<vmem>>, vector<1x512xf32>
    %7 = vector.broadcast %6 : vector<1x512xf32> to vector<16x512xf32>
    %8 = arith.addf %5, %7 : vector<16x512xf32>
    %cst = arith.constant 0.000000e+00 : f32
    %9 = vector.broadcast %cst : f32 to vector<16x512xf32>
    %10 = arith.maximumf %8, %9 : vector<16x512xf32>
    %11 = arith.truncf %10 : vector<16x512xf32> to vector<16x512xbf16>
    %c0_6 = arith.constant 0 : index
    %c0_7 = arith.constant 0 : index
    %c0_8 = arith.constant 0 : index
    %12 = vector.load %arg5[%c0_6, %c0_7, %c0_8] : memref<1x16x512xbf16, #tpu.memory_space<vmem>>, vector<1x16x512xbf16>
    %13 = vector.shape_cast %12 : vector<1x16x512xbf16> to vector<16x512xbf16>
    %14 = vector.shape_cast %11 : vector<16x512xbf16> to vector<1x16x512xbf16>
    tpu.vector_store %arg5[%c0_6, %c0_7, %c0_8], %14 {strides = array<i32>} : memref<1x16x512xbf16, #tpu.memory_space<vmem>>, vector<1x16x512xbf16>,
    return
  }
  func.func @transform_0(%arg0: i32, %arg1: i32) -> (i32, i32, i32) {
    %c0_i32 = arith.constant 0 : i32
    %c0_i32_0 = arith.constant 0 : i32
    return %arg0, %arg1, %c0_i32 : i32, i32, i32
  }
  func.func @transform_1(%arg0: i32, %arg1: i32) -> (i32, i32) {
    %c0_i32 = arith.constant 0 : i32
    %c0_i32_0 = arith.constant 0 : i32
    %c0_i32_1 = arith.constant 0 : i32
    return %c0_i32, %c0_i32_0 : i32, i32
  }
  func.func @transform_2(%arg0: i32, %arg1: i32) -> (i32, i32) {
    %c0_i32 = arith.constant 0 : i32
    %c0_i32_0 = arith.constant 0 : i32
    %c0_i32_1 = arith.constant 0 : i32
    return %c0_i32, %c0_i32_0 : i32, i32
  }
  func.func @transform_3(%arg0: i32, %arg1: i32) -> (i32, i32, i32) {
    %c0_i32 = arith.constant 0 : i32
    %c0_i32_0 = arith.constant 0 : i32
    return %arg0, %arg1, %c0_i32 : i32, i32, i32
  }
}

module attributes {stable_mosaic.version = 11 : i64} {
  func.func @_mm_stats_kernel(%arg0: i32, %arg1: i32, %arg2: memref<1x32x2048xbf16, #tpu.memory_space<vmem>>, %arg3: memref<1x2048x256xbf16, #tpu.memory_space<vmem>>, %arg4: memref<1x32x256xbf16, #tpu.memory_space<vmem>>, %arg5: memref<1x1x2x256xf32, #tpu.memory_space<vmem>>) attributes {dimension_semantics = [#tpu.dimension_semantics<parallel>, #tpu.dimension_semantics<parallel>], iteration_bounds = array<i64: 4, 1>, scalar_prefetch = 0 : i64, scratch_operands = 0 : i64, tpu.core_type = #tpu.core_type<tc>, window_params = [{transform_indices = @transform_0, window_bounds = array<i64: 1, 32, 2048>}, {transform_indices = @transform_1, window_bounds = array<i64: 1, 2048, 256>}, {transform_indices = @transform_2, window_bounds = array<i64: 1, 32, 256>}, {transform_indices = @transform_3, window_bounds = array<i64: 1, 1, 2, 256>}]} {
    %c0 = arith.constant 0 : index
    %c0_0 = arith.constant 0 : index
    %c0_1 = arith.constant 0 : index
    %0 = vector.load %arg2[%c0, %c0_0, %c0_1] : memref<1x32x2048xbf16, #tpu.memory_space<vmem>>, vector<1x32x2048xbf16>
    %1 = vector.shape_cast %0 : vector<1x32x2048xbf16> to vector<32x2048xbf16>
    %c0_2 = arith.constant 0 : index
    %c0_3 = arith.constant 0 : index
    %c0_4 = arith.constant 0 : index
    %2 = vector.load %arg3[%c0_2, %c0_3, %c0_4] : memref<1x2048x256xbf16, #tpu.memory_space<vmem>>, vector<1x2048x256xbf16>
    %3 = vector.shape_cast %2 : vector<1x2048x256xbf16> to vector<2048x256xbf16>
    %cst = arith.constant dense<0.000000e+00> : vector<32x256xf32>
    %4 = tpu.matmul %1, %3, %cst {dimension_numbers = #tpu.dot_dimension_numbers<[1], [0], [0], [1], [0, 0, 1, 1], [], []>} : vector<32x2048xbf16>, vector<2048x256xbf16>, vector<32x256xf32> -> vector<32x256xf32>
    %5 = arith.truncf %4 : vector<32x256xf32> to vector<32x256xbf16>
    %c0_5 = arith.constant 0 : index
    %c0_6 = arith.constant 0 : index
    %c0_7 = arith.constant 0 : index
    %6 = vector.load %arg4[%c0_5, %c0_6, %c0_7] : memref<1x32x256xbf16, #tpu.memory_space<vmem>>, vector<1x32x256xbf16>
    %7 = vector.shape_cast %6 : vector<1x32x256xbf16> to vector<32x256xbf16>
    %8 = vector.shape_cast %5 : vector<32x256xbf16> to vector<1x32x256xbf16>
    tpu.vector_store %arg4[%c0_5, %c0_6, %c0_7], %8 {strides = array<i32>} : memref<1x32x256xbf16, #tpu.memory_space<vmem>>, vector<1x32x256xbf16>,
    %cst_8 = arith.constant dense<0.000000e+00> : vector<256xf32>
    %9 = vector.multi_reduction <add>, %4, %cst_8 [0] : vector<32x256xf32> to vector<256xf32>
    %10 = vector.shape_cast %9 : vector<256xf32> to vector<1x256xf32>
    %11 = arith.mulf %4, %4 : vector<32x256xf32>
    %cst_9 = arith.constant dense<0.000000e+00> : vector<256xf32>
    %12 = vector.multi_reduction <add>, %11, %cst_9 [0] : vector<32x256xf32> to vector<256xf32>
    %13 = vector.shape_cast %12 : vector<256xf32> to vector<1x256xf32>
    %14 = tpu.concatenate %10, %13 in 0 : vector<1x256xf32>, vector<1x256xf32> -> vector<2x256xf32>
    %c0_10 = arith.constant 0 : index
    %c0_11 = arith.constant 0 : index
    %c0_12 = arith.constant 0 : index
    %c0_13 = arith.constant 0 : index
    %15 = vector.load %arg5[%c0_10, %c0_11, %c0_12, %c0_13] : memref<1x1x2x256xf32, #tpu.memory_space<vmem>>, vector<1x1x2x256xf32>
    %16 = vector.shape_cast %15 : vector<1x1x2x256xf32> to vector<2x256xf32>
    %17 = vector.shape_cast %14 : vector<2x256xf32> to vector<1x1x2x256xf32>
    tpu.vector_store %arg5[%c0_10, %c0_11, %c0_12, %c0_13], %17 {strides = array<i32>} : memref<1x1x2x256xf32, #tpu.memory_space<vmem>>, vector<1x1x2x256xf32>,
    return
  }
  func.func @transform_0(%arg0: i32, %arg1: i32) -> (i32, i32, i32) {
    %c0_i32 = arith.constant 0 : i32
    %c0_i32_0 = arith.constant 0 : i32
    return %arg0, %arg1, %c0_i32 : i32, i32, i32
  }
  func.func @transform_1(%arg0: i32, %arg1: i32) -> (i32, i32, i32) {
    %c0_i32 = arith.constant 0 : i32
    %c0_i32_0 = arith.constant 0 : i32
    %c0_i32_1 = arith.constant 0 : i32
    return %arg0, %c0_i32, %c0_i32_0 : i32, i32, i32
  }
  func.func @transform_2(%arg0: i32, %arg1: i32) -> (i32, i32, i32) {
    %c0_i32 = arith.constant 0 : i32
    %c0_i32_0 = arith.constant 0 : i32
    return %arg0, %arg1, %c0_i32 : i32, i32, i32
  }
  func.func @transform_3(%arg0: i32, %arg1: i32) -> (i32, i32, i32, i32) {
    %c0_i32 = arith.constant 0 : i32
    %c0_i32_0 = arith.constant 0 : i32
    %c0_i32_1 = arith.constant 0 : i32
    return %arg0, %arg1, %c0_i32, %c0_i32_0 : i32, i32, i32, i32
  }
}

module attributes {stable_mosaic.version = 11 : i64} {
  func.func @_bn_relu_kernel(%arg0: i32, %arg1: i32, %arg2: memref<1x32x256xbf16, #tpu.memory_space<vmem>>, %arg3: memref<1x256xf32, #tpu.memory_space<vmem>>, %arg4: memref<1x256xf32, #tpu.memory_space<vmem>>, %arg5: memref<1x32x256xbf16, #tpu.memory_space<vmem>>) attributes {dimension_semantics = [#tpu.dimension_semantics<parallel>, #tpu.dimension_semantics<parallel>], iteration_bounds = array<i64: 4, 1>, scalar_prefetch = 0 : i64, scratch_operands = 0 : i64, tpu.core_type = #tpu.core_type<tc>, window_params = [{transform_indices = @transform_0, window_bounds = array<i64: 1, 32, 256>}, {pipeline_mode = #tpu.pipeline_mode<synchronous>, transform_indices = @transform_1, window_bounds = array<i64: 1, 256>}, {pipeline_mode = #tpu.pipeline_mode<synchronous>, transform_indices = @transform_2, window_bounds = array<i64: 1, 256>}, {transform_indices = @transform_3, window_bounds = array<i64: 1, 32, 256>}]} {
    %c0 = arith.constant 0 : index
    %c0_0 = arith.constant 0 : index
    %c0_1 = arith.constant 0 : index
    %0 = vector.load %arg2[%c0, %c0_0, %c0_1] : memref<1x32x256xbf16, #tpu.memory_space<vmem>>, vector<1x32x256xbf16>
    %1 = vector.shape_cast %0 : vector<1x32x256xbf16> to vector<32x256xbf16>
    %2 = arith.extf %1 : vector<32x256xbf16> to vector<32x256xf32>
    %c0_2 = arith.constant 0 : index
    %c0_3 = arith.constant 0 : index
    %3 = vector.load %arg3[%c0_2, %c0_3] : memref<1x256xf32, #tpu.memory_space<vmem>>, vector<1x256xf32>
    %4 = vector.broadcast %3 : vector<1x256xf32> to vector<32x256xf32>
    %5 = arith.mulf %2, %4 : vector<32x256xf32>
    %c0_4 = arith.constant 0 : index
    %c0_5 = arith.constant 0 : index
    %6 = vector.load %arg4[%c0_4, %c0_5] : memref<1x256xf32, #tpu.memory_space<vmem>>, vector<1x256xf32>
    %7 = vector.broadcast %6 : vector<1x256xf32> to vector<32x256xf32>
    %8 = arith.addf %5, %7 : vector<32x256xf32>
    %cst = arith.constant 0.000000e+00 : f32
    %9 = vector.broadcast %cst : f32 to vector<32x256xf32>
    %10 = arith.maximumf %8, %9 : vector<32x256xf32>
    %11 = arith.truncf %10 : vector<32x256xf32> to vector<32x256xbf16>
    %c0_6 = arith.constant 0 : index
    %c0_7 = arith.constant 0 : index
    %c0_8 = arith.constant 0 : index
    %12 = vector.load %arg5[%c0_6, %c0_7, %c0_8] : memref<1x32x256xbf16, #tpu.memory_space<vmem>>, vector<1x32x256xbf16>
    %13 = vector.shape_cast %12 : vector<1x32x256xbf16> to vector<32x256xbf16>
    %14 = vector.shape_cast %11 : vector<32x256xbf16> to vector<1x32x256xbf16>
    tpu.vector_store %arg5[%c0_6, %c0_7, %c0_8], %14 {strides = array<i32>} : memref<1x32x256xbf16, #tpu.memory_space<vmem>>, vector<1x32x256xbf16>,
    return
  }
  func.func @transform_0(%arg0: i32, %arg1: i32) -> (i32, i32, i32) {
    %c0_i32 = arith.constant 0 : i32
    %c0_i32_0 = arith.constant 0 : i32
    return %arg0, %arg1, %c0_i32 : i32, i32, i32
  }
  func.func @transform_1(%arg0: i32, %arg1: i32) -> (i32, i32) {
    %c0_i32 = arith.constant 0 : i32
    %c0_i32_0 = arith.constant 0 : i32
    %c0_i32_1 = arith.constant 0 : i32
    return %c0_i32, %c0_i32_0 : i32, i32
  }
  func.func @transform_2(%arg0: i32, %arg1: i32) -> (i32, i32) {
    %c0_i32 = arith.constant 0 : i32
    %c0_i32_0 = arith.constant 0 : i32
    %c0_i32_1 = arith.constant 0 : i32
    return %c0_i32, %c0_i32_0 : i32, i32
  }
  func.func @transform_3(%arg0: i32, %arg1: i32) -> (i32, i32, i32) {
    %c0_i32 = arith.constant 0 : i32
    %c0_i32_0 = arith.constant 0 : i32
    return %arg0, %arg1, %c0_i32 : i32, i32, i32
  }
}

module attributes {stable_mosaic.version = 11 : i64} {
  func.func @_mm_stats_kernel(%arg0: i32, %arg1: i32, %arg2: memref<1x128x1024xbf16, #tpu.memory_space<vmem>>, %arg3: memref<1x1024x128xbf16, #tpu.memory_space<vmem>>, %arg4: memref<1x128x128xbf16, #tpu.memory_space<vmem>>, %arg5: memref<1x1x2x128xf32, #tpu.memory_space<vmem>>) attributes {dimension_semantics = [#tpu.dimension_semantics<parallel>, #tpu.dimension_semantics<parallel>], iteration_bounds = array<i64: 4, 1>, scalar_prefetch = 0 : i64, scratch_operands = 0 : i64, tpu.core_type = #tpu.core_type<tc>, window_params = [{transform_indices = @transform_0, window_bounds = array<i64: 1, 128, 1024>}, {transform_indices = @transform_1, window_bounds = array<i64: 1, 1024, 128>}, {transform_indices = @transform_2, window_bounds = array<i64: 1, 128, 128>}, {transform_indices = @transform_3, window_bounds = array<i64: 1, 1, 2, 128>}]} {
    %c0 = arith.constant 0 : index
    %c0_0 = arith.constant 0 : index
    %c0_1 = arith.constant 0 : index
    %0 = vector.load %arg2[%c0, %c0_0, %c0_1] : memref<1x128x1024xbf16, #tpu.memory_space<vmem>>, vector<1x128x1024xbf16>
    %1 = vector.shape_cast %0 : vector<1x128x1024xbf16> to vector<128x1024xbf16>
    %c0_2 = arith.constant 0 : index
    %c0_3 = arith.constant 0 : index
    %c0_4 = arith.constant 0 : index
    %2 = vector.load %arg3[%c0_2, %c0_3, %c0_4] : memref<1x1024x128xbf16, #tpu.memory_space<vmem>>, vector<1x1024x128xbf16>
    %3 = vector.shape_cast %2 : vector<1x1024x128xbf16> to vector<1024x128xbf16>
    %cst = arith.constant dense<0.000000e+00> : vector<128x128xf32>
    %4 = tpu.matmul %1, %3, %cst {dimension_numbers = #tpu.dot_dimension_numbers<[1], [0], [0], [1], [0, 0, 1, 1], [], []>} : vector<128x1024xbf16>, vector<1024x128xbf16>, vector<128x128xf32> -> vector<128x128xf32>
    %5 = arith.truncf %4 : vector<128x128xf32> to vector<128x128xbf16>
    %c0_5 = arith.constant 0 : index
    %c0_6 = arith.constant 0 : index
    %c0_7 = arith.constant 0 : index
    %6 = vector.load %arg4[%c0_5, %c0_6, %c0_7] : memref<1x128x128xbf16, #tpu.memory_space<vmem>>, vector<1x128x128xbf16>
    %7 = vector.shape_cast %6 : vector<1x128x128xbf16> to vector<128x128xbf16>
    %8 = vector.shape_cast %5 : vector<128x128xbf16> to vector<1x128x128xbf16>
    tpu.vector_store %arg4[%c0_5, %c0_6, %c0_7], %8 {strides = array<i32>} : memref<1x128x128xbf16, #tpu.memory_space<vmem>>, vector<1x128x128xbf16>,
    %cst_8 = arith.constant dense<0.000000e+00> : vector<128xf32>
    %9 = vector.multi_reduction <add>, %4, %cst_8 [0] : vector<128x128xf32> to vector<128xf32>
    %10 = vector.shape_cast %9 : vector<128xf32> to vector<1x128xf32>
    %11 = arith.mulf %4, %4 : vector<128x128xf32>
    %cst_9 = arith.constant dense<0.000000e+00> : vector<128xf32>
    %12 = vector.multi_reduction <add>, %11, %cst_9 [0] : vector<128x128xf32> to vector<128xf32>
    %13 = vector.shape_cast %12 : vector<128xf32> to vector<1x128xf32>
    %14 = tpu.concatenate %10, %13 in 0 : vector<1x128xf32>, vector<1x128xf32> -> vector<2x128xf32>
    %c0_10 = arith.constant 0 : index
    %c0_11 = arith.constant 0 : index
    %c0_12 = arith.constant 0 : index
    %c0_13 = arith.constant 0 : index
    %15 = vector.load %arg5[%c0_10, %c0_11, %c0_12, %c0_13] : memref<1x1x2x128xf32, #tpu.memory_space<vmem>>, vector<1x1x2x128xf32>
    %16 = vector.shape_cast %15 : vector<1x1x2x128xf32> to vector<2x128xf32>
    %17 = vector.shape_cast %14 : vector<2x128xf32> to vector<1x1x2x128xf32>
    tpu.vector_store %arg5[%c0_10, %c0_11, %c0_12, %c0_13], %17 {strides = array<i32>} : memref<1x1x2x128xf32, #tpu.memory_space<vmem>>, vector<1x1x2x128xf32>,
    return
  }
  func.func @transform_0(%arg0: i32, %arg1: i32) -> (i32, i32, i32) {
    %c0_i32 = arith.constant 0 : i32
    %c0_i32_0 = arith.constant 0 : i32
    return %arg0, %arg1, %c0_i32 : i32, i32, i32
  }
  func.func @transform_1(%arg0: i32, %arg1: i32) -> (i32, i32, i32) {
    %c0_i32 = arith.constant 0 : i32
    %c0_i32_0 = arith.constant 0 : i32
    %c0_i32_1 = arith.constant 0 : i32
    return %arg0, %c0_i32, %c0_i32_0 : i32, i32, i32
  }
  func.func @transform_2(%arg0: i32, %arg1: i32) -> (i32, i32, i32) {
    %c0_i32 = arith.constant 0 : i32
    %c0_i32_0 = arith.constant 0 : i32
    return %arg0, %arg1, %c0_i32 : i32, i32, i32
  }
  func.func @transform_3(%arg0: i32, %arg1: i32) -> (i32, i32, i32, i32) {
    %c0_i32 = arith.constant 0 : i32
    %c0_i32_0 = arith.constant 0 : i32
    %c0_i32_1 = arith.constant 0 : i32
    return %arg0, %arg1, %c0_i32, %c0_i32_0 : i32, i32, i32, i32
  }
}

module attributes {stable_mosaic.version = 11 : i64} {
  func.func @_bn_relu_kernel(%arg0: i32, %arg1: i32, %arg2: memref<1x128x128xbf16, #tpu.memory_space<vmem>>, %arg3: memref<1x128xf32, #tpu.memory_space<vmem>>, %arg4: memref<1x128xf32, #tpu.memory_space<vmem>>, %arg5: memref<1x128x128xbf16, #tpu.memory_space<vmem>>) attributes {dimension_semantics = [#tpu.dimension_semantics<parallel>, #tpu.dimension_semantics<parallel>], iteration_bounds = array<i64: 4, 1>, scalar_prefetch = 0 : i64, scratch_operands = 0 : i64, tpu.core_type = #tpu.core_type<tc>, window_params = [{transform_indices = @transform_0, window_bounds = array<i64: 1, 128, 128>}, {pipeline_mode = #tpu.pipeline_mode<synchronous>, transform_indices = @transform_1, window_bounds = array<i64: 1, 128>}, {pipeline_mode = #tpu.pipeline_mode<synchronous>, transform_indices = @transform_2, window_bounds = array<i64: 1, 128>}, {transform_indices = @transform_3, window_bounds = array<i64: 1, 128, 128>}]} {
    %c0 = arith.constant 0 : index
    %c0_0 = arith.constant 0 : index
    %c0_1 = arith.constant 0 : index
    %0 = vector.load %arg2[%c0, %c0_0, %c0_1] : memref<1x128x128xbf16, #tpu.memory_space<vmem>>, vector<1x128x128xbf16>
    %1 = vector.shape_cast %0 : vector<1x128x128xbf16> to vector<128x128xbf16>
    %2 = arith.extf %1 : vector<128x128xbf16> to vector<128x128xf32>
    %c0_2 = arith.constant 0 : index
    %c0_3 = arith.constant 0 : index
    %3 = vector.load %arg3[%c0_2, %c0_3] : memref<1x128xf32, #tpu.memory_space<vmem>>, vector<1x128xf32>
    %4 = vector.broadcast %3 : vector<1x128xf32> to vector<128x128xf32>
    %5 = arith.mulf %2, %4 : vector<128x128xf32>
    %c0_4 = arith.constant 0 : index
    %c0_5 = arith.constant 0 : index
    %6 = vector.load %arg4[%c0_4, %c0_5] : memref<1x128xf32, #tpu.memory_space<vmem>>, vector<1x128xf32>
    %7 = vector.broadcast %6 : vector<1x128xf32> to vector<128x128xf32>
    %8 = arith.addf %5, %7 : vector<128x128xf32>
    %cst = arith.constant 0.000000e+00 : f32
    %9 = vector.broadcast %cst : f32 to vector<128x128xf32>
    %10 = arith.maximumf %8, %9 : vector<128x128xf32>
    %11 = arith.truncf %10 : vector<128x128xf32> to vector<128x128xbf16>
    %c0_6 = arith.constant 0 : index
    %c0_7 = arith.constant 0 : index
    %c0_8 = arith.constant 0 : index
    %12 = vector.load %arg5[%c0_6, %c0_7, %c0_8] : memref<1x128x128xbf16, #tpu.memory_space<vmem>>, vector<1x128x128xbf16>
    %13 = vector.shape_cast %12 : vector<1x128x128xbf16> to vector<128x128xbf16>
    %14 = vector.shape_cast %11 : vector<128x128xbf16> to vector<1x128x128xbf16>
    tpu.vector_store %arg5[%c0_6, %c0_7, %c0_8], %14 {strides = array<i32>} : memref<1x128x128xbf16, #tpu.memory_space<vmem>>, vector<1x128x128xbf16>,
    return
  }
  func.func @transform_0(%arg0: i32, %arg1: i32) -> (i32, i32, i32) {
    %c0_i32 = arith.constant 0 : i32
    %c0_i32_0 = arith.constant 0 : i32
    return %arg0, %arg1, %c0_i32 : i32, i32, i32
  }
  func.func @transform_1(%arg0: i32, %arg1: i32) -> (i32, i32) {
    %c0_i32 = arith.constant 0 : i32
    %c0_i32_0 = arith.constant 0 : i32
    %c0_i32_1 = arith.constant 0 : i32
    return %c0_i32, %c0_i32_0 : i32, i32
  }
  func.func @transform_2(%arg0: i32, %arg1: i32) -> (i32, i32) {
    %c0_i32 = arith.constant 0 : i32
    %c0_i32_0 = arith.constant 0 : i32
    %c0_i32_1 = arith.constant 0 : i32
    return %c0_i32, %c0_i32_0 : i32, i32
  }
  func.func @transform_3(%arg0: i32, %arg1: i32) -> (i32, i32, i32) {
    %c0_i32 = arith.constant 0 : i32
    %c0_i32_0 = arith.constant 0 : i32
    return %arg0, %arg1, %c0_i32 : i32, i32, i32
  }
}

module attributes {stable_mosaic.version = 11 : i64} {
  func.func @_mm_stats_kernel(%arg0: i32, %arg1: i32, %arg2: memref<1x256x512xbf16, #tpu.memory_space<vmem>>, %arg3: memref<1x512x64xbf16, #tpu.memory_space<vmem>>, %arg4: memref<1x256x64xbf16, #tpu.memory_space<vmem>>, %arg5: memref<1x1x2x64xf32, #tpu.memory_space<vmem>>) attributes {dimension_semantics = [#tpu.dimension_semantics<parallel>, #tpu.dimension_semantics<parallel>], iteration_bounds = array<i64: 4, 2>, scalar_prefetch = 0 : i64, scratch_operands = 0 : i64, tpu.core_type = #tpu.core_type<tc>, window_params = [{transform_indices = @transform_0, window_bounds = array<i64: 1, 256, 512>}, {transform_indices = @transform_1, window_bounds = array<i64: 1, 512, 64>}, {transform_indices = @transform_2, window_bounds = array<i64: 1, 256, 64>}, {transform_indices = @transform_3, window_bounds = array<i64: 1, 1, 2, 64>}]} {
    %c0 = arith.constant 0 : index
    %c0_0 = arith.constant 0 : index
    %c0_1 = arith.constant 0 : index
    %0 = vector.load %arg2[%c0, %c0_0, %c0_1] : memref<1x256x512xbf16, #tpu.memory_space<vmem>>, vector<1x256x512xbf16>
    %1 = vector.shape_cast %0 : vector<1x256x512xbf16> to vector<256x512xbf16>
    %c0_2 = arith.constant 0 : index
    %c0_3 = arith.constant 0 : index
    %c0_4 = arith.constant 0 : index
    %2 = vector.load %arg3[%c0_2, %c0_3, %c0_4] : memref<1x512x64xbf16, #tpu.memory_space<vmem>>, vector<1x512x64xbf16>
    %3 = vector.shape_cast %2 : vector<1x512x64xbf16> to vector<512x64xbf16>
    %cst = arith.constant dense<0.000000e+00> : vector<256x64xf32>
    %4 = tpu.matmul %1, %3, %cst {dimension_numbers = #tpu.dot_dimension_numbers<[1], [0], [0], [1], [0, 0, 1, 1], [], []>} : vector<256x512xbf16>, vector<512x64xbf16>, vector<256x64xf32> -> vector<256x64xf32>
    %5 = arith.truncf %4 : vector<256x64xf32> to vector<256x64xbf16>
    %c0_5 = arith.constant 0 : index
    %c0_6 = arith.constant 0 : index
    %c0_7 = arith.constant 0 : index
    %6 = vector.load %arg4[%c0_5, %c0_6, %c0_7] : memref<1x256x64xbf16, #tpu.memory_space<vmem>>, vector<1x256x64xbf16>
    %7 = vector.shape_cast %6 : vector<1x256x64xbf16> to vector<256x64xbf16>
    %8 = vector.shape_cast %5 : vector<256x64xbf16> to vector<1x256x64xbf16>
    tpu.vector_store %arg4[%c0_5, %c0_6, %c0_7], %8 {strides = array<i32>} : memref<1x256x64xbf16, #tpu.memory_space<vmem>>, vector<1x256x64xbf16>,
    %cst_8 = arith.constant dense<0.000000e+00> : vector<64xf32>
    %9 = vector.multi_reduction <add>, %4, %cst_8 [0] : vector<256x64xf32> to vector<64xf32>
    %10 = vector.shape_cast %9 : vector<64xf32> to vector<1x64xf32>
    %11 = arith.mulf %4, %4 : vector<256x64xf32>
    %cst_9 = arith.constant dense<0.000000e+00> : vector<64xf32>
    %12 = vector.multi_reduction <add>, %11, %cst_9 [0] : vector<256x64xf32> to vector<64xf32>
    %13 = vector.shape_cast %12 : vector<64xf32> to vector<1x64xf32>
    %14 = tpu.concatenate %10, %13 in 0 : vector<1x64xf32>, vector<1x64xf32> -> vector<2x64xf32>
    %c0_10 = arith.constant 0 : index
    %c0_11 = arith.constant 0 : index
    %c0_12 = arith.constant 0 : index
    %c0_13 = arith.constant 0 : index
    %15 = vector.load %arg5[%c0_10, %c0_11, %c0_12, %c0_13] : memref<1x1x2x64xf32, #tpu.memory_space<vmem>>, vector<1x1x2x64xf32>
    %16 = vector.shape_cast %15 : vector<1x1x2x64xf32> to vector<2x64xf32>
    %17 = vector.shape_cast %14 : vector<2x64xf32> to vector<1x1x2x64xf32>
    tpu.vector_store %arg5[%c0_10, %c0_11, %c0_12, %c0_13], %17 {strides = array<i32>} : memref<1x1x2x64xf32, #tpu.memory_space<vmem>>, vector<1x1x2x64xf32>,
    return
  }
  func.func @transform_0(%arg0: i32, %arg1: i32) -> (i32, i32, i32) {
    %c0_i32 = arith.constant 0 : i32
    %c0_i32_0 = arith.constant 0 : i32
    return %arg0, %arg1, %c0_i32 : i32, i32, i32
  }
  func.func @transform_1(%arg0: i32, %arg1: i32) -> (i32, i32, i32) {
    %c0_i32 = arith.constant 0 : i32
    %c0_i32_0 = arith.constant 0 : i32
    %c0_i32_1 = arith.constant 0 : i32
    return %arg0, %c0_i32, %c0_i32_0 : i32, i32, i32
  }
  func.func @transform_2(%arg0: i32, %arg1: i32) -> (i32, i32, i32) {
    %c0_i32 = arith.constant 0 : i32
    %c0_i32_0 = arith.constant 0 : i32
    return %arg0, %arg1, %c0_i32 : i32, i32, i32
  }
  func.func @transform_3(%arg0: i32, %arg1: i32) -> (i32, i32, i32, i32) {
    %c0_i32 = arith.constant 0 : i32
    %c0_i32_0 = arith.constant 0 : i32
    %c0_i32_1 = arith.constant 0 : i32
    return %arg0, %arg1, %c0_i32, %c0_i32_0 : i32, i32, i32, i32
  }
}

module attributes {stable_mosaic.version = 11 : i64} {
  func.func @_bn_relu_kernel(%arg0: i32, %arg1: i32, %arg2: memref<1x256x64xbf16, #tpu.memory_space<vmem>>, %arg3: memref<1x64xf32, #tpu.memory_space<vmem>>, %arg4: memref<1x64xf32, #tpu.memory_space<vmem>>, %arg5: memref<1x256x64xbf16, #tpu.memory_space<vmem>>) attributes {dimension_semantics = [#tpu.dimension_semantics<parallel>, #tpu.dimension_semantics<parallel>], iteration_bounds = array<i64: 4, 2>, scalar_prefetch = 0 : i64, scratch_operands = 0 : i64, tpu.core_type = #tpu.core_type<tc>, window_params = [{transform_indices = @transform_0, window_bounds = array<i64: 1, 256, 64>}, {pipeline_mode = #tpu.pipeline_mode<synchronous>, transform_indices = @transform_1, window_bounds = array<i64: 1, 64>}, {pipeline_mode = #tpu.pipeline_mode<synchronous>, transform_indices = @transform_2, window_bounds = array<i64: 1, 64>}, {transform_indices = @transform_3, window_bounds = array<i64: 1, 256, 64>}]} {
    %c0 = arith.constant 0 : index
    %c0_0 = arith.constant 0 : index
    %c0_1 = arith.constant 0 : index
    %0 = vector.load %arg2[%c0, %c0_0, %c0_1] : memref<1x256x64xbf16, #tpu.memory_space<vmem>>, vector<1x256x64xbf16>
    %1 = vector.shape_cast %0 : vector<1x256x64xbf16> to vector<256x64xbf16>
    %2 = arith.extf %1 : vector<256x64xbf16> to vector<256x64xf32>
    %c0_2 = arith.constant 0 : index
    %c0_3 = arith.constant 0 : index
    %3 = vector.load %arg3[%c0_2, %c0_3] : memref<1x64xf32, #tpu.memory_space<vmem>>, vector<1x64xf32>
    %4 = vector.broadcast %3 : vector<1x64xf32> to vector<256x64xf32>
    %5 = arith.mulf %2, %4 : vector<256x64xf32>
    %c0_4 = arith.constant 0 : index
    %c0_5 = arith.constant 0 : index
    %6 = vector.load %arg4[%c0_4, %c0_5] : memref<1x64xf32, #tpu.memory_space<vmem>>, vector<1x64xf32>
    %7 = vector.broadcast %6 : vector<1x64xf32> to vector<256x64xf32>
    %8 = arith.addf %5, %7 : vector<256x64xf32>
    %cst = arith.constant 0.000000e+00 : f32
    %9 = vector.broadcast %cst : f32 to vector<256x64xf32>
    %10 = arith.maximumf %8, %9 : vector<256x64xf32>
    %11 = arith.truncf %10 : vector<256x64xf32> to vector<256x64xbf16>
    %c0_6 = arith.constant 0 : index
    %c0_7 = arith.constant 0 : index
    %c0_8 = arith.constant 0 : index
    %12 = vector.load %arg5[%c0_6, %c0_7, %c0_8] : memref<1x256x64xbf16, #tpu.memory_space<vmem>>, vector<1x256x64xbf16>
    %13 = vector.shape_cast %12 : vector<1x256x64xbf16> to vector<256x64xbf16>
    %14 = vector.shape_cast %11 : vector<256x64xbf16> to vector<1x256x64xbf16>
    tpu.vector_store %arg5[%c0_6, %c0_7, %c0_8], %14 {strides = array<i32>} : memref<1x256x64xbf16, #tpu.memory_space<vmem>>, vector<1x256x64xbf16>,
    return
  }
  func.func @transform_0(%arg0: i32, %arg1: i32) -> (i32, i32, i32) {
    %c0_i32 = arith.constant 0 : i32
    %c0_i32_0 = arith.constant 0 : i32
    return %arg0, %arg1, %c0_i32 : i32, i32, i32
  }
  func.func @transform_1(%arg0: i32, %arg1: i32) -> (i32, i32) {
    %c0_i32 = arith.constant 0 : i32
    %c0_i32_0 = arith.constant 0 : i32
    %c0_i32_1 = arith.constant 0 : i32
    return %c0_i32, %c0_i32_0 : i32, i32
  }
  func.func @transform_2(%arg0: i32, %arg1: i32) -> (i32, i32) {
    %c0_i32 = arith.constant 0 : i32
    %c0_i32_0 = arith.constant 0 : i32
    %c0_i32_1 = arith.constant 0 : i32
    return %c0_i32, %c0_i32_0 : i32, i32
  }
  func.func @transform_3(%arg0: i32, %arg1: i32) -> (i32, i32, i32) {
    %c0_i32 = arith.constant 0 : i32
    %c0_i32_0 = arith.constant 0 : i32
    return %arg0, %arg1, %c0_i32 : i32, i32, i32
  }
}

module attributes {stable_mosaic.version = 11 : i64} {
  func.func @_final_kernel(%arg0: i32, %arg1: i32, %arg2: memref<1x3x256xbf16, #tpu.memory_space<vmem>>, %arg3: memref<1x256x1024xbf16, #tpu.memory_space<vmem>>, %arg4: memref<1x3x1024xf32, #tpu.memory_space<vmem>>) attributes {dimension_semantics = [#tpu.dimension_semantics<parallel>, #tpu.dimension_semantics<parallel>], iteration_bounds = array<i64: 4, 2>, scalar_prefetch = 0 : i64, scratch_operands = 0 : i64, tpu.core_type = #tpu.core_type<tc>, window_params = [{transform_indices = @transform_0, window_bounds = array<i64: 1, 3, 256>}, {transform_indices = @transform_1, window_bounds = array<i64: 1, 256, 1024>}, {transform_indices = @transform_2, window_bounds = array<i64: 1, 3, 1024>}]} {
    %c0 = arith.constant 0 : index
    %c0_0 = arith.constant 0 : index
    %c0_1 = arith.constant 0 : index
    %0 = vector.load %arg2[%c0, %c0_0, %c0_1] : memref<1x3x256xbf16, #tpu.memory_space<vmem>>, vector<1x3x256xbf16>
    %1 = vector.shape_cast %0 : vector<1x3x256xbf16> to vector<3x256xbf16>
    %c0_2 = arith.constant 0 : index
    %c0_3 = arith.constant 0 : index
    %c0_4 = arith.constant 0 : index
    %2 = vector.load %arg3[%c0_2, %c0_3, %c0_4] : memref<1x256x1024xbf16, #tpu.memory_space<vmem>>, vector<1x256x1024xbf16>
    %3 = vector.shape_cast %2 : vector<1x256x1024xbf16> to vector<256x1024xbf16>
    %cst = arith.constant dense<0.000000e+00> : vector<3x1024xf32>
    %4 = tpu.matmul %1, %3, %cst {dimension_numbers = #tpu.dot_dimension_numbers<[1], [0], [0], [1], [0, 0, 1, 1], [], []>} : vector<3x256xbf16>, vector<256x1024xbf16>, vector<3x1024xf32> -> vector<3x1024xf32>
    %5 = math.tanh %4 : vector<3x1024xf32>
    %c0_5 = arith.constant 0 : index
    %c0_6 = arith.constant 0 : index
    %c0_7 = arith.constant 0 : index
    %6 = vector.load %arg4[%c0_5, %c0_6, %c0_7] : memref<1x3x1024xf32, #tpu.memory_space<vmem>>, vector<1x3x1024xf32>
    %7 = vector.shape_cast %6 : vector<1x3x1024xf32> to vector<3x1024xf32>
    %8 = vector.shape_cast %5 : vector<3x1024xf32> to vector<1x3x1024xf32>
    tpu.vector_store %arg4[%c0_5, %c0_6, %c0_7], %8 {strides = array<i32>} : memref<1x3x1024xf32, #tpu.memory_space<vmem>>, vector<1x3x1024xf32>,
    return
  }
  func.func @transform_0(%arg0: i32, %arg1: i32) -> (i32, i32, i32) {
    %c0_i32 = arith.constant 0 : i32
    %c0_i32_0 = arith.constant 0 : i32
    %c0_i32_1 = arith.constant 0 : i32
    return %arg0, %c0_i32, %c0_i32_0 : i32, i32, i32
  }
  func.func @transform_1(%arg0: i32, %arg1: i32) -> (i32, i32, i32) {
    %c0_i32 = arith.constant 0 : i32
    %c0_i32_0 = arith.constant 0 : i32
    return %arg0, %c0_i32, %arg1 : i32, i32, i32
  }
  func.func @transform_2(%arg0: i32, %arg1: i32) -> (i32, i32, i32) {
    %c0_i32 = arith.constant 0 : i32
    %c0_i32_0 = arith.constant 0 : i32
    return %arg0, %c0_i32, %arg1 : i32, i32, i32
  }
}

</mosaic_0001>

<bundles_post_ra>
// kernel: generator_forward.9
= control target key start
LH: loop header
LB: loop body
LE: loop exit
PB: predicated region body
PF: predicated region fallthrough
CT: control target
= control target key end

     0   :  { %s1001_s12 = smov 0   ;;  %s1003_s13 = smov 0   ;;  %s1089_s0 = inlined_call_operand.vmem [shape: bf16[16,16,128], index: 0, kind: input, shape index: {}]   ;;  %s1090_s1 = inlined_call_operand.vmem [shape: bf16[16,128,512], index: 1, kind: input, shape index: {}]   ;;  %s1091_s2 = inlined_call_operand.vmem [shape: bf16[16,16,512], index: 2, kind: output, shape index: {0}]   ;;  %s1092_s3 = inlined_call_operand.vmem [shape: f32[16,1,2,512], index: 3, kind: output, shape index: {1}]  }
   0x1   :  { %s1005_s14 = smov 0  }
   0x2 LB: > { %s26_s15 = sadd.s32 1, %s973_s13  ;;  %p824_p0 = scmp.ge.s32.totalorder %s977_s14, 1  ;;  %s977_s14 = sphi %s1005_s14, %s14_s14   ;;  %s973_s13 = sphi %s1003_s13, %s1094_s13   ;;  %s969_s12 = sphi %s1001_s12, %s1093_s12  }
   0x3   : > { %p28_p1 = scmp.ge.s32.totalorder %s26_s15, 16  ;;  %p173_p2 = scmp.lt.s32.totalorder %s977_s14, 17 }
   0x5   : > { %s1096_s15 = smov (%p28_p1, %s26_s15), 0  ;;  %p174_p3 = pnand %p824_p0, %p173_p2 }
   0x6   : > { %p221_p4 = scmp.lt.s32.totalorder (!%p174_p3), %s969_s12, 15 }
   0x7   : > { %177 = sbr.rel (%p174_p3) target bundleno = 274 (0x112), region = 28 }
   0xc   : > { %v979_v0 = vmov 0   ;;  %s1098_s12 = smov (!%p221_p4, %s969_s12), 15  ;;  %vm634_vm0 = vcmask 1040384  }
   0xd   : > { %488 = vmatprep.mubr.bf16.mxu0 %v979_v0  ;;  %531 = vmatprep.mubr.bf16.mxu1 %v979_v0  ;;  %s873_s16 = sshll.u32 %s1098_s12, 8  ;;  %s872_s20 = sshll.u32 %s1098_s12, 3 }
   0xe   : > { %s1025_s19 = scalar_lea.vmem %s1090_s1, %s873_s16  ;;  %s228_s23 = scalar_lea.vmem %s1089_s0, %s872_s20 }
   0xf   : > { %v906_v1 = vld [vmem:[%s1025_s19 + $0xe4] ss:$16 sps:$4 sm:$0xff]   ;;  %v908_v2 = vld [vmem:[%s1025_s19 + $0xec] ss:$16 sps:$4 sm:$0xff]   ;;  %v910_v3 = vld [vmem:[%s1025_s19 + $0xe0] ss:$16 sps:$4 sm:$0xff]   ;;  %s254_s30 = scalar_lea.vmem %s1092_s3, %s872_s20 }
  0x10   : > { %456 = vmatprep.subr.bf16.mxu0 %v906_v1  ;;  %v911_v4 = vld [vmem:[%s1025_s19 + $0xe8] ss:$16 sps:$4 sm:$0xff]   ;;  %499 = vmatprep.subr.bf16.mxu1 %v908_v2  ;;  %v912_v5 = vld [vmem:[%s1025_s19 + $0xc4] ss:$16 sps:$4 sm:$0xff]   ;;  %v914_v6 = vld [vmem:[%s1025_s19 + $0xcc] ss:$16 sps:$4 sm:$0xff]  }
  0x11   : > { %457 = vmatpush1.bf16.msra.mxu0 %v910_v3  ;;  %500 = vmatpush1.bf16.msra.mxu1 %v911_v4  ;;  %v916_v7 = vld [vmem:[%s1025_s19 + $0xc0] ss:$16 sps:$4 sm:$0xff]   ;;  %v917_v8 = vld [vmem:[%s1025_s19 + $0xc8] ss:$16 sps:$4 sm:$0xff]   ;;  %v918_v9 = vld [vmem:[%s1025_s19 + $0xa4] ss:$16 sps:$4 sm:$0xff]  }
  0x12   : > { %458 = vmatprep.subr.bf16.mxu0 %v912_v5  ;;  %501 = vmatprep.subr.bf16.mxu1 %v914_v6  ;;  %v920_v10 = vld [vmem:[%s1025_s19 + $0xac] ss:$16 sps:$4 sm:$0xff]   ;;  %v922_v11 = vld [vmem:[%s1025_s19 + $0xa0] ss:$16 sps:$4 sm:$0xff]   ;;  %v923_v12 = vld [vmem:[%s1025_s19 + $0xa8] ss:$16 sps:$4 sm:$0xff]  }
  0x13   : > { %v924_v13 = vld [vmem:[%s1025_s19 + $0x84] ss:$16 sps:$4 sm:$0xff]   ;;  %v926_v14 = vld [vmem:[%s1025_s19 + $0x8c] ss:$16 sps:$4 sm:$0xff]   ;;  %v928_v15 = vld [vmem:[%s1025_s19 + $0x80] ss:$16 sps:$4 sm:$0xff]  }
  0x14   : > { %v929_v16 = vld [vmem:[%s1025_s19 + $0x88] ss:$16 sps:$4 sm:$0xff]   ;;  %v930_v17 = vld [vmem:[%s1025_s19 + $0x64] ss:$16 sps:$4 sm:$0xff]   ;;  %v932_v18 = vld [vmem:[%s1025_s19 + $0x6c] ss:$16 sps:$4 sm:$0xff]  }
  0x15   : > { %459 = vmatpush1.bf16.msra.mxu0 %v916_v7  ;;  %502 = vmatpush1.bf16.msra.mxu1 %v917_v8  ;;  %v934_v19 = vld [vmem:[%s1025_s19 + $0x60] ss:$16 sps:$4 sm:$0xff]   ;;  %v935_v20 = vld [vmem:[%s1025_s19 + $0x68] ss:$16 sps:$4 sm:$0xff]   ;;  %v936_v21 = vld [vmem:[%s1025_s19 + $0x44] ss:$16 sps:$4 sm:$0xff]  }
  0x16   : > { %460 = vmatprep.subr.bf16.mxu0 %v918_v9  ;;  %503 = vmatprep.subr.bf16.mxu1 %v920_v10  ;;  %v938_v22 = vld [vmem:[%s1025_s19 + $0x4c] ss:$16 sps:$4 sm:$0xff]   ;;  %v940_v23 = vld [vmem:[%s1025_s19 + $0x40] ss:$16 sps:$4 sm:$0xff]   ;;  %v941_v24 = vld [vmem:[%s1025_s19 + $0x48] ss:$16 sps:$4 sm:$0xff]  }
  0x17   : > { %v942_v25 = vld [vmem:[%s1025_s19 + $0x24] ss:$16 sps:$4 sm:$0xff]   ;;  %v944_v26 = vld [vmem:[%s1025_s19 + $0x2c] ss:$16 sps:$4 sm:$0xff]   ;;  %v946_v27 = vld [vmem:[%s1025_s19 + $0x20] ss:$16 sps:$4 sm:$0xff]  }
  0x18   : > { %v947_v28 = vld [vmem:[%s1025_s19 + $0x28] ss:$16 sps:$4 sm:$0xff]   ;;  %v948_v29 = vld [vmem:[%s1025_s19 + $0x4] ss:$16 sps:$4 sm:$0xff]   ;;  %v950_v30 = vld [vmem:[%s1025_s19 + $0xc] ss:$16 sps:$4 sm:$0xff]  }
  0x19   : > { %461 = vmatpush1.bf16.msra.mxu0 %v922_v11  ;;  %504 = vmatpush1.bf16.msra.mxu1 %v923_v12  ;;  %v952_v31 = vld [vmem:[%s1025_s19] ss:$16 sps:$4 sm:$0xff]   ;;  %v953_v32 = vld [vmem:[%s1025_s19 + $0x8] ss:$16 sps:$4 sm:$0xff]   ;;  %s874_s24 = sshll.u32 %s1098_s12, 5 }
  0x1a   : > { %462 = vmatprep.subr.bf16.mxu0 %v924_v13  ;;  %505 = vmatprep.subr.bf16.mxu1 %v926_v14  ;;  %v954_v33 = vld [vmem:[%s228_s23] sm:$0xff]   ;;  %s1069_s27 = scalar_lea.vmem %s1091_s2, %s874_s24 }
  0x1d   : > { %463 = vmatpush1.bf16.msra.mxu0 %v928_v15  ;;  %506 = vmatpush1.bf16.msra.mxu1 %v929_v16  ;;  %v980_v15 = vmov 1983009808  }
  0x1e   : > { %464 = vmatprep.subr.bf16.mxu0 %v930_v17  ;;  %507 = vmatprep.subr.bf16.mxu1 %v932_v18  ;;  %v646_v16 = vunpack.c.l.s4 %v980_v15 }
  0x21   : > { %465 = vmatpush1.bf16.msra.mxu0 %v934_v19  ;;  %508 = vmatpush1.bf16.msra.mxu1 %v935_v20 }
  0x22   : > { %466 = vmatprep.subr.bf16.mxu0 %v936_v21  ;;  %509 = vmatprep.subr.bf16.mxu1 %v938_v22 }
  0x25   : > { %467 = vmatpush1.bf16.msra.mxu0 %v940_v23  ;;  %510 = vmatpush1.bf16.msra.mxu1 %v941_v24  ;;  %v648_v24 = vlaneseq }
  0x26   : > { %468 = vmatprep.subr.bf16.mxu0 %v942_v25  ;;  %511 = vmatprep.subr.bf16.mxu1 %v944_v26 }
  0x29   : > { %469 = vmatpush1.bf16.msra.mxu0 %v946_v27  ;;  %512 = vmatpush1.bf16.msra.mxu1 %v947_v28 }
  0x2a   : > { %470 = vmatprep.subr.bf16.mxu0 %v948_v29  ;;  %513 = vmatprep.subr.bf16.mxu1 %v950_v30 }
  0x2d   : > { %471 = vmatpush1.bf16.msra.mxu0 %v952_v31  ;;  %514 = vmatpush1.bf16.msra.mxu1 %v953_v32 }
  0x30   : > { %489 = vmatmul.mubr.bf16.vlgmr.msra.gmra.mxu0 %v954_v33  ;;  %532 = vmatmul.mubr.bf16.vlgmr.msra.gmra.mxu1 %v954_v33 }
  0xf0   : > { %v490_v34 = vpop.f32.mrf.mxu0  ;;  %v533_v35 = vpop.f32.mrf.mxu1 }
  0xf1   : > { %v598_v40 = vmul.f32 %v490_v34, %v490_v34  ;;  %v600_v41 = vmul.f32 %v533_v35, %v533_v35 }
  0xf2   : > { %v492_v36 = vpop.f32.mrf.mxu0  ;;  %v535_v37 = vpop.f32.mrf.mxu1 }
  0xf3   : > { %v876_v38 = vpack.c.bf16 %v492_v36, %v490_v34  ;;  %v877_v39 = vpack.c.bf16 %v535_v37, %v533_v35  ;;  %v599_v48 = vmul.f32 %v492_v36, %v492_v36  ;;  %v601_v49 = vmul.f32 %v535_v37, %v535_v37 }
  0xf4   : > { %v494_v42 = vpop.f32.mrf.mxu0  ;;  %v537_v43 = vpop.f32.mrf.mxu1 }
  0xf5   : > { %566 = vst [vmem:[%s1069_s27] sm:$0xff] %v876_v38  ;;  %567 = vst [vmem:[%s1069_s27 + $0x8] sm:$0xff] %v877_v39  ;;  %v570_v44 = vadd.f32 %v494_v42, %v490_v34  ;;  %v602_v45 = vmul.f32 %v494_v42, %v494_v42  ;;  %v584_v46 = vadd.f32 %v537_v43, %v533_v35  ;;  %v649_v38 = vshrl.u32 %v648_v24, 7 }
  0xf6   : > { %v604_v47 = vmul.f32 %v537_v43, %v537_v43  ;;  %v496_v50 = vpop.f32.mrf.mxu0  ;;  %v539_v51 = vpop.f32.mrf.mxu1 }
  0xf7   : > { %v571_v52 = vrot.slane %v570_v44, 4  ;;  %v606_v53 = vadd.f32 %v602_v45, %v598_v40  ;;  %v585_v54 = vrot.slane %v584_v46, 4  ;;  %v878_v56 = vpack.c.bf16 %v496_v50, %v494_v42 }
  0xf8   : > { %v620_v55 = vadd.f32 %v604_v47, %v600_v41  ;;  %v577_v57 = vadd.f32 %v496_v50, %v492_v36  ;;  %v603_v58 = vmul.f32 %v496_v50, %v496_v50  ;;  %v879_v59 = vpack.c.bf16 %v539_v51, %v537_v43 }
  0xf9   : > { %v572_v60 = vadd.f32 %v571_v52, %v570_v44  ;;  %v607_v61 = vrot.slane %v606_v53, 4  ;;  %v586_v62 = vadd.f32 %v585_v54, %v584_v46  ;;  %568 = vst [vmem:[%s1069_s27 + $0x10] sm:$0xff] %v878_v56  ;;  %v591_v2 = vadd.f32 %v539_v51, %v535_v37 }
  0xfa   : > { %v621_v63 = vrot.slane %v620_v55, 4  ;;  %v578_v0 = vrot.slane %v577_v57, 4  ;;  %v613_v1 = vadd.f32 %v603_v58, %v599_v48  ;;  %569 = vst [vmem:[%s1069_s27 + $0x18] sm:$0xff] %v879_v59  ;;  %v605_v3 = vmul.f32 %v539_v51, %v539_v51 }
  0xfb   : > { %v573_v4 = vrot.slane %v572_v60, 2  ;;  %v608_v5 = vadd.f32 %v607_v61, %v606_v53  ;;  %v587_v6 = vrot.slane %v586_v62, 2  ;;  %v592_v10 = vrot.slane %v591_v2, 4 }
  0xfc   : > { %v622_v7 = vadd.f32 %v621_v63, %v620_v55  ;;  %v579_v8 = vadd.f32 %v578_v0, %v577_v57  ;;  %v614_v9 = vrot.slane %v613_v1, 4  ;;  %v627_v11 = vadd.f32 %v605_v3, %v601_v49 }
  0xfd   : > { %v574_v12 = vadd.f32 %v573_v4, %v572_v60  ;;  %v609_v13 = vrot.slane %v608_v5, 2  ;;  %v593_v19 = vadd.f32 %v592_v10, %v591_v2  ;;  %v588_v22 = vadd.f32 %v587_v6, %v586_v62 }
  0xfe   : > { %v623_v14 = vrot.slane %v622_v7, 2  ;;  %v580_v17 = vrot.slane %v579_v8, 2  ;;  %v615_v18 = vadd.f32 %v614_v9, %v613_v1  ;;  %v628_v20 = vrot.slane %v627_v11, 4 }
  0xff   : > { %v610_v21 = vadd.f32 %v609_v13, %v608_v5  ;;  %v594_v27 = vrot.slane %v593_v19, 2  ;;  %v575_v29 = vrot.slane %v574_v12, 1  ;;  %v589_v36 = vrot.slane %v588_v22, 1 }
 0x100   : > { %v624_v23 = vadd.f32 %v623_v14, %v622_v7  ;;  %v581_v25 = vadd.f32 %v580_v17, %v579_v8  ;;  %v616_v26 = vrot.slane %v615_v18, 2  ;;  %v629_v28 = vadd.f32 %v628_v20, %v627_v11 }
 0x101   : > { %v611_v30 = vrot.slane %v610_v21, 1  ;;  %v595_v34 = vadd.f32 %v594_v27, %v593_v19  ;;  %v647_v37 = vunpack.c.0.s8 %v646_v16  ;;  %v576_v43 = vadd.f32 %v575_v29, %v574_v12 }
 0x102   : > { %v625_v31 = vrot.slane %v624_v23, 1  ;;  %v582_v32 = vrot.slane %v581_v25, 1  ;;  %v617_v33 = vadd.f32 %v616_v26, %v615_v18  ;;  %v630_v35 = vrot.slane %v629_v28, 2 }
 0x103   : > { %v612_v39 = vadd.f32 %v611_v30, %v610_v21  ;;  %v596_v41 = vrot.slane %v595_v34, 1  ;;  %v590_v48 = vadd.f32 %v589_v36, %v588_v22  ;;  %v650_v49 = vsub.s32 %v647_v37, %v649_v38 }
 0x104   : > { %v618_v40 = vrot.slane %v617_v33, 1  ;;  %v631_v42 = vadd.f32 %v630_v35, %v629_v28  ;;  %v626_v44 = vadd.f32 %v625_v31, %v624_v23  ;;  %v583_v45 = vadd.f32 %v582_v32, %v581_v25 }
 0x105   : > { %v635_v50 = vsel %vm634_vm0, %v576_v43, %v612_v39  ;;  %v597_v52 = vadd.f32 %v596_v41, %v595_v34 }
 0x106   : > { %v619_v46 = vadd.f32 %v618_v40, %v617_v33  ;;  %v632_v47 = vrot.slane %v631_v42, 1  ;;  %v637_v55 = vsel %vm634_vm0, %v590_v48, %v626_v44 }
 0x108   : > { %v636_v51 = vsel %vm634_vm0, %v583_v45, %v619_v46  ;;  %v633_v53 = vadd.f32 %v632_v47, %v631_v42 }
 0x109   : > { %v643_v54 = vcombine.low %v635_v50, %v636_v51 }
 0x10a   : > { %v638_v56 = vsel %vm634_vm0, %v597_v52, %v633_v53 }
 0x10b   : > { %v651_v57 = vrot.slane %v643_v54, %v650_v49  ;;  %v644_v58 = vcombine.low %v637_v55, %v638_v56 }
 0x10d   : > { %v658_v59 = vrot.slane %v644_v58, %v650_v49 }
 0x10f   : > { %v659_v60 = vcombine.low %v651_v57, %v658_v59 }
 0x111   : > { %661 = vst [vmem:[%s254_s30] sm:$0xff] %v659_v60 }
 0x112 PF: > { %s14_s14 = sadd.s32 1, %s977_s14   ;;  %s1093_s12 = smov %s973_s13 }
 0x113   : > { %p11_p5 = scmp.ge.s32.totalorder %s14_s14, 18   ;;  %s1094_s13 = smov %s1096_s15 }
 0x115   :  { %13 = sbr.rel (!%p11_p5) target bundleno = 2 (0x2), region = 73 }

// kernel: generator_forward.10
= control target key start
LH: loop header
LB: loop body
LE: loop exit
PB: predicated region body
PF: predicated region fallthrough
CT: control target
= control target key end

     0   :  { %s508_s12 = smov 0   ;;  %s510_s13 = smov 0   ;;  %s554_s0 = inlined_call_operand.vmem [shape: bf16[16,16,512], index: 0, kind: input, shape index: {}]   ;;  %s555_s1 = inlined_call_operand.vmem [shape: f32[1,512], index: 1, kind: input, shape index: {}]   ;;  %s556_s2 = inlined_call_operand.vmem [shape: f32[1,512], index: 2, kind: input, shape index: {}]   ;;  %s557_s3 = inlined_call_operand.vmem [shape: bf16[16,16,512], index: 3, kind: output, shape index: {}]  }
   0x1   :  { %s512_s14 = smov 0  }
   0x2 LB: > { %s25_s15 = sadd.s32 1, %s482_s13  ;;  %p423_p0 = scmp.ge.s32.totalorder %s486_s14, 1  ;;  %s486_s14 = sphi %s512_s14, %s13_s14   ;;  %s482_s13 = sphi %s510_s13, %s559_s13   ;;  %s478_s12 = sphi %s508_s12, %s558_s12  }
   0x3   : > { %p27_p1 = scmp.ge.s32.totalorder %s25_s15, 16  ;;  %p159_p2 = scmp.lt.s32.totalorder %s486_s14, 17 }
   0x5   : > { %s561_s15 = smov (%p27_p1, %s25_s15), 0  ;;  %p160_p3 = pnand %p423_p0, %p159_p2 }
   0x6   : > { %p194_p4 = scmp.lt.s32.totalorder (!%p160_p3), %s478_s12, 15 }
   0x7   : > { %163 = sbr.rel (%p160_p3) target bundleno = 32 (0x20), region = 32 }
   0xc   : > { %v229_v0 = vlaneseq  ;;  %s563_s12 = smov (!%p194_p4, %s478_s12), 15  ;;  %v227_v2 = vld [vmem:[%s555_s1] sm:$0xf] }
   0xd   : > { %v257_v3 = vld [vmem:[%s556_s2] sm:$0xf]  ;;  %s434_s20 = sshll.u32 %s563_s12, 5 }
   0xe   : > { %v230_v1 = vshrl.u32 %v229_v0, 7  ;;  %s202_s23 = scalar_lea.vmem %s554_s0, %s434_s20  ;;  %s213_s26 = scalar_lea.vmem %s557_s3, %s434_s20 }
   0xf   : > { %v215_v8 = vld [vmem:[%s202_s23] sm:$0xff]  ;;  %v216_v13 = vld [vmem:[%s202_s23 + $0x8] sm:$0xff]  ;;  %v217_v14 = vld [vmem:[%s202_s23 + $0x10] sm:$0xff] }
  0x10   : > { %v231_v4 = vsub.s32 0, %v230_v1  ;;  %v235_v5 = vsub.s32 1, %v230_v1  ;;  %v239_v6 = vsub.s32 2, %v230_v1  ;;  %v243_v7 = vsub.s32 3, %v230_v1  ;;  %v218_v19 = vld [vmem:[%s202_s23 + $0x18] sm:$0xff] }
  0x11   : > { %v219_v15 = vunpack.c.l.bf16 %v215_v8  ;;  %v220_v16 = vunpack.c.h.bf16 %v215_v8  ;;  %v221_v17 = vunpack.c.l.bf16 %v216_v13  ;;  %v222_v18 = vunpack.c.h.bf16 %v216_v13 }
  0x12   : > { %v232_v9 = vrot.slane %v227_v2, %v231_v4  ;;  %v236_v10 = vrot.slane %v227_v2, %v235_v5  ;;  %v262_v11 = vrot.slane %v257_v3, %v231_v4  ;;  %v266_v12 = vrot.slane %v257_v3, %v235_v5 }
  0x13   : > { %v240_v20 = vrot.slane %v227_v2, %v239_v6  ;;  %v244_v21 = vrot.slane %v227_v2, %v243_v7  ;;  %v270_v22 = vrot.slane %v257_v3, %v239_v6  ;;  %v274_v23 = vrot.slane %v257_v3, %v243_v7 }
  0x14   : > { %v249_v24 = vmul.f32 %v232_v9, %v219_v15  ;;  %v250_v25 = vmul.f32 %v236_v10, %v220_v16  ;;  %v223_v26 = vunpack.c.l.bf16 %v217_v14  ;;  %v224_v27 = vunpack.c.h.bf16 %v217_v14 }
  0x15   : > { %v251_v28 = vmul.f32 %v240_v20, %v221_v17  ;;  %v252_v29 = vmul.f32 %v244_v21, %v222_v18  ;;  %v225_v30 = vunpack.c.l.bf16 %v218_v19  ;;  %v226_v31 = vunpack.c.h.bf16 %v218_v19 }
  0x16   : > { %v279_v32 = vadd.f32 %v262_v11, %v249_v24  ;;  %v280_v33 = vadd.f32 %v266_v12, %v250_v25  ;;  %v253_v34 = vmul.f32 %v232_v9, %v223_v26  ;;  %v254_v35 = vmul.f32 %v236_v10, %v224_v27 }
  0x17   : > { %v281_v36 = vadd.f32 %v270_v22, %v251_v28  ;;  %v282_v37 = vadd.f32 %v274_v23, %v252_v29  ;;  %v255_v38 = vmul.f32 %v240_v20, %v225_v30  ;;  %v256_v39 = vmul.f32 %v244_v21, %v226_v31 }
  0x18   : > { %v287_v40 = vmax.f32 %v279_v32, 0.0  ;;  %v288_v41 = vmax.f32 %v280_v33, 0.0  ;;  %v283_v42 = vadd.f32 %v262_v11, %v253_v34  ;;  %v284_v43 = vadd.f32 %v266_v12, %v254_v35 }
  0x19   : > { %v289_v44 = vmax.f32 %v281_v36, 0.0  ;;  %v290_v45 = vmax.f32 %v282_v37, 0.0  ;;  %v285_v46 = vadd.f32 %v270_v22, %v255_v38  ;;  %v286_v47 = vadd.f32 %v274_v23, %v256_v39 }
  0x1a   : > { %v436_v48 = vpack.c.bf16 %v288_v41, %v287_v40  ;;  %v291_v49 = vmax.f32 %v283_v42, 0.0  ;;  %v292_v50 = vmax.f32 %v284_v43, 0.0 }
  0x1b   : > { %v437_v51 = vpack.c.bf16 %v290_v45, %v289_v44  ;;  %v293_v52 = vmax.f32 %v285_v46, 0.0  ;;  %v294_v53 = vmax.f32 %v286_v47, 0.0 }
  0x1c   : > { %319 = vst [vmem:[%s213_s26] sm:$0xff] %v436_v48  ;;  %v438_v54 = vpack.c.bf16 %v292_v50, %v291_v49 }
  0x1d   : > { %320 = vst [vmem:[%s213_s26 + $0x8] sm:$0xff] %v437_v51  ;;  %v439_v55 = vpack.c.bf16 %v294_v53, %v293_v52 }
  0x1e   : > { %321 = vst [vmem:[%s213_s26 + $0x10] sm:$0xff] %v438_v54 }
  0x1f   : > { %322 = vst [vmem:[%s213_s26 + $0x18] sm:$0xff] %v439_v55 }
  0x20 PF: > { %s13_s14 = sadd.s32 1, %s486_s14   ;;  %s558_s12 = smov %s482_s13 }
  0x21   : > { %p10_p5 = scmp.ge.s32.totalorder %s13_s14, 18   ;;  %s559_s13 = smov %s561_s15 }
  0x23   :  { %12 = sbr.rel (!%p10_p5) target bundleno = 2 (0x2), region = 62 }

// kernel: generator_forward.11
= control target key start
LH: loop header
LB: loop body
LE: loop exit
PB: predicated region body
PF: predicated region fallthrough
CT: control target
= control target key end

     0   :  { %s3426_s12 = smov 0   ;;  %s3428_s13 = smov 0   ;;  %s3817_s0 = inlined_call_operand.vmem [shape: bf16[4,32,2048], index: 0, kind: input, shape index: {}]   ;;  %s3818_s1 = inlined_call_operand.vmem [shape: bf16[4,2048,256], index: 1, kind: input, shape index: {}]   ;;  %s3819_s2 = inlined_call_operand.vmem [shape: bf16[4,32,256], index: 2, kind: output, shape index: {0}]   ;;  %s3820_s3 = inlined_call_operand.vmem [shape: f32[4,1,2,256], index: 3, kind: output, shape index: {1}]  }
   0x1   :  { %s3430_s14 = smov 0  }
   0x2 LB: > { %s26_s15 = sadd.s32 1, %s3400_s13  ;;  %p2662_p0 = scmp.ge.s32.totalorder %s3404_s14, 1  ;;  %s3404_s14 = sphi %s3430_s14, %s14_s14   ;;  %s3400_s13 = sphi %s3428_s13, %s3822_s13   ;;  %s3396_s12 = sphi %s3426_s12, %s3821_s12  }
   0x3   : > { %p28_p1 = scmp.ge.s32.totalorder %s26_s15, 4  ;;  %p174_p2 = scmp.lt.s32.totalorder %s3404_s14, 5 }
   0x5   : > { %s3824_s15 = smov (%p28_p1, %s26_s15), 0  ;;  %p175_p3 = pnand %p2662_p0, %p174_p2 }
   0x6   : > { %p223_p4 = scmp.lt.s32.totalorder (!%p175_p3), %s3396_s12, 3 }
   0x7   : > { %178 = sbr.rel (%p175_p3) target bundleno = 504 (0x1f8), region = 28 }
   0xc   : > { %s3826_s12 = smov (!%p223_p4, %s3396_s12), 3  ;;  %vm2482_vm0 = vcmask 1040384  }
   0xd   : > { %s2967_s16 = sshll.u32 %s3826_s12, 11  ;;  %s2966_s20 = sshll.u32 %s3826_s12, 8 }
   0xe   : > { %s3450_s19 = scalar_lea.vmem %s3818_s1, %s2967_s16  ;;  %s3500_s23 = scalar_lea.vmem %s3817_s0, %s2966_s20 }
   0xf   : > { %v2998_v0 = vld [vmem:[%s3450_s19 + $0x74] ss:$8 sps:$4 sm:$0xff]   ;;  %v3002_v2 = vld [vmem:[%s3450_s19 + $0x70] ss:$8 sps:$4 sm:$0xff]   ;;  %v3004_v4 = vld [vmem:[%s3450_s19 + $0x64] ss:$8 sps:$4 sm:$0xff]  }
  0x10   : > { %v3000_v1 = vld [vmem:[%s3450_s19 + $0x174] ss:$8 sps:$4 sm:$0xff]   ;;  %1986 = vmatprep.subr.bf16.mxu0 %v2998_v0  ;;  %v3003_v3 = vld [vmem:[%s3450_s19 + $0x170] ss:$8 sps:$4 sm:$0xff]   ;;  %v3006_v5 = vld [vmem:[%s3450_s19 + $0x164] ss:$8 sps:$4 sm:$0xff]  }
  0x11   : > { %2039 = vmatprep.subr.bf16.mxu1 %v3000_v1  ;;  %1987 = vmatpush1.bf16.msra.mxu0 %v3002_v2  ;;  %v3008_v6 = vld [vmem:[%s3450_s19 + $0x60] ss:$8 sps:$4 sm:$0xff]   ;;  %v3010_v8 = vld [vmem:[%s3450_s19 + $0x54] ss:$8 sps:$4 sm:$0xff]   ;;  %v3014_v10 = vld [vmem:[%s3450_s19 + $0x50] ss:$8 sps:$4 sm:$0xff]  }
  0x12   : > { %2040 = vmatpush1.bf16.msra.mxu1 %v3003_v3  ;;  %1988 = vmatprep.subr.bf16.mxu0 %v3004_v4  ;;  %v3009_v7 = vld [vmem:[%s3450_s19 + $0x160] ss:$8 sps:$4 sm:$0xff]   ;;  %v3012_v9 = vld [vmem:[%s3450_s19 + $0x154] ss:$8 sps:$4 sm:$0xff]   ;;  %v3015_v11 = vld [vmem:[%s3450_s19 + $0x150] ss:$8 sps:$4 sm:$0xff]  }
  0x13   : > { %2041 = vmatprep.subr.bf16.mxu1 %v3006_v5  ;;  %v3016_v12 = vld [vmem:[%s3450_s19 + $0x44] ss:$8 sps:$4 sm:$0xff]   ;;  %v3020_v14 = vld [vmem:[%s3450_s19 + $0x40] ss:$8 sps:$4 sm:$0xff]   ;;  %v3022_v16 = vld [vmem:[%s3450_s19 + $0x34] ss:$8 sps:$4 sm:$0xff]  }
  0x14   : > { %v3018_v13 = vld [vmem:[%s3450_s19 + $0x144] ss:$8 sps:$4 sm:$0xff]   ;;  %v3021_v15 = vld [vmem:[%s3450_s19 + $0x140] ss:$8 sps:$4 sm:$0xff]   ;;  %v3024_v17 = vld [vmem:[%s3450_s19 + $0x134] ss:$8 sps:$4 sm:$0xff]  }
  0x15   : > { %1989 = vmatpush1.bf16.msra.mxu0 %v3008_v6  ;;  %v3026_v18 = vld [vmem:[%s3450_s19 + $0x30] ss:$8 sps:$4 sm:$0xff]   ;;  %v3028_v20 = vld [vmem:[%s3450_s19 + $0x24] ss:$8 sps:$4 sm:$0xff]   ;;  %v3032_v22 = vld [vmem:[%s3450_s19 + $0x20] ss:$8 sps:$4 sm:$0xff]  }
  0x16   : > { %2042 = vmatpush1.bf16.msra.mxu1 %v3009_v7  ;;  %1990 = vmatprep.subr.bf16.mxu0 %v3010_v8  ;;  %v3027_v19 = vld [vmem:[%s3450_s19 + $0x130] ss:$8 sps:$4 sm:$0xff]   ;;  %v3030_v21 = vld [vmem:[%s3450_s19 + $0x124] ss:$8 sps:$4 sm:$0xff]   ;;  %v3033_v23 = vld [vmem:[%s3450_s19 + $0x120] ss:$8 sps:$4 sm:$0xff]  }
  0x17   : > { %2043 = vmatprep.subr.bf16.mxu1 %v3012_v9  ;;  %v3034_v24 = vld [vmem:[%s3450_s19 + $0x14] ss:$8 sps:$4 sm:$0xff]   ;;  %v3038_v26 = vld [vmem:[%s3450_s19 + $0x10] ss:$8 sps:$4 sm:$0xff]   ;;  %v3040_v28 = vld [vmem:[%s3450_s19 + $0x4] ss:$8 sps:$4 sm:$0xff]  }
  0x18   : > { %v3036_v25 = vld [vmem:[%s3450_s19 + $0x114] ss:$8 sps:$4 sm:$0xff]   ;;  %v3039_v27 = vld [vmem:[%s3450_s19 + $0x110] ss:$8 sps:$4 sm:$0xff]   ;;  %v3042_v29 = vld [vmem:[%s3450_s19 + $0x104] ss:$8 sps:$4 sm:$0xff]  }
  0x19   : > { %1991 = vmatpush1.bf16.msra.mxu0 %v3014_v10  ;;  %v3044_v30 = vld [vmem:[%s3450_s19] ss:$8 sps:$4 sm:$0xff]   ;;  %v3046_v32 = vld [vmem:[%s3450_s19 + $0xf4] ss:$8 sps:$4 sm:$0xff]   ;;  %v3050_v34 = vld [vmem:[%s3450_s19 + $0xf0] ss:$8 sps:$4 sm:$0xff]  }
  0x1a   : > { %2044 = vmatpush1.bf16.msra.mxu1 %v3015_v11  ;;  %1992 = vmatprep.subr.bf16.mxu0 %v3016_v12  ;;  %v3045_v31 = vld [vmem:[%s3450_s19 + $0x100] ss:$8 sps:$4 sm:$0xff]   ;;  %v3048_v33 = vld [vmem:[%s3450_s19 + $0x1f4] ss:$8 sps:$4 sm:$0xff]   ;;  %v3051_v35 = vld [vmem:[%s3450_s19 + $0x1f0] ss:$8 sps:$4 sm:$0xff]  }
  0x1b   : > { %2045 = vmatprep.subr.bf16.mxu1 %v3018_v13  ;;  %v3052_v36 = vld [vmem:[%s3450_s19 + $0xe4] ss:$8 sps:$4 sm:$0xff]   ;;  %v3056_v38 = vld [vmem:[%s3450_s19 + $0xe0] ss:$8 sps:$4 sm:$0xff]   ;;  %v3058_v40 = vld [vmem:[%s3450_s19 + $0xd4] ss:$8 sps:$4 sm:$0xff]  }
  0x1c   : > { %v3054_v37 = vld [vmem:[%s3450_s19 + $0x1e4] ss:$8 sps:$4 sm:$0xff]   ;;  %v3057_v39 = vld [vmem:[%s3450_s19 + $0x1e0] ss:$8 sps:$4 sm:$0xff]   ;;  %v3060_v41 = vld [vmem:[%s3450_s19 + $0x1d4] ss:$8 sps:$4 sm:$0xff]  }
  0x1d   : > { %1993 = vmatpush1.bf16.msra.mxu0 %v3020_v14  ;;  %v3062_v42 = vld [vmem:[%s3450_s19 + $0xd0] ss:$8 sps:$4 sm:$0xff]   ;;  %v3064_v44 = vld [vmem:[%s3450_s19 + $0xc4] ss:$8 sps:$4 sm:$0xff]   ;;  %v3068_v46 = vld [vmem:[%s3450_s19 + $0xc0] ss:$8 sps:$4 sm:$0xff]  }
  0x1e   : > { %2046 = vmatpush1.bf16.msra.mxu1 %v3021_v15  ;;  %1994 = vmatprep.subr.bf16.mxu0 %v3022_v16  ;;  %v3063_v43 = vld [vmem:[%s3450_s19 + $0x1d0] ss:$8 sps:$4 sm:$0xff]   ;;  %v3066_v45 = vld [vmem:[%s3450_s19 + $0x1c4] ss:$8 sps:$4 sm:$0xff]   ;;  %v3069_v47 = vld [vmem:[%s3450_s19 + $0x1c0] ss:$8 sps:$4 sm:$0xff]  }
  0x1f   : > { %2047 = vmatprep.subr.bf16.mxu1 %v3024_v17  ;;  %v258_v48 = vld [vmem:[%s3500_s23] sm:$0xff]  ;;  %v259_v50 = vld [vmem:[%s3500_s23 + $0x8] sm:$0xff]  ;;  %v3070_v52 = vld [vmem:[%s3450_s19 + $0xb4] ss:$8 sps:$4 sm:$0xff]   ;;  %s2968_s24 = sshll.u32 %s3826_s12, 5  ;;  %s2969_s28 = sshll.u32 %s3826_s12, 2 }
  0x20   : > { %v266_v49 = vld [vmem:[%s3500_s23 + $0x40] sm:$0xff]  ;;  %v267_v51 = vld [vmem:[%s3500_s23 + $0x48] sm:$0xff]  ;;  %v3072_v54 = vld [vmem:[%s3450_s19 + $0x1b4] ss:$8 sps:$4 sm:$0xff]   ;;  %s3798_s27 = scalar_lea.vmem %s3819_s2, %s2968_s24  ;;  %s257_s4 = scalar_lea.vmem %s3820_s3, %s2969_s28 }
  0x21   : > { %1995 = vmatpush1.bf16.msra.mxu0 %v3026_v18  ;;  %v2672_v53 = vcombine.high %v258_v48, %v266_v49  ;;  %v2674_v55 = vcombine.high %v259_v50, %v267_v51  ;;  %v3074_v56 = vld [vmem:[%s3450_s19 + $0xb0] ss:$8 sps:$4 sm:$0xff]   ;;  %v3076_v58 = vld [vmem:[%s3450_s19 + $0xa4] ss:$8 sps:$4 sm:$0xff]   ;;  %v3080_v60 = vld [vmem:[%s3450_s19 + $0xa0] ss:$8 sps:$4 sm:$0xff]   ;;  %v2671_v8 = vcombine.low %v258_v48, %v266_v49  ;;  %v2673_v9 = vcombine.low %v259_v50, %v267_v51 }
  0x22   : > { %2048 = vmatpush1.bf16.msra.mxu1 %v3027_v19  ;;  %1996 = vmatprep.subr.bf16.mxu0 %v3028_v20  ;;  %v3075_v57 = vld [vmem:[%s3450_s19 + $0x1b0] ss:$8 sps:$4 sm:$0xff]   ;;  %v3078_v59 = vld [vmem:[%s3450_s19 + $0x1a4] ss:$8 sps:$4 sm:$0xff]   ;;  %v3081_v61 = vld [vmem:[%s3450_s19 + $0x1a0] ss:$8 sps:$4 sm:$0xff]  }
  0x23   : > { %2049 = vmatprep.subr.bf16.mxu1 %v3030_v21  ;;  %2018 = vmatprep.mubr.bf16.mxu0 %v2672_v53  ;;  %v3082_v62 = vld [vmem:[%s3450_s19 + $0x94] ss:$8 sps:$4 sm:$0xff]   ;;  %v3086_v0 = vld [vmem:[%s3450_s19 + $0x90] ss:$8 sps:$4 sm:$0xff]   ;;  %v3088_v2 = vld [vmem:[%s3450_s19 + $0x84] ss:$8 sps:$4 sm:$0xff]  }
  0x24   : > { %2071 = vmatprep.mubr.bf16.mxu1 %v2674_v55  ;;  %v3084_v63 = vld [vmem:[%s3450_s19 + $0x194] ss:$8 sps:$4 sm:$0xff]   ;;  %v3087_v1 = vld [vmem:[%s3450_s19 + $0x190] ss:$8 sps:$4 sm:$0xff]   ;;  %v3090_v3 = vld [vmem:[%s3450_s19 + $0x184] ss:$8 sps:$4 sm:$0xff]  }
  0x25   : > { %1997 = vmatpush1.bf16.msra.mxu0 %v3032_v22  ;;  %v3092_v4 = vld [vmem:[%s3450_s19 + $0x80] ss:$8 sps:$4 sm:$0xff]   ;;  %v3096_v6 = vld [vmem:[%s3450_s19 + $0x274] ss:$8 sps:$4 sm:$0xff]   ;;  %v3094_v10 = vld [vmem:[%s3450_s19 + $0x270] ss:$8 sps:$4 sm:$0xff]  }
  0x26   : > { %2050 = vmatpush1.bf16.msra.mxu1 %v3033_v23  ;;  %1998 = vmatprep.subr.bf16.mxu0 %v3034_v24  ;;  %v3093_v5 = vld [vmem:[%s3450_s19 + $0x180] ss:$8 sps:$4 sm:$0xff]   ;;  %v3099_v7 = vld [vmem:[%s3450_s19 + $0x374] ss:$8 sps:$4 sm:$0xff]   ;;  %v3097_v11 = vld [vmem:[%s3450_s19 + $0x370] ss:$8 sps:$4 sm:$0xff]  }
  0x27   : > { %2051 = vmatprep.subr.bf16.mxu1 %v3036_v25  ;;  %v3102_v12 = vld [vmem:[%s3450_s19 + $0x264] ss:$8 sps:$4 sm:$0xff]   ;;  %v3100_v14 = vld [vmem:[%s3450_s19 + $0x260] ss:$8 sps:$4 sm:$0xff]   ;;  %v3108_v16 = vld [vmem:[%s3450_s19 + $0x254] ss:$8 sps:$4 sm:$0xff]  }
  0x28   : > { %v3105_v13 = vld [vmem:[%s3450_s19 + $0x364] ss:$8 sps:$4 sm:$0xff]   ;;  %v3103_v15 = vld [vmem:[%s3450_s19 + $0x360] ss:$8 sps:$4 sm:$0xff]   ;;  %v3111_v17 = vld [vmem:[%s3450_s19 + $0x354] ss:$8 sps:$4 sm:$0xff]  }
  0x29   : > { %1999 = vmatpush1.bf16.msra.mxu0 %v3038_v26  ;;  %v3106_v18 = vld [vmem:[%s3450_s19 + $0x250] ss:$8 sps:$4 sm:$0xff]   ;;  %v3114_v20 = vld [vmem:[%s3450_s19 + $0x244] ss:$8 sps:$4 sm:$0xff]   ;;  %v3112_v22 = vld [vmem:[%s3450_s19 + $0x240] ss:$8 sps:$4 sm:$0xff]  }
  0x2a   : > { %2052 = vmatpush1.bf16.msra.mxu1 %v3039_v27  ;;  %2000 = vmatprep.subr.bf16.mxu0 %v3040_v28  ;;  %v3109_v19 = vld [vmem:[%s3450_s19 + $0x350] ss:$8 sps:$4 sm:$0xff]   ;;  %v3117_v21 = vld [vmem:[%s3450_s19 + $0x344] ss:$8 sps:$4 sm:$0xff]   ;;  %v3115_v23 = vld [vmem:[%s3450_s19 + $0x340] ss:$8 sps:$4 sm:$0xff]  }
  0x2b   : > { %2053 = vmatprep.subr.bf16.mxu1 %v3042_v29  ;;  %v3120_v24 = vld [vmem:[%s3450_s19 + $0x234] ss:$8 sps:$4 sm:$0xff]   ;;  %v3118_v26 = vld [vmem:[%s3450_s19 + $0x230] ss:$8 sps:$4 sm:$0xff]   ;;  %v274_v28 = vld [vmem:[%s3500_s23 + $0x80] sm:$0xff] }
  0x2c   : > { %v3123_v25 = vld [vmem:[%s3450_s19 + $0x334] ss:$8 sps:$4 sm:$0xff]   ;;  %v3121_v27 = vld [vmem:[%s3450_s19 + $0x330] ss:$8 sps:$4 sm:$0xff]   ;;  %v282_v29 = vld [vmem:[%s3500_s23 + $0xc0] sm:$0xff] }
  0x2d   : > { %2001 = vmatpush1.bf16.msra.mxu0 %v3044_v30  ;;  %v275_v30 = vld [vmem:[%s3500_s23 + $0x88] sm:$0xff]  ;;  %v3567_v48 = vld [vmem:[%s3500_s23 + $0x18] sm:$0xff] }
  0x2e   : > { %2054 = vmatpush1.bf16.msra.mxu1 %v3045_v31  ;;  %2002 = vmatprep.subr.bf16.mxu0 %v3046_v32  ;;  %v283_v31 = vld [vmem:[%s3500_s23 + $0xc8] sm:$0xff]  ;;  %v3572_v50 = vld [vmem:[%s3500_s23 + $0x58] sm:$0xff] }
  0x2f   : > { %2055 = vmatprep.subr.bf16.mxu1 %v3048_v33  ;;  %v3126_v32 = vld [vmem:[%s3450_s19 + $0x224] ss:$8 sps:$4 sm:$0xff]   ;;  %v2688_v33 = vcombine.high %v274_v28, %v282_v29  ;;  %v2678_v51 = vcombine.high %v3567_v48, %v3572_v50  ;;  %v3139_v53 = vld [vmem:[%s3450_s19 + $0x300] ss:$8 sps:$4 sm:$0xff]   ;;  %v3147_v55 = vld [vmem:[%s3450_s19 + $0x3f4] ss:$8 sps:$4 sm:$0xff]  }
  0x31   : > { %2003 = vmatpush2.bf16.msra.mxu0 %v3050_v34  ;;  %v2690_v34 = vcombine.high %v275_v30, %v283_v31 }
  0x32   : > { %2056 = vmatpush2.bf16.msra.mxu1 %v3051_v35  ;;  %2004 = vmatprep.subr.bf16.mxu0 %v3052_v36  ;;  %v2687_v35 = vcombine.low %v274_v28, %v282_v29  ;;  %v3129_v36 = vld [vmem:[%s3450_s19 + $0x324] ss:$8 sps:$4 sm:$0xff]   ;;  %v2677_v29 = vcombine.low %v3567_v48, %v3572_v50 }
  0x33   : > { %2057 = vmatprep.subr.bf16.mxu1 %v3054_v37  ;;  %v2689_v37 = vcombine.low %v275_v30, %v283_v31  ;;  %v277_v30 = vld [vmem:[%s3500_s23 + $0x98] sm:$0xff]  ;;  %v3210_v48 = vld [vmem:[%s3450_s19 + $0x444] ss:$8 sps:$4 sm:$0xff]  }
  0x34   : > { %v285_v31 = vld [vmem:[%s3500_s23 + $0xd8] sm:$0xff] }
  0x35   : > { %2005 = vmatpush2.bf16.msra.mxu0 %v3056_v38  ;;  %v3124_v38 = vld [vmem:[%s3450_s19 + $0x220] ss:$8 sps:$4 sm:$0xff]  }
  0x36   : > { %2058 = vmatpush2.bf16.msra.mxu1 %v3057_v39  ;;  %2006 = vmatprep.subr.bf16.mxu0 %v3058_v40  ;;  %v3127_v39 = vld [vmem:[%s3450_s19 + $0x320] ss:$8 sps:$4 sm:$0xff]   ;;  %v3132_v40 = vld [vmem:[%s3450_s19 + $0x214] ss:$8 sps:$4 sm:$0xff]  }
  0x37   : > { %2059 = vmatprep.subr.bf16.mxu1 %v3060_v41  ;;  %v3135_v41 = vld [vmem:[%s3450_s19 + $0x314] ss:$8 sps:$4 sm:$0xff]  }
  0x39   : > { %2007 = vmatpush2.bf16.msra.mxu0 %v3062_v42  ;;  %v3130_v42 = vld [vmem:[%s3450_s19 + $0x210] ss:$8 sps:$4 sm:$0xff]  }
  0x3a   : > { %2060 = vmatpush2.bf16.msra.mxu1 %v3063_v43  ;;  %2008 = vmatprep.subr.bf16.mxu0 %v3064_v44  ;;  %v3133_v43 = vld [vmem:[%s3450_s19 + $0x310] ss:$8 sps:$4 sm:$0xff]   ;;  %v3138_v44 = vld [vmem:[%s3450_s19 + $0x204] ss:$8 sps:$4 sm:$0xff]  }
  0x3b   : > { %2061 = vmatprep.subr.bf16.mxu1 %v3066_v45  ;;  %v3141_v45 = vld [vmem:[%s3450_s19 + $0x304] ss:$8 sps:$4 sm:$0xff]  }
  0x3d   : > { %2009 = vmatpush2.bf16.msra.mxu0 %v3068_v46  ;;  %v3561_v46 = vld [vmem:[%s3500_s23 + $0x10] sm:$0xff] }
  0x3e   : > { %2062 = vmatpush2.bf16.msra.mxu1 %v3069_v47  ;;  %2010 = vmatprep.subr.bf16.mxu0 %v3070_v52  ;;  %v3564_v47 = vld [vmem:[%s3500_s23 + $0x50] sm:$0xff]  ;;  %v3136_v52 = vld [vmem:[%s3450_s19 + $0x200] ss:$8 sps:$4 sm:$0xff]  }
  0x3f   : > { %2063 = vmatprep.subr.bf16.mxu1 %v3072_v54  ;;  %v2676_v49 = vcombine.high %v3561_v46, %v3564_v47  ;;  %v3144_v54 = vld [vmem:[%s3450_s19 + $0x2f4] ss:$8 sps:$4 sm:$0xff]   ;;  %v2675_v28 = vcombine.low %v3561_v46, %v3564_v47  ;;  %v3637_v46 = vld [vmem:[%s3500_s23 + $0x28] sm:$0xff] }
  0x40   : > { %v3640_v47 = vld [vmem:[%s3500_s23 + $0x68] sm:$0xff] }
  0x41   : > { %2011 = vmatpush2.bf16.msra.mxu0 %v3074_v56  ;;  %v3142_v56 = vld [vmem:[%s3450_s19 + $0x2f0] ss:$8 sps:$4 sm:$0xff]  }
  0x42   : > { %2064 = vmatpush2.bf16.msra.mxu1 %v3075_v57  ;;  %2012 = vmatprep.subr.bf16.mxu0 %v3076_v58  ;;  %v3145_v57 = vld [vmem:[%s3450_s19 + $0x3f0] ss:$8 sps:$4 sm:$0xff]   ;;  %v3150_v58 = vld [vmem:[%s3450_s19 + $0x2e4] ss:$8 sps:$4 sm:$0xff]  }
  0x43   : > { %2065 = vmatprep.subr.bf16.mxu1 %v3078_v59  ;;  %v3153_v59 = vld [vmem:[%s3450_s19 + $0x3e4] ss:$8 sps:$4 sm:$0xff]  }
  0x45   : > { %2013 = vmatpush2.bf16.msra.mxu0 %v3080_v60  ;;  %v3148_v60 = vld [vmem:[%s3450_s19 + $0x2e0] ss:$8 sps:$4 sm:$0xff]  }
  0x46   : > { %2066 = vmatpush2.bf16.msra.mxu1 %v3081_v61  ;;  %2014 = vmatprep.subr.bf16.mxu0 %v3082_v62  ;;  %v3151_v61 = vld [vmem:[%s3450_s19 + $0x3e0] ss:$8 sps:$4 sm:$0xff]   ;;  %v3156_v62 = vld [vmem:[%s3450_s19 + $0x2d4] ss:$8 sps:$4 sm:$0xff]  }
  0x47   : > { %2067 = vmatprep.subr.bf16.mxu1 %v3084_v63  ;;  %v3159_v63 = vld [vmem:[%s3450_s19 + $0x3d4] ss:$8 sps:$4 sm:$0xff]  }
  0x49   : > { %2015 = vmatpush2.bf16.msra.mxu0 %v3086_v0  ;;  %v3154_v0 = vld [vmem:[%s3450_s19 + $0x2d0] ss:$8 sps:$4 sm:$0xff]  }
  0x4a   : > { %2068 = vmatpush2.bf16.msra.mxu1 %v3087_v1  ;;  %2016 = vmatprep.subr.bf16.mxu0 %v3088_v2  ;;  %v3157_v1 = vld [vmem:[%s3450_s19 + $0x3d0] ss:$8 sps:$4 sm:$0xff]   ;;  %v3162_v2 = vld [vmem:[%s3450_s19 + $0x2c4] ss:$8 sps:$4 sm:$0xff]  }
  0x4b   : > { %2069 = vmatprep.subr.bf16.mxu1 %v3090_v3  ;;  %v3165_v3 = vld [vmem:[%s3450_s19 + $0x3c4] ss:$8 sps:$4 sm:$0xff]  }
  0x4d   : > { %2017 = vmatpush2.bf16.msra.mxu0 %v3092_v4  ;;  %v3160_v4 = vld [vmem:[%s3450_s19 + $0x2c0] ss:$8 sps:$4 sm:$0xff]  }
  0x4e   : > { %2070 = vmatpush2.bf16.msra.mxu1 %v3093_v5  ;;  %2092 = vmatprep.subr.bf16.mxu0 %v3096_v6  ;;  %v3163_v5 = vld [vmem:[%s3450_s19 + $0x3c0] ss:$8 sps:$4 sm:$0xff]   ;;  %v3168_v6 = vld [vmem:[%s3450_s19 + $0x2b4] ss:$8 sps:$4 sm:$0xff]  }
  0x4f   : > { %2145 = vmatprep.subr.bf16.mxu1 %v3099_v7  ;;  %v3171_v7 = vld [vmem:[%s3450_s19 + $0x3b4] ss:$8 sps:$4 sm:$0xff]  }
  0x50   : > { %2019 = vmatmul.mubr.bf16.vlgmr.msra.gmra.mxu0 %v2671_v8  ;;  %v3166_v8 = vld [vmem:[%s3450_s19 + $0x2b0] ss:$8 sps:$4 sm:$0xff]  }
  0x51   : > { %2072 = vmatmul.mubr.bf16.vlgmr.msra.gmra.mxu1 %v2673_v9  ;;  %2093 = vmatpush1.bf16.msra.mxu0 %v3094_v10  ;;  %v3169_v9 = vld [vmem:[%s3450_s19 + $0x3b0] ss:$8 sps:$4 sm:$0xff]   ;;  %v3174_v10 = vld [vmem:[%s3450_s19 + $0x2a4] ss:$8 sps:$4 sm:$0xff]  }
  0x52   : > { %2146 = vmatpush1.bf16.msra.mxu1 %v3097_v11  ;;  %2094 = vmatprep.subr.bf16.mxu0 %v3102_v12  ;;  %v3177_v11 = vld [vmem:[%s3450_s19 + $0x3a4] ss:$8 sps:$4 sm:$0xff]   ;;  %v3172_v12 = vld [vmem:[%s3450_s19 + $0x2a0] ss:$8 sps:$4 sm:$0xff]  }
  0x53   : > { %2147 = vmatprep.subr.bf16.mxu1 %v3105_v13  ;;  %2028 = vmatprep.mubr.bf16.mxu0 %v2688_v33  ;;  %v3175_v13 = vld [vmem:[%s3450_s19 + $0x3a0] ss:$8 sps:$4 sm:$0xff]   ;;  %v3201_v33 = vld [vmem:[%s3450_s19 + $0x564] ss:$8 sps:$4 sm:$0xff]  }
  0x54   : > { %2081 = vmatprep.mubr.bf16.mxu1 %v2690_v34 }
  0x55   : > { %2095 = vmatpush1.bf16.msra.mxu0 %v3100_v14  ;;  %v3180_v14 = vld [vmem:[%s3450_s19 + $0x294] ss:$8 sps:$4 sm:$0xff]  }
  0x56   : > { %2148 = vmatpush1.bf16.msra.mxu1 %v3103_v15  ;;  %2096 = vmatprep.subr.bf16.mxu0 %v3108_v16  ;;  %v3183_v15 = vld [vmem:[%s3450_s19 + $0x394] ss:$8 sps:$4 sm:$0xff]   ;;  %v3178_v16 = vld [vmem:[%s3450_s19 + $0x290] ss:$8 sps:$4 sm:$0xff]  }
  0x57   : > { %2149 = vmatprep.subr.bf16.mxu1 %v3111_v17  ;;  %v3181_v17 = vld [vmem:[%s3450_s19 + $0x390] ss:$8 sps:$4 sm:$0xff]  }
  0x58   : > { %2029 = vmatmul.mubr.bf16.gmra.mxu0 %v2687_v35  ;;  %v2694_v35 = vcombine.high %v277_v30, %v285_v31 }
  0x59   : > { %2097 = vmatpush1.bf16.msra.mxu0 %v3106_v18  ;;  %2082 = vmatmul.mubr.bf16.gmra.mxu1 %v2689_v37  ;;  %v3186_v18 = vld [vmem:[%s3450_s19 + $0x284] ss:$8 sps:$4 sm:$0xff]   ;;  %v3199_v37 = vld [vmem:[%s3450_s19 + $0x560] ss:$8 sps:$4 sm:$0xff]  }
  0x5a   : > { %2150 = vmatpush1.bf16.msra.mxu1 %v3109_v19  ;;  %2098 = vmatprep.subr.bf16.mxu0 %v3114_v20  ;;  %v3189_v19 = vld [vmem:[%s3450_s19 + $0x384] ss:$8 sps:$4 sm:$0xff]   ;;  %v3184_v20 = vld [vmem:[%s3450_s19 + $0x280] ss:$8 sps:$4 sm:$0xff]  }
  0x5b   : > { %2151 = vmatprep.subr.bf16.mxu1 %v3117_v21  ;;  %2124 = vmatprep.mubr.bf16.mxu0 %v2676_v49  ;;  %v3187_v21 = vld [vmem:[%s3450_s19 + $0x380] ss:$8 sps:$4 sm:$0xff]   ;;  %v3213_v49 = vld [vmem:[%s3450_s19 + $0x544] ss:$8 sps:$4 sm:$0xff]  }
  0x5c   : > { %2177 = vmatprep.mubr.bf16.mxu1 %v2678_v51  ;;  %v2682_v51 = vcombine.high %v3637_v46, %v3640_v47 }
  0x5d   : > { %2099 = vmatpush1.bf16.msra.mxu0 %v3112_v22  ;;  %v3192_v22 = vld [vmem:[%s3450_s19 + $0x474] ss:$8 sps:$4 sm:$0xff]  }
  0x5e   : > { %2152 = vmatpush1.bf16.msra.mxu1 %v3115_v23  ;;  %2100 = vmatprep.subr.bf16.mxu0 %v3120_v24  ;;  %v3195_v23 = vld [vmem:[%s3450_s19 + $0x574] ss:$8 sps:$4 sm:$0xff]   ;;  %v3190_v24 = vld [vmem:[%s3450_s19 + $0x470] ss:$8 sps:$4 sm:$0xff]  }
  0x5f   : > { %2153 = vmatprep.subr.bf16.mxu1 %v3123_v25  ;;  %v3193_v25 = vld [vmem:[%s3450_s19 + $0x570] ss:$8 sps:$4 sm:$0xff]  }
  0x61   : > { %2101 = vmatpush1.bf16.msra.mxu0 %v3118_v26  ;;  %v276_v26 = vld [vmem:[%s3500_s23 + $0x90] sm:$0xff] }
  0x62   : > { %2154 = vmatpush1.bf16.msra.mxu1 %v3121_v27  ;;  %2102 = vmatprep.subr.bf16.mxu0 %v3126_v32  ;;  %v284_v27 = vld [vmem:[%s3500_s23 + $0xd0] sm:$0xff]  ;;  %v3198_v32 = vld [vmem:[%s3450_s19 + $0x464] ss:$8 sps:$4 sm:$0xff]  }
  0x63   : > { %2155 = vmatprep.subr.bf16.mxu1 %v3129_v36  ;;  %v2692_v34 = vcombine.high %v276_v26, %v284_v27  ;;  %v3196_v36 = vld [vmem:[%s3450_s19 + $0x460] ss:$8 sps:$4 sm:$0xff]  }
  0x65   : > { %2103 = vmatpush1.bf16.msra.mxu0 %v3124_v38  ;;  %v3204_v38 = vld [vmem:[%s3450_s19 + $0x454] ss:$8 sps:$4 sm:$0xff]  }
  0x66   : > { %2156 = vmatpush1.bf16.msra.mxu1 %v3127_v39  ;;  %2104 = vmatprep.subr.bf16.mxu0 %v3132_v40  ;;  %v3207_v39 = vld [vmem:[%s3450_s19 + $0x554] ss:$8 sps:$4 sm:$0xff]   ;;  %v3202_v40 = vld [vmem:[%s3450_s19 + $0x450] ss:$8 sps:$4 sm:$0xff]  }
  0x67   : > { %2157 = vmatprep.subr.bf16.mxu1 %v3135_v41  ;;  %v3205_v41 = vld [vmem:[%s3450_s19 + $0x550] ss:$8 sps:$4 sm:$0xff]  }
  0x69   : > { %2105 = vmatpush1.bf16.msra.mxu0 %v3130_v42  ;;  %v3631_v42 = vld [vmem:[%s3500_s23 + $0x20] sm:$0xff] }
  0x6a   : > { %2158 = vmatpush1.bf16.msra.mxu1 %v3133_v43  ;;  %2106 = vmatprep.subr.bf16.mxu0 %v3138_v44  ;;  %v3634_v43 = vld [vmem:[%s3500_s23 + $0x60] sm:$0xff]  ;;  %v2691_v44 = vcombine.low %v276_v26, %v284_v27 }
  0x6b   : > { %2159 = vmatprep.subr.bf16.mxu1 %v3141_v45  ;;  %v2693_v45 = vcombine.low %v277_v30, %v285_v31  ;;  %v2680_v50 = vcombine.high %v3631_v42, %v3634_v43  ;;  %v3270_v26 = vld [vmem:[%s3450_s19 + $0x4a4] ss:$8 sps:$4 sm:$0xff]   ;;  %v3276_v30 = vld [vmem:[%s3450_s19 + $0x494] ss:$8 sps:$4 sm:$0xff]  }
  0x6c   : > { %v3273_v27 = vld [vmem:[%s3450_s19 + $0x5a4] ss:$8 sps:$4 sm:$0xff]   ;;  %v3279_v31 = vld [vmem:[%s3450_s19 + $0x594] ss:$8 sps:$4 sm:$0xff]  }
  0x6d   : > { %2107 = vmatpush1.bf16.msra.mxu0 %v3136_v52  ;;  %v3208_v52 = vld [vmem:[%s3450_s19 + $0x440] ss:$8 sps:$4 sm:$0xff]  }
  0x6e   : > { %2160 = vmatpush1.bf16.msra.mxu1 %v3139_v53  ;;  %2108 = vmatprep.subr.bf16.mxu0 %v3144_v54  ;;  %v3211_v53 = vld [vmem:[%s3450_s19 + $0x540] ss:$8 sps:$4 sm:$0xff]   ;;  %v3216_v54 = vld [vmem:[%s3450_s19 + $0x434] ss:$8 sps:$4 sm:$0xff]  }
  0x6f   : > { %2161 = vmatprep.subr.bf16.mxu1 %v3147_v55  ;;  %v3219_v55 = vld [vmem:[%s3450_s19 + $0x534] ss:$8 sps:$4 sm:$0xff]  }
  0x71   : > { %2109 = vmatpush2.bf16.msra.mxu0 %v3142_v56  ;;  %v3214_v56 = vld [vmem:[%s3450_s19 + $0x430] ss:$8 sps:$4 sm:$0xff]  }
  0x72   : > { %2162 = vmatpush2.bf16.msra.mxu1 %v3145_v57  ;;  %2110 = vmatprep.subr.bf16.mxu0 %v3150_v58  ;;  %v3217_v57 = vld [vmem:[%s3450_s19 + $0x530] ss:$8 sps:$4 sm:$0xff]   ;;  %v3222_v58 = vld [vmem:[%s3450_s19 + $0x424] ss:$8 sps:$4 sm:$0xff]  }
  0x73   : > { %2163 = vmatprep.subr.bf16.mxu1 %v3153_v59  ;;  %v3225_v59 = vld [vmem:[%s3450_s19 + $0x524] ss:$8 sps:$4 sm:$0xff]  }
  0x75   : > { %2111 = vmatpush2.bf16.msra.mxu0 %v3148_v60  ;;  %v3220_v60 = vld [vmem:[%s3450_s19 + $0x420] ss:$8 sps:$4 sm:$0xff]  }
  0x76   : > { %2164 = vmatpush2.bf16.msra.mxu1 %v3151_v61  ;;  %2112 = vmatprep.subr.bf16.mxu0 %v3156_v62  ;;  %v3223_v61 = vld [vmem:[%s3450_s19 + $0x520] ss:$8 sps:$4 sm:$0xff]   ;;  %v3228_v62 = vld [vmem:[%s3450_s19 + $0x414] ss:$8 sps:$4 sm:$0xff]  }
  0x77   : > { %2165 = vmatprep.subr.bf16.mxu1 %v3159_v63  ;;  %v3231_v63 = vld [vmem:[%s3450_s19 + $0x514] ss:$8 sps:$4 sm:$0xff]  }
  0x79   : > { %2113 = vmatpush2.bf16.msra.mxu0 %v3154_v0  ;;  %v3226_v0 = vld [vmem:[%s3450_s19 + $0x410] ss:$8 sps:$4 sm:$0xff]  }
  0x7a   : > { %2166 = vmatpush2.bf16.msra.mxu1 %v3157_v1  ;;  %2114 = vmatprep.subr.bf16.mxu0 %v3162_v2  ;;  %v3229_v1 = vld [vmem:[%s3450_s19 + $0x510] ss:$8 sps:$4 sm:$0xff]   ;;  %v3234_v2 = vld [vmem:[%s3450_s19 + $0x404] ss:$8 sps:$4 sm:$0xff]  }
  0x7b   : > { %2167 = vmatprep.subr.bf16.mxu1 %v3165_v3  ;;  %v3237_v3 = vld [vmem:[%s3450_s19 + $0x504] ss:$8 sps:$4 sm:$0xff]  }
  0x7d   : > { %2115 = vmatpush2.bf16.msra.mxu0 %v3160_v4  ;;  %v3232_v4 = vld [vmem:[%s3450_s19 + $0x400] ss:$8 sps:$4 sm:$0xff]  }
  0x7e   : > { %2168 = vmatpush2.bf16.msra.mxu1 %v3163_v5  ;;  %2116 = vmatprep.subr.bf16.mxu0 %v3168_v6  ;;  %v3235_v5 = vld [vmem:[%s3450_s19 + $0x500] ss:$8 sps:$4 sm:$0xff]   ;;  %v3240_v6 = vld [vmem:[%s3450_s19 + $0x4f4] ss:$8 sps:$4 sm:$0xff]  }
  0x7f   : > { %2169 = vmatprep.subr.bf16.mxu1 %v3171_v7  ;;  %v3243_v7 = vld [vmem:[%s3450_s19 + $0x5f4] ss:$8 sps:$4 sm:$0xff]  }
  0x81   : > { %2117 = vmatpush2.bf16.msra.mxu0 %v3166_v8  ;;  %v3238_v8 = vld [vmem:[%s3450_s19 + $0x4f0] ss:$8 sps:$4 sm:$0xff]  }
  0x82   : > { %2170 = vmatpush2.bf16.msra.mxu1 %v3169_v9  ;;  %2118 = vmatprep.subr.bf16.mxu0 %v3174_v10  ;;  %v3241_v9 = vld [vmem:[%s3450_s19 + $0x5f0] ss:$8 sps:$4 sm:$0xff]   ;;  %v3246_v10 = vld [vmem:[%s3450_s19 + $0x4e4] ss:$8 sps:$4 sm:$0xff]  }
  0x83   : > { %2171 = vmatprep.subr.bf16.mxu1 %v3177_v11  ;;  %v3249_v11 = vld [vmem:[%s3450_s19 + $0x5e4] ss:$8 sps:$4 sm:$0xff]  }
  0x85   : > { %2119 = vmatpush2.bf16.msra.mxu0 %v3172_v12  ;;  %v3244_v12 = vld [vmem:[%s3450_s19 + $0x4e0] ss:$8 sps:$4 sm:$0xff]  }
  0x86   : > { %2172 = vmatpush2.bf16.msra.mxu1 %v3175_v13  ;;  %2120 = vmatprep.subr.bf16.mxu0 %v3180_v14  ;;  %v3247_v13 = vld [vmem:[%s3450_s19 + $0x5e0] ss:$8 sps:$4 sm:$0xff]   ;;  %v3252_v14 = vld [vmem:[%s3450_s19 + $0x4d4] ss:$8 sps:$4 sm:$0xff]  }
  0x87   : > { %2173 = vmatprep.subr.bf16.mxu1 %v3183_v15  ;;  %v3255_v15 = vld [vmem:[%s3450_s19 + $0x5d4] ss:$8 sps:$4 sm:$0xff]  }
  0x89   : > { %2121 = vmatpush2.bf16.msra.mxu0 %v3178_v16  ;;  %v3250_v16 = vld [vmem:[%s3450_s19 + $0x4d0] ss:$8 sps:$4 sm:$0xff]  }
  0x8a   : > { %2174 = vmatpush2.bf16.msra.mxu1 %v3181_v17  ;;  %2122 = vmatprep.subr.bf16.mxu0 %v3186_v18  ;;  %v3253_v17 = vld [vmem:[%s3450_s19 + $0x5d0] ss:$8 sps:$4 sm:$0xff]   ;;  %v3258_v18 = vld [vmem:[%s3450_s19 + $0x4c4] ss:$8 sps:$4 sm:$0xff]  }
  0x8b   : > { %2175 = vmatprep.subr.bf16.mxu1 %v3189_v19  ;;  %v3261_v19 = vld [vmem:[%s3450_s19 + $0x5c4] ss:$8 sps:$4 sm:$0xff]  }
  0x8d   : > { %2123 = vmatpush2.bf16.msra.mxu0 %v3184_v20  ;;  %v3256_v20 = vld [vmem:[%s3450_s19 + $0x4c0] ss:$8 sps:$4 sm:$0xff]  }
  0x8e   : > { %2176 = vmatpush2.bf16.msra.mxu1 %v3187_v21  ;;  %2198 = vmatprep.subr.bf16.mxu0 %v3192_v22  ;;  %v3259_v21 = vld [vmem:[%s3450_s19 + $0x5c0] ss:$8 sps:$4 sm:$0xff]   ;;  %v3264_v22 = vld [vmem:[%s3450_s19 + $0x4b4] ss:$8 sps:$4 sm:$0xff]  }
  0x8f   : > { %2251 = vmatprep.subr.bf16.mxu1 %v3195_v23  ;;  %v3267_v23 = vld [vmem:[%s3450_s19 + $0x5b4] ss:$8 sps:$4 sm:$0xff]  }
  0x90   : > { %2125 = vmatmul.mubr.bf16.vlgmr.msra.gmra.mxu0 %v2675_v28  ;;  %v3268_v28 = vld [vmem:[%s3450_s19 + $0x4a0] ss:$8 sps:$4 sm:$0xff]  }
  0x91   : > { %2178 = vmatmul.mubr.bf16.vlgmr.msra.gmra.mxu1 %v2677_v29  ;;  %2199 = vmatpush1.bf16.msra.mxu0 %v3190_v24  ;;  %v3262_v24 = vld [vmem:[%s3450_s19 + $0x4b0] ss:$8 sps:$4 sm:$0xff]   ;;  %v3271_v29 = vld [vmem:[%s3450_s19 + $0x5a0] ss:$8 sps:$4 sm:$0xff]  }
  0x92   : > { %2252 = vmatpush1.bf16.msra.mxu1 %v3193_v25  ;;  %2200 = vmatprep.subr.bf16.mxu0 %v3198_v32  ;;  %v3265_v25 = vld [vmem:[%s3450_s19 + $0x5b0] ss:$8 sps:$4 sm:$0xff]  }
  0x93   : > { %2253 = vmatprep.subr.bf16.mxu1 %v3201_v33  ;;  %2134 = vmatprep.mubr.bf16.mxu0 %v2692_v34  ;;  %v3274_v32 = vld [vmem:[%s3450_s19 + $0x490] ss:$8 sps:$4 sm:$0xff]   ;;  %v3282_v34 = vld [vmem:[%s3450_s19 + $0x484] ss:$8 sps:$4 sm:$0xff]  }
  0x94   : > { %2187 = vmatprep.mubr.bf16.mxu1 %v2694_v35  ;;  %v3277_v33 = vld [vmem:[%s3450_s19 + $0x590] ss:$8 sps:$4 sm:$0xff]   ;;  %v3285_v35 = vld [vmem:[%s3450_s19 + $0x584] ss:$8 sps:$4 sm:$0xff]  }
  0x95   : > { %2201 = vmatpush1.bf16.msra.mxu0 %v3196_v36  ;;  %v3280_v36 = vld [vmem:[%s3450_s19 + $0x480] ss:$8 sps:$4 sm:$0xff]  }
  0x96   : > { %2254 = vmatpush1.bf16.msra.mxu1 %v3199_v37  ;;  %2202 = vmatprep.subr.bf16.mxu0 %v3204_v38  ;;  %v3283_v37 = vld [vmem:[%s3450_s19 + $0x580] ss:$8 sps:$4 sm:$0xff]   ;;  %v3288_v38 = vld [vmem:[%s3450_s19 + $0x674] ss:$8 sps:$4 sm:$0xff]  }
  0x97   : > { %2255 = vmatprep.subr.bf16.mxu1 %v3207_v39  ;;  %v3291_v39 = vld [vmem:[%s3450_s19 + $0x774] ss:$8 sps:$4 sm:$0xff]  }
  0x98   : > { %2135 = vmatmul.mubr.bf16.gmra.mxu0 %v2691_v44  ;;  %v2681_v44 = vcombine.low %v3637_v46, %v3640_v47  ;;  %v3292_v46 = vld [vmem:[%s3450_s19 + $0x660] ss:$8 sps:$4 sm:$0xff]  }
  0x99   : > { %2188 = vmatmul.mubr.bf16.gmra.mxu1 %v2693_v45  ;;  %2203 = vmatpush1.bf16.msra.mxu0 %v3202_v40  ;;  %v278_v40 = vld [vmem:[%s3500_s23 + $0xa0] sm:$0xff] }
  0x9a   : > { %2256 = vmatpush1.bf16.msra.mxu1 %v3205_v41  ;;  %2204 = vmatprep.subr.bf16.mxu0 %v3210_v48  ;;  %v2679_v41 = vcombine.low %v3631_v42, %v3634_v43  ;;  %v286_v45 = vld [vmem:[%s3500_s23 + $0xe0] sm:$0xff]  ;;  %v279_v48 = vld [vmem:[%s3500_s23 + $0xa8] sm:$0xff] }
  0x9b   : > { %2257 = vmatprep.subr.bf16.mxu1 %v3213_v49  ;;  %2230 = vmatprep.mubr.bf16.mxu0 %v2680_v50  ;;  %v287_v49 = vld [vmem:[%s3500_s23 + $0xe8] sm:$0xff]  ;;  %v3286_v50 = vld [vmem:[%s3450_s19 + $0x670] ss:$8 sps:$4 sm:$0xff]   ;;  %v2696_v42 = vcombine.high %v278_v40, %v286_v45 }
  0x9c   : > { %2283 = vmatprep.mubr.bf16.mxu1 %v2682_v51  ;;  %v3289_v51 = vld [vmem:[%s3450_s19 + $0x770] ss:$8 sps:$4 sm:$0xff]   ;;  %v2698_v43 = vcombine.high %v279_v48, %v287_v49  ;;  %v3295_v47 = vld [vmem:[%s3450_s19 + $0x760] ss:$8 sps:$4 sm:$0xff]  }
  0x9d   : > { %2205 = vmatpush1.bf16.msra.mxu0 %v3208_v52  ;;  %v3294_v52 = vld [vmem:[%s3450_s19 + $0x664] ss:$8 sps:$4 sm:$0xff]  }
  0x9e   : > { %2258 = vmatpush1.bf16.msra.mxu1 %v3211_v53  ;;  %2206 = vmatprep.subr.bf16.mxu0 %v3216_v54  ;;  %v3297_v53 = vld [vmem:[%s3450_s19 + $0x764] ss:$8 sps:$4 sm:$0xff]   ;;  %v3300_v54 = vld [vmem:[%s3450_s19 + $0x654] ss:$8 sps:$4 sm:$0xff]  }
  0x9f   : > { %2259 = vmatprep.subr.bf16.mxu1 %v3219_v55  ;;  %v3303_v55 = vld [vmem:[%s3450_s19 + $0x754] ss:$8 sps:$4 sm:$0xff]  }
  0xa1   : > { %2207 = vmatpush1.bf16.msra.mxu0 %v3214_v56  ;;  %v3717_v56 = vld [vmem:[%s3500_s23 + $0x30] sm:$0xff] }
  0xa2   : > { %2260 = vmatpush1.bf16.msra.mxu1 %v3217_v57  ;;  %2208 = vmatprep.subr.bf16.mxu0 %v3222_v58  ;;  %v2695_v57 = vcombine.low %v278_v40, %v286_v45  ;;  %v2697_v58 = vcombine.low %v279_v48, %v287_v49  ;;  %v3358_v40 = vld [vmem:[%s3450_s19 + $0x6b0] ss:$8 sps:$4 sm:$0xff]   ;;  %v3369_v45 = vld [vmem:[%s3450_s19 + $0x7a4] ss:$8 sps:$4 sm:$0xff]   ;;  %v3364_v48 = vld [vmem:[%s3450_s19 + $0x6a0] ss:$8 sps:$4 sm:$0xff]  }
  0xa3   : > { %2261 = vmatprep.subr.bf16.mxu1 %v3225_v59  ;;  %v3720_v59 = vld [vmem:[%s3500_s23 + $0x70] sm:$0xff]  ;;  %v3367_v49 = vld [vmem:[%s3450_s19 + $0x7a0] ss:$8 sps:$4 sm:$0xff]  }
  0xa5   : > { %2209 = vmatpush1.bf16.msra.mxu0 %v3220_v60  ;;  %v3723_v60 = vld [vmem:[%s3500_s23 + $0x38] sm:$0xff] }
  0xa6   : > { %2262 = vmatpush1.bf16.msra.mxu1 %v3223_v61  ;;  %2210 = vmatprep.subr.bf16.mxu0 %v3228_v62  ;;  %v3726_v61 = vld [vmem:[%s3500_s23 + $0x78] sm:$0xff] }
  0xa7   : > { %2263 = vmatprep.subr.bf16.mxu1 %v3231_v63  ;;  %v3298_v62 = vld [vmem:[%s3450_s19 + $0x650] ss:$8 sps:$4 sm:$0xff]  }
  0xa8   : > { %v3301_v63 = vld [vmem:[%s3450_s19 + $0x750] ss:$8 sps:$4 sm:$0xff]  }
  0xa9   : > { %2211 = vmatpush1.bf16.msra.mxu0 %v3226_v0  ;;  %v3306_v0 = vld [vmem:[%s3450_s19 + $0x644] ss:$8 sps:$4 sm:$0xff]  }
  0xaa   : > { %2264 = vmatpush1.bf16.msra.mxu1 %v3229_v1  ;;  %2212 = vmatprep.subr.bf16.mxu0 %v3234_v2  ;;  %v3309_v1 = vld [vmem:[%s3450_s19 + $0x744] ss:$8 sps:$4 sm:$0xff]   ;;  %v2684_v2 = vcombine.high %v3717_v56, %v3720_v59 }
  0xab   : > { %2265 = vmatprep.subr.bf16.mxu1 %v3237_v3  ;;  %v2686_v3 = vcombine.high %v3723_v60, %v3726_v61 }
  0xad   : > { %2213 = vmatpush1.bf16.msra.mxu0 %v3232_v4  ;;  %v3304_v4 = vld [vmem:[%s3450_s19 + $0x640] ss:$8 sps:$4 sm:$0xff]  }
  0xae   : > { %2266 = vmatpush1.bf16.msra.mxu1 %v3235_v5  ;;  %2214 = vmatprep.subr.bf16.mxu0 %v3240_v6  ;;  %v3307_v5 = vld [vmem:[%s3450_s19 + $0x740] ss:$8 sps:$4 sm:$0xff]   ;;  %v3312_v6 = vld [vmem:[%s3450_s19 + $0x634] ss:$8 sps:$4 sm:$0xff]  }
  0xaf   : > { %2267 = vmatprep.subr.bf16.mxu1 %v3243_v7  ;;  %v3315_v7 = vld [vmem:[%s3450_s19 + $0x734] ss:$8 sps:$4 sm:$0xff]  }
  0xb1   : > { %2215 = vmatpush2.bf16.msra.mxu0 %v3238_v8  ;;  %v3310_v8 = vld [vmem:[%s3450_s19 + $0x630] ss:$8 sps:$4 sm:$0xff]  }
  0xb2   : > { %2268 = vmatpush2.bf16.msra.mxu1 %v3241_v9  ;;  %2216 = vmatprep.subr.bf16.mxu0 %v3246_v10  ;;  %v3313_v9 = vld [vmem:[%s3450_s19 + $0x730] ss:$8 sps:$4 sm:$0xff]   ;;  %v3318_v10 = vld [vmem:[%s3450_s19 + $0x624] ss:$8 sps:$4 sm:$0xff]  }
  0xb3   : > { %2269 = vmatprep.subr.bf16.mxu1 %v3249_v11  ;;  %v3321_v11 = vld [vmem:[%s3450_s19 + $0x724] ss:$8 sps:$4 sm:$0xff]  }
  0xb5   : > { %2217 = vmatpush2.bf16.msra.mxu0 %v3244_v12  ;;  %v3316_v12 = vld [vmem:[%s3450_s19 + $0x620] ss:$8 sps:$4 sm:$0xff]  }
  0xb6   : > { %2270 = vmatpush2.bf16.msra.mxu1 %v3247_v13  ;;  %2218 = vmatprep.subr.bf16.mxu0 %v3252_v14  ;;  %v3319_v13 = vld [vmem:[%s3450_s19 + $0x720] ss:$8 sps:$4 sm:$0xff]   ;;  %v3324_v14 = vld [vmem:[%s3450_s19 + $0x614] ss:$8 sps:$4 sm:$0xff]  }
  0xb7   : > { %2271 = vmatprep.subr.bf16.mxu1 %v3255_v15  ;;  %v3327_v15 = vld [vmem:[%s3450_s19 + $0x714] ss:$8 sps:$4 sm:$0xff]  }
  0xb9   : > { %2219 = vmatpush2.bf16.msra.mxu0 %v3250_v16  ;;  %v3322_v16 = vld [vmem:[%s3450_s19 + $0x610] ss:$8 sps:$4 sm:$0xff]  }
  0xba   : > { %2272 = vmatpush2.bf16.msra.mxu1 %v3253_v17  ;;  %2220 = vmatprep.subr.bf16.mxu0 %v3258_v18  ;;  %v3325_v17 = vld [vmem:[%s3450_s19 + $0x710] ss:$8 sps:$4 sm:$0xff]   ;;  %v3330_v18 = vld [vmem:[%s3450_s19 + $0x604] ss:$8 sps:$4 sm:$0xff]  }
  0xbb   : > { %2273 = vmatprep.subr.bf16.mxu1 %v3261_v19  ;;  %v3333_v19 = vld [vmem:[%s3450_s19 + $0x704] ss:$8 sps:$4 sm:$0xff]  }
  0xbd   : > { %2221 = vmatpush2.bf16.msra.mxu0 %v3256_v20  ;;  %v3328_v20 = vld [vmem:[%s3450_s19 + $0x600] ss:$8 sps:$4 sm:$0xff]  }
  0xbe   : > { %2274 = vmatpush2.bf16.msra.mxu1 %v3259_v21  ;;  %2222 = vmatprep.subr.bf16.mxu0 %v3264_v22  ;;  %v3331_v21 = vld [vmem:[%s3450_s19 + $0x700] ss:$8 sps:$4 sm:$0xff]   ;;  %v3336_v22 = vld [vmem:[%s3450_s19 + $0x6f4] ss:$8 sps:$4 sm:$0xff]  }
  0xbf   : > { %2275 = vmatprep.subr.bf16.mxu1 %v3267_v23  ;;  %v3339_v23 = vld [vmem:[%s3450_s19 + $0x7f4] ss:$8 sps:$4 sm:$0xff]  }
  0xc1   : > { %2223 = vmatpush2.bf16.msra.mxu0 %v3262_v24  ;;  %v3334_v24 = vld [vmem:[%s3450_s19 + $0x6f0] ss:$8 sps:$4 sm:$0xff]  }
  0xc2   : > { %2276 = vmatpush2.bf16.msra.mxu1 %v3265_v25  ;;  %2224 = vmatprep.subr.bf16.mxu0 %v3270_v26  ;;  %v3337_v25 = vld [vmem:[%s3450_s19 + $0x7f0] ss:$8 sps:$4 sm:$0xff]   ;;  %v3342_v26 = vld [vmem:[%s3450_s19 + $0x6e4] ss:$8 sps:$4 sm:$0xff]  }
  0xc3   : > { %2277 = vmatprep.subr.bf16.mxu1 %v3273_v27  ;;  %v3345_v27 = vld [vmem:[%s3450_s19 + $0x7e4] ss:$8 sps:$4 sm:$0xff]  }
  0xc5   : > { %2225 = vmatpush2.bf16.msra.mxu0 %v3268_v28  ;;  %v3340_v28 = vld [vmem:[%s3450_s19 + $0x6e0] ss:$8 sps:$4 sm:$0xff]  }
  0xc6   : > { %2278 = vmatpush2.bf16.msra.mxu1 %v3271_v29  ;;  %2226 = vmatprep.subr.bf16.mxu0 %v3276_v30  ;;  %v3343_v29 = vld [vmem:[%s3450_s19 + $0x7e0] ss:$8 sps:$4 sm:$0xff]   ;;  %v3348_v30 = vld [vmem:[%s3450_s19 + $0x6d4] ss:$8 sps:$4 sm:$0xff]  }
  0xc7   : > { %2279 = vmatprep.subr.bf16.mxu1 %v3279_v31  ;;  %v3351_v31 = vld [vmem:[%s3450_s19 + $0x7d4] ss:$8 sps:$4 sm:$0xff]  }
  0xc9   : > { %2227 = vmatpush2.bf16.msra.mxu0 %v3274_v32  ;;  %v3346_v32 = vld [vmem:[%s3450_s19 + $0x6d0] ss:$8 sps:$4 sm:$0xff]  }
  0xca   : > { %2280 = vmatpush2.bf16.msra.mxu1 %v3277_v33  ;;  %2228 = vmatprep.subr.bf16.mxu0 %v3282_v34  ;;  %v3349_v33 = vld [vmem:[%s3450_s19 + $0x7d0] ss:$8 sps:$4 sm:$0xff]   ;;  %v3354_v34 = vld [vmem:[%s3450_s19 + $0x6c4] ss:$8 sps:$4 sm:$0xff]  }
  0xcb   : > { %2281 = vmatprep.subr.bf16.mxu1 %v3285_v35  ;;  %v3357_v35 = vld [vmem:[%s3450_s19 + $0x7c4] ss:$8 sps:$4 sm:$0xff]  }
  0xcd   : > { %2229 = vmatpush2.bf16.msra.mxu0 %v3280_v36  ;;  %v3352_v36 = vld [vmem:[%s3450_s19 + $0x6c0] ss:$8 sps:$4 sm:$0xff]  }
  0xce   : > { %2282 = vmatpush2.bf16.msra.mxu1 %v3283_v37  ;;  %2304 = vmatprep.subr.bf16.mxu0 %v3288_v38  ;;  %v3355_v37 = vld [vmem:[%s3450_s19 + $0x7c0] ss:$8 sps:$4 sm:$0xff]   ;;  %v3360_v38 = vld [vmem:[%s3450_s19 + $0x6b4] ss:$8 sps:$4 sm:$0xff]  }
  0xcf   : > { %2357 = vmatprep.subr.bf16.mxu1 %v3291_v39  ;;  %v3363_v39 = vld [vmem:[%s3450_s19 + $0x7b4] ss:$8 sps:$4 sm:$0xff]  }
  0xd0   : > { %2231 = vmatmul.mubr.bf16.vlgmr.msra.gmra.mxu0 %v2679_v41  ;;  %v3361_v41 = vld [vmem:[%s3450_s19 + $0x7b0] ss:$8 sps:$4 sm:$0xff]  }
  0xd1   : > { %2284 = vmatmul.mubr.bf16.vlgmr.msra.gmra.mxu1 %v2681_v44  ;;  %2305 = vmatpush1.bf16.msra.mxu0 %v3286_v50  ;;  %v3366_v44 = vld [vmem:[%s3450_s19 + $0x6a4] ss:$8 sps:$4 sm:$0xff]   ;;  %v3372_v50 = vld [vmem:[%s3450_s19 + $0x694] ss:$8 sps:$4 sm:$0xff]  }
  0xd2   : > { %2358 = vmatpush1.bf16.msra.mxu1 %v3289_v51  ;;  %2306 = vmatprep.subr.bf16.mxu0 %v3294_v52  ;;  %v3375_v51 = vld [vmem:[%s3450_s19 + $0x794] ss:$8 sps:$4 sm:$0xff]   ;;  %v3370_v52 = vld [vmem:[%s3450_s19 + $0x690] ss:$8 sps:$4 sm:$0xff]  }
  0xd3   : > { %2359 = vmatprep.subr.bf16.mxu1 %v3297_v53  ;;  %2240 = vmatprep.mubr.bf16.mxu0 %v2696_v42  ;;  %v3373_v53 = vld [vmem:[%s3450_s19 + $0x790] ss:$8 sps:$4 sm:$0xff]   ;;  %v3378_v42 = vld [vmem:[%s3450_s19 + $0x684] ss:$8 sps:$4 sm:$0xff]  }
  0xd4   : > { %2293 = vmatprep.mubr.bf16.mxu1 %v2698_v43  ;;  %v3381_v43 = vld [vmem:[%s3450_s19 + $0x784] ss:$8 sps:$4 sm:$0xff]  }
  0xd5   : > { %2307 = vmatpush1.bf16.msra.mxu0 %v3292_v46  ;;  %v3376_v46 = vld [vmem:[%s3450_s19 + $0x680] ss:$8 sps:$4 sm:$0xff]  }
  0xd6   : > { %2360 = vmatpush1.bf16.msra.mxu1 %v3295_v47  ;;  %2308 = vmatprep.subr.bf16.mxu0 %v3300_v54  ;;  %v3379_v47 = vld [vmem:[%s3450_s19 + $0x780] ss:$8 sps:$4 sm:$0xff]   ;;  %v280_v54 = vld [vmem:[%s3500_s23 + $0xb0] sm:$0xff] }
  0xd7   : > { %2361 = vmatprep.subr.bf16.mxu1 %v3303_v55  ;;  %v288_v55 = vld [vmem:[%s3500_s23 + $0xf0] sm:$0xff] }
  0xd8   : > { %2241 = vmatmul.mubr.bf16.gmra.mxu0 %v2695_v57  ;;  %v281_v57 = vld [vmem:[%s3500_s23 + $0xb8] sm:$0xff] }
  0xd9   : > { %2294 = vmatmul.mubr.bf16.gmra.mxu1 %v2697_v58  ;;  %2309 = vmatpush1.bf16.msra.mxu0 %v3298_v62  ;;  %v289_v58 = vld [vmem:[%s3500_s23 + $0xf8] sm:$0xff]  ;;  %v2683_v62 = vcombine.low %v3717_v56, %v3720_v59 }
  0xda   : > { %2362 = vmatpush1.bf16.msra.mxu1 %v3301_v63  ;;  %2310 = vmatprep.subr.bf16.mxu0 %v3306_v0  ;;  %v2685_v63 = vcombine.low %v3723_v60, %v3726_v61  ;;  %v2700_v0 = vcombine.high %v280_v54, %v288_v55 }
  0xdb   : > { %2363 = vmatprep.subr.bf16.mxu1 %v3309_v1  ;;  %2336 = vmatprep.mubr.bf16.mxu0 %v2684_v2  ;;  %v2702_v1 = vcombine.high %v281_v57, %v289_v58  ;;  %v2699_v2 = vcombine.low %v280_v54, %v288_v55 }
  0xdc   : > { %2389 = vmatprep.mubr.bf16.mxu1 %v2686_v3  ;;  %v2701_v3 = vcombine.low %v281_v57, %v289_v58 }
  0xdd   : > { %2311 = vmatpush1.bf16.msra.mxu0 %v3304_v4 }
  0xde   : > { %2364 = vmatpush1.bf16.msra.mxu1 %v3307_v5  ;;  %2312 = vmatprep.subr.bf16.mxu0 %v3312_v6 }
  0xdf   : > { %2365 = vmatprep.subr.bf16.mxu1 %v3315_v7 }
  0xe1   : > { %2313 = vmatpush1.bf16.msra.mxu0 %v3310_v8 }
  0xe2   : > { %2366 = vmatpush1.bf16.msra.mxu1 %v3313_v9  ;;  %2314 = vmatprep.subr.bf16.mxu0 %v3318_v10 }
  0xe3   : > { %2367 = vmatprep.subr.bf16.mxu1 %v3321_v11 }
  0xe5   : > { %2315 = vmatpush1.bf16.msra.mxu0 %v3316_v12 }
  0xe6   : > { %2368 = vmatpush1.bf16.msra.mxu1 %v3319_v13  ;;  %2316 = vmatprep.subr.bf16.mxu0 %v3324_v14 }
  0xe7   : > { %2369 = vmatprep.subr.bf16.mxu1 %v3327_v15 }
  0xe9   : > { %2317 = vmatpush1.bf16.msra.mxu0 %v3322_v16 }
  0xea   : > { %2370 = vmatpush1.bf16.msra.mxu1 %v3325_v17  ;;  %2318 = vmatprep.subr.bf16.mxu0 %v3330_v18 }
  0xeb   : > { %2371 = vmatprep.subr.bf16.mxu1 %v3333_v19 }
  0xed   : > { %2319 = vmatpush1.bf16.msra.mxu0 %v3328_v20 }
  0xee   : > { %2372 = vmatpush1.bf16.msra.mxu1 %v3331_v21  ;;  %2320 = vmatprep.subr.bf16.mxu0 %v3336_v22 }
  0xef   : > { %2373 = vmatprep.subr.bf16.mxu1 %v3339_v23 }
  0xf1   : > { %2321 = vmatpush2.bf16.msra.mxu0 %v3334_v24 }
  0xf2   : > { %2374 = vmatpush2.bf16.msra.mxu1 %v3337_v25  ;;  %2322 = vmatprep.subr.bf16.mxu0 %v3342_v26 }
  0xf3   : > { %2375 = vmatprep.subr.bf16.mxu1 %v3345_v27 }
  0xf5   : > { %2323 = vmatpush2.bf16.msra.mxu0 %v3340_v28 }
  0xf6   : > { %2376 = vmatpush2.bf16.msra.mxu1 %v3343_v29  ;;  %2324 = vmatprep.subr.bf16.mxu0 %v3348_v30 }
  0xf7   : > { %2377 = vmatprep.subr.bf16.mxu1 %v3351_v31 }
  0xf9   : > { %2325 = vmatpush2.bf16.msra.mxu0 %v3346_v32 }
  0xfa   : > { %2378 = vmatpush2.bf16.msra.mxu1 %v3349_v33  ;;  %2326 = vmatprep.subr.bf16.mxu0 %v3354_v34 }
  0xfb   : > { %2379 = vmatprep.subr.bf16.mxu1 %v3357_v35 }
  0xfd   : > { %2327 = vmatpush2.bf16.msra.mxu0 %v3352_v36 }
  0xfe   : > { %2380 = vmatpush2.bf16.msra.mxu1 %v3355_v37  ;;  %2328 = vmatprep.subr.bf16.mxu0 %v3360_v38 }
  0xff   : > { %2381 = vmatprep.subr.bf16.mxu1 %v3363_v39 }
 0x101   : > { %2329 = vmatpush2.bf16.msra.mxu0 %v3358_v40 }
 0x102   : > { %2382 = vmatpush2.bf16.msra.mxu1 %v3361_v41  ;;  %2330 = vmatprep.subr.bf16.mxu0 %v3366_v44 }
 0x103   : > { %2383 = vmatprep.subr.bf16.mxu1 %v3369_v45 }
 0x105   : > { %2331 = vmatpush2.bf16.msra.mxu0 %v3364_v48 }
 0x106   : > { %2384 = vmatpush2.bf16.msra.mxu1 %v3367_v49  ;;  %2332 = vmatprep.subr.bf16.mxu0 %v3372_v50 }
 0x107   : > { %2385 = vmatprep.subr.bf16.mxu1 %v3375_v51 }
 0x109   : > { %2333 = vmatpush2.bf16.msra.mxu0 %v3370_v52 }
 0x10a   : > { %2386 = vmatpush2.bf16.msra.mxu1 %v3373_v53  ;;  %2334 = vmatprep.subr.bf16.mxu0 %v3378_v42 }
 0x10b   : > { %2387 = vmatprep.subr.bf16.mxu1 %v3381_v43 }
 0x10d   : > { %2335 = vmatpush2.bf16.msra.mxu0 %v3376_v46 }
 0x10e   : > { %2388 = vmatpush2.bf16.msra.mxu1 %v3379_v47 }
 0x110   : > { %2337 = vmatmul.mubr.bf16.vlgmr.msra.gmra.mxu0 %v2683_v62  ;;  %v2020_v4 = vpop.f32.mrf.mxu0 }
 0x111   : > { %2390 = vmatmul.mubr.bf16.vlgmr.msra.gmra.mxu1 %v2685_v63  ;;  %2346 = vmatprep.mubr.bf16.mxu0 %v2700_v0  ;;  %v2073_v5 = vpop.f32.mrf.mxu1 }
 0x112   : > { %2399 = vmatprep.mubr.bf16.mxu1 %v2702_v1  ;;  %v2022_v6 = vpop.f32.mrf.mxu0  ;;  %v2074_v44 = vadd.f32 %v2073_v5, %v2020_v4 }
 0x113   : > { %v2075_v7 = vpop.f32.mrf.mxu1 }
 0x114   : > { %v2024_v56 = vpop.f32.mrf.mxu0  ;;  %v2076_v45 = vadd.f32 %v2075_v7, %v2022_v6 }
 0x115   : > { %v2077_v59 = vpop.f32.mrf.mxu1 }
 0x116   : > { %v2026_v8 = vpop.f32.mrf.mxu0  ;;  %v2078_v51 = vadd.f32 %v2077_v59, %v2024_v56 }
 0x117   : > { %v2079_v61 = vpop.f32.mrf.mxu1 }
 0x118   : > { %2347 = vmatmul.mubr.bf16.gmra.mxu0 %v2699_v2  ;;  %v2030_v60 = vpop.f32.mrf.mxu0  ;;  %v2080_v53 = vadd.f32 %v2079_v61, %v2026_v8 }
 0x119   : > { %2400 = vmatmul.mubr.bf16.gmra.mxu1 %v2701_v3  ;;  %v2083_v9 = vpop.f32.mrf.mxu1 }
 0x11a   : > { %v2032_v10 = vpop.f32.mrf.mxu0  ;;  %v2084_v46 = vadd.f32 %v2083_v9, %v2030_v60 }
 0x11b   : > { %v2085_v11 = vpop.f32.mrf.mxu1 }
 0x11c   : > { %v2034_v12 = vpop.f32.mrf.mxu0  ;;  %v2086_v1 = vadd.f32 %v2085_v11, %v2032_v10 }
 0x11d   : > { %v2087_v13 = vpop.f32.mrf.mxu1 }
 0x11e   : > { %v2036_v14 = vpop.f32.mrf.mxu0  ;;  %v2088_v2 = vadd.f32 %v2087_v13, %v2034_v12 }
 0x11f   : > { %v2089_v16 = vpop.f32.mrf.mxu1 }
 0x120   : > { %v2090_v56 = vadd.f32 %v2089_v16, %v2036_v14 }
 0x150   : > { %v2126_v15 = vpop.f32.mrf.mxu0 }
 0x151   : > { %v2179_v17 = vpop.f32.mrf.mxu1  ;;  %v2127_v48 = vadd.f32 %v2126_v15, %v2074_v44 }
 0x152   : > { %v2128_v18 = vpop.f32.mrf.mxu0 }
 0x153   : > { %v2181_v19 = vpop.f32.mrf.mxu1  ;;  %v2129_v52 = vadd.f32 %v2128_v18, %v2076_v45  ;;  %v2180_v42 = vadd.f32 %v2179_v17, %v2127_v48 }
 0x154   : > { %v2130_v20 = vpop.f32.mrf.mxu0 }
 0x155   : > { %v2183_v21 = vpop.f32.mrf.mxu1  ;;  %v2131_v43 = vadd.f32 %v2130_v20, %v2078_v51  ;;  %v2182_v55 = vadd.f32 %v2181_v19, %v2129_v52 }
 0x156   : > { %v2132_v22 = vpop.f32.mrf.mxu0 }
 0x157   : > { %v2185_v23 = vpop.f32.mrf.mxu1  ;;  %v2133_v57 = vadd.f32 %v2132_v22, %v2080_v53  ;;  %v2184_v63 = vadd.f32 %v2183_v21, %v2131_v43 }
 0x158   : > { %v2136_v24 = vpop.f32.mrf.mxu0 }
 0x159   : > { %v2189_v25 = vpop.f32.mrf.mxu1  ;;  %v2137_v62 = vadd.f32 %v2136_v24, %v2084_v46  ;;  %v2186_v5 = vadd.f32 %v2185_v23, %v2133_v57 }
 0x15a   : > { %v2138_v26 = vpop.f32.mrf.mxu0 }
 0x15b   : > { %v2191_v27 = vpop.f32.mrf.mxu1  ;;  %v2139_v59 = vadd.f32 %v2138_v26, %v2086_v1  ;;  %v2190_v8 = vadd.f32 %v2189_v25, %v2137_v62 }
 0x15c   : > { %v2140_v28 = vpop.f32.mrf.mxu0 }
 0x15d   : > { %v2193_v29 = vpop.f32.mrf.mxu1  ;;  %v2141_v60 = vadd.f32 %v2140_v28, %v2088_v2  ;;  %v2192_v13 = vadd.f32 %v2191_v27, %v2139_v59 }
 0x15e   : > { %v2142_v30 = vpop.f32.mrf.mxu0 }
 0x15f   : > { %v2195_v31 = vpop.f32.mrf.mxu1  ;;  %v2143_v19 = vadd.f32 %v2142_v30, %v2090_v56  ;;  %v2194_v22 = vadd.f32 %v2193_v29, %v2141_v60 }
 0x161   : > { %v2196_v28 = vadd.f32 %v2195_v31, %v2143_v19 }
 0x190   : > { %v2232_v32 = vpop.f32.mrf.mxu0 }
 0x191   : > { %v2285_v33 = vpop.f32.mrf.mxu1  ;;  %v2233_v58 = vadd.f32 %v2232_v32, %v2180_v42 }
 0x192   : > { %v2234_v34 = vpop.f32.mrf.mxu0 }
 0x193   : > { %v2287_v35 = vpop.f32.mrf.mxu1  ;;  %v2235_v0 = vadd.f32 %v2234_v34, %v2182_v55  ;;  %v2286_v6 = vadd.f32 %v2285_v33, %v2233_v58 }
 0x194   : > { %v2236_v36 = vpop.f32.mrf.mxu0 }
 0x195   : > { %v2289_v37 = vpop.f32.mrf.mxu1  ;;  %v2237_v7 = vadd.f32 %v2236_v36, %v2184_v63  ;;  %v2288_v15 = vadd.f32 %v2287_v35, %v2235_v0 }
 0x196   : > { %v2238_v38 = vpop.f32.mrf.mxu0 }
 0x197   : > { %v2291_v39 = vpop.f32.mrf.mxu1  ;;  %v2239_v17 = vadd.f32 %v2238_v38, %v2186_v5  ;;  %v2290_v11 = vadd.f32 %v2289_v37, %v2237_v7 }
 0x198   : > { %v2242_v40 = vpop.f32.mrf.mxu0 }
 0x199   : > { %v2295_v41 = vpop.f32.mrf.mxu1  ;;  %v2243_v20 = vadd.f32 %v2242_v40, %v2190_v8  ;;  %v2292_v14 = vadd.f32 %v2291_v39, %v2239_v17 }
 0x19a   : > { %v2244_v49 = vpop.f32.mrf.mxu0 }
 0x19b   : > { %v2297_v50 = vpop.f32.mrf.mxu1  ;;  %v2245_v32 = vadd.f32 %v2244_v49, %v2192_v13  ;;  %v2296_v33 = vadd.f32 %v2295_v41, %v2243_v20 }
 0x19c   : > { %v2246_v47 = vpop.f32.mrf.mxu0 }
 0x19d   : > { %v2299_v54 = vpop.f32.mrf.mxu1  ;;  %v2247_v35 = vadd.f32 %v2246_v47, %v2194_v22  ;;  %v2298_v41 = vadd.f32 %v2297_v50, %v2245_v32 }
 0x19e   : > { %v2248_v3 = vpop.f32.mrf.mxu0 }
 0x19f   : > { %v2301_v4 = vpop.f32.mrf.mxu1  ;;  %v2249_v39 = vadd.f32 %v2248_v3, %v2196_v28  ;;  %v2300_v49 = vadd.f32 %v2299_v54, %v2247_v35 }
 0x1a1   : > { %v2302_v47 = vadd.f32 %v2301_v4, %v2249_v39 }
 0x1d0   : > { %v2338_v61 = vpop.f32.mrf.mxu0 }
 0x1d1   : > { %v2391_v9 = vpop.f32.mrf.mxu1  ;;  %v2339_v18 = vadd.f32 %v2338_v61, %v2286_v6 }
 0x1d2   : > { %v2340_v21 = vpop.f32.mrf.mxu0 }
 0x1d3   : > { %v2393_v10 = vpop.f32.mrf.mxu1  ;;  %v2341_v12 = vadd.f32 %v2340_v21, %v2288_v15  ;;  %v2392_v16 = vadd.f32 %v2391_v9, %v2339_v18 }
 0x1d4   : > { %v2342_v23 = vpop.f32.mrf.mxu0 }
 0x1d5   : > { %v2395_v24 = vpop.f32.mrf.mxu1  ;;  %v2394_v25 = vadd.f32 %v2393_v10, %v2341_v12  ;;  %v2343_v26 = vadd.f32 %v2342_v23, %v2290_v11  ;;  %v2456_v52 = vmul.f32 %v2392_v16, %v2392_v16 }
 0x1d6   : > { %v2344_v30 = vpop.f32.mrf.mxu0 }
 0x1d7   : > { %v2397_v34 = vpop.f32.mrf.mxu1  ;;  %v2970_v27 = vpack.c.bf16 %v2394_v25, %v2392_v16  ;;  %v2396_v29 = vadd.f32 %v2395_v24, %v2343_v26  ;;  %v2345_v36 = vadd.f32 %v2344_v30, %v2292_v14  ;;  %v2457_v5 = vmul.f32 %v2394_v25, %v2394_v25 }
 0x1d8   : > { %v2348_v37 = vpop.f32.mrf.mxu0 }
 0x1d9   : > { %v2401_v38 = vpop.f32.mrf.mxu1  ;;  %2434 = vst [vmem:[%s3798_s27] sm:$0xff] %v2970_v27  ;;  %v2398_v31 = vadd.f32 %v2397_v34, %v2345_v36  ;;  %v2349_v40 = vadd.f32 %v2348_v37, %v2296_v33  ;;  %v2458_v44 = vmul.f32 %v2396_v29, %v2396_v29  ;;  %v2438_v55 = vadd.f32 %v2396_v29, %v2392_v16 }
 0x1da   : > { %v2350_v45 = vpop.f32.mrf.mxu0 }
 0x1db   : > { %v2403_v48 = vpop.f32.mrf.mxu1  ;;  %v2971_v51 = vpack.c.bf16 %v2398_v31, %v2396_v29  ;;  %v2402_v53 = vadd.f32 %v2401_v38, %v2349_v40  ;;  %v2351_v42 = vadd.f32 %v2350_v45, %v2298_v41  ;;  %v2464_v58 = vadd.f32 %v2458_v44, %v2456_v52 }
 0x1dc   : > { %v2352_v43 = vpop.f32.mrf.mxu0  ;;  %v2459_v62 = vmul.f32 %v2398_v31, %v2398_v31  ;;  %v2447_v1 = vadd.f32 %v2398_v31, %v2394_v25 }
 0x1dd   : > { %v2405_v46 = vpop.f32.mrf.mxu1  ;;  %2435 = vst [vmem:[%s3798_s27 + $0x8] sm:$0xff] %v2971_v51  ;;  %v2353_v57 = vadd.f32 %v2352_v43, %v2300_v49  ;;  %v2460_v63 = vmul.f32 %v2402_v53, %v2402_v53  ;;  %v2404_v0 = vadd.f32 %v2403_v48, %v2351_v42  ;;  %v2439_v2 = vadd.f32 %v2438_v55, %v2402_v53 }
 0x1de   : > { %v2354_v50 = vpop.f32.mrf.mxu0  ;;  %v2473_v9 = vadd.f32 %v2459_v62, %v2457_v5 }
 0x1df   : > { %v2406_v3 = vadd.f32 %v2405_v46, %v2353_v57  ;;  %v2355_v54 = vadd.f32 %v2354_v50, %v2302_v47  ;;  %v2465_v6 = vadd.f32 %v2464_v58, %v2460_v63  ;;  %v2972_v7 = vpack.c.bf16 %v2404_v0, %v2402_v53  ;;  %v2407_v59 = vpop.f32.mrf.mxu1 }
 0x1e0   : > { %v2461_v56 = vmul.f32 %v2404_v0, %v2404_v0  ;;  %v2448_v4 = vadd.f32 %v2447_v1, %v2404_v0 }
 0x1e1   : > { %v2440_v8 = vadd.f32 %v2439_v2, %v2406_v3  ;;  %v2462_v60 = vmul.f32 %v2406_v3, %v2406_v3  ;;  %v2408_v61 = vadd.f32 %v2407_v59, %v2355_v54  ;;  %2436 = vst [vmem:[%s3798_s27 + $0x10] sm:$0xff] %v2972_v7 }
 0x1e2   : > { %v2474_v20 = vadd.f32 %v2473_v9, %v2461_v56 }
 0x1e3   : > { %v2441_v15 = vrot.slane %v2440_v8, 4  ;;  %v2466_v17 = vadd.f32 %v2465_v6, %v2462_v60  ;;  %v2973_v18 = vpack.c.bf16 %v2408_v61, %v2406_v3  ;;  %v2449_v19 = vadd.f32 %v2448_v4, %v2408_v61 }
 0x1e4   : > { %v2463_v21 = vmul.f32 %v2408_v61, %v2408_v61 }
 0x1e5   : > { %v2442_v10 = vadd.f32 %v2441_v15, %v2440_v8  ;;  %v2467_v11 = vrot.slane %v2466_v17, 4  ;;  %2437 = vst [vmem:[%s3798_s27 + $0x18] sm:$0xff] %v2973_v18  ;;  %v2450_v12 = vrot.slane %v2449_v19, 4 }
 0x1e6   : > { %v2475_v13 = vadd.f32 %v2474_v20, %v2463_v21 }
 0x1e7   : > { %v2443_v22 = vrot.slane %v2442_v10, 2  ;;  %v2468_v23 = vadd.f32 %v2467_v11, %v2466_v17  ;;  %v2451_v24 = vadd.f32 %v2450_v12, %v2449_v19 }
 0x1e8   : > { %v2476_v14 = vrot.slane %v2475_v13, 4 }
 0x1e9   : > { %v2469_v16 = vrot.slane %v2468_v23, 2  ;;  %v2452_v25 = vrot.slane %v2451_v24, 2  ;;  %v2444_v26 = vadd.f32 %v2443_v22, %v2442_v10 }
 0x1ea   : > { %v2477_v28 = vadd.f32 %v2476_v14, %v2475_v13 }
 0x1eb   : > { %v2470_v32 = vadd.f32 %v2469_v16, %v2468_v23  ;;  %v2453_v33 = vadd.f32 %v2452_v25, %v2451_v24  ;;  %v2445_v35 = vrot.slane %v2444_v26, 1 }
 0x1ec   : > { %v2478_v30 = vrot.slane %v2477_v28, 2 }
 0x1ed   : > { %v2471_v34 = vrot.slane %v2470_v32, 1  ;;  %v2454_v27 = vrot.slane %v2453_v33, 1  ;;  %v2446_v38 = vadd.f32 %v2445_v35, %v2444_v26 }
 0x1ee   : > { %v2479_v29 = vadd.f32 %v2478_v30, %v2477_v28 }
 0x1ef   : > { %v2472_v36 = vadd.f32 %v2471_v34, %v2470_v32  ;;  %v2455_v39 = vadd.f32 %v2454_v27, %v2453_v33 }
 0x1f0   : > { %v2480_v37 = vrot.slane %v2479_v29, 1 }
 0x1f1   : > { %v2483_v40 = vsel %vm2482_vm0, %v2446_v38, %v2472_v36 }
 0x1f2   : > { %v2481_v31 = vadd.f32 %v2480_v37, %v2479_v29 }
 0x1f4   : > { %v2484_v41 = vsel %vm2482_vm0, %v2455_v39, %v2481_v31 }
 0x1f5   : > { %v2487_v44 = vcombine.low %v2483_v40, %v2484_v41 }
 0x1f7   : > { %2963 = vst.sshfl [vmem:[%s257_s4] sm:$0x33 pattern:$0x76325410] %v2487_v44 }
 0x1f8 PF: > { %s14_s14 = sadd.s32 1, %s3404_s14   ;;  %s3821_s12 = smov %s3400_s13 }
 0x1f9   : > { %p11_p5 = scmp.ge.s32.totalorder %s14_s14, 6   ;;  %s3822_s13 = smov %s3824_s15 }
 0x1fb   :  { %13 = sbr.rel (!%p11_p5) target bundleno = 2 (0x2), region = 73 }

// kernel: generator_forward.12
= control target key start
LH: loop header
LB: loop body
LE: loop exit
PB: predicated region body
PF: predicated region fallthrough
CT: control target
= control target key end

     0   :  { %s488_s12 = smov 0   ;;  %s490_s13 = smov 0   ;;  %s534_s0 = inlined_call_operand.vmem [shape: bf16[4,32,256], index: 0, kind: input, shape index: {}]   ;;  %s535_s1 = inlined_call_operand.vmem [shape: f32[1,256], index: 1, kind: input, shape index: {}]   ;;  %s536_s2 = inlined_call_operand.vmem [shape: f32[1,256], index: 2, kind: input, shape index: {}]   ;;  %s537_s3 = inlined_call_operand.vmem [shape: bf16[4,32,256], index: 3, kind: output, shape index: {}]  }
   0x1   :  { %s492_s14 = smov 0  }
   0x2 LB: > { %s25_s15 = sadd.s32 1, %s462_s13  ;;  %p403_p0 = scmp.ge.s32.totalorder %s466_s14, 1  ;;  %s466_s14 = sphi %s492_s14, %s13_s14   ;;  %s462_s13 = sphi %s490_s13, %s539_s13   ;;  %s458_s12 = sphi %s488_s12, %s538_s12  }
   0x3   : > { %p27_p1 = scmp.ge.s32.totalorder %s25_s15, 4  ;;  %p159_p2 = scmp.lt.s32.totalorder %s466_s14, 5 }
   0x5   : > { %s541_s15 = smov (%p27_p1, %s25_s15), 0  ;;  %p160_p3 = pnand %p403_p0, %p159_p2 }
   0x6   : > { %p194_p4 = scmp.lt.s32.totalorder (!%p160_p3), %s458_s12, 3 }
   0x7   : > { %163 = sbr.rel (%p160_p3) target bundleno = 30 (0x1e), region = 32 }
   0xc   : > { %v229_v0 = vlaneseq  ;;  %s543_s12 = smov (!%p194_p4, %s458_s12), 3  ;;  %v227_v2 = vld [vmem:[%s535_s1] sm:$0x3] }
   0xd   : > { %v247_v3 = vld [vmem:[%s536_s2] sm:$0x3]  ;;  %s414_s20 = sshll.u32 %s543_s12, 5 }
   0xe   : > { %v230_v1 = vshrl.u32 %v229_v0, 7  ;;  %s202_s23 = scalar_lea.vmem %s534_s0, %s414_s20  ;;  %s213_s26 = scalar_lea.vmem %s537_s3, %s414_s20 }
   0xf   : > { %v215_v6 = vld [vmem:[%s202_s23] sm:$0xff]  ;;  %v216_v11 = vld [vmem:[%s202_s23 + $0x8] sm:$0xff]  ;;  %v217_v12 = vld [vmem:[%s202_s23 + $0x10] sm:$0xff] }
  0x10   : > { %v231_v4 = vsub.s32 0, %v230_v1  ;;  %v235_v5 = vsub.s32 1, %v230_v1  ;;  %v219_v13 = vunpack.c.l.bf16 %v215_v6  ;;  %v220_v14 = vunpack.c.h.bf16 %v215_v6  ;;  %v218_v17 = vld [vmem:[%s202_s23 + $0x18] sm:$0xff] }
  0x11   : > { %v221_v15 = vunpack.c.l.bf16 %v216_v11  ;;  %v222_v16 = vunpack.c.h.bf16 %v216_v11  ;;  %v223_v18 = vunpack.c.l.bf16 %v217_v12  ;;  %v224_v19 = vunpack.c.h.bf16 %v217_v12 }
  0x12   : > { %v232_v7 = vrot.slane %v227_v2, %v231_v4  ;;  %v236_v8 = vrot.slane %v227_v2, %v235_v5  ;;  %v252_v9 = vrot.slane %v247_v3, %v231_v4  ;;  %v256_v10 = vrot.slane %v247_v3, %v235_v5 }
  0x13   : > { %v225_v20 = vunpack.c.l.bf16 %v218_v17  ;;  %v226_v21 = vunpack.c.h.bf16 %v218_v17 }
  0x14   : > { %v239_v22 = vmul.f32 %v232_v7, %v219_v13  ;;  %v240_v23 = vmul.f32 %v236_v8, %v220_v14  ;;  %v241_v24 = vmul.f32 %v232_v7, %v221_v15  ;;  %v242_v25 = vmul.f32 %v236_v8, %v222_v16 }
  0x15   : > { %v243_v26 = vmul.f32 %v232_v7, %v223_v18  ;;  %v244_v27 = vmul.f32 %v236_v8, %v224_v19  ;;  %v245_v28 = vmul.f32 %v232_v7, %v225_v20  ;;  %v246_v29 = vmul.f32 %v236_v8, %v226_v21 }
  0x16   : > { %v259_v30 = vadd.f32 %v252_v9, %v239_v22  ;;  %v260_v31 = vadd.f32 %v256_v10, %v240_v23  ;;  %v261_v32 = vadd.f32 %v252_v9, %v241_v24  ;;  %v262_v33 = vadd.f32 %v256_v10, %v242_v25 }
  0x17   : > { %v263_v34 = vadd.f32 %v252_v9, %v243_v26  ;;  %v264_v35 = vadd.f32 %v256_v10, %v244_v27  ;;  %v265_v36 = vadd.f32 %v252_v9, %v245_v28  ;;  %v266_v37 = vadd.f32 %v256_v10, %v246_v29 }
  0x18   : > { %v267_v38 = vmax.f32 %v259_v30, 0.0  ;;  %v268_v39 = vmax.f32 %v260_v31, 0.0  ;;  %v269_v40 = vmax.f32 %v261_v32, 0.0  ;;  %v270_v41 = vmax.f32 %v262_v33, 0.0 }
  0x19   : > { %v271_v42 = vmax.f32 %v263_v34, 0.0  ;;  %v272_v43 = vmax.f32 %v264_v35, 0.0  ;;  %v273_v44 = vmax.f32 %v265_v36, 0.0  ;;  %v274_v45 = vmax.f32 %v266_v37, 0.0 }
  0x1a   : > { %v416_v46 = vpack.c.bf16 %v268_v39, %v267_v38  ;;  %v417_v47 = vpack.c.bf16 %v270_v41, %v269_v40 }
  0x1b   : > { %v418_v48 = vpack.c.bf16 %v272_v43, %v271_v42  ;;  %v419_v49 = vpack.c.bf16 %v274_v45, %v273_v44 }
  0x1c   : > { %299 = vst [vmem:[%s213_s26] sm:$0xff] %v416_v46  ;;  %300 = vst [vmem:[%s213_s26 + $0x8] sm:$0xff] %v417_v47 }
  0x1d   : > { %301 = vst [vmem:[%s213_s26 + $0x10] sm:$0xff] %v418_v48  ;;  %302 = vst [vmem:[%s213_s26 + $0x18] sm:$0xff] %v419_v49 }
  0x1e PF: > { %s13_s14 = sadd.s32 1, %s466_s14   ;;  %s538_s12 = smov %s462_s13 }
  0x1f   : > { %p10_p5 = scmp.ge.s32.totalorder %s13_s14, 6   ;;  %s539_s13 = smov %s541_s15 }
  0x21   :  { %12 = sbr.rel (!%p10_p5) target bundleno = 2 (0x2), region = 62 }

// kernel: generator_forward.14
= control target key start
LH: loop header
LB: loop body
LE: loop exit
PB: predicated region body
PF: predicated region fallthrough
CT: control target
= control target key end

     0   :  { %s672_s12 = smov 0   ;;  %s674_s13 = smov 0   ;;  %s774_s0 = inlined_call_operand.vmem [shape: bf16[4,128,128], index: 0, kind: input, shape index: {}]   ;;  %s775_s1 = inlined_call_operand.vmem [shape: f32[1,128], index: 1, kind: input, shape index: {}]   ;;  %s776_s2 = inlined_call_operand.vmem [shape: f32[1,128], index: 2, kind: input, shape index: {}]   ;;  %s777_s3 = inlined_call_operand.vmem [shape: bf16[4,128,128], index: 3, kind: output, shape index: {}]  }
   0x1   :  { %s676_s14 = smov 0  }
   0x2 LB: > { %s25_s15 = sadd.s32 1, %s646_s13  ;;  %p475_p0 = scmp.ge.s32.totalorder %s650_s14, 1  ;;  %s650_s14 = sphi %s676_s14, %s13_s14   ;;  %s646_s13 = sphi %s674_s13, %s779_s13   ;;  %s642_s12 = sphi %s672_s12, %s778_s12  }
   0x3   : > { %p27_p1 = scmp.ge.s32.totalorder %s25_s15, 4  ;;  %p158_p2 = scmp.lt.s32.totalorder %s650_s14, 5 }
   0x5   : > { %s781_s15 = smov (%p27_p1, %s25_s15), 0  ;;  %p159_p3 = pnand %p475_p0, %p158_p2 }
   0x6   : > { %p191_p4 = scmp.lt.s32.totalorder (!%p159_p3), %s642_s12, 3 }
   0x7   : > { %162 = sbr.rel (%p159_p3) target bundleno = 38 (0x26), region = 32 }
   0xc   : > { %s783_s12 = smov (!%p191_p4, %s642_s12), 3  ;;  %v703_v0 = vld [vmem:[%s775_s1] ss:$0 sm:$0xff] }
   0xd   : > { %s500_s16 = sshll.u32 %s783_s12, 6  ;;  %v712_v9 = vld [vmem:[%s776_s2] ss:$0 sm:$0xff] }
   0xe   : > { %s698_s19 = scalar_lea.vmem %s774_s0, %s500_s16  ;;  %s737_s26 = scalar_lea.vmem %s777_s3, %s500_s16 }
   0xf   : > { %v519_v1 = vld [vmem:[%s698_s19] sm:$0xff]   ;;  %v590_v2 = vld [vmem:[%s698_s19 + $0x8] sm:$0xff]   ;;  %v591_v3 = vld [vmem:[%s698_s19 + $0x10] sm:$0xff]  }
  0x10   : > { %v520_v4 = vunpack.c.l.bf16 %v519_v1  ;;  %v521_v5 = vunpack.c.h.bf16 %v519_v1  ;;  %v524_v6 = vunpack.c.l.bf16 %v590_v2  ;;  %v525_v7 = vunpack.c.h.bf16 %v590_v2  ;;  %v592_v8 = vld [vmem:[%s698_s19 + $0x18] sm:$0xff]   ;;  %v593_v30 = vld [vmem:[%s698_s19 + $0x20] sm:$0xff]   ;;  %v594_v35 = vld [vmem:[%s698_s19 + $0x28] sm:$0xff]  }
  0x11   : > { %v528_v10 = vunpack.c.l.bf16 %v591_v3  ;;  %v529_v11 = vunpack.c.h.bf16 %v591_v3  ;;  %v532_v12 = vunpack.c.l.bf16 %v592_v8  ;;  %v533_v13 = vunpack.c.h.bf16 %v592_v8  ;;  %v595_v40 = vld [vmem:[%s698_s19 + $0x30] sm:$0xff]   ;;  %v596_v45 = vld [vmem:[%s698_s19 + $0x38] sm:$0xff]  }
  0x12   : > { %v249_v14 = vmul.f32 %v520_v4, %v703_v0  ;;  %v250_v15 = vmul.f32 %v521_v5, %v703_v0  ;;  %v251_v16 = vmul.f32 %v524_v6, %v703_v0  ;;  %v252_v17 = vmul.f32 %v525_v7, %v703_v0 }
  0x13   : > { %v253_v18 = vmul.f32 %v528_v10, %v703_v0  ;;  %v254_v19 = vmul.f32 %v529_v11, %v703_v0  ;;  %v255_v20 = vmul.f32 %v532_v12, %v703_v0  ;;  %v256_v21 = vmul.f32 %v533_v13, %v703_v0 }
  0x14   : > { %v272_v22 = vadd.f32 %v712_v9, %v249_v14  ;;  %v273_v23 = vadd.f32 %v712_v9, %v250_v15  ;;  %v274_v24 = vadd.f32 %v712_v9, %v251_v16  ;;  %v275_v25 = vadd.f32 %v712_v9, %v252_v17 }
  0x15   : > { %v276_v26 = vadd.f32 %v712_v9, %v253_v18  ;;  %v277_v27 = vadd.f32 %v712_v9, %v254_v19  ;;  %v278_v28 = vadd.f32 %v712_v9, %v255_v20  ;;  %v279_v29 = vadd.f32 %v712_v9, %v256_v21 }
  0x16   : > { %v288_v31 = vmax.f32 %v272_v22, 0.0  ;;  %v289_v32 = vmax.f32 %v273_v23, 0.0  ;;  %v290_v33 = vmax.f32 %v274_v24, 0.0  ;;  %v291_v34 = vmax.f32 %v275_v25, 0.0 }
  0x17   : > { %v292_v36 = vmax.f32 %v276_v26, 0.0  ;;  %v293_v37 = vmax.f32 %v277_v27, 0.0  ;;  %v294_v38 = vmax.f32 %v278_v28, 0.0  ;;  %v295_v39 = vmax.f32 %v279_v29, 0.0 }
  0x18   : > { %v553_v41 = vpack.c.bf16 %v289_v32, %v288_v31  ;;  %v558_v42 = vpack.c.bf16 %v291_v34, %v290_v33  ;;  %v536_v43 = vunpack.c.l.bf16 %v593_v30  ;;  %v537_v44 = vunpack.c.h.bf16 %v593_v30 }
  0x19   : > { %v563_v46 = vpack.c.bf16 %v293_v37, %v292_v36  ;;  %v568_v47 = vpack.c.bf16 %v295_v39, %v294_v38  ;;  %v540_v48 = vunpack.c.l.bf16 %v594_v35  ;;  %v541_v49 = vunpack.c.h.bf16 %v594_v35 }
  0x1a   : > { %554 = vst [vmem:[%s737_s26] sm:$0xff] %v553_v41   ;;  %597 = vst [vmem:[%s737_s26 + $0x8] sm:$0xff] %v558_v42   ;;  %v257_v50 = vmul.f32 %v536_v43, %v703_v0  ;;  %v258_v51 = vmul.f32 %v537_v44, %v703_v0  ;;  %v544_v52 = vunpack.c.l.bf16 %v595_v40  ;;  %v545_v53 = vunpack.c.h.bf16 %v595_v40 }
  0x1b   : > { %598 = vst [vmem:[%s737_s26 + $0x10] sm:$0xff] %v563_v46   ;;  %599 = vst [vmem:[%s737_s26 + $0x18] sm:$0xff] %v568_v47   ;;  %v259_v54 = vmul.f32 %v540_v48, %v703_v0  ;;  %v260_v55 = vmul.f32 %v541_v49, %v703_v0  ;;  %v548_v56 = vunpack.c.l.bf16 %v596_v45  ;;  %v549_v57 = vunpack.c.h.bf16 %v596_v45 }
  0x1c   : > { %v280_v58 = vadd.f32 %v712_v9, %v257_v50  ;;  %v281_v59 = vadd.f32 %v712_v9, %v258_v51  ;;  %v261_v60 = vmul.f32 %v544_v52, %v703_v0  ;;  %v262_v61 = vmul.f32 %v545_v53, %v703_v0 }
  0x1d   : > { %v282_v62 = vadd.f32 %v712_v9, %v259_v54  ;;  %v283_v63 = vadd.f32 %v712_v9, %v260_v55  ;;  %v263_v1 = vmul.f32 %v548_v56, %v703_v0  ;;  %v264_v2 = vmul.f32 %v549_v57, %v703_v0 }
  0x1e   : > { %v296_v3 = vmax.f32 %v280_v58, 0.0  ;;  %v297_v4 = vmax.f32 %v281_v59, 0.0  ;;  %v284_v5 = vadd.f32 %v712_v9, %v261_v60  ;;  %v285_v6 = vadd.f32 %v712_v9, %v262_v61 }
  0x1f   : > { %v298_v7 = vmax.f32 %v282_v62, 0.0  ;;  %v299_v8 = vmax.f32 %v283_v63, 0.0  ;;  %v286_v10 = vadd.f32 %v712_v9, %v263_v1  ;;  %v287_v11 = vadd.f32 %v712_v9, %v264_v2 }
  0x20   : > { %v573_v12 = vpack.c.bf16 %v297_v4, %v296_v3  ;;  %v300_v13 = vmax.f32 %v284_v5, 0.0  ;;  %v301_v14 = vmax.f32 %v285_v6, 0.0 }
  0x21   : > { %v578_v15 = vpack.c.bf16 %v299_v8, %v298_v7  ;;  %v302_v0 = vmax.f32 %v286_v10, 0.0  ;;  %v303_v16 = vmax.f32 %v287_v11, 0.0 }
  0x22   : > { %600 = vst [vmem:[%s737_s26 + $0x20] sm:$0xff] %v573_v12   ;;  %v583_v17 = vpack.c.bf16 %v301_v14, %v300_v13 }
  0x23   : > { %601 = vst [vmem:[%s737_s26 + $0x28] sm:$0xff] %v578_v15   ;;  %v588_v18 = vpack.c.bf16 %v303_v16, %v302_v0 }
  0x24   : > { %602 = vst [vmem:[%s737_s26 + $0x30] sm:$0xff] %v583_v17  }
  0x25   : > { %603 = vst [vmem:[%s737_s26 + $0x38] sm:$0xff] %v588_v18  }
  0x26 PF: > { %s13_s14 = sadd.s32 1, %s650_s14   ;;  %s778_s12 = smov %s646_s13 }
  0x27   : > { %p10_p5 = scmp.ge.s32.totalorder %s13_s14, 6   ;;  %s779_s13 = smov %s781_s15 }
  0x29   :  { %12 = sbr.rel (!%p10_p5) target bundleno = 2 (0x2), region = 62 }

// kernel: generator_forward.13
= control target key start
LH: loop header
LB: loop body
LE: loop exit
PB: predicated region body
PF: predicated region fallthrough
CT: control target
= control target key end

     0   :  { %s2433_s12 = smov 0   ;;  %s2435_s13 = smov 0   ;;  %s2743_s0 = inlined_call_operand.vmem [shape: bf16[4,128,1024], index: 0, kind: input, shape index: {}]   ;;  %s2744_s1 = inlined_call_operand.vmem [shape: bf16[4,1024,128], index: 1, kind: input, shape index: {}]   ;;  %s2745_s2 = inlined_call_operand.vmem [shape: bf16[4,128,128], index: 2, kind: output, shape index: {0}]   ;;  %s2746_s3 = inlined_call_operand.vmem [shape: f32[4,1,2,128], index: 3, kind: output, shape index: {1}]  }
   0x1   :  { %s2437_s14 = smov 0  }
   0x2 LB: > { %s26_s15 = sadd.s32 1, %s2407_s13  ;;  %p1825_p0 = scmp.ge.s32.totalorder %s2411_s14, 1  ;;  %s2411_s14 = sphi %s2437_s14, %s14_s14   ;;  %s2407_s13 = sphi %s2435_s13, %s2748_s13   ;;  %s2403_s12 = sphi %s2433_s12, %s2747_s12  }
   0x3   : > { %p28_p1 = scmp.ge.s32.totalorder %s26_s15, 4  ;;  %p174_p2 = scmp.lt.s32.totalorder %s2411_s14, 5 }
   0x5   : > { %s2750_s15 = smov (%p28_p1, %s26_s15), 0  ;;  %p175_p3 = pnand %p1825_p0, %p174_p2 }
   0x6   : > { %p220_p4 = scmp.lt.s32.totalorder (!%p175_p3), %s2403_s12, 3 }
   0x7   : > { %178 = sbr.rel (%p175_p3) target bundleno = 392 (0x188), region = 28 }
   0xc   : > { %s2752_s12 = smov (!%p220_p4, %s2403_s12), 3  ;;  %vm1675_vm0 = vcmask 1040384  }
   0xd   : > { %s1979_s16 = sshll.u32 %s2752_s12, 9  ;;  %s1981_s23 = sshll.u32 %s2752_s12, 6 }
   0xe   : > { %s2459_s19 = scalar_lea.vmem %s2744_s1, %s1979_s16  ;;  %s2496_s22 = scalar_lea.vmem %s2743_s0, %s1979_s16 }
   0xf   : > { %v2325_v0 = vld [vmem:[%s2459_s19 + $0x78] sm:$0xff]   ;;  %v2329_v4 = vld [vmem:[%s2459_s19 + $0x70] sm:$0xff]   ;;  %v2333_v8 = vld [vmem:[%s2459_s19 + $0x68] sm:$0xff]   ;;  %s2689_s26 = scalar_lea.vmem %s2745_s2, %s1981_s23  ;;  %s1832_s27 = sshll.u32 %s2752_s12, 1 }
  0x10   : > { %v2326_v1 = vld [vmem:[%s2459_s19 + $0xf8] sm:$0xff]   ;;  %2045 = vmatprep.subr.bf16.mxu0 %v2325_v0  ;;  %v2330_v5 = vld [vmem:[%s2459_s19 + $0xf0] sm:$0xff]   ;;  %v2334_v9 = vld [vmem:[%s2459_s19 + $0xe8] sm:$0xff]   ;;  %s251_s30 = scalar_lea.vmem %s2746_s3, %s1832_s27 }
  0x11   : > { %v2327_v2 = vld [vmem:[%s2459_s19 + $0x38] sm:$0xff]   ;;  %2109 = vmatprep.subr.bf16.mxu1 %v2326_v1  ;;  %v2331_v6 = vld [vmem:[%s2459_s19 + $0x30] sm:$0xff]   ;;  %v2335_v10 = vld [vmem:[%s2459_s19 + $0x28] sm:$0xff]  }
  0x12   : > { %v2328_v3 = vld [vmem:[%s2459_s19 + $0xb8] sm:$0xff]   ;;  %2046 = vmatpush3.bf16.msra.mxu0 %v2327_v2  ;;  %v2332_v7 = vld [vmem:[%s2459_s19 + $0xb0] sm:$0xff]   ;;  %v2336_v11 = vld [vmem:[%s2459_s19 + $0xa8] sm:$0xff]  }
  0x13   : > { %2110 = vmatpush3.bf16.msra.mxu1 %v2328_v3  ;;  %2047 = vmatprep.subr.bf16.mxu0 %v2329_v4  ;;  %v2337_v12 = vld [vmem:[%s2459_s19 + $0x60] sm:$0xff]   ;;  %v2341_v16 = vld [vmem:[%s2459_s19 + $0x58] sm:$0xff]   ;;  %v2345_v20 = vld [vmem:[%s2459_s19 + $0x50] sm:$0xff]  }
  0x14   : > { %2111 = vmatprep.subr.bf16.mxu1 %v2330_v5  ;;  %v2338_v13 = vld [vmem:[%s2459_s19 + $0xe0] sm:$0xff]   ;;  %v2342_v17 = vld [vmem:[%s2459_s19 + $0xd8] sm:$0xff]   ;;  %v2346_v21 = vld [vmem:[%s2459_s19 + $0xd0] sm:$0xff]  }
  0x15   : > { %v2339_v14 = vld [vmem:[%s2459_s19 + $0x20] sm:$0xff]   ;;  %v2343_v18 = vld [vmem:[%s2459_s19 + $0x18] sm:$0xff]   ;;  %v2347_v22 = vld [vmem:[%s2459_s19 + $0x10] sm:$0xff]  }
  0x16   : > { %2048 = vmatpush3.bf16.msra.mxu0 %v2331_v6  ;;  %v2340_v15 = vld [vmem:[%s2459_s19 + $0xa0] sm:$0xff]   ;;  %v2344_v19 = vld [vmem:[%s2459_s19 + $0x98] sm:$0xff]   ;;  %v2348_v23 = vld [vmem:[%s2459_s19 + $0x90] sm:$0xff]  }
  0x17   : > { %2112 = vmatpush3.bf16.msra.mxu1 %v2332_v7  ;;  %2049 = vmatprep.subr.bf16.mxu0 %v2333_v8  ;;  %v2349_v24 = vld [vmem:[%s2459_s19 + $0x48] sm:$0xff]   ;;  %v2353_v28 = vld [vmem:[%s2459_s19 + $0x40] sm:$0xff]   ;;  %v2357_v40 = vld [vmem:[%s2459_s19 + $0x178] sm:$0xff]  }
  0x18   : > { %2113 = vmatprep.subr.bf16.mxu1 %v2334_v9  ;;  %v2350_v25 = vld [vmem:[%s2459_s19 + $0xc8] sm:$0xff]   ;;  %v2354_v29 = vld [vmem:[%s2459_s19 + $0xc0] sm:$0xff]   ;;  %v2358_v41 = vld [vmem:[%s2459_s19 + $0x138] sm:$0xff]  }
  0x19   : > { %v2351_v26 = vld [vmem:[%s2459_s19 + $0x8] sm:$0xff]   ;;  %v2355_v30 = vld [vmem:[%s2459_s19] sm:$0xff]   ;;  %v2359_v42 = vld [vmem:[%s2459_s19 + $0x1f8] sm:$0xff]  }
  0x1a   : > { %2050 = vmatpush3.bf16.msra.mxu0 %v2335_v10  ;;  %v2352_v27 = vld [vmem:[%s2459_s19 + $0x88] sm:$0xff]   ;;  %v2356_v31 = vld [vmem:[%s2459_s19 + $0x80] sm:$0xff]   ;;  %v2360_v43 = vld [vmem:[%s2459_s19 + $0x1b8] sm:$0xff]  }
  0x1b   : > { %2114 = vmatpush3.bf16.msra.mxu1 %v2336_v11  ;;  %2051 = vmatprep.subr.bf16.mxu0 %v2337_v12  ;;  %v253_v32 = vld [vmem:[%s2496_s22] sm:$0xff]  ;;  %v254_v34 = vld [vmem:[%s2496_s22 + $0x8] sm:$0xff]  ;;  %v2361_v50 = vld [vmem:[%s2459_s19 + $0x170] sm:$0xff]  }
  0x1c   : > { %2115 = vmatprep.subr.bf16.mxu1 %v2338_v13  ;;  %v257_v33 = vld [vmem:[%s2496_s22 + $0x20] sm:$0xff]  ;;  %v258_v37 = vld [vmem:[%s2496_s22 + $0x28] sm:$0xff]  ;;  %v2362_v52 = vld [vmem:[%s2459_s19 + $0x130] sm:$0xff]  }
  0x1d   : > { %v1833_v35 = vcombine.low %v253_v32, %v257_v33  ;;  %v1834_v36 = vcombine.high %v253_v32, %v257_v33  ;;  %v1835_v38 = vcombine.low %v254_v34, %v258_v37  ;;  %v1836_v39 = vcombine.high %v254_v34, %v258_v37  ;;  %v261_v44 = vld [vmem:[%s2496_s22 + $0x40] sm:$0xff]  ;;  %v262_v47 = vld [vmem:[%s2496_s22 + $0x48] sm:$0xff]  ;;  %v2363_v54 = vld [vmem:[%s2459_s19 + $0x1f0] sm:$0xff]  }
  0x1e   : > { %2052 = vmatpush3.bf16.msra.mxu0 %v2339_v14  ;;  %v265_v45 = vld [vmem:[%s2496_s22 + $0x60] sm:$0xff]  ;;  %v266_v48 = vld [vmem:[%s2496_s22 + $0x68] sm:$0xff]  ;;  %v2364_v55 = vld [vmem:[%s2459_s19 + $0x1b0] sm:$0xff]  }
  0x1f   : > { %2116 = vmatpush3.bf16.msra.mxu1 %v2340_v15  ;;  %2053 = vmatprep.subr.bf16.mxu0 %v2341_v16  ;;  %v1842_v46 = vcombine.high %v261_v44, %v265_v45  ;;  %v1844_v49 = vcombine.high %v262_v47, %v266_v48  ;;  %v1841_v51 = vcombine.low %v261_v44, %v265_v45  ;;  %v269_v56 = vld [vmem:[%s2496_s22 + $0x80] sm:$0xff]  ;;  %v270_v58 = vld [vmem:[%s2496_s22 + $0x88] sm:$0xff]  ;;  %v2379_v32 = vld [vmem:[%s2459_s19 + $0x1d0] sm:$0xff]  }
  0x20   : > { %2117 = vmatprep.subr.bf16.mxu1 %v2342_v17  ;;  %1181 = vmatprep.mubr.bf16.mxu0 %v1834_v36  ;;  %v1843_v53 = vcombine.low %v262_v47, %v266_v48  ;;  %v273_v57 = vld [vmem:[%s2496_s22 + $0xa0] sm:$0xff]  ;;  %v274_v59 = vld [vmem:[%s2496_s22 + $0xa8] sm:$0xff]  ;;  %v2380_v33 = vld [vmem:[%s2459_s19 + $0x190] sm:$0xff]  }
  0x21   : > { %1278 = vmatprep.mubr.bf16.mxu1 %v1836_v39  ;;  %v1850_v60 = vcombine.high %v269_v56, %v273_v57  ;;  %v1852_v61 = vcombine.high %v270_v58, %v274_v59  ;;  %v2365_v62 = vld [vmem:[%s2459_s19 + $0x168] sm:$0xff]   ;;  %v1849_v2 = vcombine.low %v269_v56, %v273_v57  ;;  %v277_v3 = vld [vmem:[%s2496_s22 + $0xc0] sm:$0xff]  ;;  %v1851_v6 = vcombine.low %v270_v58, %v274_v59 }
  0x22   : > { %2054 = vmatpush3.bf16.msra.mxu0 %v2343_v18  ;;  %v2366_v63 = vld [vmem:[%s2459_s19 + $0x128] sm:$0xff]   ;;  %v281_v4 = vld [vmem:[%s2496_s22 + $0xe0] sm:$0xff]  ;;  %v2373_v18 = vld [vmem:[%s2459_s19 + $0x158] sm:$0xff]  }
  0x23   : > { %2118 = vmatpush3.bf16.msra.mxu1 %v2344_v19  ;;  %2055 = vmatprep.subr.bf16.mxu0 %v2345_v20  ;;  %v2367_v0 = vld [vmem:[%s2459_s19 + $0x1e8] sm:$0xff]   ;;  %v1858_v7 = vcombine.high %v277_v3, %v281_v4  ;;  %v2369_v10 = vld [vmem:[%s2459_s19 + $0x160] sm:$0xff]   ;;  %v1857_v19 = vcombine.low %v277_v3, %v281_v4  ;;  %v2374_v20 = vld [vmem:[%s2459_s19 + $0x118] sm:$0xff]  }
  0x24   : > { %2119 = vmatprep.subr.bf16.mxu1 %v2346_v21  ;;  %v2368_v1 = vld [vmem:[%s2459_s19 + $0x1a8] sm:$0xff]   ;;  %v2370_v11 = vld [vmem:[%s2459_s19 + $0x120] sm:$0xff]  }
  0x25   : > { %v278_v5 = vld [vmem:[%s2496_s22 + $0xc8] sm:$0xff]  ;;  %v2371_v12 = vld [vmem:[%s2459_s19 + $0x1e0] sm:$0xff]  }
  0x26   : > { %2056 = vmatpush3.bf16.msra.mxu0 %v2347_v22  ;;  %v282_v8 = vld [vmem:[%s2496_s22 + $0xe8] sm:$0xff]  ;;  %v2372_v13 = vld [vmem:[%s2459_s19 + $0x1a0] sm:$0xff]  }
  0x27   : > { %2120 = vmatpush3.bf16.msra.mxu1 %v2348_v23  ;;  %2057 = vmatprep.subr.bf16.mxu0 %v2349_v24  ;;  %v1860_v9 = vcombine.high %v278_v5, %v282_v8  ;;  %v285_v14 = vld [vmem:[%s2496_s22 + $0x100] sm:$0xff]  ;;  %v286_v16 = vld [vmem:[%s2496_s22 + $0x108] sm:$0xff]  ;;  %v1859_v21 = vcombine.low %v278_v5, %v282_v8  ;;  %v2375_v23 = vld [vmem:[%s2459_s19 + $0x1d8] sm:$0xff]  }
  0x28   : > { %2121 = vmatprep.subr.bf16.mxu1 %v2350_v25  ;;  %v289_v15 = vld [vmem:[%s2496_s22 + $0x120] sm:$0xff]  ;;  %v290_v17 = vld [vmem:[%s2496_s22 + $0x128] sm:$0xff]  ;;  %v2376_v25 = vld [vmem:[%s2459_s19 + $0x198] sm:$0xff]  }
  0x29   : > { %v1866_v22 = vcombine.high %v285_v14, %v289_v15  ;;  %v1868_v24 = vcombine.high %v286_v16, %v290_v17  ;;  %v1865_v34 = vcombine.low %v285_v14, %v289_v15  ;;  %v2382_v39 = vld [vmem:[%s2459_s19 + $0x108] sm:$0xff]   ;;  %v2386_v48 = vld [vmem:[%s2459_s19 + $0x100] sm:$0xff]   ;;  %v264_v8 = vld [vmem:[%s2496_s22 + $0x58] sm:$0xff] }
  0x2a   : > { %2058 = vmatpush3.bf16.msra.mxu0 %v2351_v26  ;;  %v293_v26 = vld [vmem:[%s2496_s22 + $0x140] sm:$0xff]  ;;  %v302_v44 = vld [vmem:[%s2496_s22 + $0x188] sm:$0xff]  ;;  %v271_v14 = vld [vmem:[%s2496_s22 + $0x90] sm:$0xff] }
  0x2b   : > { %2122 = vmatpush3.bf16.msra.mxu1 %v2352_v27  ;;  %2059 = vmatprep.subr.bf16.mxu0 %v2353_v28  ;;  %v297_v27 = vld [vmem:[%s2496_s22 + $0x160] sm:$0xff]  ;;  %v2377_v28 = vld [vmem:[%s2459_s19 + $0x150] sm:$0xff]   ;;  %v306_v45 = vld [vmem:[%s2496_s22 + $0x1a8] sm:$0xff] }
  0x2c   : > { %2123 = vmatprep.subr.bf16.mxu1 %v2354_v29  ;;  %v294_v29 = vld [vmem:[%s2496_s22 + $0x148] sm:$0xff]  ;;  %v1874_v36 = vcombine.high %v293_v26, %v297_v27  ;;  %v1873_v47 = vcombine.low %v293_v26, %v297_v27  ;;  %v1883_v59 = vcombine.low %v302_v44, %v306_v45  ;;  %v275_v15 = vld [vmem:[%s2496_s22 + $0xb0] sm:$0xff] }
  0x2d   : > { %v310_v56 = vld [vmem:[%s2496_s22 + $0x1c8] sm:$0xff]  ;;  %v1853_v26 = vcombine.low %v271_v14, %v275_v15 }
  0x2e   : > { %2060 = vmatpush3.bf16.msra.mxu0 %v2355_v30  ;;  %v298_v30 = vld [vmem:[%s2496_s22 + $0x168] sm:$0xff] }
  0x2f   : > { %2124 = vmatpush3.bf16.msra.mxu1 %v2356_v31  ;;  %2173 = vmatprep.subr.bf16.mxu0 %v2357_v40  ;;  %v2378_v31 = vld [vmem:[%s2459_s19 + $0x110] sm:$0xff]   ;;  %v1876_v37 = vcombine.high %v294_v29, %v298_v30  ;;  %v2383_v40 = vld [vmem:[%s2459_s19 + $0x1c8] sm:$0xff]  }
  0x30   : > { %2237 = vmatprep.subr.bf16.mxu1 %v2359_v42  ;;  %v305_v42 = vld [vmem:[%s2496_s22 + $0x1a0] sm:$0xff]  ;;  %v314_v57 = vld [vmem:[%s2496_s22 + $0x1e8] sm:$0xff] }
  0x31   : > { %1182 = vmatmul.mubr.bf16.vlgmr.msra.gmra.mxu0 %v1833_v35  ;;  %v1867_v35 = vcombine.low %v286_v16, %v290_v17  ;;  %v1891_v3 = vcombine.low %v310_v56, %v314_v57  ;;  %v272_v16 = vld [vmem:[%s2496_s22 + $0x98] sm:$0xff] }
  0x32   : > { %1279 = vmatmul.mubr.bf16.vlgmr.msra.gmra.mxu1 %v1835_v38  ;;  %2174 = vmatpush3.bf16.msra.mxu0 %v2358_v41  ;;  %v2381_v38 = vld [vmem:[%s2459_s19 + $0x148] sm:$0xff]   ;;  %v301_v41 = vld [vmem:[%s2496_s22 + $0x180] sm:$0xff]  ;;  %v276_v17 = vld [vmem:[%s2496_s22 + $0xb8] sm:$0xff] }
  0x33   : > { %2238 = vmatpush3.bf16.msra.mxu1 %v2360_v43  ;;  %1189 = vmatprep.mubr.bf16.mxu0 %v1842_v46  ;;  %v2384_v43 = vld [vmem:[%s2459_s19 + $0x188] sm:$0xff]   ;;  %v2385_v46 = vld [vmem:[%s2459_s19 + $0x140] sm:$0xff]   ;;  %v1881_v58 = vcombine.low %v301_v41, %v305_v42  ;;  %v1855_v27 = vcombine.low %v272_v16, %v276_v17 }
  0x34   : > { %1286 = vmatprep.mubr.bf16.mxu1 %v1844_v49  ;;  %2175 = vmatprep.subr.bf16.mxu0 %v2361_v50  ;;  %v1875_v49 = vcombine.low %v294_v29, %v298_v30  ;;  %v1882_v50 = vcombine.high %v301_v41, %v305_v42  ;;  %v287_v30 = vld [vmem:[%s2496_s22 + $0x110] sm:$0xff]  ;;  %v300_v41 = vld [vmem:[%s2496_s22 + $0x178] sm:$0xff] }
  0x35   : > { %2239 = vmatprep.subr.bf16.mxu1 %v2363_v54  ;;  %v309_v54 = vld [vmem:[%s2496_s22 + $0x1c0] sm:$0xff] }
  0x36   : > { %2176 = vmatpush3.bf16.msra.mxu0 %v2362_v52  ;;  %v1884_v52 = vcombine.high %v302_v44, %v306_v45 }
  0x37   : > { %2240 = vmatpush3.bf16.msra.mxu1 %v2364_v55  ;;  %2177 = vmatprep.subr.bf16.mxu0 %v2365_v62  ;;  %v313_v55 = vld [vmem:[%s2496_s22 + $0x1e0] sm:$0xff]  ;;  %v255_v62 = vld [vmem:[%s2496_s22 + $0x10] sm:$0xff] }
  0x38   : > { %2241 = vmatprep.subr.bf16.mxu1 %v2367_v0  ;;  %v256_v0 = vld [vmem:[%s2496_s22 + $0x18] sm:$0xff] }
  0x39   : > { %1190 = vmatmul.mubr.bf16.gmra.mxu0 %v1841_v51  ;;  %v2387_v51 = vld [vmem:[%s2459_s19 + $0x1c0] sm:$0xff]  }
  0x3a   : > { %1287 = vmatmul.mubr.bf16.gmra.mxu1 %v1843_v53  ;;  %1197 = vmatprep.mubr.bf16.mxu0 %v1850_v60  ;;  %v2388_v53 = vld [vmem:[%s2459_s19 + $0x180] sm:$0xff]   ;;  %v1890_v60 = vcombine.high %v309_v54, %v313_v55 }
  0x3b   : > { %1294 = vmatprep.mubr.bf16.mxu1 %v1852_v61  ;;  %2178 = vmatpush3.bf16.msra.mxu0 %v2366_v63  ;;  %v1892_v61 = vcombine.high %v310_v56, %v314_v57  ;;  %v259_v63 = vld [vmem:[%s2496_s22 + $0x30] sm:$0xff]  ;;  %v312_v56 = vld [vmem:[%s2496_s22 + $0x1d8] sm:$0xff] }
  0x3c   : > { %2242 = vmatpush3.bf16.msra.mxu1 %v2368_v1  ;;  %2179 = vmatprep.subr.bf16.mxu0 %v2369_v10  ;;  %v260_v1 = vld [vmem:[%s2496_s22 + $0x38] sm:$0xff]  ;;  %v1838_v4 = vcombine.high %v255_v62, %v259_v63  ;;  %v1837_v10 = vcombine.low %v255_v62, %v259_v63 }
  0x3d   : > { %2243 = vmatprep.subr.bf16.mxu1 %v2371_v12  ;;  %v1840_v5 = vcombine.high %v256_v0, %v260_v1  ;;  %v316_v57 = vld [vmem:[%s2496_s22 + $0x1f8] sm:$0xff] }
  0x3e   : > { %v1895_v63 = vcombine.low %v312_v56, %v316_v57 }
  0x3f   : > { %2180 = vmatpush3.bf16.msra.mxu0 %v2370_v11  ;;  %v1839_v11 = vcombine.low %v256_v0, %v260_v1 }
  0x40   : > { %2244 = vmatpush3.bf16.msra.mxu1 %v2372_v13  ;;  %2181 = vmatprep.subr.bf16.mxu0 %v2373_v18 }
  0x41   : > { %1198 = vmatmul.mubr.bf16.gmra.mxu0 %v1849_v2  ;;  %2245 = vmatprep.subr.bf16.mxu1 %v2375_v23  ;;  %v1889_v2 = vcombine.low %v309_v54, %v313_v55  ;;  %v283_v23 = vld [vmem:[%s2496_s22 + $0xf0] sm:$0xff] }
  0x42   : > { %1295 = vmatmul.mubr.bf16.gmra.mxu1 %v1851_v6  ;;  %1205 = vmatprep.mubr.bf16.mxu0 %v1858_v7  ;;  %v263_v6 = vld [vmem:[%s2496_s22 + $0x50] sm:$0xff] }
  0x43   : > { %1302 = vmatprep.mubr.bf16.mxu1 %v1860_v9  ;;  %2182 = vmatpush3.bf16.msra.mxu0 %v2374_v20  ;;  %v267_v7 = vld [vmem:[%s2496_s22 + $0x70] sm:$0xff]  ;;  %v268_v9 = vld [vmem:[%s2496_s22 + $0x78] sm:$0xff]  ;;  %v1854_v20 = vcombine.high %v271_v14, %v275_v15 }
  0x44   : > { %2246 = vmatpush3.bf16.msra.mxu1 %v2376_v25  ;;  %2183 = vmatprep.subr.bf16.mxu0 %v2377_v28  ;;  %v1846_v12 = vcombine.high %v263_v6, %v267_v7  ;;  %v1848_v13 = vcombine.high %v264_v8, %v268_v9  ;;  %v1845_v18 = vcombine.low %v263_v6, %v267_v7  ;;  %v284_v25 = vld [vmem:[%s2496_s22 + $0xf8] sm:$0xff]  ;;  %v311_v54 = vld [vmem:[%s2496_s22 + $0x1d0] sm:$0xff] }
  0x45   : > { %2247 = vmatprep.subr.bf16.mxu1 %v2379_v32  ;;  %v288_v32 = vld [vmem:[%s2496_s22 + $0x118] sm:$0xff]  ;;  %v315_v55 = vld [vmem:[%s2496_s22 + $0x1f0] sm:$0xff] }
  0x46   : > { %v1893_v62 = vcombine.low %v311_v54, %v315_v55 }
  0x47   : > { %2184 = vmatpush3.bf16.msra.mxu0 %v2378_v31  ;;  %v291_v31 = vld [vmem:[%s2496_s22 + $0x130] sm:$0xff] }
  0x48   : > { %2248 = vmatpush3.bf16.msra.mxu1 %v2380_v33  ;;  %2185 = vmatprep.subr.bf16.mxu0 %v2381_v38  ;;  %v292_v33 = vld [vmem:[%s2496_s22 + $0x138] sm:$0xff]  ;;  %v295_v38 = vld [vmem:[%s2496_s22 + $0x150] sm:$0xff]  ;;  %v1869_v42 = vcombine.low %v287_v30, %v291_v31 }
  0x49   : > { %1206 = vmatmul.mubr.bf16.gmra.mxu0 %v1857_v19  ;;  %2249 = vmatprep.subr.bf16.mxu1 %v2383_v40  ;;  %v1847_v19 = vcombine.low %v264_v8, %v268_v9  ;;  %v296_v40 = vld [vmem:[%s2496_s22 + $0x158] sm:$0xff] }
  0x4a   : > { %1303 = vmatmul.mubr.bf16.gmra.mxu1 %v1859_v21  ;;  %1213 = vmatprep.mubr.bf16.mxu0 %v1866_v22  ;;  %v1856_v21 = vcombine.high %v272_v16, %v276_v17  ;;  %v279_v22 = vld [vmem:[%s2496_s22 + $0xd0] sm:$0xff]  ;;  %v1880_v45 = vcombine.high %v296_v40, %v300_v41 }
  0x4b   : > { %1310 = vmatprep.mubr.bf16.mxu1 %v1868_v24  ;;  %2186 = vmatpush3.bf16.msra.mxu0 %v2382_v39  ;;  %v280_v24 = vld [vmem:[%s2496_s22 + $0xd8] sm:$0xff]  ;;  %v1862_v28 = vcombine.high %v279_v22, %v283_v23  ;;  %v299_v39 = vld [vmem:[%s2496_s22 + $0x170] sm:$0xff] }
  0x4c   : > { %2250 = vmatpush3.bf16.msra.mxu1 %v2384_v43  ;;  %2187 = vmatprep.subr.bf16.mxu0 %v2385_v46  ;;  %v1864_v29 = vcombine.high %v280_v24, %v284_v25  ;;  %v1871_v43 = vcombine.low %v288_v32, %v292_v33  ;;  %v1878_v44 = vcombine.high %v295_v38, %v299_v39  ;;  %v303_v46 = vld [vmem:[%s2496_s22 + $0x190] sm:$0xff] }
  0x4d   : > { %2251 = vmatprep.subr.bf16.mxu1 %v2387_v51  ;;  %v1879_v51 = vcombine.low %v296_v40, %v300_v41 }
  0x4f   : > { %2188 = vmatpush3.bf16.msra.mxu0 %v2386_v48  ;;  %v304_v48 = vld [vmem:[%s2496_s22 + $0x198] sm:$0xff] }
  0x50   : > { %2252 = vmatpush3.bf16.msra.mxu1 %v2388_v53 }
  0x51   : > { %1214 = vmatmul.mubr.bf16.gmra.mxu0 %v1865_v34  ;;  %v1861_v34 = vcombine.low %v279_v22, %v283_v23 }
  0x52   : > { %1311 = vmatmul.mubr.bf16.gmra.mxu1 %v1867_v35  ;;  %1221 = vmatprep.mubr.bf16.mxu0 %v1874_v36  ;;  %v1863_v35 = vcombine.low %v280_v24, %v284_v25  ;;  %v1870_v36 = vcombine.high %v287_v30, %v291_v31 }
  0x53   : > { %1318 = vmatprep.mubr.bf16.mxu1 %v1876_v37  ;;  %v1872_v37 = vcombine.high %v288_v32, %v292_v33 }
  0x59   : > { %1222 = vmatmul.mubr.bf16.gmra.mxu0 %v1873_v47  ;;  %v307_v47 = vld [vmem:[%s2496_s22 + $0x1b0] sm:$0xff] }
  0x5a   : > { %1319 = vmatmul.mubr.bf16.gmra.mxu1 %v1875_v49  ;;  %1229 = vmatprep.mubr.bf16.mxu0 %v1882_v50  ;;  %v308_v49 = vld [vmem:[%s2496_s22 + $0x1b8] sm:$0xff]  ;;  %v1877_v50 = vcombine.low %v295_v38, %v299_v39 }
  0x5b   : > { %1326 = vmatprep.mubr.bf16.mxu1 %v1884_v52  ;;  %v1886_v52 = vcombine.high %v303_v46, %v307_v47  ;;  %v1888_v53 = vcombine.high %v304_v48, %v308_v49 }
  0x61   : > { %1230 = vmatmul.mubr.bf16.gmra.mxu0 %v1881_v58  ;;  %v1885_v58 = vcombine.low %v303_v46, %v307_v47 }
  0x62   : > { %1327 = vmatmul.mubr.bf16.gmra.mxu1 %v1883_v59  ;;  %1237 = vmatprep.mubr.bf16.mxu0 %v1890_v60  ;;  %v1887_v59 = vcombine.low %v304_v48, %v308_v49  ;;  %v1894_v60 = vcombine.high %v311_v54, %v315_v55 }
  0x63   : > { %1334 = vmatprep.mubr.bf16.mxu1 %v1892_v61  ;;  %v1896_v61 = vcombine.high %v312_v56, %v316_v57 }
  0x69   : > { %1238 = vmatmul.mubr.bf16.gmra.mxu0 %v1889_v2 }
  0x6a   : > { %1335 = vmatmul.mubr.bf16.gmra.mxu1 %v1891_v3  ;;  %1375 = vmatprep.mubr.bf16.mxu0 %v1838_v4 }
  0x6b   : > { %1472 = vmatprep.mubr.bf16.mxu1 %v1840_v5 }
  0x71   : > { %1376 = vmatmul.mubr.bf16.vlgmr.msra.gmra.mxu0 %v1837_v10 }
  0x72   : > { %1473 = vmatmul.mubr.bf16.vlgmr.msra.gmra.mxu1 %v1839_v11  ;;  %1383 = vmatprep.mubr.bf16.mxu0 %v1846_v12 }
  0x73   : > { %1480 = vmatprep.mubr.bf16.mxu1 %v1848_v13 }
  0x79   : > { %1384 = vmatmul.mubr.bf16.gmra.mxu0 %v1845_v18 }
  0x7a   : > { %1481 = vmatmul.mubr.bf16.gmra.mxu1 %v1847_v19  ;;  %1391 = vmatprep.mubr.bf16.mxu0 %v1854_v20 }
  0x7b   : > { %1488 = vmatprep.mubr.bf16.mxu1 %v1856_v21 }
  0x81   : > { %1392 = vmatmul.mubr.bf16.gmra.mxu0 %v1853_v26 }
  0x82   : > { %1489 = vmatmul.mubr.bf16.gmra.mxu1 %v1855_v27  ;;  %1399 = vmatprep.mubr.bf16.mxu0 %v1862_v28 }
  0x83   : > { %1496 = vmatprep.mubr.bf16.mxu1 %v1864_v29 }
  0x89   : > { %1400 = vmatmul.mubr.bf16.gmra.mxu0 %v1861_v34 }
  0x8a   : > { %1497 = vmatmul.mubr.bf16.gmra.mxu1 %v1863_v35  ;;  %1407 = vmatprep.mubr.bf16.mxu0 %v1870_v36 }
  0x8b   : > { %1504 = vmatprep.mubr.bf16.mxu1 %v1872_v37 }
  0x91   : > { %1408 = vmatmul.mubr.bf16.gmra.mxu0 %v1869_v42 }
  0x92   : > { %1505 = vmatmul.mubr.bf16.gmra.mxu1 %v1871_v43  ;;  %1415 = vmatprep.mubr.bf16.mxu0 %v1878_v44 }
  0x93   : > { %1512 = vmatprep.mubr.bf16.mxu1 %v1880_v45 }
  0x99   : > { %1416 = vmatmul.mubr.bf16.gmra.mxu0 %v1877_v50 }
  0x9a   : > { %1513 = vmatmul.mubr.bf16.gmra.mxu1 %v1879_v51  ;;  %1423 = vmatprep.mubr.bf16.mxu0 %v1886_v52 }
  0x9b   : > { %1520 = vmatprep.mubr.bf16.mxu1 %v1888_v53 }
  0xa1   : > { %1424 = vmatmul.mubr.bf16.gmra.mxu0 %v1885_v58 }
  0xa2   : > { %1521 = vmatmul.mubr.bf16.gmra.mxu1 %v1887_v59  ;;  %1431 = vmatprep.mubr.bf16.mxu0 %v1894_v60 }
  0xa3   : > { %1528 = vmatprep.mubr.bf16.mxu1 %v1896_v61 }
  0xa9   : > { %1432 = vmatmul.mubr.bf16.gmra.mxu0 %v1893_v62 }
  0xaa   : > { %1529 = vmatmul.mubr.bf16.gmra.mxu1 %v1895_v63 }
  0xf1   : > { %v2061_v0 = vpop.f32.mrf.mxu0 }
  0xf2   : > { %v2125_v1 = vpop.f32.mrf.mxu1 }
  0xf3   : > { %v2062_v2 = vpop.f32.mrf.mxu0 }
  0xf4   : > { %v2063_v3 = vadd.f32 %v2062_v2, %v2061_v0  ;;  %v2126_v4 = vpop.f32.mrf.mxu1 }
  0xf5   : > { %v2127_v5 = vadd.f32 %v2126_v4, %v2125_v1  ;;  %v2596_v6 = vpop.f32.mrf.mxu0 }
  0xf6   : > { %v2598_v7 = vpop.f32.mrf.mxu1 }
  0xf7   : > { %v2600_v8 = vadd.f32 %v2127_v5, %v2063_v3  ;;  %v2602_v9 = vpop.f32.mrf.mxu0 }
  0xf8   : > { %v2604_v10 = vpop.f32.mrf.mxu1 }
  0xf9   : > { %v2067_v11 = vpop.f32.mrf.mxu0 }
  0xfa   : > { %v2131_v12 = vpop.f32.mrf.mxu1 }
  0xfb   : > { %v2068_v13 = vpop.f32.mrf.mxu0 }
  0xfc   : > { %v2069_v14 = vadd.f32 %v2068_v13, %v2067_v11  ;;  %v2132_v15 = vpop.f32.mrf.mxu1 }
  0xfd   : > { %v2133_v16 = vadd.f32 %v2132_v15, %v2131_v12  ;;  %v2606_v17 = vpop.f32.mrf.mxu0 }
  0xfe   : > { %v2608_v18 = vpop.f32.mrf.mxu1 }
  0xff   : > { %v2610_v19 = vadd.f32 %v2133_v16, %v2069_v14  ;;  %v2612_v20 = vpop.f32.mrf.mxu0 }
 0x100   : > { %v2614_v21 = vpop.f32.mrf.mxu1 }
 0x101   : > { %v2073_v22 = vpop.f32.mrf.mxu0 }
 0x102   : > { %v2137_v23 = vpop.f32.mrf.mxu1 }
 0x103   : > { %v2074_v24 = vpop.f32.mrf.mxu0 }
 0x104   : > { %v2075_v25 = vadd.f32 %v2074_v24, %v2073_v22  ;;  %v2138_v26 = vpop.f32.mrf.mxu1 }
 0x105   : > { %v2139_v27 = vadd.f32 %v2138_v26, %v2137_v23  ;;  %v2616_v28 = vpop.f32.mrf.mxu0 }
 0x106   : > { %v2618_v29 = vpop.f32.mrf.mxu1 }
 0x107   : > { %v2620_v30 = vadd.f32 %v2139_v27, %v2075_v25  ;;  %v2622_v31 = vpop.f32.mrf.mxu0 }
 0x108   : > { %v2624_v32 = vpop.f32.mrf.mxu1 }
 0x109   : > { %v2079_v33 = vpop.f32.mrf.mxu0 }
 0x10a   : > { %v2143_v34 = vpop.f32.mrf.mxu1 }
 0x10b   : > { %v2080_v35 = vpop.f32.mrf.mxu0 }
 0x10c   : > { %v2081_v36 = vadd.f32 %v2080_v35, %v2079_v33  ;;  %v2144_v37 = vpop.f32.mrf.mxu1 }
 0x10d   : > { %v2145_v38 = vadd.f32 %v2144_v37, %v2143_v34  ;;  %v2626_v39 = vpop.f32.mrf.mxu0 }
 0x10e   : > { %v2628_v40 = vpop.f32.mrf.mxu1 }
 0x10f   : > { %v2630_v41 = vadd.f32 %v2145_v38, %v2081_v36  ;;  %v2632_v42 = vpop.f32.mrf.mxu0 }
 0x110   : > { %v2634_v43 = vpop.f32.mrf.mxu1 }
 0x111   : > { %v2085_v44 = vpop.f32.mrf.mxu0 }
 0x112   : > { %v2149_v45 = vpop.f32.mrf.mxu1 }
 0x113   : > { %v2086_v46 = vpop.f32.mrf.mxu0 }
 0x114   : > { %v2087_v47 = vadd.f32 %v2086_v46, %v2085_v44  ;;  %v2150_v48 = vpop.f32.mrf.mxu1 }
 0x115   : > { %v2151_v49 = vadd.f32 %v2150_v48, %v2149_v45  ;;  %v2636_v50 = vpop.f32.mrf.mxu0  ;;  %v2130_v48 = vadd.f32 %v2604_v10, %v2598_v7  ;;  %v2072_v7 = vadd.f32 %v2612_v20, %v2606_v17  ;;  %v2136_v10 = vadd.f32 %v2614_v21, %v2608_v18 }
 0x116   : > { %v2638_v51 = vpop.f32.mrf.mxu1 }
 0x117   : > { %v2640_v52 = vadd.f32 %v2151_v49, %v2087_v47  ;;  %v2642_v53 = vpop.f32.mrf.mxu0  ;;  %v2066_v47 = vadd.f32 %v2602_v9, %v2596_v6  ;;  %v1292_v18 = vadd.f32 %v2136_v10, %v2072_v7 }
 0x118   : > { %v2644_v54 = vpop.f32.mrf.mxu1 }
 0x119   : > { %v2091_v55 = vpop.f32.mrf.mxu0 }
 0x11a   : > { %v2155_v56 = vpop.f32.mrf.mxu1 }
 0x11b   : > { %v2092_v57 = vpop.f32.mrf.mxu0 }
 0x11c   : > { %v2093_v58 = vadd.f32 %v2092_v57, %v2091_v55  ;;  %v2156_v59 = vpop.f32.mrf.mxu1 }
 0x11d   : > { %v2157_v60 = vadd.f32 %v2156_v59, %v2155_v56  ;;  %v2646_v61 = vpop.f32.mrf.mxu0 }
 0x11e   : > { %v2648_v62 = vpop.f32.mrf.mxu1 }
 0x11f   : > { %v2650_v63 = vadd.f32 %v2157_v60, %v2093_v58  ;;  %v2652_v0 = vpop.f32.mrf.mxu0 }
 0x120   : > { %v2654_v1 = vpop.f32.mrf.mxu1 }
 0x121   : > { %v2097_v2 = vpop.f32.mrf.mxu0 }
 0x122   : > { %v2161_v3 = vpop.f32.mrf.mxu1 }
 0x123   : > { %v2098_v4 = vpop.f32.mrf.mxu0 }
 0x124   : > { %v2099_v5 = vadd.f32 %v2098_v4, %v2097_v2  ;;  %v2162_v11 = vpop.f32.mrf.mxu1  ;;  %v1284_v2 = vadd.f32 %v2130_v48, %v2066_v47 }
 0x125   : > { %v2163_v12 = vadd.f32 %v2162_v11, %v2161_v3  ;;  %v2656_v13 = vpop.f32.mrf.mxu0 }
 0x126   : > { %v2658_v14 = vpop.f32.mrf.mxu1 }
 0x127   : > { %v2660_v15 = vadd.f32 %v2163_v12, %v2099_v5  ;;  %v2662_v16 = vpop.f32.mrf.mxu0 }
 0x128   : > { %v2664_v22 = vpop.f32.mrf.mxu1 }
 0x129   : > { %v2103_v23 = vpop.f32.mrf.mxu0 }
 0x12a   : > { %v2167_v24 = vpop.f32.mrf.mxu1 }
 0x12b   : > { %v2104_v25 = vpop.f32.mrf.mxu0 }
 0x12c   : > { %v2105_v26 = vadd.f32 %v2104_v25, %v2103_v23  ;;  %v2168_v27 = vpop.f32.mrf.mxu1 }
 0x12d   : > { %v2169_v33 = vadd.f32 %v2168_v27, %v2167_v24  ;;  %v2666_v34 = vpop.f32.mrf.mxu0 }
 0x12e   : > { %v2668_v35 = vpop.f32.mrf.mxu1 }
 0x12f   : > { %v2670_v36 = vadd.f32 %v2169_v33, %v2105_v26  ;;  %v2672_v37 = vpop.f32.mrf.mxu0 }
 0x130   : > { %v2674_v38 = vpop.f32.mrf.mxu1 }
 0x131   : > { %v2189_v44 = vpop.f32.mrf.mxu0 }
 0x132   : > { %v2253_v45 = vpop.f32.mrf.mxu1 }
 0x133   : > { %v2190_v46 = vpop.f32.mrf.mxu0 }
 0x134   : > { %v2191_v49 = vadd.f32 %v2190_v46, %v2189_v44  ;;  %v2254_v55 = vpop.f32.mrf.mxu1 }
 0x135   : > { %v2192_v56 = vpop.f32.mrf.mxu0  ;;  %v2255_v59 = vadd.f32 %v2254_v55, %v2253_v45 }
 0x136   : > { %v1378_v57 = vadd.f32 %v2191_v49, %v2600_v8  ;;  %v2256_v58 = vpop.f32.mrf.mxu1 }
 0x137   : > { %v2193_v60 = vpop.f32.mrf.mxu0 }
 0x138   : > { %v2194_v3 = vadd.f32 %v2193_v60, %v2192_v56  ;;  %v2257_v4 = vpop.f32.mrf.mxu1  ;;  %v1475_v5 = vadd.f32 %v2255_v59, %v1378_v57 }
 0x139   : > { %v2195_v11 = vpop.f32.mrf.mxu0  ;;  %v2258_v23 = vadd.f32 %v2257_v4, %v2256_v58 }
 0x13a   : > { %v1381_v12 = vadd.f32 %v2194_v3, %v1284_v2  ;;  %v2259_v6 = vpop.f32.mrf.mxu1  ;;  %v1638_v26 = vmul.f32 %v1475_v5, %v1475_v5  ;;  %v2078_v3 = vadd.f32 %v2622_v31, %v2616_v28 }
 0x13b   : > { %v2196_v9 = vpop.f32.mrf.mxu0 }
 0x13c   : > { %v1478_v8 = vadd.f32 %v2258_v23, %v1381_v12  ;;  %v2197_v24 = vadd.f32 %v2196_v9, %v2195_v11  ;;  %v2260_v25 = vpop.f32.mrf.mxu1 }
 0x13d   : > { %v2261_v27 = vadd.f32 %v2260_v25, %v2259_v6  ;;  %v2198_v33 = vpop.f32.mrf.mxu0 }
 0x13e   : > { %v2001_v44 = vpack.c.bf16 %v1478_v8, %v1475_v5  ;;  %v1617_v45 = vadd.f32 %v1478_v8, %v1475_v5  ;;  %v1639_v46 = vmul.f32 %v1478_v8, %v1478_v8  ;;  %v1386_v17 = vadd.f32 %v2197_v24, %v2610_v19  ;;  %v2262_v20 = vpop.f32.mrf.mxu1 }
 0x13f   : > { %v2199_v47 = vpop.f32.mrf.mxu0  ;;  %v2142_v19 = vadd.f32 %v2624_v32, %v2618_v29 }
 0x140   : > { %2002 = vst [vmem:[%s2689_s26] sm:$0xff] %v2001_v44   ;;  %v1654_v21 = vadd.f32 %v1639_v46, %v1638_v26  ;;  %v1483_v48 = vadd.f32 %v2261_v27, %v1386_v17  ;;  %v2200_v49 = vadd.f32 %v2199_v47, %v2198_v33  ;;  %v2263_v55 = vpop.f32.mrf.mxu1  ;;  %v2084_v47 = vadd.f32 %v2632_v42, %v2626_v39 }
 0x141   : > { %v2201_v56 = vpop.f32.mrf.mxu0  ;;  %v2264_v60 = vadd.f32 %v2263_v55, %v2262_v20  ;;  %v1300_v27 = vadd.f32 %v2142_v19, %v2078_v3 }
 0x142   : > { %v1618_v57 = vadd.f32 %v1617_v45, %v1483_v48  ;;  %v1640_v58 = vmul.f32 %v1483_v48, %v1483_v48  ;;  %v1389_v59 = vadd.f32 %v2200_v49, %v1292_v18  ;;  %v2265_v2 = vpop.f32.mrf.mxu1 }
 0x143   : > { %v2202_v4 = vpop.f32.mrf.mxu0 }
 0x144   : > { %v1655_v5 = vadd.f32 %v1654_v21, %v1640_v58  ;;  %v1486_v11 = vadd.f32 %v2264_v60, %v1389_v59  ;;  %v2203_v12 = vadd.f32 %v2202_v4, %v2201_v56  ;;  %v2266_v23 = vpop.f32.mrf.mxu1 }
 0x145   : > { %v2267_v6 = vadd.f32 %v2266_v23, %v2265_v2  ;;  %v2204_v9 = vpop.f32.mrf.mxu0 }
 0x146   : > { %v2006_v7 = vpack.c.bf16 %v1486_v11, %v1483_v48  ;;  %v1619_v10 = vadd.f32 %v1618_v57, %v1486_v11  ;;  %v1641_v8 = vmul.f32 %v1486_v11, %v1486_v11  ;;  %v1394_v24 = vadd.f32 %v2203_v12, %v2620_v30  ;;  %v2268_v25 = vpop.f32.mrf.mxu1 }
 0x147   : > { %v2205_v26 = vpop.f32.mrf.mxu0  ;;  %v2148_v30 = vadd.f32 %v2634_v43, %v2628_v40 }
 0x148   : > { %2038 = vst [vmem:[%s2689_s26 + $0x8] sm:$0xff] %v2006_v7   ;;  %v1656_v28 = vadd.f32 %v1655_v5, %v1641_v8  ;;  %v1491_v31 = vadd.f32 %v2267_v6, %v1394_v24  ;;  %v2206_v33 = vadd.f32 %v2205_v26, %v2204_v9  ;;  %v2269_v44 = vpop.f32.mrf.mxu1  ;;  %v2090_v7 = vadd.f32 %v2642_v53, %v2636_v50 }
 0x149   : > { %v2207_v29 = vpop.f32.mrf.mxu0  ;;  %v2270_v17 = vadd.f32 %v2269_v44, %v2268_v25  ;;  %v1308_v19 = vadd.f32 %v2148_v30, %v2084_v47 }
 0x14a   : > { %v1620_v32 = vadd.f32 %v1619_v10, %v1491_v31  ;;  %v1642_v45 = vmul.f32 %v1491_v31, %v1491_v31  ;;  %v1397_v46 = vadd.f32 %v2206_v33, %v1300_v27  ;;  %v2271_v20 = vpop.f32.mrf.mxu1 }
 0x14b   : > { %v2208_v18 = vpop.f32.mrf.mxu0 }
 0x14c   : > { %v1657_v21 = vadd.f32 %v1656_v28, %v1642_v45  ;;  %v1494_v48 = vadd.f32 %v2270_v17, %v1397_v46  ;;  %v2209_v49 = vadd.f32 %v2208_v18, %v2207_v29  ;;  %v2272_v55 = vpop.f32.mrf.mxu1 }
 0x14d   : > { %v2273_v56 = vadd.f32 %v2272_v55, %v2271_v20  ;;  %v2210_v57 = vpop.f32.mrf.mxu0 }
 0x14e   : > { %v2011_v58 = vpack.c.bf16 %v1494_v48, %v1491_v31  ;;  %v1621_v59 = vadd.f32 %v1620_v32, %v1494_v48  ;;  %v1643_v60 = vmul.f32 %v1494_v48, %v1494_v48  ;;  %v1402_v2 = vadd.f32 %v2209_v49, %v2630_v41  ;;  %v2274_v3 = vpop.f32.mrf.mxu1 }
 0x14f   : > { %v2211_v4 = vpop.f32.mrf.mxu0  ;;  %v2154_v41 = vadd.f32 %v2644_v54, %v2638_v51  ;;  %v2096_v48 = vadd.f32 %v2652_v0, %v2646_v61 }
 0x150   : > { %2039 = vst [vmem:[%s2689_s26 + $0x10] sm:$0xff] %v2011_v58   ;;  %v1658_v39 = vadd.f32 %v1657_v21, %v1643_v60  ;;  %v1499_v42 = vadd.f32 %v2273_v56, %v1402_v2  ;;  %v2212_v5 = vadd.f32 %v2211_v4, %v2210_v57  ;;  %v2275_v11 = vpop.f32.mrf.mxu1 }
 0x151   : > { %v2213_v40 = vpop.f32.mrf.mxu0  ;;  %v2276_v6 = vadd.f32 %v2275_v11, %v2274_v3  ;;  %v1316_v46 = vadd.f32 %v2154_v41, %v2090_v7 }
 0x152   : > { %v1622_v43 = vadd.f32 %v1621_v59, %v1499_v42  ;;  %v1644_v12 = vmul.f32 %v1499_v42, %v1499_v42  ;;  %v1405_v23 = vadd.f32 %v2212_v5, %v1308_v19  ;;  %v2277_v9 = vpop.f32.mrf.mxu1 }
 0x153   : > { %v2214_v10 = vpop.f32.mrf.mxu0 }
 0x154   : > { %v1659_v8 = vadd.f32 %v1658_v39, %v1644_v12  ;;  %v1502_v24 = vadd.f32 %v2276_v6, %v1405_v23  ;;  %v2215_v25 = vadd.f32 %v2214_v10, %v2213_v40  ;;  %v2278_v26 = vpop.f32.mrf.mxu1 }
 0x155   : > { %v2279_v27 = vadd.f32 %v2278_v26, %v2277_v9  ;;  %v2216_v28 = vpop.f32.mrf.mxu0  ;;  %v2102_v9 = vadd.f32 %v2662_v16, %v2656_v13 }
 0x156   : > { %v2016_v31 = vpack.c.bf16 %v1502_v24, %v1499_v42  ;;  %v1623_v33 = vadd.f32 %v1622_v43, %v1502_v24  ;;  %v1645_v44 = vmul.f32 %v1502_v24, %v1502_v24  ;;  %v1410_v29 = vadd.f32 %v2215_v25, %v2640_v52  ;;  %v2280_v32 = vpop.f32.mrf.mxu1 }
 0x157   : > { %v2217_v45 = vpop.f32.mrf.mxu0  ;;  %v2160_v52 = vadd.f32 %v2654_v1, %v2648_v62 }
 0x158   : > { %2040 = vst [vmem:[%s2689_s26 + $0x18] sm:$0xff] %v2016_v31   ;;  %v1660_v50 = vadd.f32 %v1659_v8, %v1645_v44  ;;  %v1507_v53 = vadd.f32 %v2279_v27, %v1410_v29  ;;  %v2218_v17 = vadd.f32 %v2217_v45, %v2216_v28  ;;  %v2281_v20 = vpop.f32.mrf.mxu1 }
 0x159   : > { %v2219_v51 = vpop.f32.mrf.mxu0  ;;  %v2282_v30 = vadd.f32 %v2281_v20, %v2280_v32  ;;  %v1324_v5 = vadd.f32 %v2160_v52, %v2096_v48 }
 0x15a   : > { %v1624_v54 = vadd.f32 %v1623_v33, %v1507_v53  ;;  %v1646_v47 = vmul.f32 %v1507_v53, %v1507_v53  ;;  %v1413_v18 = vadd.f32 %v2218_v17, %v1316_v46  ;;  %v2283_v21 = vpop.f32.mrf.mxu1 }
 0x15b   : > { %v2220_v49 = vpop.f32.mrf.mxu0 }
 0x15c   : > { %v1661_v55 = vadd.f32 %v1660_v50, %v1646_v47  ;;  %v1510_v56 = vadd.f32 %v2282_v30, %v1413_v18  ;;  %v2221_v57 = vadd.f32 %v2220_v49, %v2219_v51  ;;  %v2284_v58 = vpop.f32.mrf.mxu1  ;;  %v2108_v51 = vadd.f32 %v2672_v37, %v2666_v34 }
 0x15d   : > { %v2285_v59 = vadd.f32 %v2284_v58, %v2283_v21  ;;  %v2222_v60 = vpop.f32.mrf.mxu0 }
 0x15e   : > { %v2021_v2 = vpack.c.bf16 %v1510_v56, %v1507_v53  ;;  %v1625_v3 = vadd.f32 %v1624_v54, %v1510_v56  ;;  %v1647_v4 = vmul.f32 %v1510_v56, %v1510_v56  ;;  %v1418_v19 = vadd.f32 %v2221_v57, %v2650_v63  ;;  %v2286_v39 = vpop.f32.mrf.mxu1 }
 0x15f   : > { %v2223_v42 = vpop.f32.mrf.mxu0  ;;  %v2166_v63 = vadd.f32 %v2664_v22, %v2658_v14 }
 0x160   : > { %2041 = vst [vmem:[%s2689_s26 + $0x20] sm:$0xff] %v2021_v2   ;;  %v1662_v61 = vadd.f32 %v1661_v55, %v1647_v4  ;;  %v1515_v0 = vadd.f32 %v2285_v59, %v1418_v19  ;;  %v2224_v11 = vadd.f32 %v2223_v42, %v2222_v60  ;;  %v2287_v40 = vpop.f32.mrf.mxu1 }
 0x161   : > { %v2225_v62 = vpop.f32.mrf.mxu0  ;;  %v2288_v23 = vadd.f32 %v2287_v40, %v2286_v39  ;;  %v1332_v32 = vadd.f32 %v2166_v63, %v2102_v9 }
 0x162   : > { %v1626_v1 = vadd.f32 %v1625_v3, %v1515_v0  ;;  %v1648_v43 = vmul.f32 %v1515_v0, %v1515_v0  ;;  %v1421_v12 = vadd.f32 %v2224_v11, %v1324_v5  ;;  %v2289_v6 = vpop.f32.mrf.mxu1 }
 0x163   : > { %v2226_v7 = vpop.f32.mrf.mxu0 }
 0x164   : > { %v1663_v10 = vadd.f32 %v1662_v61, %v1648_v43  ;;  %v1518_v41 = vadd.f32 %v2288_v23, %v1421_v12  ;;  %v2227_v8 = vadd.f32 %v2226_v7, %v2225_v62  ;;  %v2290_v24 = vpop.f32.mrf.mxu1 }
 0x165   : > { %v2291_v25 = vadd.f32 %v2290_v24, %v2289_v6  ;;  %v2228_v26 = vpop.f32.mrf.mxu0 }
 0x166   : > { %v2026_v27 = vpack.c.bf16 %v1518_v41, %v1515_v0  ;;  %v1627_v28 = vadd.f32 %v1626_v1, %v1518_v41  ;;  %v1649_v31 = vmul.f32 %v1518_v41, %v1518_v41  ;;  %v1426_v33 = vadd.f32 %v2227_v8, %v2660_v15  ;;  %v2292_v44 = vpop.f32.mrf.mxu1 }
 0x167   : > { %v2229_v29 = vpop.f32.mrf.mxu0  ;;  %v2172_v15 = vadd.f32 %v2674_v38, %v2668_v35 }
 0x168   : > { %2042 = vst [vmem:[%s2689_s26 + $0x28] sm:$0xff] %v2026_v27   ;;  %v1664_v13 = vadd.f32 %v1663_v10, %v1649_v31  ;;  %v1523_v16 = vadd.f32 %v2291_v25, %v1426_v33  ;;  %v2230_v45 = vadd.f32 %v2229_v29, %v2228_v26  ;;  %v2293_v46 = vpop.f32.mrf.mxu1 }
 0x169   : > { %v2231_v14 = vpop.f32.mrf.mxu0  ;;  %v2294_v17 = vadd.f32 %v2293_v46, %v2292_v44  ;;  %v1340_v34 = vadd.f32 %v2172_v15, %v2108_v51 }
 0x16a   : > { %v1628_v22 = vadd.f32 %v1627_v28, %v1523_v16  ;;  %v1650_v50 = vmul.f32 %v1523_v16, %v1523_v16  ;;  %v1429_v53 = vadd.f32 %v2230_v45, %v1332_v32  ;;  %v2295_v20 = vpop.f32.mrf.mxu1 }
 0x16b   : > { %v2232_v54 = vpop.f32.mrf.mxu0 }
 0x16c   : > { %v1665_v47 = vadd.f32 %v1664_v13, %v1650_v50  ;;  %v1526_v18 = vadd.f32 %v2294_v17, %v1429_v53  ;;  %v2233_v30 = vadd.f32 %v2232_v54, %v2231_v14  ;;  %v2296_v21 = vpop.f32.mrf.mxu1 }
 0x16d   : > { %v2297_v48 = vadd.f32 %v2296_v21, %v2295_v20  ;;  %v2234_v49 = vpop.f32.mrf.mxu0 }
 0x16e   : > { %v2031_v52 = vpack.c.bf16 %v1526_v18, %v1523_v16  ;;  %v1629_v55 = vadd.f32 %v1628_v22, %v1526_v18  ;;  %v1651_v56 = vmul.f32 %v1526_v18, %v1526_v18  ;;  %v1434_v57 = vadd.f32 %v2233_v30, %v2670_v36  ;;  %v2298_v58 = vpop.f32.mrf.mxu1 }
 0x16f   : > { %v2235_v59 = vpop.f32.mrf.mxu0 }
 0x170   : > { %2043 = vst [vmem:[%s2689_s26 + $0x30] sm:$0xff] %v2031_v52   ;;  %v1666_v37 = vadd.f32 %v1665_v47, %v1651_v56  ;;  %v1531_v60 = vadd.f32 %v2297_v48, %v1434_v57  ;;  %v2236_v2 = vadd.f32 %v2235_v59, %v2234_v49  ;;  %v2299_v35 = vpop.f32.mrf.mxu1 }
 0x171   : > { %v2300_v19 = vadd.f32 %v2299_v35, %v2298_v58 }
 0x172   : > { %v1630_v38 = vadd.f32 %v1629_v55, %v1531_v60  ;;  %v1652_v3 = vmul.f32 %v1531_v60, %v1531_v60  ;;  %v1437_v4 = vadd.f32 %v2236_v2, %v1340_v34 }
 0x174   : > { %v1667_v39 = vadd.f32 %v1666_v37, %v1652_v3  ;;  %v1534_v42 = vadd.f32 %v2300_v19, %v1437_v4 }
 0x176   : > { %v2036_v5 = vpack.c.bf16 %v1534_v42, %v1531_v60  ;;  %v1631_v61 = vadd.f32 %v1630_v38, %v1534_v42  ;;  %v1653_v0 = vmul.f32 %v1534_v42, %v1534_v42 }
 0x178   : > { %2044 = vst [vmem:[%s2689_s26 + $0x38] sm:$0xff] %v2036_v5   ;;  %v1632_v36 = vrot.slane %v1631_v61, 4  ;;  %v1668_v11 = vadd.f32 %v1667_v39, %v1653_v0 }
 0x17a   : > { %v1633_v40 = vadd.f32 %v1632_v36, %v1631_v61  ;;  %v1669_v62 = vrot.slane %v1668_v11, 4 }
 0x17c   : > { %v1634_v1 = vrot.slane %v1633_v40, 2  ;;  %v1670_v43 = vadd.f32 %v1669_v62, %v1668_v11 }
 0x17e   : > { %v1635_v12 = vadd.f32 %v1634_v1, %v1633_v40  ;;  %v1671_v23 = vrot.slane %v1670_v43, 2 }
 0x180   : > { %v1636_v6 = vrot.slane %v1635_v12, 1  ;;  %v1672_v9 = vadd.f32 %v1671_v23, %v1670_v43 }
 0x182   : > { %v1673_v7 = vrot.slane %v1672_v9, 1  ;;  %v1637_v63 = vadd.f32 %v1636_v6, %v1635_v12 }
 0x184   : > { %v1674_v10 = vadd.f32 %v1673_v7, %v1672_v9 }
 0x186   : > { %v1676_v41 = vsel %vm1675_vm0, %v1637_v63, %v1674_v10 }
 0x187   : > { %1677 = vst [vmem:[%s251_s30] sm:$0x3] %v1676_v41 }
 0x188 PF: > { %s14_s14 = sadd.s32 1, %s2411_s14   ;;  %s2747_s12 = smov %s2407_s13 }
 0x189   : > { %p11_p5 = scmp.ge.s32.totalorder %s14_s14, 6   ;;  %s2748_s13 = smov %s2750_s15 }
 0x18b   :  { %13 = sbr.rel (!%p11_p5) target bundleno = 2 (0x2), region = 73 }

// kernel: generator_forward.16
= control target key start
LH: loop header
LB: loop body
LE: loop exit
PB: predicated region body
PF: predicated region fallthrough
CT: control target
= control target key end

     0   :  { %s893_s12 = smov 0   ;;  %s895_s13 = smov 0   ;;  %s1109_s0 = inlined_call_operand.vmem [shape: bf16[4,512,64], index: 0, kind: input, shape index: {}]   ;;  %s1110_s1 = inlined_call_operand.vmem [shape: f32[1,64], index: 1, kind: input, shape index: {}]   ;;  %s1111_s2 = inlined_call_operand.vmem [shape: f32[1,64], index: 2, kind: input, shape index: {}]   ;;  %s1112_s3 = inlined_call_operand.vmem [shape: bf16[4,512,64], index: 3, kind: output, shape index: {}]  }
   0x1   :  { %s897_s14 = smov 0   ;;  %s899_s15 = smov 0  }
   0x2   :  { %s901_s16 = smov 0  }
   0x3 LB: > { %s22_s17 = sadd.s32 1, %s863_s14  ;;  %s25_s18 = sadd.s32 1, %s867_s15  ;;  %s871_s16 = sphi %s901_s16, %s13_s16   ;;  %s867_s15 = sphi %s899_s15, %s1116_s15   ;;  %s863_s14 = sphi %s897_s14, %s1115_s14   ;;  %s859_s13 = sphi %s895_s13, %s1114_s13   ;;  %s855_s12 = sphi %s893_s12, %s1113_s12  }
   0x4   : > { %p23_p0 = scmp.ge.s32.totalorder %s22_s17, 2  ;;  %p639_p1 = scmp.ge.s32.totalorder %s871_s16, 1 }
   0x5   : > { %p158_p2 = scmp.lt.s32.totalorder %s871_s16, 9 }
   0x6   : > { %s1118_s17 = smov (%p23_p0, %s22_s17), 0  ;;  %s1120_s18 = smov (!%p23_p0, %s25_s18), %s867_s15 }
   0x7   : > { %p159_p3 = pnand %p639_p1, %p158_p2  ;;  %p27_p4 = scmp.ge.s32.totalorder %s1120_s18, 4 }
   0x8   : > { %s640_s19 = sshll.u32 (!%p159_p3), %s855_s12, 5  ;;  %p191_p5 = scmp.lt.s32.totalorder (!%p159_p3), %s859_s13, 3 }
   0x9   : > { %s1122_s18 = smov (%p27_p4, %s1120_s18), 0  ;;  %162 = sbr.rel (%p159_p3) target bundleno = 64 (0x40), region = 32 }
   0xa   : > { %p193_p6 = scmp.lt.s32.totalorder (!%p159_p3), %s640_s19, 63 }
   0xe   : > { %s1124_s13 = smov (!%p191_p5, %s859_s13), 3  ;;  %s1126_s19 = smov (!%p193_p6, %s640_s19), 63  ;;  %v936_v0 = vld [vmem:[%s1110_s1] ss:$0 sm:$0xff]  ;;  %vm512_vm0 = vcmask 519168  }
   0xf   : > { %s641_s20 = sshll.u32 %s1124_s13, 6  ;;  %v945_v9 = vld [vmem:[%s1111_s2] ss:$0 sm:$0xff] }
  0x10   : > { %s923_s21 = sadd.s32 %s641_s20, %s1126_s19 }
  0x11   : > { %s642_s22 = sshll.u32 %s923_s21, 2 }
  0x12   : > { %s931_s25 = scalar_lea.vmem %s1109_s0, %s642_s22  ;;  %s968_s5 = scalar_lea.vmem %s1112_s3, %s642_s22 }
  0x13   : > { %v715_v1 = vld [vmem:[%s931_s25] sm:$0xff]   ;;  %v778_v2 = vld [vmem:[%s931_s25 + $0x8] sm:$0xff]   ;;  %v779_v3 = vld [vmem:[%s931_s25 + $0x10] sm:$0xff]  }
  0x14   : > { %v716_v4 = vunpack.c.l.bf16 %v715_v1  ;;  %v717_v5 = vunpack.c.h.bf16 %v715_v1  ;;  %v720_v6 = vunpack.c.l.bf16 %v778_v2  ;;  %v721_v7 = vunpack.c.h.bf16 %v778_v2  ;;  %v780_v8 = vld [vmem:[%s931_s25 + $0x18] sm:$0xff]   ;;  %v781_v38 = vld [vmem:[%s931_s25 + $0x20] sm:$0xff]   ;;  %v782_v39 = vld [vmem:[%s931_s25 + $0x28] sm:$0xff]  }
  0x15   : > { %v724_v10 = vunpack.c.l.bf16 %v779_v3  ;;  %v725_v11 = vunpack.c.h.bf16 %v779_v3  ;;  %v728_v12 = vunpack.c.l.bf16 %v780_v8  ;;  %v729_v13 = vunpack.c.h.bf16 %v780_v8  ;;  %v783_v44 = vld [vmem:[%s931_s25 + $0x30] sm:$0xff]   ;;  %v784_v45 = vld [vmem:[%s931_s25 + $0x38] sm:$0xff]  }
  0x16   : > { %v281_v14 = vmul.f32 %v716_v4, %v936_v0  ;;  %v282_v15 = vmul.f32 %v717_v5, %v936_v0  ;;  %v283_v16 = vmul.f32 %v720_v6, %v936_v0  ;;  %v284_v17 = vmul.f32 %v721_v7, %v936_v0 }
  0x17   : > { %v285_v18 = vmul.f32 %v724_v10, %v936_v0  ;;  %v286_v19 = vmul.f32 %v725_v11, %v936_v0  ;;  %v287_v20 = vmul.f32 %v728_v12, %v936_v0  ;;  %v288_v21 = vmul.f32 %v729_v13, %v936_v0 }
  0x18   : > { %v320_v22 = vadd.f32 %v945_v9, %v281_v14  ;;  %v321_v23 = vadd.f32 %v945_v9, %v282_v15  ;;  %v322_v24 = vadd.f32 %v945_v9, %v283_v16  ;;  %v323_v25 = vadd.f32 %v945_v9, %v284_v17 }
  0x19   : > { %v324_v26 = vadd.f32 %v945_v9, %v285_v18  ;;  %v325_v27 = vadd.f32 %v945_v9, %v286_v19  ;;  %v326_v28 = vadd.f32 %v945_v9, %v287_v20  ;;  %v327_v29 = vadd.f32 %v945_v9, %v288_v21  ;;  %v785_v20 = vld [vmem:[%s931_s25 + $0x40] sm:$0xff]   ;;  %v786_v21 = vld [vmem:[%s931_s25 + $0x48] sm:$0xff]  }
  0x1a   : > { %v352_v30 = vmax.f32 %v320_v22, 0.0  ;;  %v353_v31 = vmax.f32 %v321_v23, 0.0  ;;  %v354_v32 = vmax.f32 %v322_v24, 0.0  ;;  %v355_v33 = vmax.f32 %v323_v25, 0.0 }
  0x1b   : > { %v356_v34 = vmax.f32 %v324_v26, 0.0  ;;  %v357_v35 = vmax.f32 %v325_v27, 0.0  ;;  %v358_v36 = vmax.f32 %v326_v28, 0.0  ;;  %v359_v37 = vmax.f32 %v327_v29, 0.0  ;;  %v787_v26 = vld [vmem:[%s931_s25 + $0x50] sm:$0xff]   ;;  %v788_v27 = vld [vmem:[%s931_s25 + $0x58] sm:$0xff]  }
  0x1c   : > { %v682_v40 = vpack.c.bf16 %v352_v30, %v352_v30  ;;  %v683_v41 = vpack.c.bf16 %v353_v31, %v353_v31  ;;  %v684_v42 = vpack.c.bf16 %v354_v32, %v354_v32  ;;  %v685_v43 = vpack.c.bf16 %v355_v33, %v355_v33 }
  0x1d   : > { %v686_v46 = vpack.c.bf16 %v356_v34, %v356_v34  ;;  %v687_v47 = vpack.c.bf16 %v357_v35, %v357_v35  ;;  %v688_v48 = vpack.c.bf16 %v358_v36, %v358_v36  ;;  %v689_v49 = vpack.c.bf16 %v359_v37, %v359_v37 }
  0x1e   : > { %513 = vst.msk [vmem:[%s968_s5] sm:$0xf] %vm512_vm0, %v682_v40  ;;  %514 = vst.msk [vmem:[%s968_s5 + $0x4] sm:$0xf] %vm512_vm0, %v683_v41  ;;  %v732_v50 = vunpack.c.l.bf16 %v781_v38  ;;  %v733_v51 = vunpack.c.h.bf16 %v781_v38  ;;  %v736_v52 = vunpack.c.l.bf16 %v782_v39  ;;  %v737_v53 = vunpack.c.h.bf16 %v782_v39 }
  0x1f   : > { %515 = vst.msk [vmem:[%s968_s5 + $0x8] sm:$0xf] %vm512_vm0, %v684_v42  ;;  %516 = vst.msk [vmem:[%s968_s5 + $0xc] sm:$0xf] %vm512_vm0, %v685_v43  ;;  %v740_v54 = vunpack.c.l.bf16 %v783_v44  ;;  %v741_v55 = vunpack.c.h.bf16 %v783_v44  ;;  %v744_v56 = vunpack.c.l.bf16 %v784_v45  ;;  %v745_v57 = vunpack.c.h.bf16 %v784_v45 }
  0x20   : > { %517 = vst.msk [vmem:[%s968_s5 + $0x10] sm:$0xf] %vm512_vm0, %v686_v46  ;;  %518 = vst.msk [vmem:[%s968_s5 + $0x14] sm:$0xf] %vm512_vm0, %v687_v47  ;;  %v289_v58 = vmul.f32 %v732_v50, %v936_v0  ;;  %v290_v59 = vmul.f32 %v733_v51, %v936_v0  ;;  %v291_v60 = vmul.f32 %v736_v52, %v936_v0  ;;  %v748_v32 = vunpack.c.l.bf16 %v785_v20 }
  0x21   : > { %519 = vst.msk [vmem:[%s968_s5 + $0x18] sm:$0xf] %vm512_vm0, %v688_v48  ;;  %520 = vst.msk [vmem:[%s968_s5 + $0x1c] sm:$0xf] %vm512_vm0, %v689_v49  ;;  %v292_v61 = vmul.f32 %v737_v53, %v936_v0  ;;  %v293_v62 = vmul.f32 %v740_v54, %v936_v0  ;;  %v294_v63 = vmul.f32 %v741_v55, %v936_v0  ;;  %v749_v33 = vunpack.c.h.bf16 %v785_v20 }
  0x22   : > { %v295_v1 = vmul.f32 %v744_v56, %v936_v0  ;;  %v296_v2 = vmul.f32 %v745_v57, %v936_v0  ;;  %v328_v3 = vadd.f32 %v945_v9, %v289_v58  ;;  %v329_v4 = vadd.f32 %v945_v9, %v290_v59 }
  0x23   : > { %v330_v5 = vadd.f32 %v945_v9, %v291_v60  ;;  %v331_v6 = vadd.f32 %v945_v9, %v292_v61  ;;  %v332_v7 = vadd.f32 %v945_v9, %v293_v62  ;;  %v333_v8 = vadd.f32 %v945_v9, %v294_v63 }
  0x24   : > { %v334_v10 = vadd.f32 %v945_v9, %v295_v1  ;;  %v335_v11 = vadd.f32 %v945_v9, %v296_v2  ;;  %v360_v12 = vmax.f32 %v328_v3, 0.0  ;;  %v361_v13 = vmax.f32 %v329_v4, 0.0  ;;  %v789_v1 = vld [vmem:[%s931_s25 + $0x60] sm:$0xff]   ;;  %v790_v2 = vld [vmem:[%s931_s25 + $0x68] sm:$0xff]  }
  0x25   : > { %v362_v14 = vmax.f32 %v330_v5, 0.0  ;;  %v363_v15 = vmax.f32 %v331_v6, 0.0  ;;  %v364_v16 = vmax.f32 %v332_v7, 0.0  ;;  %v365_v17 = vmax.f32 %v333_v8, 0.0  ;;  %v791_v7 = vld [vmem:[%s931_s25 + $0x70] sm:$0xff]   ;;  %v792_v8 = vld [vmem:[%s931_s25 + $0x78] sm:$0xff]  }
  0x26   : > { %v366_v18 = vmax.f32 %v334_v10, 0.0  ;;  %v367_v19 = vmax.f32 %v335_v11, 0.0  ;;  %v690_v22 = vpack.c.bf16 %v360_v12, %v360_v12  ;;  %v691_v23 = vpack.c.bf16 %v361_v13, %v361_v13 }
  0x27   : > { %v692_v24 = vpack.c.bf16 %v362_v14, %v362_v14  ;;  %v693_v25 = vpack.c.bf16 %v363_v15, %v363_v15  ;;  %v694_v28 = vpack.c.bf16 %v364_v16, %v364_v16  ;;  %v695_v29 = vpack.c.bf16 %v365_v17, %v365_v17 }
  0x28   : > { %v696_v30 = vpack.c.bf16 %v366_v18, %v366_v18  ;;  %v697_v31 = vpack.c.bf16 %v367_v19, %v367_v19  ;;  %521 = vst.msk [vmem:[%s968_s5 + $0x20] sm:$0xf] %vm512_vm0, %v690_v22  ;;  %522 = vst.msk [vmem:[%s968_s5 + $0x24] sm:$0xf] %vm512_vm0, %v691_v23  ;;  %v752_v34 = vunpack.c.l.bf16 %v786_v21  ;;  %v753_v35 = vunpack.c.h.bf16 %v786_v21 }
  0x29   : > { %523 = vst.msk [vmem:[%s968_s5 + $0x28] sm:$0xf] %vm512_vm0, %v692_v24  ;;  %524 = vst.msk [vmem:[%s968_s5 + $0x2c] sm:$0xf] %vm512_vm0, %v693_v25  ;;  %v756_v36 = vunpack.c.l.bf16 %v787_v26  ;;  %v757_v37 = vunpack.c.h.bf16 %v787_v26  ;;  %v760_v38 = vunpack.c.l.bf16 %v788_v27  ;;  %v761_v39 = vunpack.c.h.bf16 %v788_v27 }
  0x2a   : > { %525 = vst.msk [vmem:[%s968_s5 + $0x30] sm:$0xf] %vm512_vm0, %v694_v28  ;;  %526 = vst.msk [vmem:[%s968_s5 + $0x34] sm:$0xf] %vm512_vm0, %v695_v29  ;;  %v297_v40 = vmul.f32 %v748_v32, %v936_v0  ;;  %v298_v41 = vmul.f32 %v749_v33, %v936_v0  ;;  %v299_v42 = vmul.f32 %v752_v34, %v936_v0  ;;  %v764_v14 = vunpack.c.l.bf16 %v789_v1 }
  0x2b   : > { %527 = vst.msk [vmem:[%s968_s5 + $0x38] sm:$0xf] %vm512_vm0, %v696_v30  ;;  %528 = vst.msk [vmem:[%s968_s5 + $0x3c] sm:$0xf] %vm512_vm0, %v697_v31  ;;  %v300_v43 = vmul.f32 %v753_v35, %v936_v0  ;;  %v301_v44 = vmul.f32 %v756_v36, %v936_v0  ;;  %v302_v45 = vmul.f32 %v757_v37, %v936_v0  ;;  %v765_v15 = vunpack.c.h.bf16 %v789_v1 }
  0x2c   : > { %v303_v46 = vmul.f32 %v760_v38, %v936_v0  ;;  %v304_v47 = vmul.f32 %v761_v39, %v936_v0  ;;  %v336_v48 = vadd.f32 %v945_v9, %v297_v40  ;;  %v337_v49 = vadd.f32 %v945_v9, %v298_v41 }
  0x2d   : > { %v338_v50 = vadd.f32 %v945_v9, %v299_v42  ;;  %v339_v51 = vadd.f32 %v945_v9, %v300_v43  ;;  %v340_v52 = vadd.f32 %v945_v9, %v301_v44  ;;  %v341_v53 = vadd.f32 %v945_v9, %v302_v45 }
  0x2e   : > { %v342_v54 = vadd.f32 %v945_v9, %v303_v46  ;;  %v343_v55 = vadd.f32 %v945_v9, %v304_v47  ;;  %v368_v56 = vmax.f32 %v336_v48, 0.0  ;;  %v369_v57 = vmax.f32 %v337_v49, 0.0 }
  0x2f   : > { %v370_v58 = vmax.f32 %v338_v50, 0.0  ;;  %v371_v59 = vmax.f32 %v339_v51, 0.0  ;;  %v372_v60 = vmax.f32 %v340_v52, 0.0  ;;  %v373_v61 = vmax.f32 %v341_v53, 0.0 }
  0x30   : > { %v374_v62 = vmax.f32 %v342_v54, 0.0  ;;  %v375_v63 = vmax.f32 %v343_v55, 0.0  ;;  %v698_v3 = vpack.c.bf16 %v368_v56, %v368_v56  ;;  %v699_v4 = vpack.c.bf16 %v369_v57, %v369_v57 }
  0x31   : > { %v700_v5 = vpack.c.bf16 %v370_v58, %v370_v58  ;;  %v701_v6 = vpack.c.bf16 %v371_v59, %v371_v59  ;;  %v702_v10 = vpack.c.bf16 %v372_v60, %v372_v60  ;;  %v703_v11 = vpack.c.bf16 %v373_v61, %v373_v61 }
  0x32   : > { %v704_v12 = vpack.c.bf16 %v374_v62, %v374_v62  ;;  %v705_v13 = vpack.c.bf16 %v375_v63, %v375_v63  ;;  %529 = vst.msk [vmem:[%s968_s5 + $0x40] sm:$0xf] %vm512_vm0, %v698_v3  ;;  %530 = vst.msk [vmem:[%s968_s5 + $0x44] sm:$0xf] %vm512_vm0, %v699_v4  ;;  %v768_v16 = vunpack.c.l.bf16 %v790_v2  ;;  %v769_v17 = vunpack.c.h.bf16 %v790_v2 }
  0x33   : > { %531 = vst.msk [vmem:[%s968_s5 + $0x48] sm:$0xf] %vm512_vm0, %v700_v5  ;;  %532 = vst.msk [vmem:[%s968_s5 + $0x4c] sm:$0xf] %vm512_vm0, %v701_v6  ;;  %v772_v18 = vunpack.c.l.bf16 %v791_v7  ;;  %v773_v19 = vunpack.c.h.bf16 %v791_v7  ;;  %v776_v20 = vunpack.c.l.bf16 %v792_v8  ;;  %v777_v21 = vunpack.c.h.bf16 %v792_v8 }
  0x34   : > { %533 = vst.msk [vmem:[%s968_s5 + $0x50] sm:$0xf] %vm512_vm0, %v702_v10  ;;  %534 = vst.msk [vmem:[%s968_s5 + $0x54] sm:$0xf] %vm512_vm0, %v703_v11  ;;  %v305_v22 = vmul.f32 %v764_v14, %v936_v0  ;;  %v306_v23 = vmul.f32 %v765_v15, %v936_v0  ;;  %v307_v24 = vmul.f32 %v768_v16, %v936_v0 }
  0x35   : > { %535 = vst.msk [vmem:[%s968_s5 + $0x58] sm:$0xf] %vm512_vm0, %v704_v12  ;;  %536 = vst.msk [vmem:[%s968_s5 + $0x5c] sm:$0xf] %vm512_vm0, %v705_v13  ;;  %v308_v25 = vmul.f32 %v769_v17, %v936_v0  ;;  %v309_v26 = vmul.f32 %v772_v18, %v936_v0  ;;  %v310_v27 = vmul.f32 %v773_v19, %v936_v0 }
  0x36   : > { %v311_v28 = vmul.f32 %v776_v20, %v936_v0  ;;  %v312_v29 = vmul.f32 %v777_v21, %v936_v0  ;;  %v344_v30 = vadd.f32 %v945_v9, %v305_v22  ;;  %v345_v31 = vadd.f32 %v945_v9, %v306_v23 }
  0x37   : > { %v346_v32 = vadd.f32 %v945_v9, %v307_v24  ;;  %v347_v33 = vadd.f32 %v945_v9, %v308_v25  ;;  %v348_v34 = vadd.f32 %v945_v9, %v309_v26  ;;  %v349_v35 = vadd.f32 %v945_v9, %v310_v27 }
  0x38   : > { %v350_v36 = vadd.f32 %v945_v9, %v311_v28  ;;  %v351_v37 = vadd.f32 %v945_v9, %v312_v29  ;;  %v376_v38 = vmax.f32 %v344_v30, 0.0  ;;  %v377_v39 = vmax.f32 %v345_v31, 0.0 }
  0x39   : > { %v378_v0 = vmax.f32 %v346_v32, 0.0  ;;  %v379_v40 = vmax.f32 %v347_v33, 0.0  ;;  %v380_v41 = vmax.f32 %v348_v34, 0.0  ;;  %v381_v42 = vmax.f32 %v349_v35, 0.0 }
  0x3a   : > { %v382_v43 = vmax.f32 %v350_v36, 0.0  ;;  %v383_v44 = vmax.f32 %v351_v37, 0.0  ;;  %v706_v45 = vpack.c.bf16 %v376_v38, %v376_v38  ;;  %v707_v46 = vpack.c.bf16 %v377_v39, %v377_v39 }
  0x3b   : > { %v708_v47 = vpack.c.bf16 %v378_v0, %v378_v0  ;;  %v709_v9 = vpack.c.bf16 %v379_v40, %v379_v40  ;;  %v710_v48 = vpack.c.bf16 %v380_v41, %v380_v41  ;;  %v711_v49 = vpack.c.bf16 %v381_v42, %v381_v42 }
  0x3c   : > { %v712_v50 = vpack.c.bf16 %v382_v43, %v382_v43  ;;  %v713_v51 = vpack.c.bf16 %v383_v44, %v383_v44  ;;  %537 = vst.msk [vmem:[%s968_s5 + $0x60] sm:$0xf] %vm512_vm0, %v706_v45  ;;  %538 = vst.msk [vmem:[%s968_s5 + $0x64] sm:$0xf] %vm512_vm0, %v707_v46 }
  0x3d   : > { %539 = vst.msk [vmem:[%s968_s5 + $0x68] sm:$0xf] %vm512_vm0, %v708_v47  ;;  %540 = vst.msk [vmem:[%s968_s5 + $0x6c] sm:$0xf] %vm512_vm0, %v709_v9 }
  0x3e   : > { %541 = vst.msk [vmem:[%s968_s5 + $0x70] sm:$0xf] %vm512_vm0, %v710_v48  ;;  %542 = vst.msk [vmem:[%s968_s5 + $0x74] sm:$0xf] %vm512_vm0, %v711_v49 }
  0x3f   : > { %543 = vst.msk [vmem:[%s968_s5 + $0x78] sm:$0xf] %vm512_vm0, %v712_v50  ;;  %544 = vst.msk [vmem:[%s968_s5 + $0x7c] sm:$0xf] %vm512_vm0, %v713_v51 }
  0x40 PF: > { %s13_s16 = sadd.s32 1, %s871_s16   ;;  %s1113_s12 = smov %s863_s14 }
  0x41   : > { %p10_p7 = scmp.ge.s32.totalorder %s13_s16, 10   ;;  %s1114_s13 = smov %s867_s15 }
  0x42   : > { %s1115_s14 = smov %s1118_s17  ;;  %s1116_s15 = smov %s1122_s18 }
  0x43   :  { %12 = sbr.rel (!%p10_p7) target bundleno = 3 (0x3), region = 62 }

// kernel: generator_forward.15
= control target key start
LH: loop header
LB: loop body
LE: loop exit
PB: predicated region body
PF: predicated region fallthrough
CT: control target
= control target key end

     0   :  { %s2336_s12 = smov 0   ;;  %s2338_s13 = smov 0   ;;  %s2816_s0 = inlined_call_operand.vmem [shape: bf16[4,512,512], index: 0, kind: input, shape index: {}]   ;;  %s2817_s1 = inlined_call_operand.vmem [shape: bf16[4,512,64], index: 1, kind: input, shape index: {}]   ;;  %s2818_s2 = inlined_call_operand.vmem [shape: bf16[4,512,64], index: 2, kind: output, shape index: {0}]   ;;  %s2819_s3 = inlined_call_operand.vmem [shape: f32[4,2,2,64], index: 3, kind: output, shape index: {1}]  }
   0x1   :  { %s2340_s14 = smov 0   ;;  %s2342_s15 = smov 0  }
   0x2   :  { %s2344_s16 = smov 0  }
   0x3 LB: > { %s23_s17 = sadd.s32 1, %s2306_s14  ;;  %s26_s18 = sadd.s32 1, %s2310_s15  ;;  %s2314_s16 = sphi %s2344_s16, %s14_s16   ;;  %s2310_s15 = sphi %s2342_s15, %s2823_s15   ;;  %s2306_s14 = sphi %s2340_s14, %s2822_s14   ;;  %s2302_s13 = sphi %s2338_s13, %s2821_s13   ;;  %s2298_s12 = sphi %s2336_s12, %s2820_s12  }
   0x4   : > { %p24_p0 = scmp.ge.s32.totalorder %s23_s17, 2  ;;  %p1709_p1 = scmp.ge.s32.totalorder %s2314_s16, 1 }
   0x5   : > { %p174_p2 = scmp.lt.s32.totalorder %s2314_s16, 9 }
   0x6   : > { %s2825_s17 = smov (%p24_p0, %s23_s17), 0  ;;  %s2827_s18 = smov (!%p24_p0, %s26_s18), %s2310_s15 }
   0x7   : > { %p175_p3 = pnand %p1709_p1, %p174_p2  ;;  %p28_p4 = scmp.ge.s32.totalorder %s2827_s18, 4 }
   0x8   : > { %p221_p5 = scmp.lt.s32.totalorder (!%p175_p3), %s2302_s13, 3  ;;  %s1710_s23 = sshll.u32 (!%p175_p3), %s2298_s12, 5 }
   0x9   : > { %s2829_s18 = smov (%p28_p4, %s2827_s18), 0  ;;  %178 = sbr.rel (%p175_p3) target bundleno = 394 (0x18a), region = 28 }
   0xa   : > { %p223_p6 = scmp.lt.s32.totalorder (!%p175_p3), %s1710_s23, 63  ;;  %p248_p7 = scmp.lt.s32.totalorder (!%p175_p3), %s2298_s12, 1 }
   0xe   : > { %s2831_s13 = smov (!%p221_p5, %s2302_s13), 3  ;;  %s2833_s23 = smov (!%p223_p6, %s1710_s23), 63  ;;  %vm1345_vm0 = vcmask 519168   ;;  %vm1378_vm1 = vcmask 523264   ;;  %vm1549_vm2 = vcmask 1040384   ;;  %vm1551_vm3 = vcmask 517120  }
   0xf   : > { %s1712_s19 = sshll.u32 %s2831_s13, 8  ;;  %s1711_s24 = sshll.u32 %s2833_s23, 2 }
  0x10   : > { %s2376_s22 = scalar_lea.vmem %s2817_s1, %s1712_s19  ;;  %s227_s25 = sadd.s32 %s1712_s19, %s1711_s24 }
  0x11   : > { %v2148_v0 = vld [vmem:[%s2376_s22 + $0x78] sm:$0xff]   ;;  %v2152_v4 = vld [vmem:[%s2376_s22 + $0x70] sm:$0xff]   ;;  %v2156_v8 = vld [vmem:[%s2376_s22 + $0x68] sm:$0xff]   ;;  %s1713_s26 = sshll.u32 %s227_s25, 2  ;;  %s1717_s30 = sshll.u32 %s2831_s13, 6 }
  0x12   : > { %v2149_v1 = vld [vmem:[%s2376_s22 + $0xf8] sm:$0xff]   ;;  %1884 = vmatprep.subr.bf16.mxu0 %v2148_v0  ;;  %v2153_v5 = vld [vmem:[%s2376_s22 + $0xf0] sm:$0xff]   ;;  %v2157_v9 = vld [vmem:[%s2376_s22 + $0xe8] sm:$0xff]   ;;  %s2417_s29 = scalar_lea.vmem %s2816_s0, %s1713_s26  ;;  %s242_s4 = sadd.s32 %s1717_s30, %s2833_s23 }
  0x13   : > { %v2150_v2 = vld [vmem:[%s2376_s22 + $0x38] sm:$0xff]   ;;  %1996 = vmatprep.subr.bf16.mxu1 %v2149_v1  ;;  %v2154_v6 = vld [vmem:[%s2376_s22 + $0x30] sm:$0xff]   ;;  %v2158_v10 = vld [vmem:[%s2376_s22 + $0x28] sm:$0xff]   ;;  %s1718_s5 = sshll.u32 %s242_s4, 2  ;;  %s2835_s12 = smov (!%p248_p7, %s2298_s12), 1 }
  0x14   : > { %v2151_v3 = vld [vmem:[%s2376_s22 + $0xb8] sm:$0xff]   ;;  %1885 = vmatpush3.bf16.msra.mxu0 %v2150_v2  ;;  %v2155_v7 = vld [vmem:[%s2376_s22 + $0xb0] sm:$0xff]   ;;  %v2159_v11 = vld [vmem:[%s2376_s22 + $0xa8] sm:$0xff]   ;;  %s2492_s8 = scalar_lea.vmem %s2818_s2, %s1718_s5  ;;  %s1719_s9 = sshll.u32 %s2831_s13, 1 }
  0x15   : > { %1997 = vmatpush3.bf16.msra.mxu1 %v2151_v3  ;;  %1886 = vmatprep.subr.bf16.mxu0 %v2152_v4  ;;  %v2160_v12 = vld [vmem:[%s2376_s22 + $0x60] sm:$0xff]   ;;  %v2164_v16 = vld [vmem:[%s2376_s22 + $0x58] sm:$0xff]   ;;  %v2168_v20 = vld [vmem:[%s2376_s22 + $0x50] sm:$0xff]   ;;  %s251_s10 = sadd.s32 %s1719_s9, %s2835_s12 }
  0x16   : > { %1998 = vmatprep.subr.bf16.mxu1 %v2153_v5  ;;  %v2161_v13 = vld [vmem:[%s2376_s22 + $0xe0] sm:$0xff]   ;;  %v2165_v17 = vld [vmem:[%s2376_s22 + $0xd8] sm:$0xff]   ;;  %v2169_v21 = vld [vmem:[%s2376_s22 + $0xd0] sm:$0xff]   ;;  %s1720_s11 = sshll.u32 %s251_s10, 1 }
  0x17   : > { %v2162_v14 = vld [vmem:[%s2376_s22 + $0x20] sm:$0xff]   ;;  %v2166_v18 = vld [vmem:[%s2376_s22 + $0x18] sm:$0xff]   ;;  %v2170_v22 = vld [vmem:[%s2376_s22 + $0x10] sm:$0xff]   ;;  %s253_s21 = scalar_lea.vmem %s2819_s3, %s1720_s11 }
  0x18   : > { %1887 = vmatpush3.bf16.msra.mxu0 %v2154_v6  ;;  %v2163_v15 = vld [vmem:[%s2376_s22 + $0xa0] sm:$0xff]   ;;  %v2167_v19 = vld [vmem:[%s2376_s22 + $0x98] sm:$0xff]   ;;  %v2171_v23 = vld [vmem:[%s2376_s22 + $0x90] sm:$0xff]  }
  0x19   : > { %1999 = vmatpush3.bf16.msra.mxu1 %v2155_v7  ;;  %1888 = vmatprep.subr.bf16.mxu0 %v2156_v8  ;;  %v2172_v24 = vld [vmem:[%s2376_s22 + $0x48] sm:$0xff]   ;;  %v2176_v28 = vld [vmem:[%s2376_s22 + $0x40] sm:$0xff]  }
  0x1a   : > { %2000 = vmatprep.subr.bf16.mxu1 %v2157_v9  ;;  %v2173_v25 = vld [vmem:[%s2376_s22 + $0xc8] sm:$0xff]   ;;  %v2177_v29 = vld [vmem:[%s2376_s22 + $0xc0] sm:$0xff]  }
  0x1b   : > { %v2174_v26 = vld [vmem:[%s2376_s22 + $0x8] sm:$0xff]   ;;  %v2178_v30 = vld [vmem:[%s2376_s22] sm:$0xff]  }
  0x1c   : > { %1889 = vmatpush3.bf16.msra.mxu0 %v2158_v10  ;;  %v2175_v27 = vld [vmem:[%s2376_s22 + $0x88] sm:$0xff]   ;;  %v2179_v31 = vld [vmem:[%s2376_s22 + $0x80] sm:$0xff]  }
  0x1d   : > { %2001 = vmatpush3.bf16.msra.mxu1 %v2159_v11  ;;  %1890 = vmatprep.subr.bf16.mxu0 %v2160_v12  ;;  %v2180_v32 = vld [vmem:[%s2417_s29] ss:$16 sps:$4 sm:$0xff]   ;;  %v2182_v33 = vld [vmem:[%s2417_s29 + $0x4] ss:$16 sps:$4 sm:$0xff]   ;;  %v2183_v34 = vld [vmem:[%s2417_s29 + $0x8] ss:$16 sps:$4 sm:$0xff]  }
  0x1e   : > { %2002 = vmatprep.subr.bf16.mxu1 %v2161_v13  ;;  %v2185_v35 = vld [vmem:[%s2417_s29 + $0xc] ss:$16 sps:$4 sm:$0xff]   ;;  %927 = vmatprep.mubr.bf16.mxu0 %v2182_v33  ;;  %v2186_v36 = vld [vmem:[%s2417_s29 + $0x24] ss:$16 sps:$4 sm:$0xff]   ;;  %v2190_v38 = vld [vmem:[%s2417_s29 + $0x20] ss:$16 sps:$4 sm:$0xff]  }
  0x1f   : > { %1088 = vmatprep.mubr.bf16.mxu1 %v2185_v35  ;;  %v2188_v37 = vld [vmem:[%s2417_s29 + $0x2c] ss:$16 sps:$4 sm:$0xff]   ;;  %v2191_v39 = vld [vmem:[%s2417_s29 + $0x28] ss:$16 sps:$4 sm:$0xff]   ;;  %v2192_v40 = vld [vmem:[%s2417_s29 + $0x44] ss:$16 sps:$4 sm:$0xff]  }
  0x20   : > { %1891 = vmatpush3.bf16.msra.mxu0 %v2162_v14  ;;  %v2194_v41 = vld [vmem:[%s2417_s29 + $0x4c] ss:$16 sps:$4 sm:$0xff]   ;;  %v2196_v42 = vld [vmem:[%s2417_s29 + $0x40] ss:$16 sps:$4 sm:$0xff]   ;;  %v2197_v43 = vld [vmem:[%s2417_s29 + $0x48] ss:$16 sps:$4 sm:$0xff]  }
  0x21   : > { %2003 = vmatpush3.bf16.msra.mxu1 %v2163_v15  ;;  %1892 = vmatprep.subr.bf16.mxu0 %v2164_v16  ;;  %v2198_v44 = vld [vmem:[%s2417_s29 + $0x64] ss:$16 sps:$4 sm:$0xff]   ;;  %v2200_v45 = vld [vmem:[%s2417_s29 + $0x6c] ss:$16 sps:$4 sm:$0xff]   ;;  %v2202_v46 = vld [vmem:[%s2417_s29 + $0x60] ss:$16 sps:$4 sm:$0xff]  }
  0x22   : > { %2004 = vmatprep.subr.bf16.mxu1 %v2165_v17  ;;  %v2203_v47 = vld [vmem:[%s2417_s29 + $0x68] ss:$16 sps:$4 sm:$0xff]   ;;  %v2204_v48 = vld [vmem:[%s2417_s29 + $0x84] ss:$16 sps:$4 sm:$0xff]   ;;  %v2206_v49 = vld [vmem:[%s2417_s29 + $0x8c] ss:$16 sps:$4 sm:$0xff]  }
  0x23   : > { %v2208_v50 = vld [vmem:[%s2417_s29 + $0x80] ss:$16 sps:$4 sm:$0xff]   ;;  %v2209_v51 = vld [vmem:[%s2417_s29 + $0x88] ss:$16 sps:$4 sm:$0xff]   ;;  %v2210_v52 = vld [vmem:[%s2417_s29 + $0xa4] ss:$16 sps:$4 sm:$0xff]  }
  0x24   : > { %1893 = vmatpush3.bf16.msra.mxu0 %v2166_v18  ;;  %v2212_v53 = vld [vmem:[%s2417_s29 + $0xac] ss:$16 sps:$4 sm:$0xff]   ;;  %v2214_v54 = vld [vmem:[%s2417_s29 + $0xa0] ss:$16 sps:$4 sm:$0xff]   ;;  %v2215_v55 = vld [vmem:[%s2417_s29 + $0xa8] ss:$16 sps:$4 sm:$0xff]  }
  0x25   : > { %2005 = vmatpush3.bf16.msra.mxu1 %v2167_v19  ;;  %1894 = vmatprep.subr.bf16.mxu0 %v2168_v20  ;;  %v2216_v56 = vld [vmem:[%s2417_s29 + $0xc4] ss:$16 sps:$4 sm:$0xff]   ;;  %v2218_v57 = vld [vmem:[%s2417_s29 + $0xcc] ss:$16 sps:$4 sm:$0xff]   ;;  %v2220_v58 = vld [vmem:[%s2417_s29 + $0xc0] ss:$16 sps:$4 sm:$0xff]  }
  0x26   : > { %2006 = vmatprep.subr.bf16.mxu1 %v2169_v21  ;;  %v2221_v59 = vld [vmem:[%s2417_s29 + $0xc8] ss:$16 sps:$4 sm:$0xff]   ;;  %v2222_v60 = vld [vmem:[%s2417_s29 + $0xe4] ss:$16 sps:$4 sm:$0xff]   ;;  %v2224_v61 = vld [vmem:[%s2417_s29 + $0xec] ss:$16 sps:$4 sm:$0xff]  }
  0x27   : > { %v2226_v62 = vld [vmem:[%s2417_s29 + $0xe0] ss:$16 sps:$4 sm:$0xff]   ;;  %v2227_v63 = vld [vmem:[%s2417_s29 + $0xe8] ss:$16 sps:$4 sm:$0xff]   ;;  %v2228_v0 = vld [vmem:[%s2417_s29 + $0x104] ss:$16 sps:$4 sm:$0xff]  }
  0x28   : > { %1895 = vmatpush3.bf16.msra.mxu0 %v2170_v22  ;;  %v2230_v1 = vld [vmem:[%s2417_s29 + $0x10c] ss:$16 sps:$4 sm:$0xff]   ;;  %v2232_v2 = vld [vmem:[%s2417_s29 + $0x100] ss:$16 sps:$4 sm:$0xff]   ;;  %v2233_v3 = vld [vmem:[%s2417_s29 + $0x108] ss:$16 sps:$4 sm:$0xff]  }
  0x29   : > { %2007 = vmatpush3.bf16.msra.mxu1 %v2171_v23  ;;  %1896 = vmatprep.subr.bf16.mxu0 %v2172_v24  ;;  %v2234_v4 = vld [vmem:[%s2417_s29 + $0x124] ss:$16 sps:$4 sm:$0xff]   ;;  %v2236_v5 = vld [vmem:[%s2417_s29 + $0x12c] ss:$16 sps:$4 sm:$0xff]   ;;  %v2238_v6 = vld [vmem:[%s2417_s29 + $0x120] ss:$16 sps:$4 sm:$0xff]  }
  0x2a   : > { %2008 = vmatprep.subr.bf16.mxu1 %v2173_v25  ;;  %v2239_v7 = vld [vmem:[%s2417_s29 + $0x128] ss:$16 sps:$4 sm:$0xff]   ;;  %v2240_v8 = vld [vmem:[%s2417_s29 + $0x144] ss:$16 sps:$4 sm:$0xff]   ;;  %v2242_v9 = vld [vmem:[%s2417_s29 + $0x14c] ss:$16 sps:$4 sm:$0xff]  }
  0x2b   : > { %v2244_v10 = vld [vmem:[%s2417_s29 + $0x140] ss:$16 sps:$4 sm:$0xff]   ;;  %v2245_v11 = vld [vmem:[%s2417_s29 + $0x148] ss:$16 sps:$4 sm:$0xff]   ;;  %v2246_v12 = vld [vmem:[%s2417_s29 + $0x164] ss:$16 sps:$4 sm:$0xff]  }
  0x2c   : > { %1897 = vmatpush3.bf16.msra.mxu0 %v2174_v26  ;;  %v2248_v13 = vld [vmem:[%s2417_s29 + $0x16c] ss:$16 sps:$4 sm:$0xff]   ;;  %v2250_v14 = vld [vmem:[%s2417_s29 + $0x160] ss:$16 sps:$4 sm:$0xff]   ;;  %v2251_v15 = vld [vmem:[%s2417_s29 + $0x168] ss:$16 sps:$4 sm:$0xff]  }
  0x2d   : > { %2009 = vmatpush3.bf16.msra.mxu1 %v2175_v27  ;;  %1898 = vmatprep.subr.bf16.mxu0 %v2176_v28  ;;  %v2252_v16 = vld [vmem:[%s2417_s29 + $0x184] ss:$16 sps:$4 sm:$0xff]   ;;  %v2254_v17 = vld [vmem:[%s2417_s29 + $0x18c] ss:$16 sps:$4 sm:$0xff]   ;;  %v2256_v18 = vld [vmem:[%s2417_s29 + $0x180] ss:$16 sps:$4 sm:$0xff]  }
  0x2e   : > { %2010 = vmatprep.subr.bf16.mxu1 %v2177_v29  ;;  %v2257_v19 = vld [vmem:[%s2417_s29 + $0x188] ss:$16 sps:$4 sm:$0xff]   ;;  %v2258_v20 = vld [vmem:[%s2417_s29 + $0x1a4] ss:$16 sps:$4 sm:$0xff]   ;;  %v2260_v21 = vld [vmem:[%s2417_s29 + $0x1ac] ss:$16 sps:$4 sm:$0xff]  }
  0x2f   : > { %v2262_v22 = vld [vmem:[%s2417_s29 + $0x1a0] ss:$16 sps:$4 sm:$0xff]   ;;  %v2263_v23 = vld [vmem:[%s2417_s29 + $0x1a8] ss:$16 sps:$4 sm:$0xff]   ;;  %v2264_v24 = vld [vmem:[%s2417_s29 + $0x1c4] ss:$16 sps:$4 sm:$0xff]  }
  0x30   : > { %1899 = vmatpush3.bf16.msra.mxu0 %v2178_v30  ;;  %v2266_v25 = vld [vmem:[%s2417_s29 + $0x1cc] ss:$16 sps:$4 sm:$0xff]   ;;  %v2268_v26 = vld [vmem:[%s2417_s29 + $0x1c0] ss:$16 sps:$4 sm:$0xff]   ;;  %v2269_v27 = vld [vmem:[%s2417_s29 + $0x1c8] ss:$16 sps:$4 sm:$0xff]  }
  0x31   : > { %2011 = vmatpush3.bf16.msra.mxu1 %v2179_v31  ;;  %v2270_v28 = vld [vmem:[%s2417_s29 + $0x1e4] ss:$16 sps:$4 sm:$0xff]   ;;  %v2272_v29 = vld [vmem:[%s2417_s29 + $0x1ec] ss:$16 sps:$4 sm:$0xff]   ;;  %v2274_v30 = vld [vmem:[%s2417_s29 + $0x1e0] ss:$16 sps:$4 sm:$0xff]  }
  0x32   : > { %v2275_v31 = vld [vmem:[%s2417_s29 + $0x1e8] ss:$16 sps:$4 sm:$0xff]  }
  0x33   : > { %928 = vmatmul.mubr.bf16.vlgmr.msra.gmra.mxu0 %v2180_v32 }
  0x34   : > { %1089 = vmatmul.mubr.bf16.vlgmr.msra.gmra.mxu1 %v2183_v34  ;;  %935 = vmatprep.mubr.bf16.mxu0 %v2186_v36 }
  0x35   : > { %1096 = vmatprep.mubr.bf16.mxu1 %v2188_v37 }
  0x3b   : > { %936 = vmatmul.mubr.bf16.gmra.mxu0 %v2190_v38 }
  0x3c   : > { %1097 = vmatmul.mubr.bf16.gmra.mxu1 %v2191_v39  ;;  %943 = vmatprep.mubr.bf16.mxu0 %v2192_v40 }
  0x3d   : > { %1104 = vmatprep.mubr.bf16.mxu1 %v2194_v41 }
  0x43   : > { %944 = vmatmul.mubr.bf16.gmra.mxu0 %v2196_v42 }
  0x44   : > { %1105 = vmatmul.mubr.bf16.gmra.mxu1 %v2197_v43  ;;  %951 = vmatprep.mubr.bf16.mxu0 %v2198_v44 }
  0x45   : > { %1112 = vmatprep.mubr.bf16.mxu1 %v2200_v45 }
  0x4b   : > { %952 = vmatmul.mubr.bf16.gmra.mxu0 %v2202_v46 }
  0x4c   : > { %1113 = vmatmul.mubr.bf16.gmra.mxu1 %v2203_v47  ;;  %959 = vmatprep.mubr.bf16.mxu0 %v2204_v48 }
  0x4d   : > { %1120 = vmatprep.mubr.bf16.mxu1 %v2206_v49 }
  0x53   : > { %960 = vmatmul.mubr.bf16.gmra.mxu0 %v2208_v50 }
  0x54   : > { %1121 = vmatmul.mubr.bf16.gmra.mxu1 %v2209_v51  ;;  %967 = vmatprep.mubr.bf16.mxu0 %v2210_v52 }
  0x55   : > { %1128 = vmatprep.mubr.bf16.mxu1 %v2212_v53 }
  0x5b   : > { %968 = vmatmul.mubr.bf16.gmra.mxu0 %v2214_v54 }
  0x5c   : > { %1129 = vmatmul.mubr.bf16.gmra.mxu1 %v2215_v55  ;;  %975 = vmatprep.mubr.bf16.mxu0 %v2216_v56 }
  0x5d   : > { %1136 = vmatprep.mubr.bf16.mxu1 %v2218_v57 }
  0x63   : > { %976 = vmatmul.mubr.bf16.gmra.mxu0 %v2220_v58 }
  0x64   : > { %1137 = vmatmul.mubr.bf16.gmra.mxu1 %v2221_v59  ;;  %983 = vmatprep.mubr.bf16.mxu0 %v2222_v60 }
  0x65   : > { %1144 = vmatprep.mubr.bf16.mxu1 %v2224_v61 }
  0x6b   : > { %984 = vmatmul.mubr.bf16.gmra.mxu0 %v2226_v62 }
  0x6c   : > { %1145 = vmatmul.mubr.bf16.gmra.mxu1 %v2227_v63  ;;  %991 = vmatprep.mubr.bf16.mxu0 %v2228_v0 }
  0x6d   : > { %1152 = vmatprep.mubr.bf16.mxu1 %v2230_v1 }
  0x73   : > { %992 = vmatmul.mubr.bf16.gmra.mxu0 %v2232_v2 }
  0x74   : > { %1153 = vmatmul.mubr.bf16.gmra.mxu1 %v2233_v3  ;;  %999 = vmatprep.mubr.bf16.mxu0 %v2234_v4 }
  0x75   : > { %1160 = vmatprep.mubr.bf16.mxu1 %v2236_v5 }
  0x7b   : > { %1000 = vmatmul.mubr.bf16.gmra.mxu0 %v2238_v6 }
  0x7c   : > { %1161 = vmatmul.mubr.bf16.gmra.mxu1 %v2239_v7  ;;  %1007 = vmatprep.mubr.bf16.mxu0 %v2240_v8 }
  0x7d   : > { %1168 = vmatprep.mubr.bf16.mxu1 %v2242_v9 }
  0x83   : > { %1008 = vmatmul.mubr.bf16.gmra.mxu0 %v2244_v10 }
  0x84   : > { %1169 = vmatmul.mubr.bf16.gmra.mxu1 %v2245_v11  ;;  %1015 = vmatprep.mubr.bf16.mxu0 %v2246_v12 }
  0x85   : > { %1176 = vmatprep.mubr.bf16.mxu1 %v2248_v13 }
  0x8b   : > { %1016 = vmatmul.mubr.bf16.gmra.mxu0 %v2250_v14 }
  0x8c   : > { %1177 = vmatmul.mubr.bf16.gmra.mxu1 %v2251_v15  ;;  %1023 = vmatprep.mubr.bf16.mxu0 %v2252_v16 }
  0x8d   : > { %1184 = vmatprep.mubr.bf16.mxu1 %v2254_v17 }
  0x93   : > { %1024 = vmatmul.mubr.bf16.gmra.mxu0 %v2256_v18 }
  0x94   : > { %1185 = vmatmul.mubr.bf16.gmra.mxu1 %v2257_v19  ;;  %1031 = vmatprep.mubr.bf16.mxu0 %v2258_v20 }
  0x95   : > { %1192 = vmatprep.mubr.bf16.mxu1 %v2260_v21 }
  0x9b   : > { %1032 = vmatmul.mubr.bf16.gmra.mxu0 %v2262_v22 }
  0x9c   : > { %1193 = vmatmul.mubr.bf16.gmra.mxu1 %v2263_v23  ;;  %1039 = vmatprep.mubr.bf16.mxu0 %v2264_v24 }
  0x9d   : > { %1200 = vmatprep.mubr.bf16.mxu1 %v2266_v25 }
  0xa3   : > { %1040 = vmatmul.mubr.bf16.gmra.mxu0 %v2268_v26 }
  0xa4   : > { %1201 = vmatmul.mubr.bf16.gmra.mxu1 %v2269_v27  ;;  %1047 = vmatprep.mubr.bf16.mxu0 %v2270_v28 }
  0xa5   : > { %1208 = vmatprep.mubr.bf16.mxu1 %v2272_v29 }
  0xab   : > { %1048 = vmatmul.mubr.bf16.gmra.mxu0 %v2274_v30 }
  0xac   : > { %1209 = vmatmul.mubr.bf16.gmra.mxu1 %v2275_v31 }
  0xf3   : > { %v1900_v32 = vpop.f32.mrf.mxu0 }
  0xf4   : > { %v2012_v33 = vpop.f32.mrf.mxu1 }
  0xf5   : > { %v1901_v34 = vpop.f32.mrf.mxu0 }
  0xf6   : > { %v1902_v35 = vadd.f32 %v1901_v34, %v1900_v32  ;;  %v2013_v36 = vpop.f32.mrf.mxu1 }
  0xf7   : > { %v2014_v37 = vadd.f32 %v2013_v36, %v2012_v33  ;;  %v1903_v38 = vpop.f32.mrf.mxu0 }
  0xf8   : > { %v2015_v39 = vpop.f32.mrf.mxu1 }
  0xf9   : > { %v2487_v40 = vadd.f32 %v2014_v37, %v1902_v35  ;;  %v1904_v41 = vpop.f32.mrf.mxu0 }
  0xfa   : > { %v1905_v42 = vadd.f32 %v1904_v41, %v1903_v38  ;;  %v2016_v43 = vpop.f32.mrf.mxu1 }
  0xfb   : > { %v1852_v44 = vpack.c.bf16 %v2487_v40, %v2487_v40  ;;  %v2017_v45 = vadd.f32 %v2016_v43, %v2015_v39  ;;  %v1906_v46 = vpop.f32.mrf.mxu0 }
  0xfc   : > { %v2018_v47 = vpop.f32.mrf.mxu1 }
  0xfd   : > { %1346 = vst.msk [vmem:[%s2492_s8] sm:$0xf] %vm1345_vm0, %v1852_v44  ;;  %v2498_v48 = vadd.f32 %v2017_v45, %v1905_v42  ;;  %v1907_v49 = vpop.f32.mrf.mxu0 }
  0xfe   : > { %v1908_v50 = vadd.f32 %v1907_v49, %v1906_v46  ;;  %v2019_v51 = vpop.f32.mrf.mxu1 }
  0xff   : > { %v1853_v52 = vpack.c.bf16 %v2498_v48, %v2498_v48  ;;  %v2020_v53 = vadd.f32 %v2019_v51, %v2018_v47  ;;  %v1909_v54 = vpop.f32.mrf.mxu0 }
 0x100   : > { %v2021_v55 = vpop.f32.mrf.mxu1 }
 0x101   : > { %1347 = vst.msk [vmem:[%s2492_s8 + $0x4] sm:$0xf] %vm1345_vm0, %v1853_v52  ;;  %v2504_v56 = vadd.f32 %v2020_v53, %v1908_v50  ;;  %v1910_v57 = vpop.f32.mrf.mxu0 }
 0x102   : > { %v1911_v58 = vadd.f32 %v1910_v57, %v1909_v54  ;;  %v2022_v59 = vpop.f32.mrf.mxu1 }
 0x103   : > { %v1854_v60 = vpack.c.bf16 %v2504_v56, %v2504_v56  ;;  %v2023_v61 = vadd.f32 %v2022_v59, %v2021_v55  ;;  %v1912_v62 = vpop.f32.mrf.mxu0 }
 0x104   : > { %v2024_v63 = vpop.f32.mrf.mxu1 }
 0x105   : > { %1348 = vst.msk [vmem:[%s2492_s8 + $0x8] sm:$0xf] %vm1345_vm0, %v1854_v60  ;;  %v2510_v0 = vadd.f32 %v2023_v61, %v1911_v58  ;;  %v1913_v1 = vpop.f32.mrf.mxu0 }
 0x106   : > { %v1914_v2 = vadd.f32 %v1913_v1, %v1912_v62  ;;  %v2025_v3 = vpop.f32.mrf.mxu1 }
 0x107   : > { %v1855_v4 = vpack.c.bf16 %v2510_v0, %v2510_v0  ;;  %v2026_v5 = vadd.f32 %v2025_v3, %v2024_v63  ;;  %v1915_v6 = vpop.f32.mrf.mxu0 }
 0x108   : > { %v2027_v7 = vpop.f32.mrf.mxu1 }
 0x109   : > { %1349 = vst.msk [vmem:[%s2492_s8 + $0xc] sm:$0xf] %vm1345_vm0, %v1855_v4  ;;  %v2516_v8 = vadd.f32 %v2026_v5, %v1914_v2  ;;  %v1916_v9 = vpop.f32.mrf.mxu0 }
 0x10a   : > { %v1917_v10 = vadd.f32 %v1916_v9, %v1915_v6  ;;  %v2028_v11 = vpop.f32.mrf.mxu1 }
 0x10b   : > { %v1856_v12 = vpack.c.bf16 %v2516_v8, %v2516_v8  ;;  %v2029_v13 = vadd.f32 %v2028_v11, %v2027_v7  ;;  %v1918_v14 = vpop.f32.mrf.mxu0 }
 0x10c   : > { %v2030_v15 = vpop.f32.mrf.mxu1 }
 0x10d   : > { %1350 = vst.msk [vmem:[%s2492_s8 + $0x10] sm:$0xf] %vm1345_vm0, %v1856_v12  ;;  %v2522_v16 = vadd.f32 %v2029_v13, %v1917_v10  ;;  %v1919_v17 = vpop.f32.mrf.mxu0 }
 0x10e   : > { %v1920_v18 = vadd.f32 %v1919_v17, %v1918_v14  ;;  %v2031_v19 = vpop.f32.mrf.mxu1 }
 0x10f   : > { %v1857_v20 = vpack.c.bf16 %v2522_v16, %v2522_v16  ;;  %v2032_v21 = vadd.f32 %v2031_v19, %v2030_v15  ;;  %v1921_v22 = vpop.f32.mrf.mxu0 }
 0x110   : > { %v2033_v23 = vpop.f32.mrf.mxu1 }
 0x111   : > { %1351 = vst.msk [vmem:[%s2492_s8 + $0x14] sm:$0xf] %vm1345_vm0, %v1857_v20  ;;  %v2528_v24 = vadd.f32 %v2032_v21, %v1920_v18  ;;  %v1922_v25 = vpop.f32.mrf.mxu0 }
 0x112   : > { %v1923_v26 = vadd.f32 %v1922_v25, %v1921_v22  ;;  %v2034_v27 = vpop.f32.mrf.mxu1 }
 0x113   : > { %v1858_v28 = vpack.c.bf16 %v2528_v24, %v2528_v24  ;;  %v2035_v29 = vadd.f32 %v2034_v27, %v2033_v23  ;;  %v1924_v30 = vpop.f32.mrf.mxu0 }
 0x114   : > { %v2036_v31 = vpop.f32.mrf.mxu1 }
 0x115   : > { %1352 = vst.msk [vmem:[%s2492_s8 + $0x18] sm:$0xf] %vm1345_vm0, %v1858_v28  ;;  %v2534_v32 = vadd.f32 %v2035_v29, %v1923_v26  ;;  %v1925_v33 = vpop.f32.mrf.mxu0 }
 0x116   : > { %v1926_v34 = vadd.f32 %v1925_v33, %v1924_v30  ;;  %v2037_v35 = vpop.f32.mrf.mxu1 }
 0x117   : > { %v1859_v36 = vpack.c.bf16 %v2534_v32, %v2534_v32  ;;  %v2038_v37 = vadd.f32 %v2037_v35, %v2036_v31  ;;  %v1927_v38 = vpop.f32.mrf.mxu0 }
 0x118   : > { %v2039_v39 = vpop.f32.mrf.mxu1 }
 0x119   : > { %1353 = vst.msk [vmem:[%s2492_s8 + $0x1c] sm:$0xf] %vm1345_vm0, %v1859_v36  ;;  %v2540_v41 = vadd.f32 %v2038_v37, %v1926_v34  ;;  %v1928_v42 = vpop.f32.mrf.mxu0 }
 0x11a   : > { %v1929_v43 = vadd.f32 %v1928_v42, %v1927_v38  ;;  %v2040_v44 = vpop.f32.mrf.mxu1 }
 0x11b   : > { %v1860_v45 = vpack.c.bf16 %v2540_v41, %v2540_v41  ;;  %v2041_v46 = vadd.f32 %v2040_v44, %v2039_v39  ;;  %v1930_v47 = vpop.f32.mrf.mxu0 }
 0x11c   : > { %v2042_v49 = vpop.f32.mrf.mxu1 }
 0x11d   : > { %1354 = vst.msk [vmem:[%s2492_s8 + $0x20] sm:$0xf] %vm1345_vm0, %v1860_v45  ;;  %v2546_v50 = vadd.f32 %v2041_v46, %v1929_v43  ;;  %v1931_v51 = vpop.f32.mrf.mxu0  ;;  %v1449_v46 = vmul.f32 %v2498_v48, %v2498_v48 }
 0x11e   : > { %v1932_v52 = vadd.f32 %v1931_v51, %v1930_v47  ;;  %v2043_v53 = vpop.f32.mrf.mxu1 }
 0x11f   : > { %v1861_v54 = vpack.c.bf16 %v2546_v50, %v2546_v50  ;;  %v2044_v55 = vadd.f32 %v2043_v53, %v2042_v49  ;;  %v1933_v57 = vpop.f32.mrf.mxu0 }
 0x120   : > { %v2045_v58 = vpop.f32.mrf.mxu1 }
 0x121   : > { %1355 = vst.msk [vmem:[%s2492_s8 + $0x24] sm:$0xf] %vm1345_vm0, %v1861_v54  ;;  %v2552_v59 = vadd.f32 %v2044_v55, %v1932_v52  ;;  %v1934_v60 = vpop.f32.mrf.mxu0  ;;  %v1448_v52 = vmul.f32 %v2487_v40, %v2487_v40  ;;  %v1380_v54 = vsel %vm1378_vm1, %v2498_v48, 0.0  ;;  %v1450_v55 = vmul.f32 %v2504_v56, %v2504_v56 }
 0x122   : > { %v1935_v61 = vadd.f32 %v1934_v60, %v1933_v57  ;;  %v2046_v62 = vpop.f32.mrf.mxu1  ;;  %v1379_v60 = vsel %vm1378_vm1, %v2487_v40, 0.0  ;;  %v1382_v48 = vsel %vm1378_vm1, %v2504_v56, 0.0 }
 0x123   : > { %v1862_v63 = vpack.c.bf16 %v2552_v59, %v2552_v59  ;;  %v2047_v1 = vadd.f32 %v2046_v62, %v2045_v58  ;;  %v1936_v2 = vpop.f32.mrf.mxu0  ;;  %v1483_v40 = vsel %vm1378_vm1, %v1450_v55, 0.0 }
 0x124   : > { %v2048_v3 = vpop.f32.mrf.mxu1 }
 0x125   : > { %1356 = vst.msk [vmem:[%s2492_s8 + $0x28] sm:$0xf] %vm1345_vm0, %v1862_v63  ;;  %v2558_v4 = vadd.f32 %v2047_v1, %v1935_v61  ;;  %v1937_v5 = vpop.f32.mrf.mxu0  ;;  %v1451_v61 = vmul.f32 %v2510_v0, %v2510_v0  ;;  %v1481_v1 = vsel %vm1378_vm1, %v1449_v46, 0.0 }
 0x126   : > { %v1938_v6 = vadd.f32 %v1937_v5, %v1936_v2  ;;  %v2049_v7 = vpop.f32.mrf.mxu1 }
 0x127   : > { %v1863_v9 = vpack.c.bf16 %v2558_v4, %v2558_v4  ;;  %v2050_v10 = vadd.f32 %v2049_v7, %v2048_v3  ;;  %v1939_v11 = vpop.f32.mrf.mxu0  ;;  %v1381_v7 = vadd.f32 %v1380_v54, %v1379_v60  ;;  %v1456_v54 = vmul.f32 %v2540_v41, %v2540_v41 }
 0x128   : > { %v2051_v12 = vpop.f32.mrf.mxu1 }
 0x129   : > { %1357 = vst.msk [vmem:[%s2492_s8 + $0x2c] sm:$0xf] %vm1345_vm0, %v1863_v9  ;;  %v2564_v13 = vadd.f32 %v2050_v10, %v1938_v6  ;;  %v1940_v14 = vpop.f32.mrf.mxu0  ;;  %v1480_v6 = vsel %vm1378_vm1, %v1448_v52, 0.0  ;;  %v1384_v10 = vsel %vm1378_vm1, %v2510_v0, 0.0  ;;  %v1453_v0 = vmul.f32 %v2522_v16, %v2522_v16 }
 0x12a   : > { %v1941_v15 = vadd.f32 %v1940_v14, %v1939_v11  ;;  %v2052_v17 = vpop.f32.mrf.mxu1  ;;  %v1452_v11 = vmul.f32 %v2516_v8, %v2516_v8  ;;  %v1482_v14 = vadd.f32 %v1481_v1, %v1480_v6  ;;  %v1394_v1 = vsel %vm1378_vm1, %v2540_v41, 0.0 }
 0x12b   : > { %v1864_v18 = vpack.c.bf16 %v2564_v13, %v2564_v13  ;;  %v2053_v19 = vadd.f32 %v2052_v17, %v2051_v12  ;;  %v1942_v20 = vpop.f32.mrf.mxu0  ;;  %v1485_v17 = vsel %vm1378_vm1, %v1451_v61, 0.0 }
 0x12c   : > { %v2054_v21 = vpop.f32.mrf.mxu1 }
 0x12d   : > { %1358 = vst.msk [vmem:[%s2492_s8 + $0x30] sm:$0xf] %vm1345_vm0, %v1864_v18  ;;  %v2570_v22 = vadd.f32 %v2053_v19, %v1941_v15  ;;  %v1943_v23 = vpop.f32.mrf.mxu0  ;;  %v1383_v15 = vadd.f32 %v1382_v48, %v1381_v7 }
 0x12e   : > { %v1944_v25 = vadd.f32 %v1943_v23, %v1942_v20  ;;  %v2055_v26 = vpop.f32.mrf.mxu1  ;;  %v1386_v20 = vsel %vm1378_vm1, %v2516_v8, 0.0 }
 0x12f   : > { %v1865_v27 = vpack.c.bf16 %v2570_v22, %v2570_v22  ;;  %v2056_v28 = vadd.f32 %v2055_v26, %v2054_v21  ;;  %v1945_v29 = vpop.f32.mrf.mxu0  ;;  %v1484_v26 = vadd.f32 %v1483_v40, %v1482_v14  ;;  %v1396_v40 = vsel %vm1378_vm1, %v2546_v50, 0.0 }
 0x130   : > { %v2057_v30 = vpop.f32.mrf.mxu1 }
 0x131   : > { %1359 = vst.msk [vmem:[%s2492_s8 + $0x34] sm:$0xf] %vm1345_vm0, %v1865_v27  ;;  %v2576_v31 = vadd.f32 %v2056_v28, %v1944_v25  ;;  %v1946_v33 = vpop.f32.mrf.mxu0  ;;  %v1385_v27 = vadd.f32 %v1384_v10, %v1383_v15  ;;  %v1458_v10 = vmul.f32 %v2552_v59, %v2552_v59  ;;  %v1459_v15 = vmul.f32 %v2558_v4, %v2558_v4 }
 0x132   : > { %v1947_v34 = vadd.f32 %v1946_v33, %v1945_v29  ;;  %v2058_v35 = vpop.f32.mrf.mxu1  ;;  %v1487_v29 = vsel %vm1378_vm1, %v1452_v11, 0.0  ;;  %v1454_v33 = vmul.f32 %v2528_v24, %v2528_v24 }
 0x133   : > { %v1866_v36 = vpack.c.bf16 %v2576_v31, %v2576_v31  ;;  %v2059_v37 = vadd.f32 %v2058_v35, %v2057_v30  ;;  %v1948_v38 = vpop.f32.mrf.mxu0  ;;  %v1388_v30 = vsel %vm1378_vm1, %v2522_v16, 0.0  ;;  %v1486_v35 = vadd.f32 %v1485_v17, %v1484_v26 }
 0x134   : > { %v2060_v39 = vpop.f32.mrf.mxu1  ;;  %v1390_v16 = vsel %vm1378_vm1, %v2528_v24, 0.0  ;;  %v1491_v52 = vsel %vm1378_vm1, %v1454_v33, 0.0 }
 0x135   : > { %1360 = vst.msk [vmem:[%s2492_s8 + $0x38] sm:$0xf] %vm1345_vm0, %v1866_v36  ;;  %v2582_v42 = vadd.f32 %v2059_v37, %v1947_v34  ;;  %v1949_v43 = vpop.f32.mrf.mxu0  ;;  %v1387_v36 = vadd.f32 %v1386_v20, %v1385_v27  ;;  %v1455_v37 = vmul.f32 %v2534_v32, %v2534_v32  ;;  %v1499_v27 = vsel %vm1378_vm1, %v1458_v10, 0.0 }
 0x136   : > { %v1950_v44 = vadd.f32 %v1949_v43, %v1948_v38  ;;  %v2061_v45 = vpop.f32.mrf.mxu1  ;;  %v1489_v43 = vsel %vm1378_vm1, %v1453_v0, 0.0 }
 0x137   : > { %v1867_v47 = vpack.c.bf16 %v2582_v42, %v2582_v42  ;;  %v2062_v49 = vadd.f32 %v2061_v45, %v2060_v39  ;;  %v1951_v51 = vpop.f32.mrf.mxu0  ;;  %v1493_v61 = vsel %vm1378_vm1, %v1455_v37, 0.0 }
 0x138   : > { %v2063_v53 = vpop.f32.mrf.mxu1 }
 0x139   : > { %1361 = vst.msk [vmem:[%s2492_s8 + $0x3c] sm:$0xf] %vm1345_vm0, %v1867_v47  ;;  %v2596_v57 = vadd.f32 %v2062_v49, %v1950_v44  ;;  %v1952_v58 = vpop.f32.mrf.mxu0  ;;  %v1488_v47 = vadd.f32 %v1487_v29, %v1486_v35  ;;  %v1389_v49 = vadd.f32 %v1388_v30, %v1387_v36  ;;  %v1460_v29 = vmul.f32 %v2564_v13, %v2564_v13 }
 0x13a   : > { %v1953_v62 = vadd.f32 %v1952_v58, %v1951_v51  ;;  %v2064_v63 = vpop.f32.mrf.mxu1  ;;  %v1501_v35 = vsel %vm1378_vm1, %v1459_v15, 0.0 }
 0x13b   : > { %v1868_v2 = vpack.c.bf16 %v2596_v57, %v2596_v57  ;;  %v2065_v3 = vadd.f32 %v2064_v63, %v2063_v53  ;;  %v1954_v5 = vpop.f32.mrf.mxu0  ;;  %v1392_v53 = vsel %vm1378_vm1, %v2534_v32, 0.0  ;;  %v1490_v58 = vadd.f32 %v1489_v43, %v1488_v47 }
 0x13c   : > { %v2066_v9 = vpop.f32.mrf.mxu1  ;;  %v1391_v60 = vadd.f32 %v1390_v16, %v1389_v49  ;;  %v1457_v32 = vmul.f32 %v2546_v50, %v2546_v50  ;;  %v1398_v50 = vsel %vm1378_vm1, %v2552_v59, 0.0  ;;  %v1503_v47 = vsel %vm1378_vm1, %v1460_v29, 0.0 }
 0x13d   : > { %1362 = vst.msk [vmem:[%s2492_s8 + $0x40] sm:$0xf] %vm1345_vm0, %v1868_v2  ;;  %v2615_v56 = vadd.f32 %v2065_v3, %v1953_v62  ;;  %v1955_v12 = vpop.f32.mrf.mxu0  ;;  %v1404_v49 = vsel %vm1378_vm1, %v2570_v22, 0.0 }
 0x13e   : > { %v1956_v18 = vadd.f32 %v1955_v12, %v1954_v5  ;;  %v2067_v19 = vpop.f32.mrf.mxu1  ;;  %v1492_v5 = vadd.f32 %v1491_v52, %v1490_v58  ;;  %v1393_v6 = vadd.f32 %v1392_v53, %v1391_v60 }
 0x13f   : > { %v1869_v21 = vpack.c.bf16 %v2615_v56, %v2615_v56  ;;  %v2068_v23 = vadd.f32 %v2067_v19, %v2066_v9  ;;  %v1957_v25 = vpop.f32.mrf.mxu0  ;;  %v1495_v9 = vsel %vm1378_vm1, %v1456_v54, 0.0  ;;  %v1497_v19 = vsel %vm1378_vm1, %v1457_v32, 0.0 }
 0x140   : > { %v2069_v28 = vpop.f32.mrf.mxu1  ;;  %v1494_v12 = vadd.f32 %v1493_v61, %v1492_v5  ;;  %v1395_v14 = vadd.f32 %v1394_v1, %v1393_v6  ;;  %v1408_v5 = vsel %vm1378_vm1, %v2582_v42, 0.0  ;;  %v1464_v6 = vmul.f32 %v2596_v57, %v2596_v57 }
 0x141   : > { %1363 = vst.msk [vmem:[%s2492_s8 + $0x44] sm:$0xf] %vm1345_vm0, %v1869_v21  ;;  %v2631_v8 = vadd.f32 %v2068_v23, %v1956_v18  ;;  %v1958_v34 = vpop.f32.mrf.mxu0 }
 0x142   : > { %v1959_v38 = vadd.f32 %v1958_v34, %v1957_v25  ;;  %v2070_v39 = vpop.f32.mrf.mxu1  ;;  %v1496_v23 = vadd.f32 %v1495_v9, %v1494_v12  ;;  %v1397_v25 = vadd.f32 %v1396_v40, %v1395_v14  ;;  %v1410_v14 = vsel %vm1378_vm1, %v2596_v57, 0.0 }
 0x143   : > { %v1870_v44 = vpack.c.bf16 %v2631_v8, %v2631_v8  ;;  %v2071_v45 = vadd.f32 %v2070_v39, %v2069_v28  ;;  %v1960_v46 = vpop.f32.mrf.mxu0  ;;  %v1400_v28 = vsel %vm1378_vm1, %v2558_v4, 0.0  ;;  %v1461_v4 = vmul.f32 %v2570_v22, %v2570_v22 }
 0x144   : > { %v2072_v51 = vpop.f32.mrf.mxu1  ;;  %v1498_v33 = vadd.f32 %v1497_v19, %v1496_v23  ;;  %v1399_v34 = vadd.f32 %v1398_v50, %v1397_v25  ;;  %v1406_v22 = vsel %vm1378_vm1, %v2576_v31, 0.0  ;;  %v1466_v23 = vmul.f32 %v2631_v8, %v2631_v8 }
 0x145   : > { %1364 = vst.msk [vmem:[%s2492_s8 + $0x48] sm:$0xf] %vm1345_vm0, %v1870_v44  ;;  %v2647_v55 = vadd.f32 %v2071_v45, %v1959_v38  ;;  %v1961_v24 = vpop.f32.mrf.mxu0  ;;  %v1402_v38 = vsel %vm1378_vm1, %v2564_v13, 0.0  ;;  %v1505_v61 = vsel %vm1378_vm1, %v1461_v4, 0.0 }
 0x146   : > { %v1962_v62 = vadd.f32 %v1961_v24, %v1960_v46  ;;  %v2073_v63 = vpop.f32.mrf.mxu1  ;;  %v1500_v44 = vadd.f32 %v1499_v27, %v1498_v33  ;;  %v1401_v45 = vadd.f32 %v1400_v28, %v1399_v34  ;;  %v1463_v24 = vmul.f32 %v2582_v42, %v2582_v42 }
 0x147   : > { %v1871_v48 = vpack.c.bf16 %v2647_v55, %v2647_v55  ;;  %v2074_v2 = vadd.f32 %v2073_v63, %v2072_v51  ;;  %v1963_v3 = vpop.f32.mrf.mxu0  ;;  %v1462_v51 = vmul.f32 %v2576_v31, %v2576_v31  ;;  %v1465_v42 = vmul.f32 %v2615_v56, %v2615_v56 }
 0x148   : > { %v2075_v7 = vpop.f32.mrf.mxu1  ;;  %v1502_v53 = vadd.f32 %v1501_v35, %v1500_v44  ;;  %v1403_v54 = vadd.f32 %v1402_v38, %v1401_v45  ;;  %v1509_v10 = vsel %vm1378_vm1, %v1463_v24, 0.0  ;;  %v1467_v28 = vmul.f32 %v2647_v55, %v2647_v55 }
 0x149   : > { %1365 = vst.msk [vmem:[%s2492_s8 + $0x4c] sm:$0xf] %vm1345_vm0, %v1871_v48  ;;  %v2663_v41 = vadd.f32 %v2074_v2, %v1962_v62  ;;  %v1964_v11 = vpop.f32.mrf.mxu0  ;;  %v1513_v33 = vsel %vm1378_vm1, %v1465_v42, 0.0 }
 0x14a   : > { %v1965_v17 = vadd.f32 %v1964_v11, %v1963_v3  ;;  %v2076_v18 = vpop.f32.mrf.mxu1  ;;  %v1504_v32 = vadd.f32 %v1503_v47, %v1502_v53  ;;  %v1405_v48 = vadd.f32 %v1404_v49, %v1403_v54  ;;  %v1507_v3 = vsel %vm1378_vm1, %v1462_v51, 0.0 }
 0x14b   : > { %v1872_v20 = vpack.c.bf16 %v2663_v41, %v2663_v41  ;;  %v2077_v0 = vadd.f32 %v2076_v18, %v2075_v7  ;;  %v1966_v21 = vpop.f32.mrf.mxu0  ;;  %v1517_v47 = vsel %vm1378_vm1, %v1467_v28, 0.0 }
 0x14c   : > { %v2078_v26 = vpop.f32.mrf.mxu1  ;;  %v1506_v9 = vadd.f32 %v1505_v61, %v1504_v32  ;;  %v1407_v40 = vadd.f32 %v1406_v22, %v1405_v48 }
 0x14d   : > { %1366 = vst.msk [vmem:[%s2492_s8 + $0x50] sm:$0xf] %vm1345_vm0, %v1872_v20  ;;  %v2679_v30 = vadd.f32 %v2077_v0, %v1965_v17  ;;  %v1967_v59 = vpop.f32.mrf.mxu0  ;;  %v1511_v0 = vsel %vm1378_vm1, %v1464_v6, 0.0 }
 0x14e   : > { %v1968_v36 = vadd.f32 %v1967_v59, %v1966_v21  ;;  %v2079_v37 = vpop.f32.mrf.mxu1  ;;  %v1508_v19 = vadd.f32 %v1507_v3, %v1506_v9  ;;  %v1409_v50 = vadd.f32 %v1408_v5, %v1407_v40  ;;  %v1412_v21 = vsel %vm1378_vm1, %v2615_v56, 0.0 }
 0x14f   : > { %v1873_v39 = vpack.c.bf16 %v2679_v30, %v2679_v30  ;;  %v2080_v43 = vadd.f32 %v2079_v37, %v2078_v26  ;;  %v1969_v16 = vpop.f32.mrf.mxu0  ;;  %v1414_v56 = vsel %vm1378_vm1, %v2631_v8, 0.0 }
 0x150   : > { %v2081_v46 = vpop.f32.mrf.mxu1  ;;  %v1510_v26 = vadd.f32 %v1509_v10, %v1508_v19  ;;  %v1411_v27 = vadd.f32 %v1410_v14, %v1409_v50 }
 0x151   : > { %1367 = vst.msk [vmem:[%s2492_s8 + $0x54] sm:$0xf] %vm1345_vm0, %v1873_v39  ;;  %v2695_v13 = vadd.f32 %v2080_v43, %v1968_v36  ;;  %v1970_v52 = vpop.f32.mrf.mxu0  ;;  %v1515_v39 = vsel %vm1378_vm1, %v1466_v23, 0.0  ;;  %v1416_v43 = vsel %vm1378_vm1, %v2647_v55, 0.0  ;;  %v1469_v55 = vmul.f32 %v2679_v30, %v2679_v30 }
 0x152   : > { %v1971_v58 = vadd.f32 %v1970_v52, %v1969_v16  ;;  %v2082_v60 = vpop.f32.mrf.mxu1  ;;  %v1512_v37 = vadd.f32 %v1511_v0, %v1510_v26  ;;  %v1413_v38 = vadd.f32 %v1412_v21, %v1411_v27  ;;  %v1468_v16 = vmul.f32 %v2663_v41, %v2663_v41 }
 0x153   : > { %v1874_v62 = vpack.c.bf16 %v2695_v13, %v2695_v13  ;;  %v2083_v63 = vadd.f32 %v2082_v60, %v2081_v46  ;;  %v1972_v1 = vpop.f32.mrf.mxu0  ;;  %v1418_v52 = vsel %vm1378_vm1, %v2663_v41, 0.0  ;;  %v1521_v6 = vsel %vm1378_vm1, %v1469_v55, 0.0 }
 0x154   : > { %v2084_v2 = vpop.f32.mrf.mxu1  ;;  %v1514_v45 = vadd.f32 %v1513_v33, %v1512_v37  ;;  %v1415_v46 = vadd.f32 %v1414_v56, %v1413_v38  ;;  %v1519_v22 = vsel %vm1378_vm1, %v1468_v16, 0.0 }
 0x155   : > { %1368 = vst.msk [vmem:[%s2492_s8 + $0x58] sm:$0xf] %vm1345_vm0, %v1874_v62  ;;  %v2711_v7 = vadd.f32 %v2083_v63, %v1971_v58  ;;  %v1973_v31 = vpop.f32.mrf.mxu0  ;;  %v1420_v62 = vsel %vm1378_vm1, %v2679_v30, 0.0  ;;  %v1470_v63 = vmul.f32 %v2695_v13, %v2695_v13  ;;  %v1422_v30 = vsel %vm1378_vm1, %v2695_v13, 0.0 }
 0x156   : > { %v1974_v11 = vadd.f32 %v1973_v31, %v1972_v1  ;;  %v2085_v12 = vpop.f32.mrf.mxu1  ;;  %v1516_v58 = vadd.f32 %v1515_v39, %v1514_v45  ;;  %v1417_v60 = vadd.f32 %v1416_v43, %v1415_v46 }
 0x157   : > { %v1875_v15 = vpack.c.bf16 %v2711_v7, %v2711_v7  ;;  %v2086_v17 = vadd.f32 %v2085_v12, %v2084_v2  ;;  %v1975_v18 = vpop.f32.mrf.mxu0  ;;  %v1471_v2 = vmul.f32 %v2711_v7, %v2711_v7  ;;  %v1523_v14 = vsel %vm1378_vm1, %v1470_v63, 0.0 }
 0x158   : > { %v2087_v20 = vpop.f32.mrf.mxu1  ;;  %v1518_v32 = vadd.f32 %v1517_v47, %v1516_v58  ;;  %v1419_v48 = vadd.f32 %v1418_v52, %v1417_v60  ;;  %v1424_v42 = vsel %vm1378_vm1, %v2711_v7, 0.0 }
 0x159   : > { %1369 = vst.msk [vmem:[%s2492_s8 + $0x5c] sm:$0xf] %vm1345_vm0, %v1875_v15  ;;  %v2727_v57 = vadd.f32 %v2086_v17, %v1974_v11  ;;  %v1976_v25 = vpop.f32.mrf.mxu0  ;;  %v1525_v50 = vsel %vm1378_vm1, %v1471_v2, 0.0 }
 0x15a   : > { %v1977_v29 = vadd.f32 %v1976_v25, %v1975_v18  ;;  %v2088_v59 = vpop.f32.mrf.mxu1  ;;  %v1520_v10 = vadd.f32 %v1519_v22, %v1518_v32  ;;  %v1421_v11 = vadd.f32 %v1420_v62, %v1419_v48 }
 0x15b   : > { %v1876_v34 = vpack.c.bf16 %v2727_v57, %v2727_v57  ;;  %v2089_v35 = vadd.f32 %v2088_v59, %v2087_v20  ;;  %v1978_v36 = vpop.f32.mrf.mxu0  ;;  %v1472_v15 = vmul.f32 %v2727_v57, %v2727_v57  ;;  %v1426_v21 = vsel %vm1378_vm1, %v2727_v57, 0.0 }
 0x15c   : > { %v2090_v4 = vpop.f32.mrf.mxu1  ;;  %v1522_v19 = vadd.f32 %v1521_v6, %v1520_v10  ;;  %v1423_v13 = vadd.f32 %v1422_v30, %v1421_v11 }
 0x15d   : > { %1370 = vst.msk [vmem:[%s2492_s8 + $0x60] sm:$0xf] %vm1345_vm0, %v1876_v34  ;;  %v1190_v44 = vadd.f32 %v2089_v35, %v1977_v29  ;;  %v1979_v8 = vpop.f32.mrf.mxu0  ;;  %v1527_v59 = vsel %vm1378_vm1, %v1472_v15, 0.0 }
 0x15e   : > { %v1980_v49 = vadd.f32 %v1979_v8, %v1978_v36  ;;  %v2091_v51 = vpop.f32.mrf.mxu1  ;;  %v1524_v27 = vadd.f32 %v1523_v14, %v1522_v19  ;;  %v1425_v28 = vadd.f32 %v1424_v42, %v1423_v13 }
 0x15f   : > { %v1877_v53 = vpack.c.bf16 %v1190_v44, %v1190_v44  ;;  %v2092_v54 = vadd.f32 %v2091_v51, %v2090_v4  ;;  %v1981_v24 = vpop.f32.mrf.mxu0  ;;  %v1473_v23 = vmul.f32 %v1190_v44, %v1190_v44  ;;  %v1428_v33 = vsel %vm1378_vm1, %v1190_v44, 0.0 }
 0x160   : > { %v2093_v61 = vpop.f32.mrf.mxu1  ;;  %v1526_v36 = vadd.f32 %v1525_v50, %v1524_v27  ;;  %v1427_v37 = vadd.f32 %v1426_v21, %v1425_v28 }
 0x161   : > { %1371 = vst.msk [vmem:[%s2492_s8 + $0x64] sm:$0xf] %vm1345_vm0, %v1877_v53  ;;  %v1195_v41 = vadd.f32 %v2092_v54, %v1980_v49  ;;  %v1982_v1 = vpop.f32.mrf.mxu0  ;;  %v1529_v39 = vsel %vm1378_vm1, %v1473_v23, 0.0 }
 0x162   : > { %v1983_v3 = vadd.f32 %v1982_v1, %v1981_v24  ;;  %v2094_v5 = vpop.f32.mrf.mxu1  ;;  %v1528_v46 = vadd.f32 %v1527_v59, %v1526_v36  ;;  %v1429_v44 = vadd.f32 %v1428_v33, %v1427_v37 }
 0x163   : > { %v1878_v31 = vpack.c.bf16 %v1195_v41, %v1195_v41  ;;  %v2095_v9 = vadd.f32 %v2094_v5, %v2093_v61  ;;  %v1984_v40 = vpop.f32.mrf.mxu0  ;;  %v1474_v56 = vmul.f32 %v1195_v41, %v1195_v41  ;;  %v1430_v43 = vsel %vm1378_vm1, %v1195_v41, 0.0 }
 0x164   : > { %v2096_v12 = vpop.f32.mrf.mxu1  ;;  %v1530_v54 = vadd.f32 %v1529_v39, %v1528_v46  ;;  %v1431_v24 = vadd.f32 %v1430_v43, %v1429_v44 }
 0x165   : > { %1372 = vst.msk [vmem:[%s2492_s8 + $0x68] sm:$0xf] %vm1345_vm0, %v1878_v31  ;;  %v1198_v17 = vadd.f32 %v2095_v9, %v1983_v3  ;;  %v1985_v18 = vpop.f32.mrf.mxu0  ;;  %v1531_v49 = vsel %vm1378_vm1, %v1474_v56, 0.0 }
 0x166   : > { %v1986_v20 = vadd.f32 %v1985_v18, %v1984_v40  ;;  %v2097_v0 = vpop.f32.mrf.mxu1  ;;  %v1532_v32 = vadd.f32 %v1531_v49, %v1530_v54 }
 0x167   : > { %v1879_v25 = vpack.c.bf16 %v1198_v17, %v1198_v17  ;;  %v2098_v7 = vadd.f32 %v2097_v0, %v2096_v12  ;;  %v1987_v26 = vpop.f32.mrf.mxu0  ;;  %v1475_v57 = vmul.f32 %v1198_v17, %v1198_v17  ;;  %v1432_v51 = vsel %vm1378_vm1, %v1198_v17, 0.0 }
 0x168   : > { %v2099_v29 = vpop.f32.mrf.mxu1  ;;  %v1433_v48 = vadd.f32 %v1432_v51, %v1431_v24 }
 0x169   : > { %1373 = vst.msk [vmem:[%s2492_s8 + $0x6c] sm:$0xf] %vm1345_vm0, %v1879_v25  ;;  %v1203_v34 = vadd.f32 %v2098_v7, %v1986_v20  ;;  %v1988_v35 = vpop.f32.mrf.mxu0  ;;  %v1533_v58 = vsel %vm1378_vm1, %v1475_v57, 0.0 }
 0x16a   : > { %v1989_v38 = vadd.f32 %v1988_v35, %v1987_v26  ;;  %v2100_v4 = vpop.f32.mrf.mxu1  ;;  %v1534_v31 = vadd.f32 %v1533_v58, %v1532_v32 }
 0x16b   : > { %v1880_v16 = vpack.c.bf16 %v1203_v34, %v1203_v34  ;;  %v2101_v8 = vadd.f32 %v2100_v4, %v2099_v29  ;;  %v1990_v45 = vpop.f32.mrf.mxu0  ;;  %v1476_v52 = vmul.f32 %v1203_v34, %v1203_v34  ;;  %v1434_v22 = vsel %vm1378_vm1, %v1203_v34, 0.0 }
 0x16c   : > { %v2102_v47 = vpop.f32.mrf.mxu1  ;;  %v1435_v9 = vadd.f32 %v1434_v22, %v1433_v48 }
 0x16d   : > { %1374 = vst.msk [vmem:[%s2492_s8 + $0x70] sm:$0xf] %vm1345_vm0, %v1880_v16  ;;  %v1206_v55 = vadd.f32 %v2101_v8, %v1989_v38  ;;  %v1991_v53 = vpop.f32.mrf.mxu0  ;;  %v1535_v3 = vsel %vm1378_vm1, %v1476_v52, 0.0 }
 0x16e   : > { %v1992_v60 = vadd.f32 %v1991_v53, %v1990_v45  ;;  %v2103_v61 = vpop.f32.mrf.mxu1  ;;  %v1536_v17 = vadd.f32 %v1535_v3, %v1534_v31 }
 0x16f   : > { %v1881_v62 = vpack.c.bf16 %v1206_v55, %v1206_v55  ;;  %v1477_v63 = vmul.f32 %v1206_v55, %v1206_v55  ;;  %v2104_v41 = vadd.f32 %v2103_v61, %v2102_v47  ;;  %v1993_v1 = vpop.f32.mrf.mxu0  ;;  %v1436_v5 = vsel %vm1378_vm1, %v1206_v55, 0.0 }
 0x170   : > { %v2105_v2 = vpop.f32.mrf.mxu1  ;;  %v1437_v18 = vadd.f32 %v1436_v5, %v1435_v9 }
 0x171   : > { %1375 = vst.msk [vmem:[%s2492_s8 + $0x74] sm:$0xf] %vm1345_vm0, %v1881_v62  ;;  %v1211_v6 = vadd.f32 %v2104_v41, %v1992_v60  ;;  %v1994_v30 = vpop.f32.mrf.mxu0  ;;  %v1537_v40 = vsel %vm1378_vm1, %v1477_v63, 0.0 }
 0x172   : > { %v1995_v10 = vadd.f32 %v1994_v30, %v1993_v1  ;;  %v2106_v11 = vpop.f32.mrf.mxu1  ;;  %v1538_v50 = vadd.f32 %v1537_v40, %v1536_v17 }
 0x173   : > { %v1882_v12 = vpack.c.bf16 %v1211_v6, %v1211_v6  ;;  %v1438_v14 = vsel %vm1378_vm1, %v1211_v6, 0.0  ;;  %v1478_v42 = vmul.f32 %v1211_v6, %v1211_v6  ;;  %v2107_v15 = vadd.f32 %v2106_v11, %v2105_v2 }
 0x174   : > { %v1439_v20 = vadd.f32 %v1438_v14, %v1437_v18 }
 0x175   : > { %1376 = vst.msk [vmem:[%s2492_s8 + $0x78] sm:$0xf] %vm1345_vm0, %v1882_v12  ;;  %v1539_v19 = vsel %vm1378_vm1, %v1478_v42, 0.0  ;;  %v1214_v13 = vadd.f32 %v2107_v15, %v1995_v10 }
 0x176   : > { %v1540_v25 = vadd.f32 %v1539_v19, %v1538_v50 }
 0x177   : > { %v1883_v0 = vpack.c.bf16 %v1214_v13, %v1214_v13  ;;  %v1440_v21 = vsel %vm1378_vm1, %v1214_v13, 0.0  ;;  %v1479_v23 = vmul.f32 %v1214_v13, %v1214_v13 }
 0x178   : > { %v1441_v7 = vadd.f32 %v1440_v21, %v1439_v20 }
 0x179   : > { %1377 = vst.msk [vmem:[%s2492_s8 + $0x7c] sm:$0xf] %vm1345_vm0, %v1883_v0  ;;  %v1541_v26 = vsel %vm1378_vm1, %v1479_v23, 0.0 }
 0x17a   : > { %v1442_v27 = vrot.slane %v1441_v7, 4  ;;  %v1542_v28 = vadd.f32 %v1541_v26, %v1540_v25 }
 0x17c   : > { %v1443_v29 = vadd.f32 %v1442_v27, %v1441_v7  ;;  %v1543_v59 = vrot.slane %v1542_v28, 4 }
 0x17e   : > { %v1444_v33 = vrot.slane %v1443_v29, 2  ;;  %v1544_v56 = vadd.f32 %v1543_v59, %v1542_v28 }
 0x180   : > { %v1445_v34 = vadd.f32 %v1444_v33, %v1443_v29  ;;  %v1545_v35 = vrot.slane %v1544_v56, 2 }
 0x182   : > { %v1446_v36 = vrot.slane %v1445_v34, 1  ;;  %v1546_v37 = vadd.f32 %v1545_v35, %v1544_v56 }
 0x184   : > { %v1547_v57 = vrot.slane %v1546_v37, 1  ;;  %v1447_v38 = vadd.f32 %v1446_v36, %v1445_v34 }
 0x186   : > { %v1548_v4 = vadd.f32 %v1547_v57, %v1546_v37 }
 0x188   : > { %v1550_v39 = vsel %vm1549_vm2, %v1447_v38, %v1548_v4 }
 0x189   : > { %1552 = vst.msk [vmem:[%s253_s21] sm:$0x3] %vm1551_vm3, %v1550_v39 }
 0x18a PF: > { %s14_s16 = sadd.s32 1, %s2314_s16   ;;  %s2820_s12 = smov %s2306_s14 }
 0x18b   : > { %p11_p8 = scmp.ge.s32.totalorder %s14_s16, 10   ;;  %s2821_s13 = smov %s2310_s15 }
 0x18c   : > { %s2822_s14 = smov %s2825_s17  ;;  %s2823_s15 = smov %s2829_s18 }
 0x18d   :  { %13 = sbr.rel (!%p11_p8) target bundleno = 3 (0x3), region = 73 }

// kernel: generator_forward.17
= control target key start
LH: loop header
LB: loop body
LE: loop exit
PB: predicated region body
PF: predicated region fallthrough
CT: control target
= control target key end

     0   :  { %s1833_s9 = smov 0   ;;  %s1835_s10 = smov 0   ;;  %s2334_s0 = inlined_call_operand.vmem [shape: bf16[4,3,256], index: 0, kind: input, shape index: {}]   ;;  %s2335_s1 = inlined_call_operand.vmem [shape: bf16[4,256,2048], index: 1, kind: input, shape index: {}]   ;;  %s2336_s2 = inlined_call_operand.vmem [shape: f32[4,3,2048], index: 2, kind: output, shape index: {}]  }
   0x1   :  { %s1837_s11 = smov 0   ;;  %s1839_s12 = smov 0  }
   0x2   :  { %s1841_s13 = smov 0   ;;  %s1843_s14 = smov 0  }
   0x3   :  { %s1845_s15 = smov 0  }
   0x4 LB: > { %s21_s16 = sadd.s32 1, %s1808_s13  ;;  %s24_s17 = sadd.s32 1, %s1812_s14  ;;  %s1816_s15 = sphi %s1845_s15, %s12_s15   ;;  %s1812_s14 = sphi %s1843_s14, %s2342_s14   ;;  %s1808_s13 = sphi %s1841_s13, %s2341_s13   ;;  %s1804_s12 = sphi %s1839_s12, %s2340_s12   ;;  %s1800_s11 = sphi %s1837_s11, %s2339_s11   ;;  %s1796_s10 = sphi %s1835_s10, %s2338_s10   ;;  %s1792_s9 = sphi %s1833_s9, %s2337_s9  }
   0x5   : > { %p22_p0 = scmp.ge.s32.totalorder %s21_s16, 2  ;;  %p66_p1 = scmp.ne.s32.totalorder %s1796_s10, %s1792_s9 }
   0x6   : > { %p67_p2 = scmp.eq.s32.totalorder %s1816_s15, 0  ;;  %s59_s21 = sadd.s32 1, %s1796_s10 }
   0x7   : > { %s2344_s16 = smov (%p22_p0, %s21_s16), 0  ;;  %s2346_s17 = smov (!%p22_p0, %s24_s17), %s1812_s14 }
   0x8   : > { %p68_p3 = por %p67_p2, %p66_p1  ;;  %p26_p4 = scmp.ge.s32.totalorder %s2346_s17, 4 }
   0x9   : > { %s55_s18 = ssub.s32 %s1808_s13, %s2344_s16  ;;  %p1546_p6 = scmp.ge.s32.totalorder %s1816_s15, 8 }
   0xa   : > { %s2348_s17 = smov (%p26_p4, %s2346_s17), 0 }
   0xb   : > { %s54_s19 = ssub.s32 %s1812_s14, %s2348_s17  ;;  %120 = sbr.rel (%p1546_p6) target bundleno = 87 (0x57), region = 16 }
   0xc   : > { %s56_s20 = sor.u32 %s55_s18, %s54_s19 }
   0xd   : > { %p57_p5 = scmp.eq.s32.totalorder %s56_s20, 0 }
   0xf   : > { %s1884_s22 = scalar_select %p57_p5, %s1796_s10, %s59_s21  }
  0x10   : > { %131 = sbr.rel (!%p68_p3) target bundleno = 87 (0x57), region = 24  ;;  %s133_s23 = sand.u32 (%p68_p3), 1, %s1796_s10  }
  0x11   : > { %s1548_s24 = sshll.u32 (%p68_p3), %s1808_s13, 3  ;;  %s1547_s25 = sshll.u32 (%p68_p3), %s133_s23, 10 }
  0x12   : > { %s1549_s26 = sshll.u32 (%p68_p3), %s1812_s14, 9  ;;  %s1898_s4 = scalar_lea.vmem (%p68_p3), [#allocation2], %s1547_s25 }
  0x13   : > { %s138_s27 = sadd.s32 (%p68_p3), %s1549_s26, %s1548_s24 }
  0x14   : > { %s1550_s28 = sshll.u32 (%p68_p3), %s138_s27, 2 }
  0x15   : > { %s1893_s3 = scalar_lea.vmem %s2335_s1, %s1550_s28 }
  0x16   : > { %v153_v0 = vld [vmem:[%s1893_s3] sm:$0xff]  ;;  %v155_v1 = vld [vmem:[%s1893_s3 + $0x8] sm:$0xff]  ;;  %v157_v2 = vld [vmem:[%s1893_s3 + $0x10] sm:$0xff] }
  0x17   : > { %154 = vst [vmem:[%s1898_s4] sm:$0xff] %v153_v0  ;;  %156 = vst [vmem:[%s1898_s4 + $0x8] sm:$0xff] %v155_v1  ;;  %v159_v3 = vld [vmem:[%s1893_s3 + $0x18] sm:$0xff]  ;;  %v161_v4 = vld [vmem:[%s1893_s3 + $0x40] sm:$0xff] }
  0x18   : > { %158 = vst [vmem:[%s1898_s4 + $0x10] sm:$0xff] %v157_v2  ;;  %v163_v5 = vld [vmem:[%s1893_s3 + $0x48] sm:$0xff]  ;;  %160 = vst [vmem:[%s1898_s4 + $0x18] sm:$0xff] %v159_v3  ;;  %v165_v6 = vld [vmem:[%s1893_s3 + $0x50] sm:$0xff] }
  0x19   : > { %162 = vst [vmem:[%s1898_s4 + $0x20] sm:$0xff] %v161_v4  ;;  %164 = vst [vmem:[%s1898_s4 + $0x28] sm:$0xff] %v163_v5  ;;  %v167_v7 = vld [vmem:[%s1893_s3 + $0x58] sm:$0xff]  ;;  %v169_v8 = vld [vmem:[%s1893_s3 + $0x80] sm:$0xff] }
  0x1a   : > { %166 = vst [vmem:[%s1898_s4 + $0x30] sm:$0xff] %v165_v6  ;;  %168 = vst [vmem:[%s1898_s4 + $0x38] sm:$0xff] %v167_v7  ;;  %v171_v9 = vld [vmem:[%s1893_s3 + $0x88] sm:$0xff]  ;;  %v173_v10 = vld [vmem:[%s1893_s3 + $0x90] sm:$0xff] }
  0x1b   : > { %170 = vst [vmem:[%s1898_s4 + $0x40] sm:$0xff] %v169_v8  ;;  %v175_v11 = vld [vmem:[%s1893_s3 + $0x98] sm:$0xff]  ;;  %172 = vst [vmem:[%s1898_s4 + $0x48] sm:$0xff] %v171_v9  ;;  %v177_v12 = vld [vmem:[%s1893_s3 + $0xc0] sm:$0xff] }
  0x1c   : > { %174 = vst [vmem:[%s1898_s4 + $0x50] sm:$0xff] %v173_v10  ;;  %176 = vst [vmem:[%s1898_s4 + $0x58] sm:$0xff] %v175_v11  ;;  %v179_v13 = vld [vmem:[%s1893_s3 + $0xc8] sm:$0xff]  ;;  %v181_v14 = vld [vmem:[%s1893_s3 + $0xd0] sm:$0xff] }
  0x1d   : > { %178 = vst [vmem:[%s1898_s4 + $0x60] sm:$0xff] %v177_v12  ;;  %180 = vst [vmem:[%s1898_s4 + $0x68] sm:$0xff] %v179_v13  ;;  %v183_v15 = vld [vmem:[%s1893_s3 + $0xd8] sm:$0xff]  ;;  %v185_v16 = vld [vmem:[%s1893_s3 + $0x100] sm:$0xff] }
  0x1e   : > { %182 = vst [vmem:[%s1898_s4 + $0x70] sm:$0xff] %v181_v14  ;;  %v187_v17 = vld [vmem:[%s1893_s3 + $0x108] sm:$0xff]  ;;  %184 = vst [vmem:[%s1898_s4 + $0x78] sm:$0xff] %v183_v15  ;;  %v189_v18 = vld [vmem:[%s1893_s3 + $0x110] sm:$0xff] }
  0x1f   : > { %186 = vst [vmem:[%s1898_s4 + $0x80] sm:$0xff] %v185_v16  ;;  %188 = vst [vmem:[%s1898_s4 + $0x88] sm:$0xff] %v187_v17  ;;  %v191_v19 = vld [vmem:[%s1893_s3 + $0x118] sm:$0xff]  ;;  %v193_v20 = vld [vmem:[%s1893_s3 + $0x140] sm:$0xff] }
  0x20   : > { %190 = vst [vmem:[%s1898_s4 + $0x90] sm:$0xff] %v189_v18  ;;  %192 = vst [vmem:[%s1898_s4 + $0x98] sm:$0xff] %v191_v19  ;;  %v195_v21 = vld [vmem:[%s1893_s3 + $0x148] sm:$0xff]  ;;  %v197_v22 = vld [vmem:[%s1893_s3 + $0x150] sm:$0xff] }
  0x21   : > { %194 = vst [vmem:[%s1898_s4 + $0xa0] sm:$0xff] %v193_v20  ;;  %v199_v23 = vld [vmem:[%s1893_s3 + $0x158] sm:$0xff]  ;;  %196 = vst [vmem:[%s1898_s4 + $0xa8] sm:$0xff] %v195_v21  ;;  %v201_v24 = vld [vmem:[%s1893_s3 + $0x180] sm:$0xff] }
  0x22   : > { %198 = vst [vmem:[%s1898_s4 + $0xb0] sm:$0xff] %v197_v22  ;;  %200 = vst [vmem:[%s1898_s4 + $0xb8] sm:$0xff] %v199_v23  ;;  %v203_v25 = vld [vmem:[%s1893_s3 + $0x188] sm:$0xff]  ;;  %v205_v26 = vld [vmem:[%s1893_s3 + $0x190] sm:$0xff] }
  0x23   : > { %202 = vst [vmem:[%s1898_s4 + $0xc0] sm:$0xff] %v201_v24  ;;  %204 = vst [vmem:[%s1898_s4 + $0xc8] sm:$0xff] %v203_v25  ;;  %v207_v27 = vld [vmem:[%s1893_s3 + $0x198] sm:$0xff]  ;;  %v209_v28 = vld [vmem:[%s1893_s3 + $0x1c0] sm:$0xff] }
  0x24   : > { %206 = vst [vmem:[%s1898_s4 + $0xd0] sm:$0xff] %v205_v26  ;;  %v211_v29 = vld [vmem:[%s1893_s3 + $0x1c8] sm:$0xff]  ;;  %208 = vst [vmem:[%s1898_s4 + $0xd8] sm:$0xff] %v207_v27  ;;  %v213_v30 = vld [vmem:[%s1893_s3 + $0x1d0] sm:$0xff] }
  0x25   : > { %210 = vst [vmem:[%s1898_s4 + $0xe0] sm:$0xff] %v209_v28  ;;  %212 = vst [vmem:[%s1898_s4 + $0xe8] sm:$0xff] %v211_v29  ;;  %v215_v31 = vld [vmem:[%s1893_s3 + $0x1d8] sm:$0xff]  ;;  %v217_v32 = vld [vmem:[%s1893_s3 + $0x200] sm:$0xff] }
  0x26   : > { %214 = vst [vmem:[%s1898_s4 + $0xf0] sm:$0xff] %v213_v30  ;;  %216 = vst [vmem:[%s1898_s4 + $0xf8] sm:$0xff] %v215_v31  ;;  %v219_v33 = vld [vmem:[%s1893_s3 + $0x208] sm:$0xff]  ;;  %v221_v34 = vld [vmem:[%s1893_s3 + $0x210] sm:$0xff] }
  0x27   : > { %218 = vst [vmem:[%s1898_s4 + $0x100] sm:$0xff] %v217_v32  ;;  %v223_v35 = vld [vmem:[%s1893_s3 + $0x218] sm:$0xff]  ;;  %220 = vst [vmem:[%s1898_s4 + $0x108] sm:$0xff] %v219_v33  ;;  %v225_v36 = vld [vmem:[%s1893_s3 + $0x240] sm:$0xff] }
  0x28   : > { %222 = vst [vmem:[%s1898_s4 + $0x110] sm:$0xff] %v221_v34  ;;  %224 = vst [vmem:[%s1898_s4 + $0x118] sm:$0xff] %v223_v35  ;;  %v227_v37 = vld [vmem:[%s1893_s3 + $0x248] sm:$0xff]  ;;  %v229_v38 = vld [vmem:[%s1893_s3 + $0x250] sm:$0xff] }
  0x29   : > { %226 = vst [vmem:[%s1898_s4 + $0x120] sm:$0xff] %v225_v36  ;;  %228 = vst [vmem:[%s1898_s4 + $0x128] sm:$0xff] %v227_v37  ;;  %v231_v39 = vld [vmem:[%s1893_s3 + $0x258] sm:$0xff]  ;;  %v233_v40 = vld [vmem:[%s1893_s3 + $0x280] sm:$0xff] }
  0x2a   : > { %230 = vst [vmem:[%s1898_s4 + $0x130] sm:$0xff] %v229_v38  ;;  %v235_v41 = vld [vmem:[%s1893_s3 + $0x288] sm:$0xff]  ;;  %232 = vst [vmem:[%s1898_s4 + $0x138] sm:$0xff] %v231_v39  ;;  %v237_v42 = vld [vmem:[%s1893_s3 + $0x290] sm:$0xff] }
  0x2b   : > { %234 = vst [vmem:[%s1898_s4 + $0x140] sm:$0xff] %v233_v40  ;;  %236 = vst [vmem:[%s1898_s4 + $0x148] sm:$0xff] %v235_v41  ;;  %v239_v43 = vld [vmem:[%s1893_s3 + $0x298] sm:$0xff]  ;;  %v241_v44 = vld [vmem:[%s1893_s3 + $0x2c0] sm:$0xff] }
  0x2c   : > { %238 = vst [vmem:[%s1898_s4 + $0x150] sm:$0xff] %v237_v42  ;;  %240 = vst [vmem:[%s1898_s4 + $0x158] sm:$0xff] %v239_v43  ;;  %v243_v45 = vld [vmem:[%s1893_s3 + $0x2c8] sm:$0xff]  ;;  %v245_v46 = vld [vmem:[%s1893_s3 + $0x2d0] sm:$0xff] }
  0x2d   : > { %242 = vst [vmem:[%s1898_s4 + $0x160] sm:$0xff] %v241_v44  ;;  %v247_v47 = vld [vmem:[%s1893_s3 + $0x2d8] sm:$0xff]  ;;  %244 = vst [vmem:[%s1898_s4 + $0x168] sm:$0xff] %v243_v45  ;;  %v249_v48 = vld [vmem:[%s1893_s3 + $0x300] sm:$0xff] }
  0x2e   : > { %246 = vst [vmem:[%s1898_s4 + $0x170] sm:$0xff] %v245_v46  ;;  %248 = vst [vmem:[%s1898_s4 + $0x178] sm:$0xff] %v247_v47  ;;  %v251_v49 = vld [vmem:[%s1893_s3 + $0x308] sm:$0xff]  ;;  %v253_v50 = vld [vmem:[%s1893_s3 + $0x310] sm:$0xff] }
  0x2f   : > { %250 = vst [vmem:[%s1898_s4 + $0x180] sm:$0xff] %v249_v48  ;;  %252 = vst [vmem:[%s1898_s4 + $0x188] sm:$0xff] %v251_v49  ;;  %v255_v51 = vld [vmem:[%s1893_s3 + $0x318] sm:$0xff]  ;;  %v257_v52 = vld [vmem:[%s1893_s3 + $0x340] sm:$0xff] }
  0x30   : > { %254 = vst [vmem:[%s1898_s4 + $0x190] sm:$0xff] %v253_v50  ;;  %v259_v53 = vld [vmem:[%s1893_s3 + $0x348] sm:$0xff]  ;;  %256 = vst [vmem:[%s1898_s4 + $0x198] sm:$0xff] %v255_v51  ;;  %v261_v54 = vld [vmem:[%s1893_s3 + $0x350] sm:$0xff] }
  0x31   : > { %258 = vst [vmem:[%s1898_s4 + $0x1a0] sm:$0xff] %v257_v52  ;;  %260 = vst [vmem:[%s1898_s4 + $0x1a8] sm:$0xff] %v259_v53  ;;  %v263_v55 = vld [vmem:[%s1893_s3 + $0x358] sm:$0xff]  ;;  %v265_v56 = vld [vmem:[%s1893_s3 + $0x380] sm:$0xff] }
  0x32   : > { %262 = vst [vmem:[%s1898_s4 + $0x1b0] sm:$0xff] %v261_v54  ;;  %264 = vst [vmem:[%s1898_s4 + $0x1b8] sm:$0xff] %v263_v55  ;;  %v267_v57 = vld [vmem:[%s1893_s3 + $0x388] sm:$0xff]  ;;  %v269_v58 = vld [vmem:[%s1893_s3 + $0x390] sm:$0xff] }
  0x33   : > { %266 = vst [vmem:[%s1898_s4 + $0x1c0] sm:$0xff] %v265_v56  ;;  %v271_v59 = vld [vmem:[%s1893_s3 + $0x398] sm:$0xff]  ;;  %268 = vst [vmem:[%s1898_s4 + $0x1c8] sm:$0xff] %v267_v57  ;;  %v273_v60 = vld [vmem:[%s1893_s3 + $0x3c0] sm:$0xff] }
  0x34   : > { %270 = vst [vmem:[%s1898_s4 + $0x1d0] sm:$0xff] %v269_v58  ;;  %272 = vst [vmem:[%s1898_s4 + $0x1d8] sm:$0xff] %v271_v59  ;;  %v275_v61 = vld [vmem:[%s1893_s3 + $0x3c8] sm:$0xff]  ;;  %v277_v62 = vld [vmem:[%s1893_s3 + $0x3d0] sm:$0xff] }
  0x35   : > { %274 = vst [vmem:[%s1898_s4 + $0x1e0] sm:$0xff] %v273_v60  ;;  %276 = vst [vmem:[%s1898_s4 + $0x1e8] sm:$0xff] %v275_v61  ;;  %v279_v63 = vld [vmem:[%s1893_s3 + $0x3d8] sm:$0xff]  ;;  %v281_v0 = vld [vmem:[%s1893_s3 + $0x400] sm:$0xff] }
  0x36   : > { %278 = vst [vmem:[%s1898_s4 + $0x1f0] sm:$0xff] %v277_v62  ;;  %v283_v1 = vld [vmem:[%s1893_s3 + $0x408] sm:$0xff]  ;;  %280 = vst [vmem:[%s1898_s4 + $0x1f8] sm:$0xff] %v279_v63  ;;  %v285_v2 = vld [vmem:[%s1893_s3 + $0x410] sm:$0xff] }
  0x37   : > { %282 = vst [vmem:[%s1898_s4 + $0x200] sm:$0xff] %v281_v0  ;;  %284 = vst [vmem:[%s1898_s4 + $0x208] sm:$0xff] %v283_v1  ;;  %v287_v3 = vld [vmem:[%s1893_s3 + $0x418] sm:$0xff]  ;;  %v289_v4 = vld [vmem:[%s1893_s3 + $0x440] sm:$0xff] }
  0x38   : > { %286 = vst [vmem:[%s1898_s4 + $0x210] sm:$0xff] %v285_v2  ;;  %288 = vst [vmem:[%s1898_s4 + $0x218] sm:$0xff] %v287_v3  ;;  %v291_v5 = vld [vmem:[%s1893_s3 + $0x448] sm:$0xff]  ;;  %v293_v6 = vld [vmem:[%s1893_s3 + $0x450] sm:$0xff] }
  0x39   : > { %290 = vst [vmem:[%s1898_s4 + $0x220] sm:$0xff] %v289_v4  ;;  %v295_v7 = vld [vmem:[%s1893_s3 + $0x458] sm:$0xff]  ;;  %292 = vst [vmem:[%s1898_s4 + $0x228] sm:$0xff] %v291_v5  ;;  %v297_v8 = vld [vmem:[%s1893_s3 + $0x480] sm:$0xff] }
  0x3a   : > { %294 = vst [vmem:[%s1898_s4 + $0x230] sm:$0xff] %v293_v6  ;;  %296 = vst [vmem:[%s1898_s4 + $0x238] sm:$0xff] %v295_v7  ;;  %v299_v9 = vld [vmem:[%s1893_s3 + $0x488] sm:$0xff]  ;;  %v301_v10 = vld [vmem:[%s1893_s3 + $0x490] sm:$0xff] }
  0x3b   : > { %298 = vst [vmem:[%s1898_s4 + $0x240] sm:$0xff] %v297_v8  ;;  %300 = vst [vmem:[%s1898_s4 + $0x248] sm:$0xff] %v299_v9  ;;  %v303_v11 = vld [vmem:[%s1893_s3 + $0x498] sm:$0xff]  ;;  %v305_v12 = vld [vmem:[%s1893_s3 + $0x4c0] sm:$0xff] }
  0x3c   : > { %302 = vst [vmem:[%s1898_s4 + $0x250] sm:$0xff] %v301_v10  ;;  %v307_v13 = vld [vmem:[%s1893_s3 + $0x4c8] sm:$0xff]  ;;  %304 = vst [vmem:[%s1898_s4 + $0x258] sm:$0xff] %v303_v11  ;;  %v309_v14 = vld [vmem:[%s1893_s3 + $0x4d0] sm:$0xff] }
  0x3d   : > { %306 = vst [vmem:[%s1898_s4 + $0x260] sm:$0xff] %v305_v12  ;;  %308 = vst [vmem:[%s1898_s4 + $0x268] sm:$0xff] %v307_v13  ;;  %v311_v15 = vld [vmem:[%s1893_s3 + $0x4d8] sm:$0xff]  ;;  %v313_v16 = vld [vmem:[%s1893_s3 + $0x500] sm:$0xff] }
  0x3e   : > { %310 = vst [vmem:[%s1898_s4 + $0x270] sm:$0xff] %v309_v14  ;;  %312 = vst [vmem:[%s1898_s4 + $0x278] sm:$0xff] %v311_v15  ;;  %v315_v17 = vld [vmem:[%s1893_s3 + $0x508] sm:$0xff]  ;;  %v317_v18 = vld [vmem:[%s1893_s3 + $0x510] sm:$0xff] }
  0x3f   : > { %314 = vst [vmem:[%s1898_s4 + $0x280] sm:$0xff] %v313_v16  ;;  %v319_v19 = vld [vmem:[%s1893_s3 + $0x518] sm:$0xff]  ;;  %316 = vst [vmem:[%s1898_s4 + $0x288] sm:$0xff] %v315_v17  ;;  %v321_v20 = vld [vmem:[%s1893_s3 + $0x540] sm:$0xff] }
  0x40   : > { %318 = vst [vmem:[%s1898_s4 + $0x290] sm:$0xff] %v317_v18  ;;  %320 = vst [vmem:[%s1898_s4 + $0x298] sm:$0xff] %v319_v19  ;;  %v323_v21 = vld [vmem:[%s1893_s3 + $0x548] sm:$0xff]  ;;  %v325_v22 = vld [vmem:[%s1893_s3 + $0x550] sm:$0xff] }
  0x41   : > { %322 = vst [vmem:[%s1898_s4 + $0x2a0] sm:$0xff] %v321_v20  ;;  %324 = vst [vmem:[%s1898_s4 + $0x2a8] sm:$0xff] %v323_v21  ;;  %v327_v23 = vld [vmem:[%s1893_s3 + $0x558] sm:$0xff]  ;;  %v329_v24 = vld [vmem:[%s1893_s3 + $0x580] sm:$0xff] }
  0x42   : > { %326 = vst [vmem:[%s1898_s4 + $0x2b0] sm:$0xff] %v325_v22  ;;  %v331_v25 = vld [vmem:[%s1893_s3 + $0x588] sm:$0xff]  ;;  %328 = vst [vmem:[%s1898_s4 + $0x2b8] sm:$0xff] %v327_v23  ;;  %v333_v26 = vld [vmem:[%s1893_s3 + $0x590] sm:$0xff] }
  0x43   : > { %330 = vst [vmem:[%s1898_s4 + $0x2c0] sm:$0xff] %v329_v24  ;;  %332 = vst [vmem:[%s1898_s4 + $0x2c8] sm:$0xff] %v331_v25  ;;  %v335_v27 = vld [vmem:[%s1893_s3 + $0x598] sm:$0xff]  ;;  %v337_v28 = vld [vmem:[%s1893_s3 + $0x5c0] sm:$0xff] }
  0x44   : > { %334 = vst [vmem:[%s1898_s4 + $0x2d0] sm:$0xff] %v333_v26  ;;  %336 = vst [vmem:[%s1898_s4 + $0x2d8] sm:$0xff] %v335_v27  ;;  %v339_v29 = vld [vmem:[%s1893_s3 + $0x5c8] sm:$0xff]  ;;  %v341_v30 = vld [vmem:[%s1893_s3 + $0x5d0] sm:$0xff] }
  0x45   : > { %338 = vst [vmem:[%s1898_s4 + $0x2e0] sm:$0xff] %v337_v28  ;;  %v343_v31 = vld [vmem:[%s1893_s3 + $0x5d8] sm:$0xff]  ;;  %340 = vst [vmem:[%s1898_s4 + $0x2e8] sm:$0xff] %v339_v29  ;;  %v345_v32 = vld [vmem:[%s1893_s3 + $0x600] sm:$0xff] }
  0x46   : > { %342 = vst [vmem:[%s1898_s4 + $0x2f0] sm:$0xff] %v341_v30  ;;  %344 = vst [vmem:[%s1898_s4 + $0x2f8] sm:$0xff] %v343_v31  ;;  %v347_v33 = vld [vmem:[%s1893_s3 + $0x608] sm:$0xff]  ;;  %v349_v34 = vld [vmem:[%s1893_s3 + $0x610] sm:$0xff] }
  0x47   : > { %346 = vst [vmem:[%s1898_s4 + $0x300] sm:$0xff] %v345_v32  ;;  %348 = vst [vmem:[%s1898_s4 + $0x308] sm:$0xff] %v347_v33  ;;  %v351_v35 = vld [vmem:[%s1893_s3 + $0x618] sm:$0xff]  ;;  %v353_v36 = vld [vmem:[%s1893_s3 + $0x640] sm:$0xff] }
  0x48   : > { %350 = vst [vmem:[%s1898_s4 + $0x310] sm:$0xff] %v349_v34  ;;  %v355_v37 = vld [vmem:[%s1893_s3 + $0x648] sm:$0xff]  ;;  %352 = vst [vmem:[%s1898_s4 + $0x318] sm:$0xff] %v351_v35  ;;  %v357_v38 = vld [vmem:[%s1893_s3 + $0x650] sm:$0xff] }
  0x49   : > { %354 = vst [vmem:[%s1898_s4 + $0x320] sm:$0xff] %v353_v36  ;;  %356 = vst [vmem:[%s1898_s4 + $0x328] sm:$0xff] %v355_v37  ;;  %v359_v39 = vld [vmem:[%s1893_s3 + $0x658] sm:$0xff]  ;;  %v361_v40 = vld [vmem:[%s1893_s3 + $0x680] sm:$0xff] }
  0x4a   : > { %358 = vst [vmem:[%s1898_s4 + $0x330] sm:$0xff] %v357_v38  ;;  %360 = vst [vmem:[%s1898_s4 + $0x338] sm:$0xff] %v359_v39  ;;  %v363_v41 = vld [vmem:[%s1893_s3 + $0x688] sm:$0xff]  ;;  %v365_v42 = vld [vmem:[%s1893_s3 + $0x690] sm:$0xff] }
  0x4b   : > { %362 = vst [vmem:[%s1898_s4 + $0x340] sm:$0xff] %v361_v40  ;;  %v367_v43 = vld [vmem:[%s1893_s3 + $0x698] sm:$0xff]  ;;  %364 = vst [vmem:[%s1898_s4 + $0x348] sm:$0xff] %v363_v41  ;;  %v369_v44 = vld [vmem:[%s1893_s3 + $0x6c0] sm:$0xff] }
  0x4c   : > { %366 = vst [vmem:[%s1898_s4 + $0x350] sm:$0xff] %v365_v42  ;;  %368 = vst [vmem:[%s1898_s4 + $0x358] sm:$0xff] %v367_v43  ;;  %v371_v45 = vld [vmem:[%s1893_s3 + $0x6c8] sm:$0xff]  ;;  %v373_v46 = vld [vmem:[%s1893_s3 + $0x6d0] sm:$0xff] }
  0x4d   : > { %370 = vst [vmem:[%s1898_s4 + $0x360] sm:$0xff] %v369_v44  ;;  %372 = vst [vmem:[%s1898_s4 + $0x368] sm:$0xff] %v371_v45  ;;  %v375_v47 = vld [vmem:[%s1893_s3 + $0x6d8] sm:$0xff]  ;;  %v377_v48 = vld [vmem:[%s1893_s3 + $0x700] sm:$0xff] }
  0x4e   : > { %374 = vst [vmem:[%s1898_s4 + $0x370] sm:$0xff] %v373_v46  ;;  %v379_v49 = vld [vmem:[%s1893_s3 + $0x708] sm:$0xff]  ;;  %376 = vst [vmem:[%s1898_s4 + $0x378] sm:$0xff] %v375_v47  ;;  %v381_v50 = vld [vmem:[%s1893_s3 + $0x710] sm:$0xff] }
  0x4f   : > { %378 = vst [vmem:[%s1898_s4 + $0x380] sm:$0xff] %v377_v48  ;;  %380 = vst [vmem:[%s1898_s4 + $0x388] sm:$0xff] %v379_v49  ;;  %v383_v51 = vld [vmem:[%s1893_s3 + $0x718] sm:$0xff]  ;;  %v385_v52 = vld [vmem:[%s1893_s3 + $0x740] sm:$0xff] }
  0x50   : > { %382 = vst [vmem:[%s1898_s4 + $0x390] sm:$0xff] %v381_v50  ;;  %384 = vst [vmem:[%s1898_s4 + $0x398] sm:$0xff] %v383_v51  ;;  %v387_v53 = vld [vmem:[%s1893_s3 + $0x748] sm:$0xff]  ;;  %v389_v54 = vld [vmem:[%s1893_s3 + $0x750] sm:$0xff] }
  0x51   : > { %386 = vst [vmem:[%s1898_s4 + $0x3a0] sm:$0xff] %v385_v52  ;;  %v391_v55 = vld [vmem:[%s1893_s3 + $0x758] sm:$0xff]  ;;  %388 = vst [vmem:[%s1898_s4 + $0x3a8] sm:$0xff] %v387_v53  ;;  %v393_v56 = vld [vmem:[%s1893_s3 + $0x780] sm:$0xff] }
  0x52   : > { %390 = vst [vmem:[%s1898_s4 + $0x3b0] sm:$0xff] %v389_v54  ;;  %392 = vst [vmem:[%s1898_s4 + $0x3b8] sm:$0xff] %v391_v55  ;;  %v395_v57 = vld [vmem:[%s1893_s3 + $0x788] sm:$0xff]  ;;  %v397_v58 = vld [vmem:[%s1893_s3 + $0x790] sm:$0xff] }
  0x53   : > { %394 = vst [vmem:[%s1898_s4 + $0x3c0] sm:$0xff] %v393_v56  ;;  %396 = vst [vmem:[%s1898_s4 + $0x3c8] sm:$0xff] %v395_v57  ;;  %v399_v59 = vld [vmem:[%s1893_s3 + $0x798] sm:$0xff]  ;;  %v401_v60 = vld [vmem:[%s1893_s3 + $0x7c0] sm:$0xff] }
  0x54   : > { %398 = vst [vmem:[%s1898_s4 + $0x3d0] sm:$0xff] %v397_v58  ;;  %v403_v61 = vld [vmem:[%s1893_s3 + $0x7c8] sm:$0xff]  ;;  %400 = vst [vmem:[%s1898_s4 + $0x3d8] sm:$0xff] %v399_v59  ;;  %v405_v62 = vld [vmem:[%s1893_s3 + $0x7d0] sm:$0xff] }
  0x55   : > { %402 = vst [vmem:[%s1898_s4 + $0x3e0] sm:$0xff] %v401_v60  ;;  %404 = vst [vmem:[%s1898_s4 + $0x3e8] sm:$0xff] %v403_v61  ;;  %v407_v63 = vld [vmem:[%s1893_s3 + $0x7d8] sm:$0xff] }
  0x56   : > { %406 = vst [vmem:[%s1898_s4 + $0x3f0] sm:$0xff] %v405_v62  ;;  %408 = vst [vmem:[%s1898_s4 + $0x3f8] sm:$0xff] %v407_v63 }
  0x57 PF: > { %p1551_p7 = scmp.ge.s32.totalorder %s1816_s15, 1  ;;  %p413_p8 = scmp.lt.s32.totalorder %s1816_s15, 9 }
  0x59   : > { %p414_p9 = pnand %p1551_p7, %p413_p8 }
  0x5a   : > { %s420_s5 = sand.u32 (!%p414_p9), 1, %s1792_s9   ;;  %p450_p10 = scmp.lt.s32.totalorder (!%p414_p9), %s1804_s12, 3 }
  0x5b   : > { %417 = sbr.rel (%p414_p9) target bundleno = 441 (0x1b9), region = 47  ;;  %s1552_s6 = sshll.u32 (!%p414_p9), %s420_s5, 10 }
  0x5c   : > { %s2156_s7 = scalar_lea.vmem (!%p414_p9), [#allocation2], %s1552_s6  ;;  %s1555_s20 = sshll.u32 (!%p414_p9), %s1800_s11, 3 }
  0x5d   : > { %p459_p11 = scmp.lt.s32.totalorder (!%p414_p9), %s1555_s20, 15 }
  0x60   : > { %v523_v0 = vld [vmem:[%s2156_s7 + $0x1c0] sm:$0xff]  ;;  %v524_v2 = vld [vmem:[%s2156_s7 + $0x1c8] sm:$0xff]  ;;  %s2350_s12 = smov (!%p450_p10, %s1804_s12), 3  ;;  %s2352_s20 = smov (!%p459_p11, %s1555_s20), 15 }
  0x61   : > { %v527_v1 = vld [vmem:[%s2156_s7 + $0x1e0] sm:$0xff]  ;;  %v528_v4 = vld [vmem:[%s2156_s7 + $0x1e8] sm:$0xff]  ;;  %s1689_s8 = sshll.u32 %s2350_s12, 2  ;;  %s1556_s21 = sshll.u32 %s2350_s12, 4 }
  0x62   : > { %v1616_v3 = vcombine.high %v523_v0, %v527_v1  ;;  %v1615_v5 = vcombine.low %v523_v0, %v527_v1  ;;  %v515_v6 = vld [vmem:[%s2156_s7 + $0x180] sm:$0xff]  ;;  %v1618_v8 = vcombine.high %v524_v2, %v528_v4  ;;  %v1617_v9 = vcombine.low %v524_v2, %v528_v4  ;;  %v516_v11 = vld [vmem:[%s2156_s7 + $0x188] sm:$0xff]  ;;  %s454_s19 = scalar_lea.vmem %s2334_s0, %s1689_s8  ;;  %s462_s23 = sadd.s32 %s1556_s21, %s2352_s20 }
  0x63   : > { %v519_v7 = vld [vmem:[%s2156_s7 + $0x1a0] sm:$0xff]  ;;  %v520_v12 = vld [vmem:[%s2156_s7 + $0x1a8] sm:$0xff]  ;;  %s1557_s24 = sshll.u32 %s462_s23, 2 }
  0x64   : > { %v1608_v10 = vcombine.high %v515_v6, %v519_v7  ;;  %v507_v13 = vld [vmem:[%s2156_s7 + $0x140] sm:$0xff]  ;;  %1246 = vmatprep.subr.bf16.mxu0 %v1616_v3  ;;  %v1610_v14 = vcombine.high %v516_v11, %v520_v12  ;;  %v508_v16 = vld [vmem:[%s2156_s7 + $0x148] sm:$0xff]  ;;  %1287 = vmatprep.subr.bf16.mxu1 %v1618_v8  ;;  %v1607_v18 = vcombine.low %v515_v6, %v519_v7  ;;  %s464_s26 = scalar_lea.vmem %s2336_s2, %s1557_s24 }
  0x65   : > { %v511_v15 = vld [vmem:[%s2156_s7 + $0x160] sm:$0xff]  ;;  %v512_v17 = vld [vmem:[%s2156_s7 + $0x168] sm:$0xff]  ;;  %1247 = vmatpush1.bf16.msra.mxu0 %v1615_v5  ;;  %1288 = vmatpush1.bf16.msra.mxu1 %v1617_v9  ;;  %v1609_v19 = vcombine.low %v516_v11, %v520_v12 }
  0x66   : > { %1248 = vmatprep.subr.bf16.mxu0 %v1608_v10  ;;  %v1600_v20 = vcombine.high %v507_v13, %v511_v15  ;;  %1289 = vmatprep.subr.bf16.mxu1 %v1610_v14  ;;  %v1602_v21 = vcombine.high %v508_v16, %v512_v17  ;;  %v499_v22 = vld [vmem:[%s2156_s7 + $0x100] sm:$0xff]  ;;  %v500_v24 = vld [vmem:[%s2156_s7 + $0x108] sm:$0xff]  ;;  %v1599_v26 = vcombine.low %v507_v13, %v511_v15 }
  0x67   : > { %v503_v23 = vld [vmem:[%s2156_s7 + $0x120] sm:$0xff]  ;;  %v504_v25 = vld [vmem:[%s2156_s7 + $0x128] sm:$0xff]  ;;  %v1601_v27 = vcombine.low %v508_v16, %v512_v17 }
  0x68   : > { %v1592_v28 = vcombine.high %v499_v22, %v503_v23  ;;  %v1594_v29 = vcombine.high %v500_v24, %v504_v25  ;;  %v491_v30 = vld [vmem:[%s2156_s7 + $0xc0] sm:$0xff]  ;;  %v492_v32 = vld [vmem:[%s2156_s7 + $0xc8] sm:$0xff]  ;;  %v1591_v34 = vcombine.low %v499_v22, %v503_v23  ;;  %v1593_v35 = vcombine.low %v500_v24, %v504_v25 }
  0x69   : > { %1249 = vmatpush1.bf16.msra.mxu0 %v1607_v18  ;;  %1290 = vmatpush1.bf16.msra.mxu1 %v1609_v19  ;;  %v495_v31 = vld [vmem:[%s2156_s7 + $0xe0] sm:$0xff]  ;;  %v496_v33 = vld [vmem:[%s2156_s7 + $0xe8] sm:$0xff] }
  0x6a   : > { %1250 = vmatprep.subr.bf16.mxu0 %v1600_v20  ;;  %1291 = vmatprep.subr.bf16.mxu1 %v1602_v21  ;;  %v1584_v36 = vcombine.high %v491_v30, %v495_v31  ;;  %v1586_v37 = vcombine.high %v492_v32, %v496_v33  ;;  %v483_v38 = vld [vmem:[%s2156_s7 + $0x80] sm:$0xff]  ;;  %v484_v40 = vld [vmem:[%s2156_s7 + $0x88] sm:$0xff]  ;;  %v1583_v42 = vcombine.low %v491_v30, %v495_v31 }
  0x6b   : > { %v487_v39 = vld [vmem:[%s2156_s7 + $0xa0] sm:$0xff]  ;;  %v488_v41 = vld [vmem:[%s2156_s7 + $0xa8] sm:$0xff]  ;;  %v1585_v43 = vcombine.low %v492_v32, %v496_v33 }
  0x6c   : > { %v1576_v44 = vcombine.high %v483_v38, %v487_v39  ;;  %v1578_v45 = vcombine.high %v484_v40, %v488_v41  ;;  %v475_v46 = vld [vmem:[%s2156_s7 + $0x40] sm:$0xff]  ;;  %v476_v48 = vld [vmem:[%s2156_s7 + $0x48] sm:$0xff]  ;;  %v1575_v50 = vcombine.low %v483_v38, %v487_v39  ;;  %v1577_v51 = vcombine.low %v484_v40, %v488_v41 }
  0x6d   : > { %1251 = vmatpush1.bf16.msra.mxu0 %v1599_v26  ;;  %1292 = vmatpush1.bf16.msra.mxu1 %v1601_v27  ;;  %v479_v47 = vld [vmem:[%s2156_s7 + $0x60] sm:$0xff]  ;;  %v480_v49 = vld [vmem:[%s2156_s7 + $0x68] sm:$0xff] }
  0x6e   : > { %1252 = vmatprep.subr.bf16.mxu0 %v1592_v28  ;;  %1293 = vmatprep.subr.bf16.mxu1 %v1594_v29  ;;  %v1568_v52 = vcombine.high %v475_v46, %v479_v47  ;;  %v2194_v53 = vld.sshfl [vmem:[%s454_s19] sm:$0x33 pattern:$0x76325410]  ;;  %v1570_v54 = vcombine.high %v476_v48, %v480_v49  ;;  %v468_v58 = vld [vmem:[%s2156_s7 + $0x8] sm:$0xff]  ;;  %v1567_v60 = vcombine.low %v475_v46, %v479_v47 }
  0x6f   : > { %v467_v55 = vld [vmem:[%s2156_s7] sm:$0xff]  ;;  %v2200_v57 = vcombine.high %v2194_v53, %v2194_v53  ;;  %v472_v59 = vld [vmem:[%s2156_s7 + $0x28] sm:$0xff]  ;;  %v1569_v61 = vcombine.low %v476_v48, %v480_v49 }
  0x70   : > { %v471_v56 = vld [vmem:[%s2156_s7 + $0x20] sm:$0xff]  ;;  %v1562_v63 = vcombine.high %v468_v58, %v472_v59  ;;  %v588_v2 = vld [vmem:[%s2156_s7 + $0x3c8] sm:$0xff]  ;;  %v1561_v5 = vcombine.low %v468_v58, %v472_v59 }
  0x71   : > { %1253 = vmatpush1.bf16.msra.mxu0 %v1591_v34  ;;  %1294 = vmatpush1.bf16.msra.mxu1 %v1593_v35  ;;  %v1560_v62 = vcombine.high %v467_v55, %v471_v56  ;;  %v587_v0 = vld [vmem:[%s2156_s7 + $0x3c0] sm:$0xff]  ;;  %v592_v3 = vld [vmem:[%s2156_s7 + $0x3e8] sm:$0xff]  ;;  %v1559_v4 = vcombine.low %v467_v55, %v471_v56 }
  0x72   : > { %1254 = vmatprep.subr.bf16.mxu0 %v1584_v36  ;;  %1295 = vmatprep.subr.bf16.mxu1 %v1586_v37  ;;  %v591_v1 = vld [vmem:[%s2156_s7 + $0x3e0] sm:$0xff]  ;;  %v1682_v7 = vcombine.high %v588_v2, %v592_v3  ;;  %v580_v10 = vld [vmem:[%s2156_s7 + $0x388] sm:$0xff]  ;;  %v1681_v13 = vcombine.low %v588_v2, %v592_v3  ;;  %v525_v2 = vld [vmem:[%s2156_s7 + $0x1d0] sm:$0xff] }
  0x73   : > { %1278 = vmatprep.mubr.bf16.mxu0 %v2200_v57  ;;  %1319 = vmatprep.mubr.bf16.mxu1 %v2200_v57  ;;  %v1680_v6 = vcombine.high %v587_v0, %v591_v1  ;;  %v579_v8 = vld [vmem:[%s2156_s7 + $0x380] sm:$0xff]  ;;  %v584_v11 = vld [vmem:[%s2156_s7 + $0x3a8] sm:$0xff]  ;;  %v1679_v12 = vcombine.low %v587_v0, %v591_v1  ;;  %v529_v3 = vld [vmem:[%s2156_s7 + $0x1f0] sm:$0xff] }
  0x74   : > { %v583_v9 = vld [vmem:[%s2156_s7 + $0x3a0] sm:$0xff]  ;;  %v1674_v15 = vcombine.high %v580_v10, %v584_v11  ;;  %v572_v18 = vld [vmem:[%s2156_s7 + $0x348] sm:$0xff]  ;;  %v1673_v21 = vcombine.low %v580_v10, %v584_v11  ;;  %v517_v10 = vld [vmem:[%s2156_s7 + $0x190] sm:$0xff] }
  0x75   : > { %1255 = vmatpush1.bf16.msra.mxu0 %v1583_v42  ;;  %1296 = vmatpush1.bf16.msra.mxu1 %v1585_v43  ;;  %v1672_v14 = vcombine.high %v579_v8, %v583_v9  ;;  %v571_v16 = vld [vmem:[%s2156_s7 + $0x340] sm:$0xff]  ;;  %v576_v19 = vld [vmem:[%s2156_s7 + $0x368] sm:$0xff]  ;;  %v1671_v20 = vcombine.low %v579_v8, %v583_v9  ;;  %v1620_v8 = vcombine.high %v525_v2, %v529_v3  ;;  %v521_v11 = vld [vmem:[%s2156_s7 + $0x1b0] sm:$0xff] }
  0x76   : > { %1256 = vmatprep.subr.bf16.mxu0 %v1576_v44  ;;  %1297 = vmatprep.subr.bf16.mxu1 %v1578_v45  ;;  %v575_v17 = vld [vmem:[%s2156_s7 + $0x360] sm:$0xff]  ;;  %v1666_v23 = vcombine.high %v572_v18, %v576_v19  ;;  %v564_v26 = vld [vmem:[%s2156_s7 + $0x308] sm:$0xff]  ;;  %v1665_v29 = vcombine.low %v572_v18, %v576_v19  ;;  %v509_v18 = vld [vmem:[%s2156_s7 + $0x150] sm:$0xff] }
  0x77   : > { %v1664_v22 = vcombine.high %v571_v16, %v575_v17  ;;  %v563_v24 = vld [vmem:[%s2156_s7 + $0x300] sm:$0xff]  ;;  %v568_v27 = vld [vmem:[%s2156_s7 + $0x328] sm:$0xff]  ;;  %v1663_v28 = vcombine.low %v571_v16, %v575_v17  ;;  %v1612_v16 = vcombine.high %v517_v10, %v521_v11  ;;  %v513_v19 = vld [vmem:[%s2156_s7 + $0x170] sm:$0xff] }
  0x78   : > { %v567_v25 = vld [vmem:[%s2156_s7 + $0x320] sm:$0xff]  ;;  %v1658_v31 = vcombine.high %v564_v26, %v568_v27  ;;  %v556_v34 = vld [vmem:[%s2156_s7 + $0x2c8] sm:$0xff]  ;;  %v1657_v37 = vcombine.low %v564_v26, %v568_v27  ;;  %v501_v26 = vld [vmem:[%s2156_s7 + $0x110] sm:$0xff] }
  0x79   : > { %1257 = vmatpush1.bf16.msra.mxu0 %v1575_v50  ;;  %1298 = vmatpush1.bf16.msra.mxu1 %v1577_v51  ;;  %v1656_v30 = vcombine.high %v563_v24, %v567_v25  ;;  %v555_v32 = vld [vmem:[%s2156_s7 + $0x2c0] sm:$0xff]  ;;  %v560_v35 = vld [vmem:[%s2156_s7 + $0x2e8] sm:$0xff]  ;;  %v1655_v36 = vcombine.low %v563_v24, %v567_v25  ;;  %v1604_v24 = vcombine.high %v509_v18, %v513_v19  ;;  %v505_v27 = vld [vmem:[%s2156_s7 + $0x130] sm:$0xff] }
  0x7a   : > { %1258 = vmatprep.subr.bf16.mxu0 %v1568_v52  ;;  %1299 = vmatprep.subr.bf16.mxu1 %v1570_v54  ;;  %v559_v33 = vld [vmem:[%s2156_s7 + $0x2e0] sm:$0xff]  ;;  %v1650_v39 = vcombine.high %v556_v34, %v560_v35  ;;  %v548_v42 = vld [vmem:[%s2156_s7 + $0x288] sm:$0xff]  ;;  %v1649_v45 = vcombine.low %v556_v34, %v560_v35  ;;  %v493_v34 = vld [vmem:[%s2156_s7 + $0xd0] sm:$0xff] }
  0x7b   : > { %v1648_v38 = vcombine.high %v555_v32, %v559_v33  ;;  %v547_v40 = vld [vmem:[%s2156_s7 + $0x280] sm:$0xff]  ;;  %v552_v43 = vld [vmem:[%s2156_s7 + $0x2a8] sm:$0xff]  ;;  %v1647_v44 = vcombine.low %v555_v32, %v559_v33  ;;  %v1596_v32 = vcombine.high %v501_v26, %v505_v27  ;;  %v497_v35 = vld [vmem:[%s2156_s7 + $0xf0] sm:$0xff] }
  0x7c   : > { %v551_v41 = vld [vmem:[%s2156_s7 + $0x2a0] sm:$0xff]  ;;  %v1642_v47 = vcombine.high %v548_v42, %v552_v43  ;;  %v540_v50 = vld [vmem:[%s2156_s7 + $0x248] sm:$0xff]  ;;  %v1641_v54 = vcombine.low %v548_v42, %v552_v43  ;;  %v489_v42 = vld [vmem:[%s2156_s7 + $0xb0] sm:$0xff] }
  0x7d   : > { %1259 = vmatpush1.bf16.msra.mxu0 %v1567_v60  ;;  %1300 = vmatpush1.bf16.msra.mxu1 %v1569_v61  ;;  %v1640_v46 = vcombine.high %v547_v40, %v551_v41  ;;  %v539_v48 = vld [vmem:[%s2156_s7 + $0x240] sm:$0xff]  ;;  %v544_v51 = vld [vmem:[%s2156_s7 + $0x268] sm:$0xff]  ;;  %v1639_v52 = vcombine.low %v547_v40, %v551_v41  ;;  %v485_v41 = vld [vmem:[%s2156_s7 + $0x90] sm:$0xff] }
  0x7e   : > { %1260 = vmatprep.subr.bf16.mxu0 %v1560_v62  ;;  %1301 = vmatprep.subr.bf16.mxu1 %v1562_v63  ;;  %v543_v49 = vld [vmem:[%s2156_s7 + $0x260] sm:$0xff]  ;;  %v1634_v56 = vcombine.high %v540_v50, %v544_v51  ;;  %v532_v60 = vld [vmem:[%s2156_s7 + $0x208] sm:$0xff]  ;;  %v1633_v63 = vcombine.low %v540_v50, %v544_v51  ;;  %v486_v43 = vld [vmem:[%s2156_s7 + $0x98] sm:$0xff] }
  0x7f   : > { %v1632_v55 = vcombine.high %v539_v48, %v543_v49  ;;  %v531_v58 = vld [vmem:[%s2156_s7 + $0x200] sm:$0xff]  ;;  %v536_v61 = vld [vmem:[%s2156_s7 + $0x228] sm:$0xff]  ;;  %v1631_v62 = vcombine.low %v539_v48, %v543_v49  ;;  %v477_v49 = vld [vmem:[%s2156_s7 + $0x50] sm:$0xff] }
  0x80   : > { %v535_v59 = vld [vmem:[%s2156_s7 + $0x220] sm:$0xff]  ;;  %v1626_v1 = vcombine.high %v532_v60, %v536_v61  ;;  %v481_v50 = vld [vmem:[%s2156_s7 + $0x70] sm:$0xff]  ;;  %v478_v51 = vld [vmem:[%s2156_s7 + $0x58] sm:$0xff] }
  0x81   : > { %1261 = vmatpush1.bf16.msra.mxu0 %v1559_v4  ;;  %1302 = vmatpush1.bf16.msra.mxu1 %v1561_v5  ;;  %v1624_v0 = vcombine.high %v531_v58, %v535_v59  ;;  %v526_v4 = vld [vmem:[%s2156_s7 + $0x1d8] sm:$0xff] }
  0x82   : > { %1262 = vmatprep.subr.bf16.mxu0 %v1680_v6  ;;  %1303 = vmatprep.subr.bf16.mxu1 %v1682_v7  ;;  %v530_v5 = vld [vmem:[%s2156_s7 + $0x1f8] sm:$0xff]  ;;  %v1623_v6 = vcombine.low %v531_v58, %v535_v59  ;;  %v1625_v7 = vcombine.low %v532_v60, %v536_v61  ;;  %v469_v59 = vld [vmem:[%s2156_s7 + $0x10] sm:$0xff] }
  0x83   : > { %v1622_v9 = vcombine.high %v526_v4, %v530_v5  ;;  %v473_v60 = vld [vmem:[%s2156_s7 + $0x30] sm:$0xff]  ;;  %v470_v61 = vld [vmem:[%s2156_s7 + $0x18] sm:$0xff] }
  0x85   : > { %1263 = vmatpush2.bf16.msra.mxu0 %v1679_v12  ;;  %1304 = vmatpush2.bf16.msra.mxu1 %v1681_v13  ;;  %v518_v12 = vld [vmem:[%s2156_s7 + $0x198] sm:$0xff] }
  0x86   : > { %1264 = vmatprep.subr.bf16.mxu0 %v1672_v14  ;;  %1305 = vmatprep.subr.bf16.mxu1 %v1674_v15  ;;  %v522_v13 = vld [vmem:[%s2156_s7 + $0x1b8] sm:$0xff]  ;;  %v1619_v14 = vcombine.low %v525_v2, %v529_v3  ;;  %v1621_v15 = vcombine.low %v526_v4, %v530_v5  ;;  %v589_v3 = vld [vmem:[%s2156_s7 + $0x3d0] sm:$0xff] }
  0x87   : > { %v1614_v17 = vcombine.high %v518_v12, %v522_v13  ;;  %v593_v4 = vld [vmem:[%s2156_s7 + $0x3f0] sm:$0xff]  ;;  %v590_v5 = vld [vmem:[%s2156_s7 + $0x3d8] sm:$0xff] }
  0x89   : > { %1265 = vmatpush2.bf16.msra.mxu0 %v1671_v20  ;;  %1306 = vmatpush2.bf16.msra.mxu1 %v1673_v21  ;;  %v510_v20 = vld [vmem:[%s2156_s7 + $0x158] sm:$0xff] }
  0x8a   : > { %1266 = vmatprep.subr.bf16.mxu0 %v1664_v22  ;;  %1307 = vmatprep.subr.bf16.mxu1 %v1666_v23  ;;  %v514_v21 = vld [vmem:[%s2156_s7 + $0x178] sm:$0xff]  ;;  %v1611_v22 = vcombine.low %v517_v10, %v521_v11  ;;  %v1613_v23 = vcombine.low %v518_v12, %v522_v13  ;;  %v581_v11 = vld [vmem:[%s2156_s7 + $0x390] sm:$0xff] }
  0x8b   : > { %v1606_v25 = vcombine.high %v510_v20, %v514_v21  ;;  %v585_v12 = vld [vmem:[%s2156_s7 + $0x3b0] sm:$0xff]  ;;  %v582_v13 = vld [vmem:[%s2156_s7 + $0x398] sm:$0xff] }
  0x8d   : > { %1267 = vmatpush2.bf16.msra.mxu0 %v1663_v28  ;;  %1308 = vmatpush2.bf16.msra.mxu1 %v1665_v29  ;;  %v502_v28 = vld [vmem:[%s2156_s7 + $0x118] sm:$0xff] }
  0x8e   : > { %1268 = vmatprep.subr.bf16.mxu0 %v1656_v30  ;;  %1309 = vmatprep.subr.bf16.mxu1 %v1658_v31  ;;  %v506_v29 = vld [vmem:[%s2156_s7 + $0x138] sm:$0xff]  ;;  %v1603_v30 = vcombine.low %v509_v18, %v513_v19  ;;  %v1605_v31 = vcombine.low %v510_v20, %v514_v21  ;;  %v573_v19 = vld [vmem:[%s2156_s7 + $0x350] sm:$0xff] }
  0x8f   : > { %v1598_v33 = vcombine.high %v502_v28, %v506_v29  ;;  %v577_v20 = vld [vmem:[%s2156_s7 + $0x370] sm:$0xff]  ;;  %v574_v21 = vld [vmem:[%s2156_s7 + $0x358] sm:$0xff] }
  0x91   : > { %1269 = vmatpush2.bf16.msra.mxu0 %v1655_v36  ;;  %1310 = vmatpush2.bf16.msra.mxu1 %v1657_v37  ;;  %v494_v36 = vld [vmem:[%s2156_s7 + $0xd8] sm:$0xff] }
  0x92   : > { %1270 = vmatprep.subr.bf16.mxu0 %v1648_v38  ;;  %1311 = vmatprep.subr.bf16.mxu1 %v1650_v39  ;;  %v498_v37 = vld [vmem:[%s2156_s7 + $0xf8] sm:$0xff]  ;;  %v1595_v38 = vcombine.low %v501_v26, %v505_v27  ;;  %v1588_v39 = vcombine.high %v493_v34, %v497_v35  ;;  %v565_v27 = vld [vmem:[%s2156_s7 + $0x310] sm:$0xff] }
  0x93   : > { %v1590_v40 = vcombine.high %v494_v36, %v498_v37 }
  0x95   : > { %1271 = vmatpush2.bf16.msra.mxu0 %v1647_v44  ;;  %1312 = vmatpush2.bf16.msra.mxu1 %v1649_v45  ;;  %v490_v44 = vld [vmem:[%s2156_s7 + $0xb8] sm:$0xff]  ;;  %v1587_v45 = vcombine.low %v493_v34, %v497_v35  ;;  %v557_v35 = vld [vmem:[%s2156_s7 + $0x2d0] sm:$0xff] }
  0x96   : > { %1272 = vmatprep.subr.bf16.mxu0 %v1640_v46  ;;  %1313 = vmatprep.subr.bf16.mxu1 %v1642_v47  ;;  %v1589_v46 = vcombine.low %v494_v36, %v498_v37  ;;  %v1580_v47 = vcombine.high %v485_v41, %v489_v42  ;;  %v1582_v48 = vcombine.high %v486_v43, %v490_v44  ;;  %v561_v36 = vld [vmem:[%s2156_s7 + $0x2f0] sm:$0xff]  ;;  %v558_v37 = vld [vmem:[%s2156_s7 + $0x2d8] sm:$0xff] }
  0x99   : > { %1273 = vmatpush2.bf16.msra.mxu0 %v1639_v52  ;;  %1314 = vmatpush2.bf16.msra.mxu1 %v1641_v54  ;;  %v482_v52 = vld [vmem:[%s2156_s7 + $0x78] sm:$0xff]  ;;  %v1579_v54 = vcombine.low %v485_v41, %v489_v42  ;;  %v549_v42 = vld [vmem:[%s2156_s7 + $0x290] sm:$0xff] }
  0x9a   : > { %1274 = vmatprep.subr.bf16.mxu0 %v1632_v55  ;;  %1315 = vmatprep.subr.bf16.mxu1 %v1634_v56  ;;  %v1581_v55 = vcombine.low %v486_v43, %v490_v44  ;;  %v1572_v56 = vcombine.high %v477_v49, %v481_v50  ;;  %v1574_v58 = vcombine.high %v478_v51, %v482_v52  ;;  %v553_v43 = vld [vmem:[%s2156_s7 + $0x2b0] sm:$0xff]  ;;  %v550_v44 = vld [vmem:[%s2156_s7 + $0x298] sm:$0xff] }
  0x9d   : > { %1275 = vmatpush2.bf16.msra.mxu0 %v1631_v62  ;;  %1316 = vmatpush2.bf16.msra.mxu1 %v1633_v63  ;;  %v474_v62 = vld [vmem:[%s2156_s7 + $0x38] sm:$0xff]  ;;  %v1571_v63 = vcombine.low %v477_v49, %v481_v50  ;;  %v541_v50 = vld [vmem:[%s2156_s7 + $0x250] sm:$0xff] }
  0x9e   : > { %1276 = vmatprep.subr.bf16.mxu0 %v1624_v0  ;;  %1317 = vmatprep.subr.bf16.mxu1 %v1626_v1  ;;  %v1573_v0 = vcombine.low %v478_v51, %v482_v52  ;;  %v1564_v1 = vcombine.high %v469_v59, %v473_v60  ;;  %v1566_v2 = vcombine.high %v470_v61, %v474_v62  ;;  %v545_v51 = vld [vmem:[%s2156_s7 + $0x270] sm:$0xff]  ;;  %v542_v52 = vld [vmem:[%s2156_s7 + $0x258] sm:$0xff] }
  0xa1   : > { %1277 = vmatpush2.bf16.msra.mxu0 %v1623_v6  ;;  %1318 = vmatpush2.bf16.msra.mxu1 %v1625_v7  ;;  %v594_v6 = vld [vmem:[%s2156_s7 + $0x3f8] sm:$0xff]  ;;  %v1563_v7 = vcombine.low %v469_v59, %v473_v60  ;;  %v533_v60 = vld [vmem:[%s2156_s7 + $0x210] sm:$0xff] }
  0xa2   : > { %1328 = vmatprep.subr.bf16.mxu0 %v1620_v8  ;;  %1369 = vmatprep.subr.bf16.mxu1 %v1622_v9  ;;  %v1565_v8 = vcombine.low %v470_v61, %v474_v62  ;;  %v1684_v9 = vcombine.high %v589_v3, %v593_v4  ;;  %v1686_v10 = vcombine.high %v590_v5, %v594_v6  ;;  %v537_v61 = vld [vmem:[%s2156_s7 + $0x230] sm:$0xff]  ;;  %v534_v62 = vld [vmem:[%s2156_s7 + $0x218] sm:$0xff] }
  0xa4   : > { %1279 = vmatmul.mubr.bf16.vlgmr.msra.gmra.mxu0 %v2194_v53  ;;  %1320 = vmatmul.mubr.bf16.vlgmr.msra.gmra.mxu1 %v2194_v53 }
  0xa5   : > { %1329 = vmatpush1.bf16.msra.mxu0 %v1619_v14  ;;  %1370 = vmatpush1.bf16.msra.mxu1 %v1621_v15  ;;  %v586_v14 = vld [vmem:[%s2156_s7 + $0x3b8] sm:$0xff]  ;;  %v1683_v15 = vcombine.low %v589_v3, %v593_v4  ;;  %v1627_v4 = vcombine.low %v533_v60, %v537_v61 }
  0xa6   : > { %1330 = vmatprep.subr.bf16.mxu0 %v1612_v16  ;;  %1371 = vmatprep.subr.bf16.mxu1 %v1614_v17  ;;  %v1685_v16 = vcombine.low %v590_v5, %v594_v6  ;;  %v1676_v17 = vcombine.high %v581_v11, %v585_v12  ;;  %v1678_v18 = vcombine.high %v582_v13, %v586_v14 }
  0xa7   : > { %1360 = vmatprep.mubr.bf16.mxu0 %v2200_v57  ;;  %1401 = vmatprep.mubr.bf16.mxu1 %v2200_v57  ;;  %v1597_v57 = vcombine.low %v502_v28, %v506_v29  ;;  %v569_v28 = vld [vmem:[%s2156_s7 + $0x330] sm:$0xff]  ;;  %v566_v29 = vld [vmem:[%s2156_s7 + $0x318] sm:$0xff] }
  0xa9   : > { %1331 = vmatpush1.bf16.msra.mxu0 %v1611_v22  ;;  %1372 = vmatpush1.bf16.msra.mxu1 %v1613_v23  ;;  %v578_v22 = vld [vmem:[%s2156_s7 + $0x378] sm:$0xff]  ;;  %v1675_v23 = vcombine.low %v581_v11, %v585_v12 }
  0xaa   : > { %1332 = vmatprep.subr.bf16.mxu0 %v1604_v24  ;;  %1373 = vmatprep.subr.bf16.mxu1 %v1606_v25  ;;  %v1677_v24 = vcombine.low %v582_v13, %v586_v14  ;;  %v1668_v25 = vcombine.high %v573_v19, %v577_v20  ;;  %v1670_v26 = vcombine.high %v574_v21, %v578_v22 }
  0xad   : > { %1333 = vmatpush1.bf16.msra.mxu0 %v1603_v30  ;;  %1374 = vmatpush1.bf16.msra.mxu1 %v1605_v31  ;;  %v570_v30 = vld [vmem:[%s2156_s7 + $0x338] sm:$0xff]  ;;  %v1667_v31 = vcombine.low %v573_v19, %v577_v20 }
  0xae   : > { %1334 = vmatprep.subr.bf16.mxu0 %v1596_v32  ;;  %1375 = vmatprep.subr.bf16.mxu1 %v1598_v33  ;;  %v1669_v32 = vcombine.low %v574_v21, %v578_v22  ;;  %v1660_v33 = vcombine.high %v565_v27, %v569_v28  ;;  %v1662_v34 = vcombine.high %v566_v29, %v570_v30 }
  0xb1   : > { %1335 = vmatpush1.bf16.msra.mxu0 %v1595_v38  ;;  %1376 = vmatpush1.bf16.msra.mxu1 %v1597_v57  ;;  %v562_v38 = vld [vmem:[%s2156_s7 + $0x2f8] sm:$0xff]  ;;  %v1659_v57 = vcombine.low %v565_v27, %v569_v28 }
  0xb2   : > { %1336 = vmatprep.subr.bf16.mxu0 %v1588_v39  ;;  %1377 = vmatprep.subr.bf16.mxu1 %v1590_v40  ;;  %v1661_v39 = vcombine.low %v566_v29, %v570_v30  ;;  %v1652_v40 = vcombine.high %v557_v35, %v561_v36  ;;  %v1654_v41 = vcombine.high %v558_v37, %v562_v38 }
  0xb5   : > { %1337 = vmatpush1.bf16.msra.mxu0 %v1587_v45  ;;  %1378 = vmatpush1.bf16.msra.mxu1 %v1589_v46  ;;  %v554_v45 = vld [vmem:[%s2156_s7 + $0x2b8] sm:$0xff]  ;;  %v1651_v46 = vcombine.low %v557_v35, %v561_v36 }
  0xb6   : > { %1338 = vmatprep.subr.bf16.mxu0 %v1580_v47  ;;  %1379 = vmatprep.subr.bf16.mxu1 %v1582_v48  ;;  %v1653_v47 = vcombine.low %v558_v37, %v562_v38  ;;  %v1644_v48 = vcombine.high %v549_v42, %v553_v43  ;;  %v1646_v49 = vcombine.high %v550_v44, %v554_v45 }
  0xb9   : > { %1339 = vmatpush1.bf16.msra.mxu0 %v1579_v54  ;;  %1380 = vmatpush1.bf16.msra.mxu1 %v1581_v55  ;;  %v546_v54 = vld [vmem:[%s2156_s7 + $0x278] sm:$0xff]  ;;  %v1643_v55 = vcombine.low %v549_v42, %v553_v43 }
  0xba   : > { %1340 = vmatprep.subr.bf16.mxu0 %v1572_v56  ;;  %1381 = vmatprep.subr.bf16.mxu1 %v1574_v58  ;;  %v1645_v56 = vcombine.low %v550_v44, %v554_v45  ;;  %v1636_v58 = vcombine.high %v541_v50, %v545_v51  ;;  %v1638_v59 = vcombine.high %v542_v52, %v546_v54 }
  0xbd   : > { %1341 = vmatpush1.bf16.msra.mxu0 %v1571_v63  ;;  %1382 = vmatpush1.bf16.msra.mxu1 %v1573_v0  ;;  %v538_v63 = vld [vmem:[%s2156_s7 + $0x238] sm:$0xff]  ;;  %v1635_v0 = vcombine.low %v541_v50, %v545_v51 }
  0xbe   : > { %1342 = vmatprep.subr.bf16.mxu0 %v1564_v1  ;;  %1383 = vmatprep.subr.bf16.mxu1 %v1566_v2  ;;  %v1637_v1 = vcombine.low %v542_v52, %v546_v54  ;;  %v1628_v2 = vcombine.high %v533_v60, %v537_v61  ;;  %v1630_v3 = vcombine.high %v534_v62, %v538_v63 }
  0xbf   : > { %v1629_v5 = vcombine.low %v534_v62, %v538_v63 }
  0xc1   : > { %1343 = vmatpush1.bf16.msra.mxu0 %v1563_v7  ;;  %1384 = vmatpush1.bf16.msra.mxu1 %v1565_v8 }
  0xc2   : > { %1344 = vmatprep.subr.bf16.mxu0 %v1684_v9  ;;  %1385 = vmatprep.subr.bf16.mxu1 %v1686_v10 }
  0xc5   : > { %1345 = vmatpush2.bf16.msra.mxu0 %v1683_v15  ;;  %1386 = vmatpush2.bf16.msra.mxu1 %v1685_v16 }
  0xc6   : > { %1346 = vmatprep.subr.bf16.mxu0 %v1676_v17  ;;  %1387 = vmatprep.subr.bf16.mxu1 %v1678_v18 }
  0xc9   : > { %1347 = vmatpush2.bf16.msra.mxu0 %v1675_v23  ;;  %1388 = vmatpush2.bf16.msra.mxu1 %v1677_v24 }
  0xca   : > { %1348 = vmatprep.subr.bf16.mxu0 %v1668_v25  ;;  %1389 = vmatprep.subr.bf16.mxu1 %v1670_v26 }
  0xcd   : > { %1349 = vmatpush2.bf16.msra.mxu0 %v1667_v31  ;;  %1390 = vmatpush2.bf16.msra.mxu1 %v1669_v32 }
  0xce   : > { %1350 = vmatprep.subr.bf16.mxu0 %v1660_v33  ;;  %1391 = vmatprep.subr.bf16.mxu1 %v1662_v34 }
  0xd1   : > { %1351 = vmatpush2.bf16.msra.mxu0 %v1659_v57  ;;  %1392 = vmatpush2.bf16.msra.mxu1 %v1661_v39 }
  0xd2   : > { %1352 = vmatprep.subr.bf16.mxu0 %v1652_v40  ;;  %1393 = vmatprep.subr.bf16.mxu1 %v1654_v41 }
  0xd5   : > { %1353 = vmatpush2.bf16.msra.mxu0 %v1651_v46  ;;  %1394 = vmatpush2.bf16.msra.mxu1 %v1653_v47 }
  0xd6   : > { %1354 = vmatprep.subr.bf16.mxu0 %v1644_v48  ;;  %1395 = vmatprep.subr.bf16.mxu1 %v1646_v49 }
  0xd9   : > { %1355 = vmatpush2.bf16.msra.mxu0 %v1643_v55  ;;  %1396 = vmatpush2.bf16.msra.mxu1 %v1645_v56 }
  0xda   : > { %1356 = vmatprep.subr.bf16.mxu0 %v1636_v58  ;;  %1397 = vmatprep.subr.bf16.mxu1 %v1638_v59 }
  0xdd   : > { %1357 = vmatpush2.bf16.msra.mxu0 %v1635_v0  ;;  %1398 = vmatpush2.bf16.msra.mxu1 %v1637_v1 }
  0xde   : > { %1358 = vmatprep.subr.bf16.mxu0 %v1628_v2  ;;  %1399 = vmatprep.subr.bf16.mxu1 %v1630_v3 }
  0xe1   : > { %1359 = vmatpush2.bf16.msra.mxu0 %v1627_v4  ;;  %1400 = vmatpush2.bf16.msra.mxu1 %v1629_v5 }
  0xe4   : > { %1361 = vmatmul.mubr.bf16.vlgmr.msra.gmra.mxu0 %v2194_v53  ;;  %1402 = vmatmul.mubr.bf16.vlgmr.msra.gmra.mxu1 %v2194_v53 }
 0x164   : > { %v1280_v6 = vpop.f32.mrf.mxu0  ;;  %v1321_v7 = vpop.f32.mrf.mxu1 }
 0x165   : > { %1746 = vtanh.f32 %v1280_v6 }
 0x166   : > { %1748 = vtanh.f32 %v1321_v7  ;;  %v1282_v8 = vpop.f32.mrf.mxu0  ;;  %v1323_v9 = vpop.f32.mrf.mxu1 }
 0x167   : > { %1750 = vtanh.f32 %v1282_v8 }
 0x168   : > { %1752 = vtanh.f32 %v1323_v9  ;;  %v1284_v10 = vpop.f32.mrf.mxu0  ;;  %v1325_v11 = vpop.f32.mrf.mxu1 }
 0x16a   : > { %v1285_v12 = vpop.f32.mrf.mxu0  ;;  %v1326_v13 = vpop.f32.mrf.mxu1 }
 0x172   : > { %v1747_v14 = vpop.eup %1746 }
 0x173   : > { %v1749_v53 = vpop.eup %1748 }
 0x174   : > { %v1751_v15 = vpop.eup %1750 }
 0x175   : > { %v1753_v16 = vpop.eup %1752  ;;  %v1426_v17 = vcombine.low %v1747_v14, %v1751_v15 }
 0x176   : > { %v1427_v18 = vcombine.low %v1749_v53, %v1753_v16 }
 0x177   : > { %1434 = vst [vmem:[%s464_s26] sm:$0x77] %v1426_v17 }
 0x178   : > { %1435 = vst [vmem:[%s464_s26 + $0x8] sm:$0x77] %v1427_v18 }
 0x1a4   : > { %v1362_v19 = vpop.f32.mrf.mxu0  ;;  %v1403_v20 = vpop.f32.mrf.mxu1 }
 0x1a5   : > { %1754 = vtanh.f32 %v1362_v19 }
 0x1a6   : > { %1756 = vtanh.f32 %v1403_v20  ;;  %v1364_v21 = vpop.f32.mrf.mxu0  ;;  %v1405_v22 = vpop.f32.mrf.mxu1 }
 0x1a7   : > { %1758 = vtanh.f32 %v1364_v21 }
 0x1a8   : > { %1760 = vtanh.f32 %v1405_v22  ;;  %v1366_v23 = vpop.f32.mrf.mxu0  ;;  %v1407_v24 = vpop.f32.mrf.mxu1 }
 0x1aa   : > { %v1367_v25 = vpop.f32.mrf.mxu0  ;;  %v1408_v26 = vpop.f32.mrf.mxu1 }
 0x1b2   : > { %v1755_v27 = vpop.eup %1754 }
 0x1b3   : > { %v1757_v28 = vpop.eup %1756 }
 0x1b4   : > { %v1759_v29 = vpop.eup %1758 }
 0x1b5   : > { %v1761_v30 = vpop.eup %1760  ;;  %v1428_v31 = vcombine.low %v1755_v27, %v1759_v29 }
 0x1b6   : > { %v1429_v32 = vcombine.low %v1757_v28, %v1761_v30 }
 0x1b7   : > { %1436 = vst [vmem:[%s464_s26 + $0x10] sm:$0x77] %v1428_v31 }
 0x1b8   : > { %1437 = vst [vmem:[%s464_s26 + $0x18] sm:$0x77] %v1429_v32 }
 0x1b9 PF: > { %s12_s15 = sadd.s32 1, %s1816_s15   ;;  %s2337_s9 = smov %s1796_s10 }
 0x1ba   : > { %p9_p12 = scmp.ge.s32.totalorder %s12_s15, 10   ;;  %s2338_s10 = smov %s1884_s22 }
 0x1bb   : > { %s2339_s11 = smov %s1808_s13  ;;  %s2340_s12 = smov %s1812_s14 }
 0x1bc   : > { %s2341_s13 = smov %s2344_s16  ;;  %s2342_s14 = smov %s2348_s17 }
 0x1bd   :  { %11 = sbr.rel (!%p9_p12) target bundleno = 4 (0x4), region = 89 }

</bundles_post_ra>
